<compile_context>
chip_gen: v5e
topology: v5e:2x2
jax: 0.10.0
libtpu: 0.0.40
codegen_flags: <defaults>
</compile_context>

<pallas_src>
import functools
import math

import jax
import jax.numpy as jnp
import numpy as np
from jax.experimental import pallas as pl
from jax.experimental.pallas import tpu as pltpu

_VOCAB_TILE = 2048          # logits kernel vocab tile (multiple of 128)
_LOGITS_TOKEN_TILE = 512    # logits kernel token tile


# ---------------------------------------------------------------------------
# VMEM / tiling heuristics (generation-aware)
# ---------------------------------------------------------------------------
def _vmem_capacity():
    try:
        get_info = getattr(pltpu, "get_tpu_info", None)
        if get_info is not None:
            cap = int(getattr(get_info(), "vmem_capacity_bytes", 0) or 0)
            if cap > 0:
                return cap
    except Exception:
        pass
    return 64 << 20  # conservative default (v7x per-TensorCore)


def _fused_weight_bytes(d):
    # Double-buffered per-layer blocks: qkv/w1/w2 bf16 + LN/bias vectors f32.
    return 2 * (11 * d * d * 2 + 16 * d * 4)


def _pick_token_tile(n, d, hd, cap):
    """Largest token tile whose working set fits next to the double-buffered
    per-layer weights in ~70% of VMEM (bigger tile -> weights re-streamed less
    often -> compute-bound)."""
    # TODO(synk): for very large d on v7x (64 MiB VMEM) the weight blocks
    # themselves need hidden-dim tiling; not needed at these model sizes.
    budget = int(cap * 0.70) - _fused_weight_bytes(d)
    tn = n if n < 8 else 8
    for cand in (8, 16, 32, 64, 128, 256, 512, 1024):
        act = 28 * cand * d * 4 + 12 * cand * hd * 4
        if cand <= n and act <= budget:
            tn = cand
    return max(tn, 1)


def _fused_vmem_limit(tn, d, hd, cap):
    need = (_fused_weight_bytes(d) + 32 * tn * d * 4 + 12 * tn * hd * 4
            + (8 << 20))
    return int(min(int(cap * 0.85), max(need, 32 << 20)))


def _logits_vmem_limit(tn, d, tv, cap):
    need = 2 * (tn * d * 4 + d * tv * 2 + tn * tv * 4) + (8 << 20)
    return int(min(int(cap * 0.85), max(need, 32 << 20)))


# ---------------------------------------------------------------------------
# in-kernel helpers
# ---------------------------------------------------------------------------
def _layer_norm(x, w, b, eps=1e-5):
    mu = jnp.mean(x, axis=-1, keepdims=True)
    var = jnp.mean((x - mu) ** 2, axis=-1, keepdims=True)
    return (x - mu) * jax.lax.rsqrt(var + eps) * w + b


def _gelu_exact(x):
    """Exact (erf-based) GELU via the A&S 7.1.26 polynomial, rewritten using
    erf oddness as relu(x) - 0.5*|x|*P(t)*exp(-x^2/2): no sign/abs select,
    divide goes to the EUP via pl.reciprocal(approx=True)."""
    inv_sqrt2 = 0.7071067811865476
    az = jnp.abs(x) * inv_sqrt2
    t = pl.reciprocal(1.0 + 0.3275911 * az, approx=True)
    poly = ((((1.061405429 * t - 1.453152027) * t + 1.421413741) * t
             - 0.284496736) * t + 0.254829592) * t
    # 0.5*|x| == 0.7071... * az
    return jnp.maximum(x, 0.0) - 0.7071067811865476 * az * poly * jnp.exp(-az * az)


def _shift_left(x):
    """y[:, j] = x[:, j+1] (wrap); only used on lanes whose table entry != 0."""
    return jnp.concatenate([x[:, 1:], x[:, :1]], axis=1)


def _shift_right(x):
    """y[:, j] = x[:, j-1] (wrap)."""
    return jnp.concatenate([x[:, -1:], x[:, :-1]], axis=1)


def _tile_heads(t, num_heads):
    # (tn, hd) -> (tn, num_heads*hd) by lane concatenation (no reshape).
    return jnp.concatenate([t] * num_heads, axis=1)


def _split_heads(x, num_heads, hd):
    # (tn, d) -> (tn, H, hd) built from static lane slices (robust lowering).
    return jnp.stack([x[:, i * hd:(i + 1) * hd] for i in range(num_heads)],
                     axis=1)


# ---------------------------------------------------------------------------
# kernels
# ---------------------------------------------------------------------------
def fused_layers_kernel(x_ref, cos_ref, sina_ref, sinb_ref,
                        ln1_w_ref, ln1_b_ref, qkv_w_ref, qkv_b_ref,
                        ln2_w_ref, ln2_b_ref, w1_ref, b1_ref, w2_ref, b2_ref,
                        out_ref, *, num_heads):
    layer = pl.program_id(1)

    # Residual stream carried in the layer-invariant output block (VMEM
    # resident across the whole layer axis): no scratch, no HBM round trips.
    @pl.when(layer == 0)
    def _():
        out_ref[...] = x_ref[...]

    x = out_ref[...]                                    # (TN, D) f32
    tn, d = x.shape
    hd = d // num_heads
    scale = 1.0 / math.sqrt(hd)

    # ---- attention block (pre-norm, residual added after) ----
    h = _layer_norm(x, ln1_w_ref[0], ln1_b_ref[0])
    qkv = jnp.dot(h.astype(jnp.bfloat16), qkv_w_ref[0],
                  preferred_element_type=jnp.float32) + qkv_b_ref[0]
    q, k, v = qkv[:, :d], qkv[:, d:2 * d], qkv[:, 2 * d:]

    # Interleaved-pair RoPE, no widened weights / rotation matrix:
    #   rope(x)[2i]   = x[2i]*cos_i - x[2i+1]*sin_i
    #   rope(x)[2i+1] = x[2i]*sin_i + x[2i+1]*cos_i
    # expressed as x*COS + shift_left(x)*SIN_A + shift_right(x)*SIN_B with the
    # even/odd masks folded into the (TN, hd) tables (broadcast across heads).
    cos_f = _tile_heads(cos_ref[...], num_heads)
    sina_f = _tile_heads(sina_ref[...], num_heads)
    sinb_f = _tile_heads(sinb_ref[...], num_heads)
    q = q * cos_f + _shift_left(q) * sina_f + _shift_right(q) * sinb_f
    k = k * cos_f + _shift_left(k) * sina_f + _shift_right(k) * sinb_f

    # Per-token H x H softmax over the HEADS axis (faithful to the PyTorch
    # reference, which never transposes (B, L, H, hd)).  O(H) segment
    # reductions; head outputs concatenated into one (TN, D) slab.
    q3 = _split_heads(q, num_heads, hd)                 # (TN, H, hd)
    k3 = _split_heads(k, num_heads, hd)
    v3 = _split_heads(v, num_heads, hd)
    head_outs = []
    for hi in range(num_heads):
        s = jnp.sum(q3[:, hi:hi + 1, :] * k3, axis=-1) * scale      # (TN, H)
        s = s - jnp.max(s, axis=-1, keepdims=True)
        e = jnp.exp(s)
        p = e / jnp.sum(e, axis=-1, keepdims=True)                  # exact
        head_outs.append(jnp.sum(p[:, :, None] * v3, axis=1))       # (TN, hd)
    x = x + jnp.concatenate(head_outs, axis=-1)

    # ---- FFN block (pre-norm, residual added after) ----
    h = _layer_norm(x, ln2_w_ref[0], ln2_b_ref[0])
    h = jnp.dot(h.astype(jnp.bfloat16), w1_ref[0],
                preferred_element_type=jnp.float32) + b1_ref[0]
    h = _gelu_exact(h)
    h = jnp.dot(h.astype(jnp.bfloat16), w2_ref[0],
                preferred_element_type=jnp.float32) + b2_ref[0]
    out_ref[...] = x + h


def logits_kernel(x_ref, w_ref, out_ref):
    out_ref[...] = jnp.dot(x_ref[...].astype(jnp.bfloat16), w_ref[...],
                           preferred_element_type=jnp.float32)


# ---------------------------------------------------------------------------
# wrappers (glue)
# ---------------------------------------------------------------------------
def fused_layers(x2d, prep, cos_t, sin_a, sin_b, *, num_heads):
    n, d = x2d.shape
    hd = d // num_heads
    num_layers = prep["qkv_w"].shape[0]
    cap = _vmem_capacity()
    tn = _pick_token_tile(n, d, hd, cap)
    grid = (pl.cdiv(n, tn), num_layers)

    tok2 = lambda i, l: (i, 0)          # resident across the layer axis
    lay3 = lambda i, l: (l, 0, 0)       # streamed per layer

    in_specs = [
        pl.BlockSpec((tn, d), tok2),            # x (read at layer 0 only)
        pl.BlockSpec((tn, hd), tok2),           # cos  (both pair lanes)
        pl.BlockSpec((tn, hd), tok2),           # sinA (-sin on even lanes)
        pl.BlockSpec((tn, hd), tok2),           # sinB (+sin on odd lanes)
        pl.BlockSpec((1, 1, d), lay3),          # ln1_w
        pl.BlockSpec((1, 1, d), lay3),          # ln1_b
        pl.BlockSpec((1, d, 3 * d), lay3),      # qkv_w (bf16)
        pl.BlockSpec((1, 1, 3 * d), lay3),      # qkv_b
        pl.BlockSpec((1, 1, d), lay3),          # ln2_w
        pl.BlockSpec((1, 1, d), lay3),          # ln2_b
        pl.BlockSpec((1, d, 4 * d), lay3),      # w1 (bf16)
        pl.BlockSpec((1, 1, 4 * d), lay3),      # b1
        pl.BlockSpec((1, 4 * d, d), lay3),      # w2 (bf16)
        pl.BlockSpec((1, 1, d), lay3),          # b2
    ]
    out_spec = pl.BlockSpec((tn, d), tok2)      # residual carry + final output

    return pl.pallas_call(
        functools.partial(fused_layers_kernel, num_heads=num_heads),
        out_shape=jax.ShapeDtypeStruct((n, d), jnp.float32),
        grid_spec=pltpu.PrefetchScalarGridSpec(
            num_scalar_prefetch=0,
            grid=grid,
            in_specs=in_specs,
            out_specs=out_spec),
        compiler_params=pltpu.CompilerParams(
            dimension_semantics=("parallel", "arbitrary"),
            vmem_limit_bytes=_fused_vmem_limit(tn, d, hd, cap)),
    )(x2d, cos_t, sin_a, sin_b,
      prep["ln1_w"], prep["ln1_b"], prep["qkv_w"], prep["qkv_b"],
      prep["ln2_w"], prep["ln2_b"], prep["w1"], prep["b1"],
      prep["w2"], prep["b2"])


def output_logits(x2d, w_bf16):
    n, d = x2d.shape
    v = w_bf16.shape[1]
    cap = _vmem_capacity()
    tn = n if n <= _LOGITS_TOKEN_TILE else _LOGITS_TOKEN_TILE
    tv = v if v <= _VOCAB_TILE else _VOCAB_TILE
    # Vocab axis outermost: each (D, tv) weight block is DMA'd once while the
    # (much smaller) activation tile is re-streamed.
    grid = (pl.cdiv(v, tv), pl.cdiv(n, tn))

    return pl.pallas_call(
        logits_kernel,
        out_shape=jax.ShapeDtypeStruct((n, v), jnp.float32),
        grid_spec=pltpu.PrefetchScalarGridSpec(
            num_scalar_prefetch=0,
            grid=grid,
            in_specs=[pl.BlockSpec((tn, d), lambda j, i: (i, 0)),
                      pl.BlockSpec((d, tv), lambda j, i: (0, j))],
            out_specs=pl.BlockSpec((tn, tv), lambda j, i: (i, j))),
        compiler_params=pltpu.CompilerParams(
            dimension_semantics=("parallel", "parallel"),
            vmem_limit_bytes=_logits_vmem_limit(tn, d, tv, cap)),
    )(x2d, w_bf16)


def _rope_tables(b, l, hd):
    """Tiny (B*L, hd) RoPE tables with the interleaved even/odd masks folded
    in:  COS = [c0,c0,c1,c1,...], SIN_A = [-s0,0,-s1,0,...],
    SIN_B = [0,s0,0,s1,...]."""
    inv_freq = 1.0 / (10000.0 ** (jnp.arange(0, hd, 2, dtype=jnp.float32) / hd))
    pos = jnp.arange(l, dtype=jnp.float32)
    freqs = pos[:, None] * inv_freq[None, :]                 # (L, hd//2)
    cos = jnp.cos(freqs)
    sin = jnp.sin(freqs)
    zeros = jnp.zeros_like(sin)
    cos_t = jnp.stack([cos, cos], axis=-1).reshape(l, hd)
    sin_a = jnp.stack([-sin, zeros], axis=-1).reshape(l, hd)
    sin_b = jnp.stack([zeros, sin], axis=-1).reshape(l, hd)
    tile_b = lambda t: jnp.tile(t, (b, 1))                   # (B*L, hd)
    return tile_b(cos_t), tile_b(sin_a), tile_b(sin_b)


def prepare_params(emb, layer_params):
    """Stack per-layer params and cast matmul weights to bf16 (f32 accumulation
    happens in-kernel).  Done once, outside jit."""
    stack = lambda name: jnp.stack([p[name] for p in layer_params])
    return dict(
        ln1_w=stack("ln1_w"), ln1_b=stack("ln1_b"),
        qkv_w=stack("qkv_w").astype(jnp.bfloat16), qkv_b=stack("qkv_b"),
        ln2_w=stack("ln2_w"), ln2_b=stack("ln2_b"),
        w1=stack("w1").astype(jnp.bfloat16), b1=stack("b1"),
        w2=stack("w2").astype(jnp.bfloat16), b2=stack("b2"),
        out_w=emb.T.astype(jnp.bfloat16),                 # weight-tied logits
    )


def transformer_forward(input_ids, emb, prep, *, num_heads):
    b, l = input_ids.shape
    v, d = emb.shape
    hd = d // num_heads
    # TODO(synk): the embedding gather (dynamic token-id lookup) stays in JAX
    # glue; LN / QKV / RoPE / attention / FFN / tied logits run in Pallas.
    x = emb[input_ids].reshape(b * l, d).astype(jnp.float32)
    cos_t, sin_a, sin_b = _rope_tables(b, l, hd)
    x = fused_layers(x, prep, cos_t, sin_a, sin_b, num_heads=num_heads)
    logits = output_logits(x, prep["out_w"])
    return logits.reshape(b, l, v)


# ---------------------------------------------------------------------------
# pure-JAX f32 reference (mirrors the PyTorch module exactly) for validation
# ---------------------------------------------------------------------------
def _rope_ref(x, sin, cos):                                  # x: (B,L,H,hd)
    b, l, h, hd = x.shape
    xr = x.reshape(b, l, h, hd // 2, 2)
    x1, x2 = xr[..., 0], xr[..., 1]
    s = sin[None, :l, None, :]
    c = cos[None, :l, None, :]
    out = jnp.stack([x1 * c - x2 * s, x1 * s + x2 * c], axis=-1)
    return out.reshape(b, l, h, hd)


def reference_forward(input_ids, emb, layer_params, *, num_heads):
    b, l = input_ids.shape
    v, d = emb.shape
    hd = d // num_heads
    inv_freq = 1.0 / (10000.0 ** (jnp.arange(0, hd, 2, dtype=jnp.float32) / hd))
    pos = jnp.arange(l, dtype=jnp.float32)
    freqs = pos[:, None] * inv_freq[None, :]
    sin, cos = jnp.sin(freqs), jnp.cos(freqs)

    x = emb[input_ids].astype(jnp.float32)
    for p in layer_params:
        res = x
        h = _layer_norm(x, p["ln1_w"][0], p["ln1_b"][0])
        qkv = h @ p["qkv_w"] + p["qkv_b"][0]
        q, k, vv = jnp.split(qkv, 3, axis=-1)
        q = _rope_ref(q.reshape(b, l, num_heads, hd), sin, cos)
        k = _rope_ref(k.reshape(b, l, num_heads, hd), sin, cos)
        vv = vv.reshape(b, l, num_heads, hd)
        attn = jnp.einsum("blhd,blgd->blhg", q, k) / math.sqrt(hd)
        attn = jax.nn.softmax(attn, axis=-1)
        out = jnp.einsum("blhg,blgd->blhd", attn, vv).reshape(b, l, d)
        x = out + res
        res = x
        h = _layer_norm(x, p["ln2_w"][0], p["ln2_b"][0])
        h = h @ p["w1"] + p["b1"][0]
        h = jax.nn.gelu(h, approximate=False)
        h = h @ p["w2"] + p["b2"][0]
        x = h + res
    return x @ emb.T


# ---------------------------------------------------------------------------
# deterministic parameter init (non-trivial biases/LN params so those paths
# are actually exercised)
# ---------------------------------------------------------------------------
def init_params(key, vocab_size, dim, num_layers):
    keys = jax.random.split(key, 1 + num_layers)
    emb = jax.random.normal(keys[0], (vocab_size, dim), jnp.float32) * 0.02
    layers = []
    for li in range(num_layers):
        k = jax.random.split(keys[1 + li], 10)
        layers.append(dict(
            ln1_w=1.0 + 0.1 * jax.random.normal(k[0], (1, dim), jnp.float32),
            ln1_b=0.05 * jax.random.normal(k[1], (1, dim), jnp.float32),
            qkv_w=jax.random.normal(k[2], (dim, 3 * dim), jnp.float32) * 0.02,
            qkv_b=0.02 * jax.random.normal(k[3], (1, 3 * dim), jnp.float32),
            ln2_w=1.0 + 0.1 * jax.random.normal(k[4], (1, dim), jnp.float32),
            ln2_b=0.05 * jax.random.normal(k[5], (1, dim), jnp.float32),
            w1=jax.random.normal(k[6], (dim, 4 * dim), jnp.float32) * 0.02,
            b1=0.02 * jax.random.normal(k[7], (1, 4 * dim), jnp.float32),
            w2=jax.random.normal(k[8], (4 * dim, dim), jnp.float32) * 0.02,
            b2=0.02 * jax.random.normal(k[9], (1, dim), jnp.float32),
        ))
    return emb, layers


if __name__ == "__main__":
    # small TransformerConfig-consistent shapes
    VOCAB, DIM, LAYERS, HEADS = 256, 128, 2, 4
    B, L = 2, 8

    key = jax.random.PRNGKey(0)
    k_ids, k_params = jax.random.split(key)
    emb, layer_params = init_params(k_params, VOCAB, DIM, LAYERS)
    input_ids = jax.random.randint(k_ids, (B, L), 0, VOCAB, dtype=jnp.int32)

    prep = prepare_params(emb, layer_params)
    fwd = jax.jit(functools.partial(transformer_forward, num_heads=HEADS))
    logits = fwd(input_ids, emb, prep)
    jax.block_until_ready(logits)
    assert logits.shape == (B, L, VOCAB)

    # f32 reference with full-precision matmuls; bf16 matmul inputs in the
    # kernel (f32 accumulation) + approx reciprocal in GELU => loose-ish tol.
    with jax.default_matmul_precision("float32"):
        ref = reference_forward(input_ids, emb, layer_params, num_heads=HEADS)
        ref = jax.block_until_ready(ref)
    np.testing.assert_allclose(np.asarray(logits), np.asarray(ref),
                               rtol=5e-2, atol=1e-2)
    print("KERNEL_OK")
</pallas_src>

<mosaic_0001>
module attributes {stable_mosaic.version = 11 : i64} {
  func.func @fused_layers_kernel(%arg0: i32, %arg1: i32, %arg2: memref<16x128xf32, #tpu.memory_space<vmem>>, %arg3: memref<16x32xf32, #tpu.memory_space<vmem>>, %arg4: memref<16x32xf32, #tpu.memory_space<vmem>>, %arg5: memref<16x32xf32, #tpu.memory_space<vmem>>, %arg6: memref<1x1x128xf32, #tpu.memory_space<vmem>>, %arg7: memref<1x1x128xf32, #tpu.memory_space<vmem>>, %arg8: memref<1x128x384xbf16, #tpu.memory_space<vmem>>, %arg9: memref<1x1x384xf32, #tpu.memory_space<vmem>>, %arg10: memref<1x1x128xf32, #tpu.memory_space<vmem>>, %arg11: memref<1x1x128xf32, #tpu.memory_space<vmem>>, %arg12: memref<1x128x512xbf16, #tpu.memory_space<vmem>>, %arg13: memref<1x1x512xf32, #tpu.memory_space<vmem>>, %arg14: memref<1x512x128xbf16, #tpu.memory_space<vmem>>, %arg15: memref<1x1x128xf32, #tpu.memory_space<vmem>>, %arg16: memref<16x128xf32, #tpu.memory_space<vmem>>) attributes {dimension_semantics = [#tpu.dimension_semantics<parallel>, #tpu.dimension_semantics<arbitrary>], iteration_bounds = array<i64: 1, 2>, scalar_prefetch = 0 : i64, scratch_operands = 0 : i64, tpu.core_type = #tpu.core_type<tc>, window_params = [{transform_indices = @transform_0, window_bounds = array<i64: 16, 128>}, {transform_indices = @transform_1, window_bounds = array<i64: 16, 32>}, {transform_indices = @transform_2, window_bounds = array<i64: 16, 32>}, {transform_indices = @transform_3, window_bounds = array<i64: 16, 32>}, {transform_indices = @transform_4, window_bounds = array<i64: 1, 1, 128>}, {transform_indices = @transform_5, window_bounds = array<i64: 1, 1, 128>}, {transform_indices = @transform_6, window_bounds = array<i64: 1, 128, 384>}, {transform_indices = @transform_7, window_bounds = array<i64: 1, 1, 384>}, {transform_indices = @transform_8, window_bounds = array<i64: 1, 1, 128>}, {transform_indices = @transform_9, window_bounds = array<i64: 1, 1, 128>}, {transform_indices = @transform_10, window_bounds = array<i64: 1, 128, 512>}, {transform_indices = @transform_11, window_bounds = array<i64: 1, 1, 512>}, {transform_indices = @transform_12, window_bounds = array<i64: 1, 512, 128>}, {transform_indices = @transform_13, window_bounds = array<i64: 1, 1, 128>}, {transform_indices = @transform_14, window_bounds = array<i64: 16, 128>}]} {
    %c0_i32 = arith.constant 0 : i32
    %0 = arith.cmpi eq, %arg1, %c0_i32 : i32
    %1 = arith.extui %0 : i1 to i32
    %c0_i32_0 = arith.constant 0 : i32
    %2 = arith.cmpi ne, %1, %c0_i32_0 : i32
    scf.if %2 {
      %c0_83 = arith.constant 0 : index
      %c0_84 = arith.constant 0 : index
      %251 = vector.load %arg2[%c0_83, %c0_84] : memref<16x128xf32, #tpu.memory_space<vmem>>, vector<16x128xf32>
      %c0_85 = arith.constant 0 : index
      %c0_86 = arith.constant 0 : index
      %252 = vector.load %arg16[%c0_85, %c0_86] : memref<16x128xf32, #tpu.memory_space<vmem>>, vector<16x128xf32>
      tpu.vector_store %arg16[%c0_85, %c0_86], %251 {strides = array<i32>} : memref<16x128xf32, #tpu.memory_space<vmem>>, vector<16x128xf32>,
    } else {
    }
    %c0 = arith.constant 0 : index
    %c0_1 = arith.constant 0 : index
    %3 = vector.load %arg16[%c0, %c0_1] : memref<16x128xf32, #tpu.memory_space<vmem>>, vector<16x128xf32>
    %c0_2 = arith.constant 0 : index
    %c0_3 = arith.constant 0 : index
    %c0_4 = arith.constant 0 : index
    %4 = vector.load %arg6[%c0_2, %c0_3, %c0_4] : memref<1x1x128xf32, #tpu.memory_space<vmem>>, vector<1x1x128xf32>
    %5 = vector.shape_cast %4 : vector<1x1x128xf32> to vector<1x128xf32>
    %c0_5 = arith.constant 0 : index
    %c0_6 = arith.constant 0 : index
    %c0_7 = arith.constant 0 : index
    %6 = vector.load %arg7[%c0_5, %c0_6, %c0_7] : memref<1x1x128xf32, #tpu.memory_space<vmem>>, vector<1x1x128xf32>
    %7 = vector.shape_cast %6 : vector<1x1x128xf32> to vector<1x128xf32>
    %cst = arith.constant dense<0.000000e+00> : vector<16xf32>
    %8 = vector.multi_reduction <add>, %3, %cst [1] : vector<16x128xf32> to vector<16xf32>
    %9 = vector.shape_cast %8 : vector<16xf32> to vector<16x1xf32>
    %cst_8 = arith.constant 1.280000e+02 : f32
    %10 = vector.broadcast %cst_8 : f32 to vector<16x1xf32>
    %11 = arith.divf %9, %10 : vector<16x1xf32>
    %12 = vector.broadcast %11 : vector<16x1xf32> to vector<16x128xf32>
    %13 = arith.subf %3, %12 : vector<16x128xf32>
    %14 = arith.mulf %13, %13 : vector<16x128xf32>
    %cst_9 = arith.constant dense<0.000000e+00> : vector<16xf32>
    %15 = vector.multi_reduction <add>, %14, %cst_9 [1] : vector<16x128xf32> to vector<16xf32>
    %16 = vector.shape_cast %15 : vector<16xf32> to vector<16x1xf32>
    %cst_10 = arith.constant 1.280000e+02 : f32
    %17 = vector.broadcast %cst_10 : f32 to vector<16x1xf32>
    %18 = arith.divf %16, %17 : vector<16x1xf32>
    %19 = vector.broadcast %11 : vector<16x1xf32> to vector<16x128xf32>
    %20 = arith.subf %3, %19 : vector<16x128xf32>
    %cst_11 = arith.constant 9.99999974E-6 : f32
    %21 = vector.broadcast %cst_11 : f32 to vector<16x1xf32>
    %22 = arith.addf %18, %21 : vector<16x1xf32>
    %23 = math.rsqrt %22 : vector<16x1xf32>
    %24 = vector.broadcast %23 : vector<16x1xf32> to vector<16x128xf32>
    %25 = arith.mulf %20, %24 : vector<16x128xf32>
    %26 = vector.broadcast %5 : vector<1x128xf32> to vector<16x128xf32>
    %27 = arith.mulf %25, %26 : vector<16x128xf32>
    %28 = vector.broadcast %7 : vector<1x128xf32> to vector<16x128xf32>
    %29 = arith.addf %27, %28 : vector<16x128xf32>
    %30 = arith.truncf %29 : vector<16x128xf32> to vector<16x128xbf16>
    %c0_12 = arith.constant 0 : index
    %c0_13 = arith.constant 0 : index
    %c0_14 = arith.constant 0 : index
    %31 = vector.load %arg8[%c0_12, %c0_13, %c0_14] : memref<1x128x384xbf16, #tpu.memory_space<vmem>>, vector<1x128x384xbf16>
    %32 = vector.shape_cast %31 : vector<1x128x384xbf16> to vector<128x384xbf16>
    %cst_15 = arith.constant dense<0.000000e+00> : vector<16x384xf32>
    %33 = tpu.matmul %30, %32, %cst_15 {dimension_numbers = #tpu.dot_dimension_numbers<[1], [0], [0], [1], [0, 0, 1, 1], [], []>} : vector<16x128xbf16>, vector<128x384xbf16>, vector<16x384xf32> -> vector<16x384xf32>
    %c0_16 = arith.constant 0 : index
    %c0_17 = arith.constant 0 : index
    %c0_18 = arith.constant 0 : index
    %34 = vector.load %arg9[%c0_16, %c0_17, %c0_18] : memref<1x1x384xf32, #tpu.memory_space<vmem>>, vector<1x1x384xf32>
    %35 = vector.shape_cast %34 : vector<1x1x384xf32> to vector<1x384xf32>
    %36 = vector.broadcast %35 : vector<1x384xf32> to vector<16x384xf32>
    %37 = arith.addf %33, %36 : vector<16x384xf32>
    %38 = vector.extract_strided_slice %37 {offsets = [0, 0], sizes = [16, 128], strides = [1, 1]} : vector<16x384xf32> to vector<16x128xf32>
    %39 = vector.extract_strided_slice %37 {offsets = [0, 128], sizes = [16, 128], strides = [1, 1]} : vector<16x384xf32> to vector<16x128xf32>
    %40 = vector.extract_strided_slice %37 {offsets = [0, 256], sizes = [16, 128], strides = [1, 1]} : vector<16x384xf32> to vector<16x128xf32>
    %c0_19 = arith.constant 0 : index
    %c0_20 = arith.constant 0 : index
    %41 = vector.load %arg3[%c0_19, %c0_20] : memref<16x32xf32, #tpu.memory_space<vmem>>, vector<16x32xf32>
    %42 = tpu.concatenate %41, %41, %41, %41 in 1 : vector<16x32xf32>, vector<16x32xf32>, vector<16x32xf32>, vector<16x32xf32> -> vector<16x128xf32>
    %c0_21 = arith.constant 0 : index
    %c0_22 = arith.constant 0 : index
    %43 = vector.load %arg4[%c0_21, %c0_22] : memref<16x32xf32, #tpu.memory_space<vmem>>, vector<16x32xf32>
    %44 = tpu.concatenate %43, %43, %43, %43 in 1 : vector<16x32xf32>, vector<16x32xf32>, vector<16x32xf32>, vector<16x32xf32> -> vector<16x128xf32>
    %c0_23 = arith.constant 0 : index
    %c0_24 = arith.constant 0 : index
    %45 = vector.load %arg5[%c0_23, %c0_24] : memref<16x32xf32, #tpu.memory_space<vmem>>, vector<16x32xf32>
    %46 = tpu.concatenate %45, %45, %45, %45 in 1 : vector<16x32xf32>, vector<16x32xf32>, vector<16x32xf32>, vector<16x32xf32> -> vector<16x128xf32>
    %47 = arith.mulf %38, %42 : vector<16x128xf32>
    %48 = vector.extract_strided_slice %38 {offsets = [0, 1], sizes = [16, 127], strides = [1, 1]} : vector<16x128xf32> to vector<16x127xf32>
    %49 = vector.extract_strided_slice %38 {offsets = [0, 0], sizes = [16, 1], strides = [1, 1]} : vector<16x128xf32> to vector<16x1xf32>
    %50 = tpu.concatenate %48, %49 in 1 : vector<16x127xf32>, vector<16x1xf32> -> vector<16x128xf32>
    %51 = arith.mulf %50, %44 : vector<16x128xf32>
    %52 = arith.addf %47, %51 : vector<16x128xf32>
    %53 = vector.extract_strided_slice %38 {offsets = [0, 127], sizes = [16, 1], strides = [1, 1]} : vector<16x128xf32> to vector<16x1xf32>
    %54 = vector.extract_strided_slice %38 {offsets = [0, 0], sizes = [16, 127], strides = [1, 1]} : vector<16x128xf32> to vector<16x127xf32>
    %55 = tpu.concatenate %53, %54 in 1 : vector<16x1xf32>, vector<16x127xf32> -> vector<16x128xf32>
    %56 = arith.mulf %55, %46 : vector<16x128xf32>
    %57 = arith.addf %52, %56 : vector<16x128xf32>
    %58 = arith.mulf %39, %42 : vector<16x128xf32>
    %59 = vector.extract_strided_slice %39 {offsets = [0, 1], sizes = [16, 127], strides = [1, 1]} : vector<16x128xf32> to vector<16x127xf32>
    %60 = vector.extract_strided_slice %39 {offsets = [0, 0], sizes = [16, 1], strides = [1, 1]} : vector<16x128xf32> to vector<16x1xf32>
    %61 = tpu.concatenate %59, %60 in 1 : vector<16x127xf32>, vector<16x1xf32> -> vector<16x128xf32>
    %62 = arith.mulf %61, %44 : vector<16x128xf32>
    %63 = arith.addf %58, %62 : vector<16x128xf32>
    %64 = vector.extract_strided_slice %39 {offsets = [0, 127], sizes = [16, 1], strides = [1, 1]} : vector<16x128xf32> to vector<16x1xf32>
    %65 = vector.extract_strided_slice %39 {offsets = [0, 0], sizes = [16, 127], strides = [1, 1]} : vector<16x128xf32> to vector<16x127xf32>
    %66 = tpu.concatenate %64, %65 in 1 : vector<16x1xf32>, vector<16x127xf32> -> vector<16x128xf32>
    %67 = arith.mulf %66, %46 : vector<16x128xf32>
    %68 = arith.addf %63, %67 : vector<16x128xf32>
    %69 = vector.extract_strided_slice %57 {offsets = [0, 0], sizes = [16, 32], strides = [1, 1]} : vector<16x128xf32> to vector<16x32xf32>
    %70 = vector.extract_strided_slice %57 {offsets = [0, 32], sizes = [16, 32], strides = [1, 1]} : vector<16x128xf32> to vector<16x32xf32>
    %71 = vector.extract_strided_slice %57 {offsets = [0, 64], sizes = [16, 32], strides = [1, 1]} : vector<16x128xf32> to vector<16x32xf32>
    %72 = vector.extract_strided_slice %57 {offsets = [0, 96], sizes = [16, 32], strides = [1, 1]} : vector<16x128xf32> to vector<16x32xf32>
    %73 = vector.shape_cast %69 : vector<16x32xf32> to vector<16x1x32xf32>
    %74 = vector.shape_cast %70 : vector<16x32xf32> to vector<16x1x32xf32>
    %75 = vector.shape_cast %71 : vector<16x32xf32> to vector<16x1x32xf32>
    %76 = vector.shape_cast %72 : vector<16x32xf32> to vector<16x1x32xf32>
    %77 = tpu.concatenate %73, %74, %75, %76 in 1 : vector<16x1x32xf32>, vector<16x1x32xf32>, vector<16x1x32xf32>, vector<16x1x32xf32> -> vector<16x4x32xf32>
    %78 = vector.extract_strided_slice %68 {offsets = [0, 0], sizes = [16, 32], strides = [1, 1]} : vector<16x128xf32> to vector<16x32xf32>
    %79 = vector.extract_strided_slice %68 {offsets = [0, 32], sizes = [16, 32], strides = [1, 1]} : vector<16x128xf32> to vector<16x32xf32>
    %80 = vector.extract_strided_slice %68 {offsets = [0, 64], sizes = [16, 32], strides = [1, 1]} : vector<16x128xf32> to vector<16x32xf32>
    %81 = vector.extract_strided_slice %68 {offsets = [0, 96], sizes = [16, 32], strides = [1, 1]} : vector<16x128xf32> to vector<16x32xf32>
    %82 = vector.shape_cast %78 : vector<16x32xf32> to vector<16x1x32xf32>
    %83 = vector.shape_cast %79 : vector<16x32xf32> to vector<16x1x32xf32>
    %84 = vector.shape_cast %80 : vector<16x32xf32> to vector<16x1x32xf32>
    %85 = vector.shape_cast %81 : vector<16x32xf32> to vector<16x1x32xf32>
    %86 = tpu.concatenate %82, %83, %84, %85 in 1 : vector<16x1x32xf32>, vector<16x1x32xf32>, vector<16x1x32xf32>, vector<16x1x32xf32> -> vector<16x4x32xf32>
    %87 = vector.extract_strided_slice %40 {offsets = [0, 0], sizes = [16, 32], strides = [1, 1]} : vector<16x128xf32> to vector<16x32xf32>
    %88 = vector.extract_strided_slice %40 {offsets = [0, 32], sizes = [16, 32], strides = [1, 1]} : vector<16x128xf32> to vector<16x32xf32>
    %89 = vector.extract_strided_slice %40 {offsets = [0, 64], sizes = [16, 32], strides = [1, 1]} : vector<16x128xf32> to vector<16x32xf32>
    %90 = vector.extract_strided_slice %40 {offsets = [0, 96], sizes = [16, 32], strides = [1, 1]} : vector<16x128xf32> to vector<16x32xf32>
    %91 = vector.shape_cast %87 : vector<16x32xf32> to vector<16x1x32xf32>
    %92 = vector.shape_cast %88 : vector<16x32xf32> to vector<16x1x32xf32>
    %93 = vector.shape_cast %89 : vector<16x32xf32> to vector<16x1x32xf32>
    %94 = vector.shape_cast %90 : vector<16x32xf32> to vector<16x1x32xf32>
    %95 = tpu.concatenate %91, %92, %93, %94 in 1 : vector<16x1x32xf32>, vector<16x1x32xf32>, vector<16x1x32xf32>, vector<16x1x32xf32> -> vector<16x4x32xf32>
    %96 = vector.extract_strided_slice %77 {offsets = [0, 0, 0], sizes = [16, 1, 32], strides = [1, 1, 1]} : vector<16x4x32xf32> to vector<16x1x32xf32>
    %97 = vector.broadcast %96 : vector<16x1x32xf32> to vector<16x4x32xf32>
    %98 = arith.mulf %97, %86 : vector<16x4x32xf32>
    %cst_25 = arith.constant dense<0.000000e+00> : vector<16x4xf32>
    %99 = vector.multi_reduction <add>, %98, %cst_25 [2] : vector<16x4x32xf32> to vector<16x4xf32>
    %cst_26 = arith.constant 0.176776692 : f32
    %100 = vector.broadcast %cst_26 : f32 to vector<16x4xf32>
    %101 = arith.mulf %99, %100 : vector<16x4xf32>
    %cst_27 = arith.constant dense<0xFF800000> : vector<16xf32>
    %102 = vector.multi_reduction <maximumf>, %101, %cst_27 [1] : vector<16x4xf32> to vector<16xf32>
    %103 = vector.shape_cast %102 : vector<16xf32> to vector<16x1xf32>
    %104 = vector.broadcast %103 : vector<16x1xf32> to vector<16x4xf32>
    %105 = arith.subf %101, %104 : vector<16x4xf32>
    %106 = math.exp %105 : vector<16x4xf32>
    %cst_28 = arith.constant dense<0.000000e+00> : vector<16xf32>
    %107 = vector.multi_reduction <add>, %106, %cst_28 [1] : vector<16x4xf32> to vector<16xf32>
    %108 = vector.shape_cast %107 : vector<16xf32> to vector<16x1xf32>
    %109 = vector.broadcast %108 : vector<16x1xf32> to vector<16x4xf32>
    %110 = arith.divf %106, %109 : vector<16x4xf32>
    %111 = vector.shape_cast %110 : vector<16x4xf32> to vector<16x4x1xf32>
    %112 = vector.broadcast %111 : vector<16x4x1xf32> to vector<16x4x32xf32>
    %113 = arith.mulf %112, %95 : vector<16x4x32xf32>
    %cst_29 = arith.constant dense<0.000000e+00> : vector<16x32xf32>
    %114 = vector.multi_reduction <add>, %113, %cst_29 [1] : vector<16x4x32xf32> to vector<16x32xf32>
    %115 = vector.extract_strided_slice %77 {offsets = [0, 1, 0], sizes = [16, 1, 32], strides = [1, 1, 1]} : vector<16x4x32xf32> to vector<16x1x32xf32>
    %116 = vector.broadcast %115 : vector<16x1x32xf32> to vector<16x4x32xf32>
    %117 = arith.mulf %116, %86 : vector<16x4x32xf32>
    %cst_30 = arith.constant dense<0.000000e+00> : vector<16x4xf32>
    %118 = vector.multi_reduction <add>, %117, %cst_30 [2] : vector<16x4x32xf32> to vector<16x4xf32>
    %cst_31 = arith.constant 0.176776692 : f32
    %119 = vector.broadcast %cst_31 : f32 to vector<16x4xf32>
    %120 = arith.mulf %118, %119 : vector<16x4xf32>
    %cst_32 = arith.constant dense<0xFF800000> : vector<16xf32>
    %121 = vector.multi_reduction <maximumf>, %120, %cst_32 [1] : vector<16x4xf32> to vector<16xf32>
    %122 = vector.shape_cast %121 : vector<16xf32> to vector<16x1xf32>
    %123 = vector.broadcast %122 : vector<16x1xf32> to vector<16x4xf32>
    %124 = arith.subf %120, %123 : vector<16x4xf32>
    %125 = math.exp %124 : vector<16x4xf32>
    %cst_33 = arith.constant dense<0.000000e+00> : vector<16xf32>
    %126 = vector.multi_reduction <add>, %125, %cst_33 [1] : vector<16x4xf32> to vector<16xf32>
    %127 = vector.shape_cast %126 : vector<16xf32> to vector<16x1xf32>
    %128 = vector.broadcast %127 : vector<16x1xf32> to vector<16x4xf32>
    %129 = arith.divf %125, %128 : vector<16x4xf32>
    %130 = vector.shape_cast %129 : vector<16x4xf32> to vector<16x4x1xf32>
    %131 = vector.broadcast %130 : vector<16x4x1xf32> to vector<16x4x32xf32>
    %132 = arith.mulf %131, %95 : vector<16x4x32xf32>
    %cst_34 = arith.constant dense<0.000000e+00> : vector<16x32xf32>
    %133 = vector.multi_reduction <add>, %132, %cst_34 [1] : vector<16x4x32xf32> to vector<16x32xf32>
    %134 = vector.extract_strided_slice %77 {offsets = [0, 2, 0], sizes = [16, 1, 32], strides = [1, 1, 1]} : vector<16x4x32xf32> to vector<16x1x32xf32>
    %135 = vector.broadcast %134 : vector<16x1x32xf32> to vector<16x4x32xf32>
    %136 = arith.mulf %135, %86 : vector<16x4x32xf32>
    %cst_35 = arith.constant dense<0.000000e+00> : vector<16x4xf32>
    %137 = vector.multi_reduction <add>, %136, %cst_35 [2] : vector<16x4x32xf32> to vector<16x4xf32>
    %cst_36 = arith.constant 0.176776692 : f32
    %138 = vector.broadcast %cst_36 : f32 to vector<16x4xf32>
    %139 = arith.mulf %137, %138 : vector<16x4xf32>
    %cst_37 = arith.constant dense<0xFF800000> : vector<16xf32>
    %140 = vector.multi_reduction <maximumf>, %139, %cst_37 [1] : vector<16x4xf32> to vector<16xf32>
    %141 = vector.shape_cast %140 : vector<16xf32> to vector<16x1xf32>
    %142 = vector.broadcast %141 : vector<16x1xf32> to vector<16x4xf32>
    %143 = arith.subf %139, %142 : vector<16x4xf32>
    %144 = math.exp %143 : vector<16x4xf32>
    %cst_38 = arith.constant dense<0.000000e+00> : vector<16xf32>
    %145 = vector.multi_reduction <add>, %144, %cst_38 [1] : vector<16x4xf32> to vector<16xf32>
    %146 = vector.shape_cast %145 : vector<16xf32> to vector<16x1xf32>
    %147 = vector.broadcast %146 : vector<16x1xf32> to vector<16x4xf32>
    %148 = arith.divf %144, %147 : vector<16x4xf32>
    %149 = vector.shape_cast %148 : vector<16x4xf32> to vector<16x4x1xf32>
    %150 = vector.broadcast %149 : vector<16x4x1xf32> to vector<16x4x32xf32>
    %151 = arith.mulf %150, %95 : vector<16x4x32xf32>
    %cst_39 = arith.constant dense<0.000000e+00> : vector<16x32xf32>
    %152 = vector.multi_reduction <add>, %151, %cst_39 [1] : vector<16x4x32xf32> to vector<16x32xf32>
    %153 = vector.extract_strided_slice %77 {offsets = [0, 3, 0], sizes = [16, 1, 32], strides = [1, 1, 1]} : vector<16x4x32xf32> to vector<16x1x32xf32>
    %154 = vector.broadcast %153 : vector<16x1x32xf32> to vector<16x4x32xf32>
    %155 = arith.mulf %154, %86 : vector<16x4x32xf32>
    %cst_40 = arith.constant dense<0.000000e+00> : vector<16x4xf32>
    %156 = vector.multi_reduction <add>, %155, %cst_40 [2] : vector<16x4x32xf32> to vector<16x4xf32>
    %cst_41 = arith.constant 0.176776692 : f32
    %157 = vector.broadcast %cst_41 : f32 to vector<16x4xf32>
    %158 = arith.mulf %156, %157 : vector<16x4xf32>
    %cst_42 = arith.constant dense<0xFF800000> : vector<16xf32>
    %159 = vector.multi_reduction <maximumf>, %158, %cst_42 [1] : vector<16x4xf32> to vector<16xf32>
    %160 = vector.shape_cast %159 : vector<16xf32> to vector<16x1xf32>
    %161 = vector.broadcast %160 : vector<16x1xf32> to vector<16x4xf32>
    %162 = arith.subf %158, %161 : vector<16x4xf32>
    %163 = math.exp %162 : vector<16x4xf32>
    %cst_43 = arith.constant dense<0.000000e+00> : vector<16xf32>
    %164 = vector.multi_reduction <add>, %163, %cst_43 [1] : vector<16x4xf32> to vector<16xf32>
    %165 = vector.shape_cast %164 : vector<16xf32> to vector<16x1xf32>
    %166 = vector.broadcast %165 : vector<16x1xf32> to vector<16x4xf32>
    %167 = arith.divf %163, %166 : vector<16x4xf32>
    %168 = vector.shape_cast %167 : vector<16x4xf32> to vector<16x4x1xf32>
    %169 = vector.broadcast %168 : vector<16x4x1xf32> to vector<16x4x32xf32>
    %170 = arith.mulf %169, %95 : vector<16x4x32xf32>
    %cst_44 = arith.constant dense<0.000000e+00> : vector<16x32xf32>
    %171 = vector.multi_reduction <add>, %170, %cst_44 [1] : vector<16x4x32xf32> to vector<16x32xf32>
    %172 = tpu.concatenate %114, %133, %152, %171 in 1 : vector<16x32xf32>, vector<16x32xf32>, vector<16x32xf32>, vector<16x32xf32> -> vector<16x128xf32>
    %173 = arith.addf %3, %172 : vector<16x128xf32>
    %c0_45 = arith.constant 0 : index
    %c0_46 = arith.constant 0 : index
    %c0_47 = arith.constant 0 : index
    %174 = vector.load %arg10[%c0_45, %c0_46, %c0_47] : memref<1x1x128xf32, #tpu.memory_space<vmem>>, vector<1x1x128xf32>
    %175 = vector.shape_cast %174 : vector<1x1x128xf32> to vector<1x128xf32>
    %c0_48 = arith.constant 0 : index
    %c0_49 = arith.constant 0 : index
    %c0_50 = arith.constant 0 : index
    %176 = vector.load %arg11[%c0_48, %c0_49, %c0_50] : memref<1x1x128xf32, #tpu.memory_space<vmem>>, vector<1x1x128xf32>
    %177 = vector.shape_cast %176 : vector<1x1x128xf32> to vector<1x128xf32>
    %cst_51 = arith.constant dense<0.000000e+00> : vector<16xf32>
    %178 = vector.multi_reduction <add>, %173, %cst_51 [1] : vector<16x128xf32> to vector<16xf32>
    %179 = vector.shape_cast %178 : vector<16xf32> to vector<16x1xf32>
    %cst_52 = arith.constant 1.280000e+02 : f32
    %180 = vector.broadcast %cst_52 : f32 to vector<16x1xf32>
    %181 = arith.divf %179, %180 : vector<16x1xf32>
    %182 = vector.broadcast %181 : vector<16x1xf32> to vector<16x128xf32>
    %183 = arith.subf %173, %182 : vector<16x128xf32>
    %184 = arith.mulf %183, %183 : vector<16x128xf32>
    %cst_53 = arith.constant dense<0.000000e+00> : vector<16xf32>
    %185 = vector.multi_reduction <add>, %184, %cst_53 [1] : vector<16x128xf32> to vector<16xf32>
    %186 = vector.shape_cast %185 : vector<16xf32> to vector<16x1xf32>
    %cst_54 = arith.constant 1.280000e+02 : f32
    %187 = vector.broadcast %cst_54 : f32 to vector<16x1xf32>
    %188 = arith.divf %186, %187 : vector<16x1xf32>
    %189 = vector.broadcast %181 : vector<16x1xf32> to vector<16x128xf32>
    %190 = arith.subf %173, %189 : vector<16x128xf32>
    %cst_55 = arith.constant 9.99999974E-6 : f32
    %191 = vector.broadcast %cst_55 : f32 to vector<16x1xf32>
    %192 = arith.addf %188, %191 : vector<16x1xf32>
    %193 = math.rsqrt %192 : vector<16x1xf32>
    %194 = vector.broadcast %193 : vector<16x1xf32> to vector<16x128xf32>
    %195 = arith.mulf %190, %194 : vector<16x128xf32>
    %196 = vector.broadcast %175 : vector<1x128xf32> to vector<16x128xf32>
    %197 = arith.mulf %195, %196 : vector<16x128xf32>
    %198 = vector.broadcast %177 : vector<1x128xf32> to vector<16x128xf32>
    %199 = arith.addf %197, %198 : vector<16x128xf32>
    %200 = arith.truncf %199 : vector<16x128xf32> to vector<16x128xbf16>
    %c0_56 = arith.constant 0 : index
    %c0_57 = arith.constant 0 : index
    %c0_58 = arith.constant 0 : index
    %201 = vector.load %arg12[%c0_56, %c0_57, %c0_58] : memref<1x128x512xbf16, #tpu.memory_space<vmem>>, vector<1x128x512xbf16>
    %202 = vector.shape_cast %201 : vector<1x128x512xbf16> to vector<128x512xbf16>
    %cst_59 = arith.constant dense<0.000000e+00> : vector<16x512xf32>
    %203 = tpu.matmul %200, %202, %cst_59 {dimension_numbers = #tpu.dot_dimension_numbers<[1], [0], [0], [1], [0, 0, 1, 1], [], []>} : vector<16x128xbf16>, vector<128x512xbf16>, vector<16x512xf32> -> vector<16x512xf32>
    %c0_60 = arith.constant 0 : index
    %c0_61 = arith.constant 0 : index
    %c0_62 = arith.constant 0 : index
    %204 = vector.load %arg13[%c0_60, %c0_61, %c0_62] : memref<1x1x512xf32, #tpu.memory_space<vmem>>, vector<1x1x512xf32>
    %205 = vector.shape_cast %204 : vector<1x1x512xf32> to vector<1x512xf32>
    %206 = vector.broadcast %205 : vector<1x512xf32> to vector<16x512xf32>
    %207 = arith.addf %203, %206 : vector<16x512xf32>
    %208 = math.absf %207 : vector<16x512xf32>
    %cst_63 = arith.constant 0.707106769 : f32
    %209 = vector.broadcast %cst_63 : f32 to vector<16x512xf32>
    %210 = arith.mulf %208, %209 : vector<16x512xf32>
    %cst_64 = arith.constant 0.327591091 : f32
    %211 = vector.broadcast %cst_64 : f32 to vector<16x512xf32>
    %212 = arith.mulf %211, %210 : vector<16x512xf32>
    %cst_65 = arith.constant 1.000000e+00 : f32
    %213 = vector.broadcast %cst_65 : f32 to vector<16x512xf32>
    %214 = arith.addf %213, %212 : vector<16x512xf32>
    %215 = tpu.reciprocal %214 {approx = true} : vector<16x512xf32> -> vector<16x512xf32>
    %cst_66 = arith.constant 1.06140542 : f32
    %216 = vector.broadcast %cst_66 : f32 to vector<16x512xf32>
    %217 = arith.mulf %216, %215 : vector<16x512xf32>
    %cst_67 = arith.constant 1.45315206 : f32
    %218 = vector.broadcast %cst_67 : f32 to vector<16x512xf32>
    %219 = arith.subf %217, %218 : vector<16x512xf32>
    %220 = arith.mulf %219, %215 : vector<16x512xf32>
    %cst_68 = arith.constant 1.42141378 : f32
    %221 = vector.broadcast %cst_68 : f32 to vector<16x512xf32>
    %222 = arith.addf %220, %221 : vector<16x512xf32>
    %223 = arith.mulf %222, %215 : vector<16x512xf32>
    %cst_69 = arith.constant 0.284496725 : f32
    %224 = vector.broadcast %cst_69 : f32 to vector<16x512xf32>
    %225 = arith.subf %223, %224 : vector<16x512xf32>
    %226 = arith.mulf %225, %215 : vector<16x512xf32>
    %cst_70 = arith.constant 0.254829586 : f32
    %227 = vector.broadcast %cst_70 : f32 to vector<16x512xf32>
    %228 = arith.addf %226, %227 : vector<16x512xf32>
    %229 = arith.mulf %228, %215 : vector<16x512xf32>
    %cst_71 = arith.constant 0.000000e+00 : f32
    %230 = vector.broadcast %cst_71 : f32 to vector<16x512xf32>
    %231 = arith.maximumf %207, %230 : vector<16x512xf32>
    %cst_72 = arith.constant 0.707106769 : f32
    %232 = vector.broadcast %cst_72 : f32 to vector<16x512xf32>
    %233 = arith.mulf %232, %210 : vector<16x512xf32>
    %234 = arith.mulf %233, %229 : vector<16x512xf32>
    %cst_73 = arith.constant 0.000000e+00 : f32
    %235 = vector.broadcast %cst_73 : f32 to vector<16x512xf32>
    %236 = arith.subf %235, %210 : vector<16x512xf32>
    %237 = arith.mulf %236, %210 : vector<16x512xf32>
    %238 = math.exp %237 : vector<16x512xf32>
    %239 = arith.mulf %234, %238 : vector<16x512xf32>
    %240 = arith.subf %231, %239 : vector<16x512xf32>
    %241 = arith.truncf %240 : vector<16x512xf32> to vector<16x512xbf16>
    %c0_74 = arith.constant 0 : index
    %c0_75 = arith.constant 0 : index
    %c0_76 = arith.constant 0 : index
    %242 = vector.load %arg14[%c0_74, %c0_75, %c0_76] : memref<1x512x128xbf16, #tpu.memory_space<vmem>>, vector<1x512x128xbf16>
    %243 = vector.shape_cast %242 : vector<1x512x128xbf16> to vector<512x128xbf16>
    %cst_77 = arith.constant dense<0.000000e+00> : vector<16x128xf32>
    %244 = tpu.matmul %241, %243, %cst_77 {dimension_numbers = #tpu.dot_dimension_numbers<[1], [0], [0], [1], [0, 0, 1, 1], [], []>} : vector<16x512xbf16>, vector<512x128xbf16>, vector<16x128xf32> -> vector<16x128xf32>
    %c0_78 = arith.constant 0 : index
    %c0_79 = arith.constant 0 : index
    %c0_80 = arith.constant 0 : index
    %245 = vector.load %arg15[%c0_78, %c0_79, %c0_80] : memref<1x1x128xf32, #tpu.memory_space<vmem>>, vector<1x1x128xf32>
    %246 = vector.shape_cast %245 : vector<1x1x128xf32> to vector<1x128xf32>
    %247 = vector.broadcast %246 : vector<1x128xf32> to vector<16x128xf32>
    %248 = arith.addf %244, %247 : vector<16x128xf32>
    %249 = arith.addf %173, %248 : vector<16x128xf32>
    %c0_81 = arith.constant 0 : index
    %c0_82 = arith.constant 0 : index
    %250 = vector.load %arg16[%c0_81, %c0_82] : memref<16x128xf32, #tpu.memory_space<vmem>>, vector<16x128xf32>
    tpu.vector_store %arg16[%c0_81, %c0_82], %249 {strides = array<i32>} : memref<16x128xf32, #tpu.memory_space<vmem>>, vector<16x128xf32>,
    return
  }
  func.func @transform_0(%arg0: i32, %arg1: i32) -> (i32, i32) {
    %c0_i32 = arith.constant 0 : i32
    %c0_i32_0 = arith.constant 0 : i32
    return %arg0, %c0_i32 : i32, i32
  }
  func.func @transform_1(%arg0: i32, %arg1: i32) -> (i32, i32) {
    %c0_i32 = arith.constant 0 : i32
    %c0_i32_0 = arith.constant 0 : i32
    return %arg0, %c0_i32 : i32, i32
  }
  func.func @transform_2(%arg0: i32, %arg1: i32) -> (i32, i32) {
    %c0_i32 = arith.constant 0 : i32
    %c0_i32_0 = arith.constant 0 : i32
    return %arg0, %c0_i32 : i32, i32
  }
  func.func @transform_3(%arg0: i32, %arg1: i32) -> (i32, i32) {
    %c0_i32 = arith.constant 0 : i32
    %c0_i32_0 = arith.constant 0 : i32
    return %arg0, %c0_i32 : i32, i32
  }
  func.func @transform_4(%arg0: i32, %arg1: i32) -> (i32, i32, i32) {
    %c0_i32 = arith.constant 0 : i32
    %c0_i32_0 = arith.constant 0 : i32
    %c0_i32_1 = arith.constant 0 : i32
    return %arg1, %c0_i32, %c0_i32_0 : i32, i32, i32
  }
  func.func @transform_5(%arg0: i32, %arg1: i32) -> (i32, i32, i32) {
    %c0_i32 = arith.constant 0 : i32
    %c0_i32_0 = arith.constant 0 : i32
    %c0_i32_1 = arith.constant 0 : i32
    return %arg1, %c0_i32, %c0_i32_0 : i32, i32, i32
  }
  func.func @transform_6(%arg0: i32, %arg1: i32) -> (i32, i32, i32) {
    %c0_i32 = arith.constant 0 : i32
    %c0_i32_0 = arith.constant 0 : i32
    %c0_i32_1 = arith.constant 0 : i32
    return %arg1, %c0_i32, %c0_i32_0 : i32, i32, i32
  }
  func.func @transform_7(%arg0: i32, %arg1: i32) -> (i32, i32, i32) {
    %c0_i32 = arith.constant 0 : i32
    %c0_i32_0 = arith.constant 0 : i32
    %c0_i32_1 = arith.constant 0 : i32
    return %arg1, %c0_i32, %c0_i32_0 : i32, i32, i32
  }
  func.func @transform_8(%arg0: i32, %arg1: i32) -> (i32, i32, i32) {
    %c0_i32 = arith.constant 0 : i32
    %c0_i32_0 = arith.constant 0 : i32
    %c0_i32_1 = arith.constant 0 : i32
    return %arg1, %c0_i32, %c0_i32_0 : i32, i32, i32
  }
  func.func @transform_9(%arg0: i32, %arg1: i32) -> (i32, i32, i32) {
    %c0_i32 = arith.constant 0 : i32
    %c0_i32_0 = arith.constant 0 : i32
    %c0_i32_1 = arith.constant 0 : i32
    return %arg1, %c0_i32, %c0_i32_0 : i32, i32, i32
  }
  func.func @transform_10(%arg0: i32, %arg1: i32) -> (i32, i32, i32) {
    %c0_i32 = arith.constant 0 : i32
    %c0_i32_0 = arith.constant 0 : i32
    %c0_i32_1 = arith.constant 0 : i32
    return %arg1, %c0_i32, %c0_i32_0 : i32, i32, i32
  }
  func.func @transform_11(%arg0: i32, %arg1: i32) -> (i32, i32, i32) {
    %c0_i32 = arith.constant 0 : i32
    %c0_i32_0 = arith.constant 0 : i32
    %c0_i32_1 = arith.constant 0 : i32
    return %arg1, %c0_i32, %c0_i32_0 : i32, i32, i32
  }
  func.func @transform_12(%arg0: i32, %arg1: i32) -> (i32, i32, i32) {
    %c0_i32 = arith.constant 0 : i32
    %c0_i32_0 = arith.constant 0 : i32
    %c0_i32_1 = arith.constant 0 : i32
    return %arg1, %c0_i32, %c0_i32_0 : i32, i32, i32
  }
  func.func @transform_13(%arg0: i32, %arg1: i32) -> (i32, i32, i32) {
    %c0_i32 = arith.constant 0 : i32
    %c0_i32_0 = arith.constant 0 : i32
    %c0_i32_1 = arith.constant 0 : i32
    return %arg1, %c0_i32, %c0_i32_0 : i32, i32, i32
  }
  func.func @transform_14(%arg0: i32, %arg1: i32) -> (i32, i32) {
    %c0_i32 = arith.constant 0 : i32
    %c0_i32_0 = arith.constant 0 : i32
    return %arg0, %c0_i32 : i32, i32
  }
}

module attributes {stable_mosaic.version = 11 : i64} {
  func.func @logits_kernel(%arg0: i32, %arg1: i32, %arg2: memref<16x128xf32, #tpu.memory_space<vmem>>, %arg3: memref<128x256xbf16, #tpu.memory_space<vmem>>, %arg4: memref<16x256xf32, #tpu.memory_space<vmem>>) attributes {dimension_semantics = [#tpu.dimension_semantics<parallel>, #tpu.dimension_semantics<parallel>], iteration_bounds = array<i64: 1, 1>, scalar_prefetch = 0 : i64, scratch_operands = 0 : i64, tpu.core_type = #tpu.core_type<tc>, window_params = [{transform_indices = @transform_0, window_bounds = array<i64: 16, 128>}, {transform_indices = @transform_1, window_bounds = array<i64: 128, 256>}, {transform_indices = @transform_2, window_bounds = array<i64: 16, 256>}]} {
    %c0 = arith.constant 0 : index
    %c0_0 = arith.constant 0 : index
    %0 = vector.load %arg2[%c0, %c0_0] : memref<16x128xf32, #tpu.memory_space<vmem>>, vector<16x128xf32>
    %1 = arith.truncf %0 : vector<16x128xf32> to vector<16x128xbf16>
    %c0_1 = arith.constant 0 : index
    %c0_2 = arith.constant 0 : index
    %2 = vector.load %arg3[%c0_1, %c0_2] : memref<128x256xbf16, #tpu.memory_space<vmem>>, vector<128x256xbf16>
    %cst = arith.constant dense<0.000000e+00> : vector<16x256xf32>
    %3 = tpu.matmul %1, %2, %cst {dimension_numbers = #tpu.dot_dimension_numbers<[1], [0], [0], [1], [0, 0, 1, 1], [], []>} : vector<16x128xbf16>, vector<128x256xbf16>, vector<16x256xf32> -> vector<16x256xf32>
    %c0_3 = arith.constant 0 : index
    %c0_4 = arith.constant 0 : index
    %4 = vector.load %arg4[%c0_3, %c0_4] : memref<16x256xf32, #tpu.memory_space<vmem>>, vector<16x256xf32>
    tpu.vector_store %arg4[%c0_3, %c0_4], %3 {strides = array<i32>} : memref<16x256xf32, #tpu.memory_space<vmem>>, vector<16x256xf32>,
    return
  }
  func.func @transform_0(%arg0: i32, %arg1: i32) -> (i32, i32) {
    %c0_i32 = arith.constant 0 : i32
    %c0_i32_0 = arith.constant 0 : i32
    return %arg1, %c0_i32 : i32, i32
  }
  func.func @transform_1(%arg0: i32, %arg1: i32) -> (i32, i32) {
    %c0_i32 = arith.constant 0 : i32
    %c0_i32_0 = arith.constant 0 : i32
    return %c0_i32, %arg0 : i32, i32
  }
  func.func @transform_2(%arg0: i32, %arg1: i32) -> (i32, i32) {
    %c0_i32 = arith.constant 0 : i32
    return %arg1, %arg0 : i32, i32
  }
}

</mosaic_0001>

<bundles_post_ra>
// kernel: transformer_forward.3
= control target key start
LH: loop header
LB: loop body
LE: loop exit
PB: predicated region body
PF: predicated region fallthrough
CT: control target
= control target key end

     0   :  { %s393_s0 = inlined_call_operand.vmem [shape: f32[16,128], index: 0, kind: input, shape index: {}]   ;;  %s394_s1 = inlined_call_operand.vmem [shape: bf16[128,256], index: 1, kind: input, shape index: {}]   ;;  %s395_s2 = inlined_call_operand.hbm [shape: f32[16,256], index: 2, kind: output, shape index: {}]  }
   0x1   :  { %v219_v0 = vld [vmem:[%s394_s1 + $0x70] sm:$0xf]  ;;  %v240_v1 = vld [vmem:[%s394_s1 + $0x74] sm:$0xf0]  ;;  %v239_v2 = vld [vmem:[%s394_s1 + $0x74] sm:$0xf] }
   0x2   :  { %v220_v3 = vor.u32 %v240_v1, %v219_v0  ;;  %v221_v4 = vld [vmem:[%s394_s1 + $0x78] sm:$0xf0]  ;;  %v211_v5 = vld [vmem:[%s394_s1 + $0x60] sm:$0xf]  ;;  %v238_v6 = vld [vmem:[%s394_s1 + $0x64] sm:$0xf0] }
   0x3   :  { %v224_v7 = vor.u32 %v239_v2, %v221_v4  ;;  %v237_v8 = vld [vmem:[%s394_s1 + $0x64] sm:$0xf]  ;;  %v213_v9 = vld [vmem:[%s394_s1 + $0x68] sm:$0xf0]  ;;  %v212_v10 = vor.u32 %v238_v6, %v211_v5  ;;  %v203_v12 = vld [vmem:[%s394_s1 + $0x50] sm:$0xf] }
   0x4   :  { %111 = vmatpush.bf16.msra.mxu0 %v220_v3  ;;  %v216_v11 = vor.u32 %v237_v8, %v213_v9  ;;  %v236_v13 = vld [vmem:[%s394_s1 + $0x54] sm:$0xf0]  ;;  %v235_v14 = vld [vmem:[%s394_s1 + $0x54] sm:$0xf]  ;;  %v205_v15 = vld [vmem:[%s394_s1 + $0x58] sm:$0xf0] }
   0x5   :  { %125 = vmatpush.bf16.msra.mxu1 %v224_v7  ;;  %v204_v16 = vor.u32 %v236_v13, %v203_v12  ;;  %v208_v17 = vor.u32 %v235_v14, %v205_v15  ;;  %v195_v18 = vld [vmem:[%s394_s1 + $0x40] sm:$0xf]  ;;  %v234_v19 = vld [vmem:[%s394_s1 + $0x44] sm:$0xf0]  ;;  %v233_v20 = vld [vmem:[%s394_s1 + $0x44] sm:$0xf] }
   0x6   :  { %v197_v21 = vld [vmem:[%s394_s1 + $0x48] sm:$0xf0]  ;;  %v196_v22 = vor.u32 %v234_v19, %v195_v18 }
   0x8   :  { %112 = vmatpush.bf16.msra.mxu0 %v212_v10 }
   0x9   :  { %126 = vmatpush.bf16.msra.mxu1 %v216_v11 }
   0xc   :  { %113 = vmatpush.bf16.msra.mxu0 %v204_v16 }
   0xd   :  { %7 = vsyncpa [#allocation3], 0  ;;  %127 = vmatpush.bf16.msra.mxu1 %v208_v17  ;;  %v200_v23 = vor.u32 %v233_v20, %v197_v21  ;;  %v187_v24 = vld [vmem:[%s394_s1 + $0x30] sm:$0xf]  ;;  %v232_v25 = vld [vmem:[%s394_s1 + $0x34] sm:$0xf0] }
   0xe   :  { %v231_v26 = vld [vmem:[%s394_s1 + $0x34] sm:$0xf]  ;;  %v189_v27 = vld [vmem:[%s394_s1 + $0x38] sm:$0xf0]  ;;  %v188_v28 = vor.u32 %v232_v25, %v187_v24  ;;  %v179_v30 = vld [vmem:[%s394_s1 + $0x20] sm:$0xf] }
   0xf   :  { %v192_v29 = vor.u32 %v231_v26, %v189_v27  ;;  %v230_v31 = vld [vmem:[%s394_s1 + $0x24] sm:$0xf0]  ;;  %v229_v32 = vld [vmem:[%s394_s1 + $0x24] sm:$0xf]  ;;  %v181_v33 = vld [vmem:[%s394_s1 + $0x28] sm:$0xf0] }
  0x10   :  { %114 = vmatpush.bf16.msra.mxu0 %v196_v22  ;;  %v180_v34 = vor.u32 %v230_v31, %v179_v30  ;;  %v184_v35 = vor.u32 %v229_v32, %v181_v33  ;;  %v171_v36 = vld [vmem:[%s394_s1 + $0x10] sm:$0xf]  ;;  %v228_v37 = vld [vmem:[%s394_s1 + $0x14] sm:$0xf0]  ;;  %v227_v38 = vld [vmem:[%s394_s1 + $0x14] sm:$0xf] }
  0x11   :  { %128 = vmatpush.bf16.msra.mxu1 %v200_v23  ;;  %v173_v39 = vld [vmem:[%s394_s1 + $0x18] sm:$0xf0]  ;;  %v172_v40 = vor.u32 %v228_v37, %v171_v36  ;;  %v163_v42 = vld [vmem:[%s394_s1] sm:$0xf]  ;;  %v226_v43 = vld [vmem:[%s394_s1 + $0x4] sm:$0xf0] }
  0x12   :  { %v176_v41 = vor.u32 %v227_v38, %v173_v39  ;;  %v225_v44 = vld [vmem:[%s394_s1 + $0x4] sm:$0xf]  ;;  %v165_v45 = vld [vmem:[%s394_s1 + $0x8] sm:$0xf0]  ;;  %v164_v46 = vor.u32 %v226_v43, %v163_v42  ;;  %s270_s1 = smov [#allocation2]   ;;  %s149_s24 = sshll.u32 %s395_s2, 4  ;;  %s150_s24 = int_to_ptr.hbm [resolvable:$true] %s149_s24 }
  0x13   :  { %v12_v47 = vld [vmem:[%s393_s0] sm:$0xff]  ;;  %v13_v48 = vld [vmem:[%s393_s0 + $0x8] sm:$0xff]  ;;  %v168_v49 = vor.u32 %v225_v44, %v165_v45  ;;  %s147_s21 = sshll.u32 %s270_s1, 4  ;;  %s271_s0 = smov 256   ;;  %s148_s21 = int_to_ptr.vmem [resolvable:$true] %s147_s21 }
  0x14   :  { %115 = vmatpush.bf16.msra.mxu0 %v188_v28  ;;  %v14_v50 = vpack.c.bf16 %v13_v48, %v12_v47  ;;  %s272_s25 = smov 16  }
  0x15   :  { %129 = vmatpush.bf16.msra.mxu1 %v192_v29 }
  0x18   :  { %116 = vmatpush.bf16.msra.mxu0 %v180_v34 }
  0x19   :  { %130 = vmatpush.bf16.msra.mxu1 %v184_v35 }
  0x1c   :  { %117 = vmatpush.bf16.msra.mxu0 %v172_v40 }
  0x1d   :  { %131 = vmatpush.bf16.msra.mxu1 %v176_v41 }
  0x20   :  { %118 = vmatpush.bf16.msra.mxu0 %v164_v46 }
  0x21   :  { %132 = vmatpush.bf16.msra.mxu1 %v168_v49 }
  0x23   :  { %119 = vmatmul.bf16.vlgmr.msra.gmra.mxu0 %v14_v50 }
  0x24   :  { %133 = vmatmul.bf16.vlgmr.msra.gmra.mxu1 %v14_v50 }
  0xa0   :  { %v120_v51 = vpop.f32.mrf.mxu0 }
  0xa1   :  { %139 = vst [vmem:[#allocation2] sm:$0xff] %v120_v51  ;;  %v134_v52 = vpop.f32.mrf.mxu1 }
  0xa2   :  { %140 = vst [vmem:[#allocation2 + $0x8] sm:$0xff] %v134_v52 }
  0xa8   :  { %v122_v53 = vpop.f32.mrf.mxu0 }
  0xa9   :  { %141 = vst [vmem:[#allocation2 + $0x10] sm:$0xff] %v122_v53  ;;  %v136_v54 = vpop.f32.mrf.mxu1 }
  0xaa   :  { %142 = vst [vmem:[#allocation2 + $0x18] sm:$0xff] %v136_v54 }
  0xab   :  { %155 = dma.vmem_to_hbm [thread:$0]  %s148_s21, 512, %s150_s24, [#allocation3], %s271_s0, %s271_s0, %s272_s25  }
  0xac   :  { %268 = dma.done.wait [#allocation3], 512  }
  0xad   :  { %269 = vsyncadd [#allocation3], 4294966784 }
  0xae   :  { %160 = vsyncpa [#allocation3], 1 }

// kernel: transformer_forward.2
= control target key start
LH: loop header
LB: loop body
LE: loop exit
PB: predicated region body
PF: predicated region fallthrough
CT: control target
= control target key end

     0   :  { %s12514_s0 = inlined_call_operand.vmem [shape: f32[16,128], index: 0, kind: input, shape index: {}]   ;;  %s12515_s1 = inlined_call_operand.vmem [shape: f32[16,32], index: 1, kind: input, shape index: {}]   ;;  %s12516_s2 = inlined_call_operand.vmem [shape: f32[16,32], index: 2, kind: input, shape index: {}]   ;;  %s12517_s3 = inlined_call_operand.vmem [shape: f32[16,32], index: 3, kind: input, shape index: {}]   ;;  %s12518_s4 = inlined_call_operand.vmem [shape: f32[2,1,128], index: 4, kind: input, shape index: {}]   ;;  %s12519_s5 = inlined_call_operand.vmem [shape: f32[2,1,128], index: 5, kind: input, shape index: {}]   ;;  %s12520_s6 = inlined_call_operand.vmem [shape: bf16[2,128,384], index: 6, kind: input, shape index: {}]   ;;  %s12521_s7 = inlined_call_operand.vmem [shape: f32[2,1,384], index: 7, kind: input, shape index: {}]   ;;  %s12522_s8 = inlined_call_operand.vmem [shape: f32[2,1,128], index: 8, kind: input, shape index: {}]   ;;  %s12523_s9 = inlined_call_operand.vmem [shape: f32[2,1,128], index: 9, kind: input, shape index: {}]   ;;  %s12524_s10 = inlined_call_operand.hbm [shape: bf16[2,128,512], index: 10, kind: input, shape index: {}]   ;;  %s12525_s11 = inlined_call_operand.vmem [shape: f32[2,1,512], index: 11, kind: input, shape index: {}]   ;;  %s12526_s12 = inlined_call_operand.hbm [shape: bf16[2,512,128], index: 12, kind: input, shape index: {}]   ;;  %s12527_s13 = inlined_call_operand.vmem [shape: f32[2,1,128], index: 13, kind: input, shape index: {}]   ;;  %s12528_s14 = inlined_call_operand.vmem [shape: f32[16,128], index: 14, kind: output, shape index: {}]  }
   0x1   :  { %12716 = sst [smem:[#allocation111_spill]] %s12514_s0 }
   0x2   :  { %12717 = sst [smem:[#allocation112_spill]] %s12515_s1 }
   0x3   :  { %12718 = sst [smem:[#allocation113_spill]] %s12516_s2 }
   0x4   :  { %12719 = sst [smem:[#allocation114_spill]] %s12517_s3 }
   0x5   :  { %12720 = sst [smem:[#allocation115_spill]] %s12520_s6 }
   0x6   :  { %12721 = sst [smem:[#allocation116_spill]] %s12524_s10 }
   0x7   :  { %12722 = sst [smem:[#allocation117_spill]] %s12528_s14 }
   0x8   :  { %19 = vsyncpa [#allocation3], 0 }
   0x9   :  { %21 = vsyncpa [#allocation3 + $0x1], 0 }
   0xa   :  { %22 = vsyncpa [#allocation5], 0 }
   0xb   :  { %24 = vsyncpa [#allocation5 + $0x1], 0  ;;  %s7432_s29 = smov 0   ;;  %s7434_s30 = smov 0  }
   0xc   :  { %s7436_s15 = smov 0   ;;  %s7438_s16 = smov 0  }
   0xd   :  { %s7440_s17 = smov 0   ;;  %s7442_s18 = smov 0  }
   0xe LB: > { %12723 = sst [smem:[#allocation8_spill]] %s7332_s15  ;;  %s6368_s19 = sadd.s32 4294967295, %s7344_s18   ;;  %s7344_s18 = sphi %s7442_s18, %s30_s18   ;;  %s7340_s17 = sphi %s7440_s17, %s13449_s17   ;;  %s7336_s16 = sphi %s7438_s16, %s13448_s16   ;;  %s7332_s15 = sphi %s7436_s15, %s13452_s15   ;;  %s7328_s30 = sphi %s7434_s30, %s13451_s30   ;;  %s7324_s29 = sphi %s7432_s29, %s13450_s29  }
   0xf   : > { %12724 = sst [smem:[#allocation9_spill]] %s7340_s17  ;;  %s39_s20 = sadd.s32 1, %s7340_s17 }
  0x10   : > { %12725 = sst [smem:[#allocation10_spill]] %s7344_s18  ;;  %p40_p0 = scmp.ge.s32.totalorder %s39_s20, 2 }
  0x11   : > { %s309_s21 = sadd.s32 1, %s7332_s15  ;;  %p316_p1 = scmp.ne.s32.totalorder %s7332_s15, %s7328_s30 }
  0x12   : > { %p317_p2 = scmp.eq.s32.totalorder %s7344_s18, 0  ;;  %s13454_s20 = smov (%p40_p0, %s39_s20), 0 }
  0x13   : > { %12726 = sst [smem:[#allocation11_spill]] %s13454_s20  ;;  %p322_p4 = scmp.ne.s32.totalorder %s7328_s30, %s7324_s29 }
  0x14   : > { %p7468_p3 = por %p317_p2, %p316_p1  ;;  %s306_s23 = ssub.s32 %s7340_s17, %s13454_s20 }
  0x15   : > { %p323_p5 = scmp.eq.s32.totalorder %s6368_s19, 0  ;;  %p307_p6 = scmp.eq.s32.totalorder %s306_s23, 0 }
  0x16   : > { %p6862_p8 = scmp.lt.s32.totalorder %s7344_s18, 2  ;;  %s7484_s26 = sand.u32 1, %s7332_s15  }
  0x17   : > { %p7475_p7 = por %p323_p5, %p322_p4  ;;  %s6759_s27 = sshll.u32 %s7340_s17, 8 }
  0x18   : > { %s7481_s25 = scalar_select %p307_p6, %s7332_s15, %s309_s21  }
  0x19   : > { %s6375_s28 = sshll.u32 %s7484_s26, 8  ;;  %s12730_s10 = sld [smem:[#allocation116_spill]] }
  0x1a   : > { %12729 = sst [smem:[#allocation12_spill]] %s7481_s25  ;;  %s529_s2 = scalar_lea.vmem [#allocation2], %s6375_s28 }
  0x1b   : > { %s537_s23 = sshll.u32 %s529_s2, 4  ;;  %p7493_p9 = pnand %p6862_p8, %p7468_p3  ;;  %s538_s23 = int_to_ptr.vmem [resolvable:$true] %s537_s23 }
  0x1c   : > { %p6381_p10 = scmp.ge.s32.totalorder %s7344_s18, 1  ;;  %p580_p11 = scmp.lt.s32.totalorder %s7344_s18, 3 }
  0x1d   : > { %s526_s17 = scalar_lea.sflag [#allocation3], %s7484_s26  ;;  %s7346_s25 = smov 256  }
  0x1e   : > { %s7347_s15 = smov 16   ;;  %p581_p12 = pnand %p6381_p10, %p580_p11 }
  0x1f   : > { %s534_s20 = scalar_lea.hbm %s12730_s10, %s6759_s27  ;;  %s558_s22 = scalar_lea.vmem [#allocation4], %s6375_s28 }
  0x20   : > { %s535_s19 = sshll.u32 %s534_s20, 4  ;;  %s563_s20 = scalar_lea.hbm %s12526_s12, %s6759_s27  ;;  %s536_s19 = int_to_ptr.hbm [resolvable:$true] %s535_s19 }
  0x21   : > { %6858 = dma.hbm_to_vmem [thread:$0]  (!%p7493_p9), %s536_s19, 4096, %s538_s23, %s526_s17, %s7346_s25, %s7346_s25, %s7347_s15  }
  0x22   : > { %s564_s29 = sshll.u32 %s563_s20, 4  ;;  %s566_s10 = sshll.u32 %s558_s22, 4  ;;  %s565_s29 = int_to_ptr.hbm [resolvable:$true] %s564_s29  ;;  %s567_s10 = int_to_ptr.vmem [resolvable:$true] %s566_s10 }
  0x23   : > { %s555_s1 = scalar_lea.sflag [#allocation5], %s7484_s26  ;;  %s7348_s14 = smov 64  }
  0x24   : > { %s7349_s0 = smov 4   ;;  %584 = sbr.rel (%p581_p12) target bundleno = 2818 (0xb02), region = 76 }
  0x25   : > { %6861 = dma.hbm_to_vmem [thread:$0]  (!%p7493_p9), %s565_s29, 4096, %s567_s10, %s555_s1, %s7348_s14, %s7348_s14, %s7349_s0  }
  0x29   : > { %s586_s18 = sand.u32 1, %s7328_s30  }
  0x2a   : > { %s6382_s15 = sshll.u32 %s586_s18, 8  ;;  %s587_s17 = scalar_lea.sflag [#allocation3], %s586_s18 }
  0x2b   : > { %s7509_s25 = scalar_lea.vmem [#allocation2], %s6382_s15 }
  0x2c   : > { %7315 = dma.done.wait (%p7475_p7), %s587_s17, 4096  }
  0x2d   : > { %7317 = vsyncadd (%p7475_p7), %s587_s17, 4294963200  ;;  %s597_s27 = scalar_lea.sflag [#allocation5], %s586_s18  ;;  %s7515_s26 = scalar_lea.vmem [#allocation4], %s6382_s15 }
  0x2e   : > { %7319 = dma.done.wait (%p7475_p7), %s597_s27, 4096  }
  0x2f   : > { %7321 = vsyncadd (%p7475_p7), %s597_s27, 4294963200  ;;  %p723_p13 = scmp.lt.s32.totalorder %s7336_s16, 1  ;;  %s12732_s6 = sld [smem:[#allocation115_spill]] }
  0x30   : > { %p6386_p0 = scmp.ne.s32.totalorder %s7336_s16, 0 }
  0x31   : > { %s7523_s0 = scalar_select %p723_p13, %s7336_s16, 1 }
  0x32   : > { %760 = sbr.rel (%p6386_p0) target bundleno = 61 (0x3d), region = 88  ;;  %s12733_s15 = sld [smem:[#allocation111_spill]] (!%p6386_p0) }
  0x33   : > { %s6849_s19 = smul.u32 192, %s7523_s0  ;;  %s6385_s1 = sshll.u32 %s7523_s0, 2 }
  0x34   : > { %s6850_s2 = smul.u32 3, %s7523_s0  ;;  %s7557_s23 = scalar_lea.vmem %s12525_s11, %s6385_s1 }
  0x35   : > { %s7546_s27 = scalar_lea.vmem %s12732_s6, %s6849_s19  ;;  %s12735_s28 = sld [smem:[#allocation117_spill]] (!%p6386_p0) }
  0x36   : > { %s7552_s18 = scalar_lea.vmem %s12521_s7, %s6850_s2 }
  0x38   : > { %s12734_s22 = smov %s12733_s15  ;;  %v761_v0 = vld [vmem:[%s12733_s15] sm:$0xff] }
  0x39   : > { %v762_v1 = vld [vmem:[%s12734_s22 + $0x8] sm:$0xff] }
  0x3b   : > { %763 = vst [vmem:[%s12735_s28] sm:$0xff] %v761_v0 }
  0x3c   : > { %764 = vst [vmem:[%s12735_s28 + $0x8] sm:$0xff] %v762_v1 }
  0x3d PF: > { %s12736_s21 = sld [smem:[#allocation117_spill]]  ;;  %s7350_s15 = smov 32   ;;  %v7353_v10 = vmov 128.0   ;;  %v6473_v27 = vld [vmem:[%s7546_s27 + $0xa8] sm:$0xf]  ;;  %vm12639_vm7 = vcmask 261120  }
  0x3e   : > { %s12737_s29 = sld [smem:[#allocation112_spill]]  ;;  %s7351_s2 = smov 64   ;;  %6930 = vrcp.f32 %v7353_v10  ;;  %v6783_v28 = vld [vmem:[%s7546_s27 + $0xb0] sm:$0xf0]  ;;  %v6782_v29 = vld [vmem:[%s7546_s27 + $0xac] sm:$0xf] }
  0x3f   : > { %s12739_s24 = sld [smem:[#allocation113_spill]]  ;;  %s7352_s3 = smov 96   ;;  %v6474_v30 = vor.u32 %v6783_v28, %v6473_v27  ;;  %v6475_v31 = vld [vmem:[%s7546_s27 + $0xb4] sm:$0xf0]  ;;  %v6481_v32 = vld [vmem:[%s7546_s27 + $0xb0] sm:$0xf] }
  0x40   : > { %v6784_v33 = vld [vmem:[%s7546_s27 + $0xb8] sm:$0xf0]  ;;  %v6478_v34 = vor.u32 %v6782_v29, %v6475_v31  ;;  %v6461_v36 = vld [vmem:[%s7546_s27 + $0x90] sm:$0xf]  ;;  %v6779_v38 = vld [vmem:[%s7546_s27 + $0x94] sm:$0xf]  ;;  %s12743_s16 = scalar_lea.vmem %s12518_s4, %s7523_s0  ;;  %s12744_s17 = scalar_lea.vmem %s12519_s5, %s7523_s0 }
  0x41   : > { %v6482_v35 = vor.u32 %v6784_v33, %v6481_v32  ;;  %995 = vmatpush.bf16.msra.mxu0 %v6474_v30  ;;  %v6780_v37 = vld [vmem:[%s7546_s27 + $0x98] sm:$0xf0]  ;;  %v6463_v40 = vld [vmem:[%s7546_s27 + $0x9c] sm:$0xf0]  ;;  %v6469_v41 = vld [vmem:[%s7546_s27 + $0x98] sm:$0xf]  ;;  %s13443_s19 = scalar_lea.vmem %s12523_s9, %s7523_s0 }
  0x42   : > { %1009 = vmatpush.bf16.msra.mxu1 %v6478_v34  ;;  %v6462_v39 = vor.u32 %v6780_v37, %v6461_v36  ;;  %v6781_v42 = vld [vmem:[%s7546_s27 + $0xa0] sm:$0xf0]  ;;  %v6466_v43 = vor.u32 %v6779_v38, %v6463_v40  ;;  %v6449_v45 = vld [vmem:[%s7546_s27 + $0x78] sm:$0xf]  ;;  %v6776_v47 = vld [vmem:[%s7546_s27 + $0x7c] sm:$0xf] }
  0x43   : > { %v765_v2 = vld [vmem:[%s12736_s21] sm:$0xff]  ;;  %v766_v5 = vld [vmem:[%s12736_s21 + $0x8] sm:$0xff]  ;;  %1023 = vmatpush.bf16.msra.mxu2 %v6482_v35  ;;  %v6470_v44 = vor.u32 %v6781_v42, %v6469_v41  ;;  %v6439_v59 = vld [vmem:[%s7546_s27 + $0x6c] sm:$0xf0]  ;;  %s7354_s10 = smov 127   ;;  %s7355_s28 = smov 1  }
  0x44   : > { %s12738_s6 = smov %s12737_s29  ;;  %v7582_v3 = vld [vmem:[%s12737_s29] sm:$0xff]  ;;  %769 = vadd.xlane.f32.xlu0 %v765_v2  ;;  %s12740_s29 = sld [smem:[#allocation114_spill]]  ;;  %v6931_v11 = vpop.eup %6930  ;;  %v6451_v50 = vld [vmem:[%s7546_s27 + $0x84] sm:$0xf0]  ;;  %v6778_v52 = vld [vmem:[%s7546_s27 + $0x88] sm:$0xf0] }
  0x45   : > { %1041 = vrot.lane.b32.xlu2 %v7582_v3, %s7350_s15  ;;  %v7589_v4 = vld [vmem:[%s12738_s6 + $0x8] sm:$0xff]  ;;  %v7628_v9 = vld [vmem:[%s12739_s24] sm:$0xff]  ;;  %v774_v12 = vmul.f32 128.0, %v6931_v11  ;;  %vm778_vm0 = vweird.f32 %v6931_v11  ;;  %996 = vmatpush.bf16.msra.mxu0 %v6462_v39  ;;  %v6454_v53 = vor.u32 %v6776_v47, %v6451_v50  ;;  %v6775_v61 = vld [vmem:[%s7546_s27 + $0x70] sm:$0xf0]  ;;  %vm12638_vm8 = vcmask 523264  }
  0x46   : > { %1049 = vrot.lane.b32.xlu1 %v7589_v4, %s7351_s2  ;;  %v7601_v6 = vld [vmem:[%s12739_s24 + $0x8] sm:$0xff]  ;;  %1010 = vmatpush.bf16.msra.mxu1 %v6466_v43  ;;  %v6777_v46 = vld [vmem:[%s7546_s27 + $0x80] sm:$0xf0]  ;;  %v6457_v51 = vld [vmem:[%s7546_s27 + $0x80] sm:$0xf]  ;;  %vm12637_vm9 = vcmask 785408  }
  0x47   : > { %v775_v13 = vsub.f32 1.0, %v774_v12  ;;  %1024 = vmatpush.bf16.msra.mxu2 %v6470_v44  ;;  %v6450_v49 = vor.u32 %v6777_v46, %v6449_v45  ;;  %v6458_v54 = vor.u32 %v6778_v52, %v6457_v51  ;;  %v6437_v55 = vld [vmem:[%s7546_s27 + $0x60] sm:$0xf]  ;;  %v6774_v56 = vld [vmem:[%s7546_s27 + $0x68] sm:$0xf0]  ;;  %vm12702_vm10 = vcmask 1040384  }
  0x48   : > { %v6773_v57 = vld [vmem:[%s7546_s27 + $0x64] sm:$0xf]  ;;  %v6438_v58 = vor.u32 %v6774_v56, %v6437_v55  ;;  %v6445_v60 = vld [vmem:[%s7546_s27 + $0x68] sm:$0xf]  ;;  %v6771_v1 = vld [vmem:[%s7546_s27 + $0x50] sm:$0xf0] }
  0x49   : > { %v776_v14 = vmul.f32 %v6931_v11, %v775_v13  ;;  %997 = vmatpush.bf16.msra.mxu0 %v6450_v49  ;;  %v6442_v62 = vor.u32 %v6773_v57, %v6439_v59  ;;  %v6446_v63 = vor.u32 %v6775_v61, %v6445_v60  ;;  %v6425_v0 = vld [vmem:[%s7546_s27 + $0x48] sm:$0xf]  ;;  %v6427_v10 = vld [vmem:[%s7546_s27 + $0x54] sm:$0xf0]  ;;  %v6772_v12 = vld [vmem:[%s7546_s27 + $0x58] sm:$0xf0] }
  0x4a   : > { %s12741_s14 = smov %s12740_s29  ;;  %v7610_v7 = vld [vmem:[%s12740_s29] sm:$0xff]  ;;  %1011 = vmatpush.bf16.msra.mxu1 %v6454_v53  ;;  %v6401_v30 = vld [vmem:[%s7546_s27 + $0x18] sm:$0xf]  ;;  %v6764_v32 = vld [vmem:[%s7546_s27 + $0x1c] sm:$0xf]  ;;  %vm12700_vm11 = vcmask 1041408  }
  0x4b   : > { %v7621_v8 = vld [vmem:[%s12741_s14 + $0x8] sm:$0xff]  ;;  %v777_v15 = vadd.f32 %v6931_v11, %v776_v14  ;;  %1025 = vmatpush.bf16.msra.mxu2 %v6458_v54  ;;  %v6769_v27 = vld [vmem:[%s7546_s27 + $0x40] sm:$0xf0]  ;;  %v6409_v35 = vld [vmem:[%s7546_s27 + $0x20] sm:$0xf]  ;;  %vm12699_vm12 = vcmask 1042432  }
  0x4c   : > { %771 = vadd.xlane.f32.xlu0 %v766_v5  ;;  %v6765_v31 = vld [vmem:[%s7546_s27 + $0x20] sm:$0xf0]  ;;  %v6403_v34 = vld [vmem:[%s7546_s27 + $0x24] sm:$0xf0]  ;;  %v6766_v36 = vld [vmem:[%s7546_s27 + $0x28] sm:$0xf0] }
  0x4d   : > { %1043 = vrot.lane.b32.xlu2 %v7589_v4, %s7350_s15  ;;  %v7648_v16 = vsel %vm778_vm0, %v6931_v11, %v777_v15  ;;  %998 = vmatpush.bf16.msra.mxu0 %v6438_v58  ;;  %v6433_v11 = vld [vmem:[%s7546_s27 + $0x50] sm:$0xf]  ;;  %v6402_v33 = vor.u32 %v6765_v31, %v6401_v30  ;;  %v6406_v37 = vor.u32 %v6764_v32, %v6403_v34  ;;  %v6389_v39 = vld [vmem:[%s7546_s27] sm:$0xf]  ;;  %v6762_v40 = vld [vmem:[%s7546_s27 + $0x8] sm:$0xf0] }
  0x4e   : > { %1080 = vrot.lane.b32.xlu1 %v7601_v6, %s7351_s2  ;;  %12742 = vst [vmem:[#allocation13_spill] sm:$0xff] %v7648_v16  ;;  %1012 = vmatpush.bf16.msra.mxu1 %v6442_v62  ;;  %v6434_v14 = vor.u32 %v6772_v12, %v6433_v11  ;;  %v6410_v38 = vor.u32 %v6766_v36, %v6409_v35  ;;  %v6761_v41 = vld [vmem:[%s7546_s27 + $0x4] sm:$0xf]  ;;  %v6391_v44 = vld [vmem:[%s7546_s27 + $0xc] sm:$0xf0]  ;;  %vm12645_vm13 = vcmask 257024  }
  0x4f   : > { %1026 = vmatpush.bf16.msra.mxu2 %v6446_v63  ;;  %v6390_v43 = vor.u32 %v6762_v40, %v6389_v39  ;;  %v6397_v45 = vld [vmem:[%s7546_s27 + $0x8] sm:$0xf]  ;;  %v6763_v46 = vld [vmem:[%s7546_s27 + $0x10] sm:$0xf0]  ;;  %v6394_v49 = vor.u32 %v6761_v41, %v6391_v44  ;;  %vm12644_vm14 = vcmask 1041409   ;;  %vm12643_vm15 = vcmask 1042434  }
  0x50   : > { %v6398_v50 = vor.u32 %v6763_v46, %v6397_v45  ;;  %vm12642_vm0 = vcmask 1043459  }
  0x53   : > { %1027 = vmatpush.bf16.msra.mxu2 %v6434_v14 }
  0x55   : > { %1053 = vrot.lane.b32.xlu2 %v7582_v3, %s7352_s3 }
  0x56   : > { %1100 = vrot.lane.b32.xlu1 %v7610_v7, %s7350_s15 }
  0x5d   : > { %1055 = vrot.lane.b32.xlu2 %v7589_v4, %s7352_s3 }
  0x5e   : > { %1108 = vrot.lane.b32.xlu1 %v7621_v8, %s7351_s2 }
  0x60   : > { %1047 = vrot.lane.b32.xlu0 %v7582_v3, %s7351_s2 }
  0x65   : > { %1072 = vrot.lane.b32.xlu2 %v7628_v9, %s7350_s15 }
  0x68   : > { %1074 = vrot.lane.b32.xlu0 %v7601_v6, %s7350_s15 }
  0x6d   : > { %1078 = vrot.lane.b32.xlu2 %v7628_v9, %s7351_s2 }
  0x70   : > { %1084 = vrot.lane.b32.xlu0 %v7628_v9, %s7352_s3 }
  0x75   : > { %1086 = vrot.lane.b32.xlu2 %v7601_v6, %s7352_s3 }
  0x78   : > { %1102 = vrot.lane.b32.xlu0 %v7621_v8, %s7350_s15 }
  0x7d   : > { %1106 = vrot.lane.b32.xlu2 %v7610_v7, %s7351_s2 }
  0x80   : > { %1112 = vrot.lane.b32.xlu0 %v7610_v7, %s7352_s3 }
  0x85   : > { %1114 = vrot.lane.b32.xlu2 %v7621_v8, %s7352_s3 }
  0x9f   : > { %v7742_v31 = vpop.permute.xlu2 %1041 }
  0xa7   : > { %v7754_v39 = vpop.permute.xlu2 %1043 }
  0xb7   : > { %v770_v17 = vpop.xlane.xlu0 %769 }
  0xb8   : > { %v780_v18 = vmul.f32 %v7648_v16, %v770_v17  ;;  %v7660_v25 = vpop.permute.xlu1 %1049  ;;  %v6413_v17 = vld [vmem:[%s7546_s27 + $0x30] sm:$0xf] }
  0xba   : > { %v7651_v19 = vsub.f32 %v765_v2, %v780_v18  ;;  %v6770_v2 = vld [vmem:[%s7546_s27 + $0x4c] sm:$0xf]  ;;  %v6768_v18 = vld [vmem:[%s7546_s27 + $0x38] sm:$0xf0] }
  0xbb   : > { %v6430_v13 = vor.u32 %v6770_v2, %v6427_v10  ;;  %v6925_v10 = vld [vmem:[%s12743_s16] ss:$0 sm:$0xff] }
  0xbc   : > { %v784_v20 = vmul.f32 %v7651_v19, %v7651_v19 }
  0xbd   : > { %1013 = vmatpush.bf16.msra.mxu1 %v6430_v13 }
  0xbe   : > { %786 = vadd.xlane.f32.xlu1 %v784_v20  ;;  %v6767_v20 = vld [vmem:[%s7546_s27 + $0x34] sm:$0xf] }
  0xbf   : > { %v772_v21 = vpop.xlane.xlu0 %771 }
  0xc0   : > { %v781_v22 = vmul.f32 %v7648_v16, %v772_v21  ;;  %v7662_v26 = vpop.permute.xlu1 %1080  ;;  %v6414_v21 = vor.u32 %v6768_v18, %v6413_v17  ;;  %v6926_v17 = vld [vmem:[%s12744_s17] ss:$0 sm:$0xff]  ;;  %s13444_s17 = scalar_lea.vmem %s12527_s13, %s7523_s0 }
  0xc2   : > { %v7656_v23 = vsub.f32 %v766_v5, %v781_v22  ;;  %v6426_v5 = vor.u32 %v6771_v1, %v6425_v0  ;;  %v6415_v22 = vld [vmem:[%s7546_s27 + $0x3c] sm:$0xf0] }
  0xc3   : > { %v6418_v28 = vor.u32 %v6767_v20, %v6415_v22  ;;  %v7731_v22 = vld [vmem:[%s7552_s18] sm:$0x7] }
  0xc4   : > { %v785_v24 = vmul.f32 %v7656_v23, %v7656_v23  ;;  %999 = vmatpush.bf16.msra.mxu0 %v6426_v5  ;;  %v863_v34 = vperm.slane %v7731_v22, 2 }
  0xc5   : > { %1014 = vmatpush.bf16.msra.mxu1 %v6418_v28 }
  0xc6   : > { %788 = vadd.xlane.f32.xlu1 %v785_v24  ;;  %v6421_v24 = vld [vmem:[%s7546_s27 + $0x38] sm:$0xf]  ;;  %s13442_s27 = scalar_lea.vmem %s12522_s8, %s7523_s0 }
  0xc7   : > { %v6422_v29 = vor.u32 %v6769_v27, %v6421_v24  ;;  %v861_v24 = vperm.slane %v7731_v22, 0  ;;  %v862_v27 = vperm.slane %v7731_v22, 1 }
  0xc8   : > { %v7679_v48 = vpop.permute.xlu1 %1100  ;;  %1000 = vmatpush.bf16.msra.mxu0 %v6414_v21 }
  0xc9   : > { %1028 = vmatpush.bf16.msra.mxu2 %v6422_v29  ;;  %1015 = vmatpush.bf16.msra.mxu1 %v6406_v37 }
  0xcc   : > { %1001 = vmatpush.bf16.msra.mxu0 %v6402_v33 }
  0xcd   : > { %1029 = vmatpush.bf16.msra.mxu2 %v6410_v38  ;;  %1016 = vmatpush.bf16.msra.mxu1 %v6394_v49 }
  0xd0   : > { %v7696_v15 = vpop.permute.xlu1 %1108  ;;  %1002 = vmatpush.bf16.msra.mxu0 %v6390_v43 }
  0xd1   : > { %1030 = vmatpush.bf16.msra.mxu2 %v6398_v50 }
 0x131   : > { %v787_v42 = vpop.xlane.xlu1 %786 }
 0x132   : > { %v790_v47 = vmul.f32 %v787_v42, %v7648_v16  ;;  %v7761_v42 = vpop.permute.xlu2 %1053 }
 0x134   : > { %v792_v51 = vadd.f32 1e-05, %v790_v47 }
 0x136   : > { %6932 = vrsqrt.f32 %v792_v51  ;;  %vm800_vm2 = vweird.f32 %v792_v51 }
 0x139   : > { %v789_v52 = vpop.xlane.xlu1 %788 }
 0x13a   : > { %v791_v53 = vmul.f32 %v789_v52, %v7648_v16 }
 0x13c   : > { %v6933_v54 = vpop.eup %6932  ;;  %v793_v55 = vadd.f32 1e-05, %v791_v53 }
 0x13d   : > { %v795_v56 = vmul.f32 %v6933_v54, %v792_v51  ;;  %vm801_vm1 = vweird.f32 %v6933_v54  ;;  %v7777_v51 = vpop.permute.xlu2 %1055 }
 0x13e   : > { %6934 = vrsqrt.f32 %v793_v55  ;;  %vm802_vm3 = vmor %vm800_vm2, %vm801_vm1  ;;  %vm810_vm5 = vweird.f32 %v793_v55  ;;  %vm12641_vm1 = vcmask 1044484   ;;  %vm12640_vm2 = vcmask 1045509  }
 0x13f   : > { %v796_v57 = vmul.f32 %v6933_v54, %v795_v56 }
 0x141   : > { %v797_v58 = vmul.f32 0.5, %v796_v57 }
 0x143   : > { %v798_v59 = vsub.f32 1.5, %v797_v58 }
 0x144   : > { %v6935_v60 = vpop.eup %6934 }
 0x145   : > { %v799_v61 = vmul.f32 %v6933_v54, %v798_v59  ;;  %v805_v62 = vmul.f32 %v6935_v60, %v793_v55  ;;  %vm811_vm4 = vweird.f32 %v6935_v60  ;;  %v7791_v56 = vpop.permute.xlu2 %1072 }
 0x146   : > { %vm812_vm6 = vmor %vm810_vm5, %vm811_vm4  ;;  %vm12647_vm4 = vcmask 1047559   ;;  %vm12646_vm5 = vcmask 31744  }
 0x147   : > { %v806_v63 = vmul.f32 %v6935_v60, %v805_v62  ;;  %v803_v0 = vsel %vm802_vm3, %v6933_v54, %v799_v61  ;;  %v1048_v61 = vpop.permute.xlu0 %1047  ;;  %vm12701_vm3 = vcmask 1046534  }
 0x148   : > { %v814_v5 = vmul.f32 %v803_v0, %v7651_v19 }
 0x149   : > { %v807_v1 = vmul.f32 0.5, %v806_v63 }
 0x14a   : > { %v819_v14 = vmul.f32 %v6925_v10, %v814_v5 }
 0x14b   : > { %v808_v2 = vsub.f32 1.5, %v807_v1 }
 0x14c   : > { %v824_v19 = vadd.f32 %v6926_v17, %v819_v14 }
 0x14d   : > { %v809_v11 = vmul.f32 %v6935_v60, %v808_v2  ;;  %v7799_v59 = vpop.permute.xlu2 %1078 }
 0x14f   : > { %v813_v12 = vsel %vm812_vm6, %v6935_v60, %v809_v11  ;;  %v7816_v1 = vpop.permute.xlu0 %1074 }
 0x150   : > { %v815_v13 = vmul.f32 %v813_v12, %v7656_v23 }
 0x152   : > { %v820_v18 = vmul.f32 %v6925_v10, %v815_v13 }
 0x154   : > { %v825_v20 = vadd.f32 %v6926_v17, %v820_v18 }
 0x155   : > { %v7804_v60 = vpop.permute.xlu2 %1086 }
 0x156   : > { %v826_v21 = vpack.c.bf16 %v825_v20, %v824_v19 }
 0x157   : > { %v1085_v11 = vpop.permute.xlu0 %1084 }
 0x158   : > { %1003 = vmatmul.bf16.vlgmr.msra.gmra.mxu0 %v826_v21  ;;  %1017 = vmatmul.bf16.vlgmr.msra.gmra.mxu1 %v826_v21 }
 0x159   : > { %1031 = vmatmul.bf16.vlgmr.msra.gmra.mxu2 %v826_v21 }
 0x15d   : > { %v7809_v63 = vpop.permute.xlu2 %1106 }
 0x15f   : > { %v7839_v22 = vpop.permute.xlu0 %1102 }
 0x165   : > { %v7822_v5 = vpop.permute.xlu2 %1114 }
 0x1d5   : > { %v1004_v23 = vpop.f32.mrf.mxu0  ;;  %v1018_v28 = vpop.f32.mrf.mxu1 }
 0x1d6   : > { %v7735_v29 = vadd.f32 %v1004_v23, %v861_v24  ;;  %v7737_v30 = vadd.f32 %v1018_v28, %v862_v27 }
 0x1d8   : > { %1152 = vrot.lane.b32.xlu0 %v7737_v30, %s7354_s10  ;;  %1138 = vrot.lane.b32.xlu2 %v7735_v29, %s7355_s28 }
 0x1d9   : > { %1128 = vrot.lane.b32.xlu1 %v7735_v29, %s7354_s10 }
 0x1dc   : > { %v1032_v37 = vpop.f32.mrf.mxu2 }
 0x1dd   : > { %v1006_v32 = vpop.f32.mrf.mxu0  ;;  %v1020_v33 = vpop.f32.mrf.mxu1  ;;  %v7752_v38 = vadd.f32 %v1032_v37, %v863_v34 }
 0x1de   : > { %v7745_v35 = vadd.f32 %v1006_v32, %v861_v24  ;;  %v7747_v36 = vadd.f32 %v1020_v33, %v862_v27  ;;  %v1113_v37 = vpop.permute.xlu0 %1112 }
 0x1df   : > { %12745 = vst [vmem:[#allocation14_spill] sm:$0xff] %v7752_v38  ;;  %v1681_v40 = vperm.slane %v7752_v38, 0  ;;  %v12548_v41 = vrot.slane %v7752_v38, 3  ;;  %v12552_v44 = vrot.slane %v7752_v38, 2  ;;  %v12547_v45 = vrot.slane %v7752_v38, 6 }
 0x1e0   : > { %1130 = vrot.lane.b32.xlu0 %v7745_v35, %s7354_s10  ;;  %1154 = vrot.lane.b32.xlu2 %v7747_v36, %s7354_s10  ;;  %v12551_v46 = vrot.slane %v7752_v38, 1  ;;  %v12549_v52 = vrot.slane %v7752_v38, 5  ;;  %v12550_v53 = vrot.slane %v7752_v38, 4  ;;  %v12546_v57 = vrot.slane %v7752_v38, 7 }
 0x1e1   : > { %1162 = vrot.lane.b32.xlu1 %v7737_v30, %s7355_s28  ;;  %v1684_v43 = vperm.slane %v12548_v41, 0  ;;  %v1683_v47 = vperm.slane %v12552_v44, 0  ;;  %v1687_v49 = vperm.slane %v12547_v45, 0 }
 0x1e2   : > { %v1682_v50 = vperm.slane %v12551_v46, 0  ;;  %v1686_v54 = vperm.slane %v12549_v52, 0  ;;  %v1685_v55 = vperm.slane %v12550_v53, 0  ;;  %v1688_v58 = vperm.slane %v12546_v57, 0 }
 0x1e4   : > { %v1034_v62 = vpop.f32.mrf.mxu2 }
 0x1e5   : > { %v7814_v0 = vadd.f32 %v1034_v62, %v863_v34 }
 0x1e7   : > { %12746 = vst [vmem:[#allocation15_spill] sm:$0xff] %v7814_v0  ;;  %v1689_v2 = vperm.slane %v7814_v0, 0  ;;  %v12545_v10 = vrot.slane %v7814_v0, 1  ;;  %v12543_v14 = vrot.slane %v7814_v0, 3  ;;  %v12542_v17 = vrot.slane %v7814_v0, 4 }
 0x1e8   : > { %1164 = vrot.lane.b32.xlu0 %v7747_v36, %s7355_s28  ;;  %1697 = vrot.lane.b32.xlu2 %v1681_v40, %s7352_s3  ;;  %v12544_v18 = vrot.slane %v7814_v0, 2  ;;  %v12540_v27 = vrot.slane %v7814_v0, 6  ;;  %v12539_v23 = vrot.slane %v7814_v0, 7  ;;  %v12541_v28 = vrot.slane %v7814_v0, 5 }
 0x1e9   : > { %1140 = vrot.lane.b32.xlu1 %v7745_v35, %s7355_s28  ;;  %v1690_v12 = vperm.slane %v12545_v10, 0  ;;  %v1692_v19 = vperm.slane %v12543_v14, 0  ;;  %v1693_v20 = vperm.slane %v12542_v17, 0 }
 0x1ea   : > { %v1691_v21 = vperm.slane %v12544_v18, 0  ;;  %v1695_v32 = vperm.slane %v12540_v27, 0  ;;  %v1696_v33 = vperm.slane %v12539_v23, 0  ;;  %v1694_v34 = vperm.slane %v12541_v28, 0 }
 0x1f0   : > { %1793 = vrot.lane.b32.xlu0 %v1681_v40, %s7350_s15  ;;  %1703 = vrot.lane.b32.xlu2 %v1684_v43, %s7352_s3 }
 0x1f1   : > { %1745 = vrot.lane.b32.xlu1 %v1681_v40, %s7351_s2 }
 0x1f8   : > { %1701 = vrot.lane.b32.xlu0 %v1683_v47, %s7352_s3  ;;  %1709 = vrot.lane.b32.xlu2 %v1687_v49, %s7352_s3 }
 0x1f9   : > { %1699 = vrot.lane.b32.xlu1 %v1682_v50, %s7352_s3 }
 0x200   : > { %1707 = vrot.lane.b32.xlu0 %v1686_v54, %s7352_s3  ;;  %1749 = vrot.lane.b32.xlu2 %v1683_v47, %s7351_s2 }
 0x201   : > { %1705 = vrot.lane.b32.xlu1 %v1685_v55, %s7352_s3 }
 0x208   : > { %1747 = vrot.lane.b32.xlu0 %v1682_v50, %s7351_s2  ;;  %1755 = vrot.lane.b32.xlu2 %v1686_v54, %s7351_s2 }
 0x209   : > { %1711 = vrot.lane.b32.xlu1 %v1688_v58, %s7352_s3 }
 0x210   : > { %1753 = vrot.lane.b32.xlu0 %v1685_v55, %s7351_s2  ;;  %1795 = vrot.lane.b32.xlu2 %v1682_v50, %s7350_s15 }
 0x211   : > { %1751 = vrot.lane.b32.xlu1 %v1684_v43, %s7351_s2 }
 0x218   : > { %1759 = vrot.lane.b32.xlu0 %v1688_v58, %s7351_s2  ;;  %1801 = vrot.lane.b32.xlu2 %v1685_v55, %s7350_s15  ;;  %v1060_v55 = vsel %vm12639_vm7, %v7582_v3, %v7742_v31 }
 0x219   : > { %1757 = vrot.lane.b32.xlu1 %v1687_v49, %s7351_s2 }
 0x220   : > { %1799 = vrot.lane.b32.xlu0 %v1684_v43, %s7350_s15  ;;  %1807 = vrot.lane.b32.xlu2 %v1688_v58, %s7350_s15  ;;  %v1090_v58 = vsel %vm12639_vm7, %v7628_v9, %v7791_v56  ;;  %v1118_v9 = vsel %vm12639_vm7, %v7610_v7, %v7679_v48 }
 0x221   : > { %1797 = vrot.lane.b32.xlu1 %v1683_v47, %s7350_s15  ;;  %v1092_v23 = vsel %vm12638_vm8, %v1090_v58, %v7799_v59 }
 0x222   : > { %v1094_v3 = vsel %vm12637_vm9, %v1092_v23, %v1085_v11 }
 0x228   : > { %1805 = vrot.lane.b32.xlu0 %v1687_v49, %s7350_s15  ;;  %1761 = vrot.lane.b32.xlu2 %v1689_v2, %s7351_s2 }
 0x229   : > { %1803 = vrot.lane.b32.xlu1 %v1686_v54, %s7350_s15 }
 0x230   : > { %1713 = vrot.lane.b32.xlu0 %v1689_v2, %s7352_s3  ;;  %1715 = vrot.lane.b32.xlu2 %v1690_v12, %s7352_s3 }
 0x231   : > { %1809 = vrot.lane.b32.xlu1 %v1689_v2, %s7350_s15  ;;  %v1063_v2 = vsel %vm12638_vm8, %v1060_v55, %v1048_v61 }
 0x232   : > { %v1139_v13 = vpop.permute.xlu2 %1138  ;;  %v1066_v27 = vsel %vm12637_vm9, %v1063_v2, %v7761_v42 }
 0x233   : > { %v1124_v42 = vmul.f32 %v1066_v27, %v7735_v29  ;;  %v1148_v29 = vmul.f32 %v1066_v27, %v7737_v30 }
 0x238   : > { %1719 = vrot.lane.b32.xlu0 %v1692_v19, %s7352_s3  ;;  %1721 = vrot.lane.b32.xlu2 %v1693_v20, %s7352_s3 }
 0x239   : > { %1717 = vrot.lane.b32.xlu1 %v1691_v21, %s7352_s3 }
 0x23a   : > { %v7844_v24 = vpop.permute.xlu2 %1154 }
 0x240   : > { %1725 = vrot.lane.b32.xlu0 %v1695_v32, %s7352_s3  ;;  %1727 = vrot.lane.b32.xlu2 %v1696_v33, %s7352_s3 }
 0x241   : > { %1723 = vrot.lane.b32.xlu1 %v1694_v34, %s7352_s3 }
 0x242   : > { %v7858_v40 = vpop.permute.xlu2 %1697 }
 0x243   : > { %12747 = vst [vmem:[#allocation16_spill] sm:$0xff] %v7858_v40 }
 0x248   : > { %1765 = vrot.lane.b32.xlu0 %v1691_v21, %s7351_s2  ;;  %1767 = vrot.lane.b32.xlu2 %v1692_v19, %s7351_s2 }
 0x249   : > { %1763 = vrot.lane.b32.xlu1 %v1690_v12, %s7351_s2 }
 0x24a   : > { %v7863_v43 = vpop.permute.xlu2 %1703  ;;  %v1153_v47 = vpop.permute.xlu0 %1152 }
 0x24b   : > { %12748 = vst [vmem:[#allocation17_spill] sm:$0xff] %v7863_v43  ;;  %v1129_v49 = vpop.permute.xlu1 %1128 }
 0x24c   : > { %v1134_v31 = vmul.f32 %v1129_v49, %v1094_v3 }
 0x250   : > { %1771 = vrot.lane.b32.xlu0 %v1694_v34, %s7351_s2  ;;  %1773 = vrot.lane.b32.xlu2 %v1695_v32, %s7351_s2 }
 0x251   : > { %1769 = vrot.lane.b32.xlu1 %v1693_v20, %s7351_s2 }
 0x252   : > { %v7868_v50 = vpop.permute.xlu2 %1709  ;;  %v7870_v54 = vpop.permute.xlu0 %1130 }
 0x253   : > { %12749 = vst [vmem:[#allocation18_spill] sm:$0xff] %v7868_v50  ;;  %v1163_v62 = vpop.permute.xlu1 %1162 }
 0x258   : > { %1811 = vrot.lane.b32.xlu0 %v1690_v12, %s7350_s15  ;;  %1813 = vrot.lane.b32.xlu2 %v1691_v21, %s7350_s15  ;;  %v1120_v12 = vsel %vm12638_vm8, %v1118_v9, %v7809_v63  ;;  %v1136_v21 = vadd.f32 %v1134_v31, %v1124_v42  ;;  %v1158_v63 = vmul.f32 %v1153_v47, %v1094_v3 }
 0x259   : > { %1775 = vrot.lane.b32.xlu1 %v1696_v33, %s7351_s2  ;;  %v1122_v11 = vsel %vm12637_vm9, %v1120_v12, %v1113_v37 }
 0x25a   : > { %v7890_v56 = vpop.permute.xlu2 %1749  ;;  %v7892_v59 = vpop.permute.xlu0 %1164  ;;  %v1144_v23 = vmul.f32 %v1139_v13, %v1122_v11  ;;  %v1168_v58 = vmul.f32 %v1163_v62, %v1122_v11  ;;  %v1160_v37 = vadd.f32 %v1158_v63, %v1148_v29 }
 0x25b   : > { %12750 = vst [vmem:[#allocation19_spill] sm:$0xff] %v7890_v56  ;;  %v7894_v61 = vpop.permute.xlu1 %1140 }
 0x25c   : > { %v7903_v7 = vadd.f32 %v1144_v23, %v1136_v21 }
 0x25e   : > { %v1202_v13 = vperm.slane %v7903_v7, 0  ;;  %v12556_v31 = vrot.slane %v7903_v7, 2  ;;  %v12553_v12 = vrot.slane %v7903_v7, 6  ;;  %v12559_v21 = vrot.slane %v7903_v7, 1 }
 0x25f   : > { %v12557_v57 = vrot.slane %v7903_v7, 7 }
 0x260   : > { %1817 = vrot.lane.b32.xlu0 %v1693_v20, %s7350_s15  ;;  %1819 = vrot.lane.b32.xlu2 %v1694_v34, %s7350_s15  ;;  %v1204_v11 = vperm.slane %v12556_v31, 0  ;;  %v1208_v23 = vperm.slane %v12553_v12, 0  ;;  %v1203_v63 = vperm.slane %v12559_v21, 0 }
 0x261   : > { %1815 = vrot.lane.b32.xlu1 %v1692_v19, %s7350_s15  ;;  %v7916_v19 = vadd.f32 %v1168_v58, %v1160_v37  ;;  %v1209_v45 = vperm.slane %v12557_v57, 0 }
 0x262   : > { %v7905_v48 = vpop.permute.xlu2 %1755  ;;  %v7907_v49 = vpop.permute.xlu0 %1793 }
 0x263   : > { %12751 = vst [vmem:[#allocation20_spill] sm:$0xff] %v7905_v48  ;;  %v7909_v55 = vpop.permute.xlu1 %1745  ;;  %v1443_v30 = vperm.slane %v7916_v19, 0  ;;  %v12564_v16 = vrot.slane %v7916_v19, 2 }
 0x264   : > { %12752 = vst [vmem:[#allocation21_spill] sm:$0xff] %v7907_v49  ;;  %v12797_v49 = vrot.slane %v7903_v7, 4 }
 0x265   : > { %12753 = vst [vmem:[#allocation22_spill] sm:$0xff] %v7909_v55 }
 0x268   : > { %1823 = vrot.lane.b32.xlu0 %v1696_v33, %s7350_s15  ;;  %1218 = vrot.lane.b32.xlu2 %v1202_v13, %s7352_s3 }
 0x269   : > { %1821 = vrot.lane.b32.xlu1 %v1695_v32, %s7350_s15  ;;  %v12555_v32 = vrot.slane %v7903_v7, 3 }
 0x26a   : > { %v7918_v20 = vpop.permute.xlu2 %1795  ;;  %v7920_v34 = vpop.permute.xlu0 %1701 }
 0x26b   : > { %12754 = vst [vmem:[#allocation23_spill] sm:$0xff] %v7918_v20  ;;  %v7922_v2 = vpop.permute.xlu1 %1699  ;;  %v1205_v62 = vperm.slane %v12555_v32, 0 }
 0x26c   : > { %12755 = vst [vmem:[#allocation24_spill] sm:$0xff] %v7920_v34 }
 0x26d   : > { %12756 = vst [vmem:[#allocation25_spill] sm:$0xff] %v7922_v2 }
 0x270   : > { %1314 = vrot.lane.b32.xlu0 %v1202_v13, %s7350_s15  ;;  %1459 = vrot.lane.b32.xlu2 %v1443_v30, %s7352_s3 }
 0x271   : > { %1266 = vrot.lane.b32.xlu1 %v1202_v13, %s7351_s2  ;;  %v12554_v13 = vrot.slane %v7903_v7, 5 }
 0x272   : > { %v7928_v27 = vpop.permute.xlu2 %1801  ;;  %v7930_v33 = vpop.permute.xlu0 %1707 }
 0x273   : > { %12757 = vst [vmem:[#allocation26_spill] sm:$0xff] %v7928_v27  ;;  %v7933_v47 = vpop.permute.xlu1 %1705  ;;  %v1207_v28 = vperm.slane %v12554_v13, 0 }
 0x274   : > { %12758 = vst [vmem:[#allocation27_spill] sm:$0xff] %v7930_v33 }
 0x275   : > { %12759 = vst [vmem:[#allocation28_spill] sm:$0xff] %v7933_v47 }
 0x278   : > { %1555 = vrot.lane.b32.xlu0 %v1443_v30, %s7350_s15  ;;  %1224 = vrot.lane.b32.xlu2 %v1205_v62, %s7352_s3 }
 0x279   : > { %1507 = vrot.lane.b32.xlu1 %v1443_v30, %s7351_s2  ;;  %v12558_v30 = vrot.slane %v7903_v7, 4 }
 0x27a   : > { %v7940_v3 = vpop.permute.xlu2 %1807  ;;  %v7942_v9 = vpop.permute.xlu0 %1747 }
 0x27b   : > { %12760 = vst [vmem:[#allocation29_spill] sm:$0xff] %v7940_v3  ;;  %v7946_v42 = vpop.permute.xlu1 %1711  ;;  %v1206_v17 = vperm.slane %v12558_v30, 0 }
 0x27c   : > { %12761 = vst [vmem:[#allocation30_spill] sm:$0xff] %v7942_v9 }
 0x27d   : > { %12762 = vst [vmem:[#allocation31_spill] sm:$0xff] %v7946_v42 }
 0x280   : > { %1222 = vrot.lane.b32.xlu0 %v1204_v11, %s7352_s3  ;;  %1230 = vrot.lane.b32.xlu2 %v1208_v23, %s7352_s3 }
 0x281   : > { %1220 = vrot.lane.b32.xlu1 %v1203_v63, %s7352_s3 }
 0x282   : > { %v7958_v29 = vpop.permute.xlu2 %1761  ;;  %v7960_v58 = vpop.permute.xlu0 %1753 }
 0x283   : > { %12763 = vst [vmem:[#allocation32_spill] sm:$0xff] %v7958_v29  ;;  %v7963_v37 = vpop.permute.xlu1 %1751 }
 0x284   : > { %12764 = vst [vmem:[#allocation33_spill] sm:$0xff] %v7960_v58 }
 0x285   : > { %12765 = vst [vmem:[#allocation34_spill] sm:$0xff] %v7963_v37 }
 0x288   : > { %1228 = vrot.lane.b32.xlu0 %v1207_v28, %s7352_s3  ;;  %1270 = vrot.lane.b32.xlu2 %v1204_v11, %s7351_s2 }
 0x289   : > { %1226 = vrot.lane.b32.xlu1 %v1206_v17, %s7352_s3 }
 0x28a   : > { %v7973_v14 = vpop.permute.xlu2 %1715  ;;  %v7975_v18 = vpop.permute.xlu0 %1759 }
 0x28b   : > { %12766 = vst [vmem:[#allocation35_spill] sm:$0xff] %v7973_v14  ;;  %v7977_v10 = vpop.permute.xlu1 %1757 }
 0x28c   : > { %12767 = vst [vmem:[#allocation36_spill] sm:$0xff] %v7975_v18 }
 0x28d   : > { %12768 = vst [vmem:[#allocation37_spill] sm:$0xff] %v7977_v10 }
 0x290   : > { %1268 = vrot.lane.b32.xlu0 %v1203_v63, %s7351_s2  ;;  %1276 = vrot.lane.b32.xlu2 %v1207_v28, %s7351_s2 }
 0x291   : > { %1232 = vrot.lane.b32.xlu1 %v1209_v45, %s7352_s3 }
 0x292   : > { %v7985_v41 = vpop.permute.xlu2 %1721  ;;  %v7987_v52 = vpop.permute.xlu0 %1799 }
 0x293   : > { %12769 = vst [vmem:[#allocation38_spill] sm:$0xff] %v7985_v41  ;;  %v7989_v53 = vpop.permute.xlu1 %1797 }
 0x294   : > { %12770 = vst [vmem:[#allocation39_spill] sm:$0xff] %v7987_v52 }
 0x295   : > { %12771 = vst [vmem:[#allocation40_spill] sm:$0xff] %v7989_v53 }
 0x298   : > { %1274 = vrot.lane.b32.xlu0 %v1206_v17, %s7351_s2  ;;  %1316 = vrot.lane.b32.xlu2 %v1203_v63, %s7350_s15 }
 0x299   : > { %1272 = vrot.lane.b32.xlu1 %v1205_v62, %s7351_s2 }
 0x29a   : > { %v7994_v46 = vpop.permute.xlu2 %1727  ;;  %v7996_v44 = vpop.permute.xlu0 %1805 }
 0x29b   : > { %12772 = vst [vmem:[#allocation41_spill] sm:$0xff] %v7994_v46  ;;  %v7998_v12 = vpop.permute.xlu1 %1803 }
 0x29c   : > { %12773 = vst [vmem:[#allocation42_spill] sm:$0xff] %v7996_v44  ;;  %v1091_v44 = vsel %vm12639_vm7, %v7601_v6, %v7816_v1 }
 0x29d   : > { %12774 = vst [vmem:[#allocation43_spill] sm:$0xff] %v7998_v12 }
 0x2a0   : > { %1280 = vrot.lane.b32.xlu0 %v1209_v45, %s7351_s2  ;;  %1322 = vrot.lane.b32.xlu2 %v1206_v17, %s7350_s15  ;;  %v12562_v17 = vrot.slane %v7916_v19, 3 }
 0x2a1   : > { %1278 = vrot.lane.b32.xlu1 %v1208_v23, %s7351_s2 }
 0x2a2   : > { %v8003_v13 = vpop.permute.xlu2 %1767  ;;  %v8005_v32 = vpop.permute.xlu0 %1713  ;;  %v1446_v21 = vperm.slane %v12562_v17, 0 }
 0x2a3   : > { %12775 = vst [vmem:[#allocation44_spill] sm:$0xff] %v8003_v13  ;;  %v8007_v31 = vpop.permute.xlu1 %1809 }
 0x2a4   : > { %12776 = vst [vmem:[#allocation45_spill] sm:$0xff] %v8005_v32 }
 0x2a5   : > { %12777 = vst [vmem:[#allocation46_spill] sm:$0xff] %v8007_v31 }
 0x2a8   : > { %1320 = vrot.lane.b32.xlu0 %v1205_v62, %s7350_s15  ;;  %1328 = vrot.lane.b32.xlu2 %v1209_v45, %s7350_s15 }
 0x2a9   : > { %1318 = vrot.lane.b32.xlu1 %v1204_v11, %s7350_s15  ;;  %v12563_v11 = vrot.slane %v7916_v19, 6 }
 0x2aa   : > { %v8012_v63 = vpop.permute.xlu2 %1773  ;;  %v8014_v57 = vpop.permute.xlu0 %1719 }
 0x2ab   : > { %12778 = vst [vmem:[#allocation47_spill] sm:$0xff] %v8012_v63  ;;  %v8017_v30 = vpop.permute.xlu1 %1717  ;;  %v12565_v63 = vrot.slane %v7916_v19, 1  ;;  %v8035_v17 = vperm.slane %v12563_v11, 0  ;;  %v12566_v11 = vrot.slane %v7916_v19, 5 }
 0x2ac   : > { %12779 = vst [vmem:[#allocation48_spill] sm:$0xff] %v8014_v57 }
 0x2ad   : > { %12780 = vst [vmem:[#allocation49_spill] sm:$0xff] %v8017_v30 }
 0x2b0   : > { %1326 = vrot.lane.b32.xlu0 %v1208_v23, %s7350_s15  ;;  %1465 = vrot.lane.b32.xlu2 %v1446_v21, %s7352_s3  ;;  %v1445_v23 = vperm.slane %v12564_v16, 0  ;;  %v12567_v16 = vrot.slane %v7916_v19, 4 }
 0x2b1   : > { %1324 = vrot.lane.b32.xlu1 %v1207_v28, %s7350_s15  ;;  %v1444_v28 = vperm.slane %v12565_v63, 0  ;;  %v1448_v63 = vperm.slane %v12566_v11, 0 }
 0x2b2   : > { %v8024_v45 = vpop.permute.xlu2 %1813  ;;  %v8026_v62 = vpop.permute.xlu0 %1725  ;;  %v1447_v13 = vperm.slane %v12567_v16, 0 }
 0x2b3   : > { %12781 = vst [vmem:[#allocation50_spill] sm:$0xff] %v8024_v45  ;;  %v8030_v46 = vpop.permute.xlu1 %1723  ;;  %v12568_v45 = vrot.slane %v7916_v19, 7 }
 0x2b4   : > { %12782 = vst [vmem:[#allocation51_spill] sm:$0xff] %v8026_v62 }
 0x2b5   : > { %12783 = vst [vmem:[#allocation52_spill] sm:$0xff] %v8030_v46 }
 0x2b8   : > { %1471 = vrot.lane.b32.xlu2 %v8035_v17, %s7352_s3  ;;  %1463 = vrot.lane.b32.xlu0 %v1445_v23, %s7352_s3 }
 0x2b9   : > { %1461 = vrot.lane.b32.xlu1 %v1444_v28, %s7352_s3 }
 0x2ba   : > { %v8045_v62 = vpop.permute.xlu2 %1819  ;;  %v8047_v46 = vpop.permute.xlu0 %1765 }
 0x2bb   : > { %12784 = vst [vmem:[#allocation53_spill] sm:$0xff] %v8045_v62  ;;  %v8050_v41 = vpop.permute.xlu1 %1763 }
 0x2bc   : > { %12785 = vst [vmem:[#allocation54_spill] sm:$0xff] %v8047_v46 }
 0x2bd   : > { %12786 = vst [vmem:[#allocation55_spill] sm:$0xff] %v8050_v41  ;;  %v1450_v41 = vperm.slane %v12568_v45, 0 }
 0x2c0   : > { %1511 = vrot.lane.b32.xlu2 %v1445_v23, %s7351_s2  ;;  %1469 = vrot.lane.b32.xlu0 %v1448_v63, %s7352_s3 }
 0x2c1   : > { %1467 = vrot.lane.b32.xlu1 %v1447_v13, %s7352_s3 }
 0x2c2   : > { %v1219_v62 = vpop.permute.xlu2 %1218  ;;  %v8060_v57 = vpop.permute.xlu0 %1771 }
 0x2c3   : > { %12787 = vst [vmem:[#allocation56_spill] sm:$0xff] %v8060_v57  ;;  %v8062_v31 = vpop.permute.xlu1 %1769 }
 0x2c4   : > { %12788 = vst [vmem:[#allocation57_spill] sm:$0xff] %v8062_v31 }
 0x2c8   : > { %1517 = vrot.lane.b32.xlu2 %v1448_v63, %s7351_s2  ;;  %1509 = vrot.lane.b32.xlu0 %v1444_v28, %s7351_s2 }
 0x2c9   : > { %1473 = vrot.lane.b32.xlu1 %v1450_v41, %s7352_s3 }
 0x2ca   : > { %v1460_v11 = vpop.permute.xlu2 %1459  ;;  %v8070_v16 = vpop.permute.xlu0 %1811 }
 0x2cb   : > { %12789 = vst [vmem:[#allocation58_spill] sm:$0xff] %v8070_v16  ;;  %v8072_v29 = vpop.permute.xlu1 %1775  ;;  %v1093_v16 = vsel %vm12638_vm8, %v1091_v44, %v7662_v26 }
 0x2cc   : > { %12790 = vst [vmem:[#allocation59_spill] sm:$0xff] %v8072_v29  ;;  %v1061_v29 = vsel %vm12639_vm7, %v7589_v4, %v7754_v39 }
 0x2cd   : > { %v1064_v6 = vsel %vm12638_vm8, %v1061_v29, %v7660_v25 }
 0x2d0   : > { %1557 = vrot.lane.b32.xlu2 %v1444_v28, %s7350_s15  ;;  %1515 = vrot.lane.b32.xlu0 %v1447_v13, %s7351_s2  ;;  %v1119_v28 = vsel %vm12639_vm7, %v7621_v8, %v7839_v22  ;;  %v1095_v8 = vsel %vm12637_vm9, %v1093_v16, %v7804_v60  ;;  %v1067_v22 = vsel %vm12637_vm9, %v1064_v6, %v7777_v51 }
 0x2d1   : > { %1513 = vrot.lane.b32.xlu1 %v1446_v21, %s7351_s2  ;;  %v1121_v4 = vsel %vm12638_vm8, %v1119_v28, %v7696_v15  ;;  %v1135_v44 = vmul.f32 %v7870_v54, %v1095_v8  ;;  %v1125_v29 = vmul.f32 %v1067_v22, %v7745_v35  ;;  %v1159_v28 = vmul.f32 %v7844_v24, %v1095_v8 }
 0x2d2   : > { %v8077_v57 = vpop.permute.xlu2 %1224  ;;  %v8079_v45 = vpop.permute.xlu0 %1817  ;;  %v1123_v25 = vsel %vm12637_vm9, %v1121_v4, %v7822_v5  ;;  %v1363_v35 = vsel %vm12702_vm10, %v7903_v7, %v1219_v62  ;;  %v1149_v5 = vmul.f32 %v1067_v22, %v7747_v36  ;;  %v1603_v6 = vsel %vm12702_vm10, %v7916_v19, %v1460_v11 }
 0x2d3   : > { %12791 = vst [vmem:[#allocation60_spill] sm:$0xff] %v8079_v45  ;;  %v8081_v31 = vpop.permute.xlu1 %1815  ;;  %v1145_v15 = vmul.f32 %v7894_v61, %v1123_v25 }
 0x2d4   : > { %12792 = vst [vmem:[#allocation61_spill] sm:$0xff] %v8081_v31 }
 0x2d8   : > { %1563 = vrot.lane.b32.xlu2 %v1447_v13, %s7350_s15  ;;  %1521 = vrot.lane.b32.xlu0 %v1450_v41, %s7351_s2  ;;  %v1137_v13 = vadd.f32 %v1135_v44, %v1125_v29 }
 0x2d9   : > { %1519 = vrot.lane.b32.xlu1 %v8035_v17, %s7351_s2 }
 0x2da   : > { %v8102_v39 = vpop.permute.xlu2 %1230  ;;  %v8104_v1 = vpop.permute.xlu0 %1823  ;;  %v8120_v16 = vadd.f32 %v1145_v15, %v1137_v13 }
 0x2db   : > { %12793 = vst [vmem:[#allocation62_spill] sm:$0xff] %v8104_v1  ;;  %v8108_v26 = vpop.permute.xlu1 %1821 }
 0x2dc   : > { %12794 = vst [vmem:[#allocation63_spill] sm:$0xff] %v8108_v26  ;;  %v12571_v13 = vrot.slane %v8120_v16, 1 }
 0x2e0   : > { %1569 = vrot.lane.b32.xlu2 %v1450_v41, %s7350_s15  ;;  %1561 = vrot.lane.b32.xlu0 %v1446_v21, %s7350_s15  ;;  %v1169_v41 = vmul.f32 %v7892_v59, %v1123_v25  ;;  %v1210_v21 = vperm.slane %v8120_v16, 0 }
 0x2e1   : > { %1559 = vrot.lane.b32.xlu1 %v1445_v23, %s7350_s15  ;;  %v1161_v23 = vadd.f32 %v1159_v28, %v1149_v5  ;;  %v12569_v5 = vrot.slane %v8120_v16, 4 }
 0x2e2   : > { %v8122_v60 = vpop.permute.xlu2 %1270  ;;  %v1315_v54 = vpop.permute.xlu0 %1314 }
 0x2e3   : > { %v1267_v51 = vpop.permute.xlu1 %1266  ;;  %v8138_v62 = vadd.f32 %v1169_v41, %v1161_v23  ;;  %v12570_v41 = vrot.slane %v8120_v16, 3  ;;  %v1214_v23 = vperm.slane %v12569_v5, 0  ;;  %v12575_v5 = vrot.slane %v8120_v16, 5 }
 0x2e4   : > { %v1380_v61 = vsel %vm12700_vm11, %v1363_v35, %v1267_v51  ;;  %v1211_v51 = vperm.slane %v12571_v13, 0 }
 0x2e5   : > { %v8135_v24 = vsel %vm12699_vm12, %v1380_v61, %v1315_v54  ;;  %v12579_v0 = vrot.slane %v8138_v62, 4  ;;  %v12581_v27 = vrot.slane %v8138_v62, 2  ;;  %v12799_v50 = vrot.slane %v8138_v62, 7 }
 0x2e6   : > { %v4348_v44 = vperm.slane %v8135_v24, 3  ;;  %v2716_v47 = vperm.slane %v8135_v24, 1 }
 0x2e7   : > { %v8267_v20 = vperm.slane %v12579_v0, 0  ;;  %v8271_v48 = vperm.slane %v12581_v27, 0  ;;  %v8312_v58 = vperm.slane %v12799_v50, 0  ;;  %v12801_v50 = vrot.slane %v7916_v19, 4 }
 0x2e8   : > { %1567 = vrot.lane.b32.xlu0 %v8035_v17, %s7350_s15  ;;  %1282 = vrot.lane.b32.xlu2 %v1210_v21, %s7351_s2  ;;  %v3532_v17 = vperm.slane %v8135_v24, 2 }
 0x2e9   : > { %1565 = vrot.lane.b32.xlu1 %v1448_v63, %s7350_s15  ;;  %v1451_v63 = vperm.slane %v8138_v62, 0 }
 0x2ea   : > { %v8140_v36 = vpop.permute.xlu2 %1276  ;;  %v1556_v59 = vpop.permute.xlu0 %1555 }
 0x2eb   : > { %v1508_v4 = vpop.permute.xlu1 %1507 }
 0x2ec   : > { %v1619_v8 = vsel %vm12700_vm11, %v1603_v6, %v1508_v4 }
 0x2ed   : > { %v8148_v22 = vsel %vm12699_vm12, %v1619_v8, %v1556_v59  ;;  %v1213_v59 = vperm.slane %v12570_v41, 0 }
 0x2ee   : > { %v8152_v25 = vmul.f32 %v3532_v17, %v8148_v22  ;;  %v8155_v29 = vmul.f32 %v4348_v44, %v8148_v22  ;;  %v12574_v17 = vrot.slane %v8120_v16, 7  ;;  %v12573_v44 = vrot.slane %v8120_v16, 6 }
 0x2ef   : > { %v2732_v55 = vmul.f32 %v2716_v47, %v8148_v22 }
 0x2f0   : > { %1234 = vrot.lane.b32.xlu0 %v1210_v21, %s7352_s3  ;;  %1523 = vrot.lane.b32.xlu2 %v1451_v63, %s7351_s2  ;;  %v1217_v41 = vperm.slane %v12574_v17, 0  ;;  %v1216_v13 = vperm.slane %v12573_v44, 0 }
 0x2f1   : > { %1330 = vrot.lane.b32.xlu1 %v1210_v21, %s7350_s15  ;;  %v12572_v21 = vrot.slane %v8120_v16, 2 }
 0x2f2   : > { %v8160_v11 = vpop.permute.xlu2 %1316  ;;  %v8162_v15 = vpop.permute.xlu0 %1222 }
 0x2f3   : > { %v8165_v54 = vpop.permute.xlu1 %1220  ;;  %v1212_v6 = vperm.slane %v12572_v21, 0  ;;  %v1215_v21 = vperm.slane %v12575_v5, 0 }
 0x2f8   : > { %1236 = vrot.lane.b32.xlu2 %v1211_v51, %s7352_s3  ;;  %1475 = vrot.lane.b32.xlu0 %v1451_v63, %s7352_s3 }
 0x2f9   : > { %1571 = vrot.lane.b32.xlu1 %v1451_v63, %s7350_s15 }
 0x2fa   : > { %v8172_v28 = vpop.permute.xlu2 %1322  ;;  %v8174_v35 = vpop.permute.xlu0 %1228 }
 0x2fb   : > { %v8178_v61 = vpop.permute.xlu1 %1226 }
 0x300   : > { %1242 = vrot.lane.b32.xlu2 %v1214_v23, %s7352_s3  ;;  %1240 = vrot.lane.b32.xlu0 %v1213_v59, %s7352_s3 }
 0x301   : > { %1238 = vrot.lane.b32.xlu1 %v1212_v6, %s7352_s3 }
 0x302   : > { %v8190_v4 = vpop.permute.xlu2 %1328  ;;  %v1269_v8 = vpop.permute.xlu0 %1268 }
 0x303   : > { %v8194_v63 = vpop.permute.xlu1 %1232 }
 0x308   : > { %1248 = vrot.lane.b32.xlu2 %v1217_v41, %s7352_s3  ;;  %1246 = vrot.lane.b32.xlu0 %v1216_v13, %s7352_s3 }
 0x309   : > { %1244 = vrot.lane.b32.xlu1 %v1215_v21, %s7352_s3 }
 0x30a   : > { %v8206_v1 = vpop.permute.xlu2 %1465  ;;  %v1275_v26 = vpop.permute.xlu0 %1274 }
 0x30b   : > { %v8208_v45 = vpop.permute.xlu1 %1272 }
 0x310   : > { %1288 = vrot.lane.b32.xlu2 %v1213_v59, %s7351_s2  ;;  %1286 = vrot.lane.b32.xlu0 %v1212_v6, %s7351_s2 }
 0x311   : > { %1284 = vrot.lane.b32.xlu1 %v1211_v51, %s7351_s2 }
 0x312   : > { %v8213_v44 = vpop.permute.xlu2 %1471  ;;  %v8215_v17 = vpop.permute.xlu0 %1280 }
 0x313   : > { %v8217_v5 = vpop.permute.xlu1 %1278 }
 0x318   : > { %1294 = vrot.lane.b32.xlu2 %v1216_v13, %s7351_s2  ;;  %1292 = vrot.lane.b32.xlu0 %v1215_v21, %s7351_s2 }
 0x319   : > { %1290 = vrot.lane.b32.xlu1 %v1214_v23, %s7351_s2 }
 0x31a   : > { %v8222_v31 = vpop.permute.xlu2 %1511  ;;  %v8224_v12 = vpop.permute.xlu0 %1320 }
 0x31b   : > { %v8226_v52 = vpop.permute.xlu1 %1318 }
 0x320   : > { %1334 = vrot.lane.b32.xlu2 %v1212_v6, %s7350_s15  ;;  %1332 = vrot.lane.b32.xlu0 %v1211_v51, %s7350_s15  ;;  %v12578_v6 = vrot.slane %v8138_v62, 1 }
 0x321   : > { %1296 = vrot.lane.b32.xlu1 %v1217_v41, %s7351_s2 }
 0x322   : > { %v8231_v53 = vpop.permute.xlu2 %1517  ;;  %v8233_v46 = vpop.permute.xlu0 %1326  ;;  %v8245_v32 = vperm.slane %v12578_v6, 0  ;;  %v12795_v6 = vrot.slane %v7903_v7, 1 }
 0x323   : > { %v8235_v3 = vpop.permute.xlu1 %1324 }
 0x328   : > { %1340 = vrot.lane.b32.xlu2 %v1215_v21, %s7350_s15  ;;  %1338 = vrot.lane.b32.xlu0 %v1214_v23, %s7350_s15 }
 0x329   : > { %1336 = vrot.lane.b32.xlu1 %v1213_v59, %s7350_s15  ;;  %v12580_v59 = vrot.slane %v8138_v62, 3 }
 0x32a   : > { %v1558_v10 = vpop.permute.xlu2 %1557  ;;  %v8240_v30 = vpop.permute.xlu0 %1463 }
 0x32b   : > { %v1462_v51 = vpop.permute.xlu1 %1461 }
 0x330   : > { %1344 = vrot.lane.b32.xlu0 %v1217_v41, %s7350_s15  ;;  %1477 = vrot.lane.b32.xlu2 %v8245_v32, %s7352_s3  ;;  %v1364_v41 = vsel %vm12702_vm10, %v12795_v6, %v8165_v54  ;;  %v12796_v54 = vrot.slane %v7916_v19, 1 }
 0x331   : > { %1342 = vrot.lane.b32.xlu1 %v1216_v13, %s7350_s15  ;;  %v1381_v37 = vsel %vm12700_vm11, %v1364_v41, %v1269_v8  ;;  %v8263_v13 = vperm.slane %v12580_v59, 0 }
 0x332   : > { %v1564_v21 = vpop.permute.xlu2 %1563  ;;  %v8251_v23 = vpop.permute.xlu0 %1469  ;;  %v8275_v18 = vsel %vm12699_vm12, %v1381_v37, %v8160_v11  ;;  %v1604_v8 = vsel %vm12702_vm10, %v12796_v54, %v1462_v51  ;;  %v1367_v51 = vsel %vm12702_vm10, %v12797_v49, %v8178_v61  ;;  %v12800_v49 = vrot.slane %v8138_v62, 5 }
 0x333   : > { %v1468_v14 = vpop.permute.xlu1 %1467  ;;  %v3533_v56 = vperm.slane %v8275_v18, 2  ;;  %v4349_v42 = vperm.slane %v8275_v18, 3  ;;  %v1384_v0 = vsel %vm12700_vm11, %v1367_v51, %v1275_v26  ;;  %v1890_v38 = vperm.slane %v8275_v18, 0 }
 0x334   : > { %v8320_v26 = vsel %vm12699_vm12, %v1384_v0, %v8172_v28 }
 0x335   : > { %v3536_v28 = vperm.slane %v8320_v26, 2  ;;  %v4352_v51 = vperm.slane %v8320_v26, 3 }
 0x338   : > { %1481 = vrot.lane.b32.xlu0 %v8263_v13, %s7352_s3  ;;  %1483 = vrot.lane.b32.xlu2 %v8267_v20, %s7352_s3 }
 0x339   : > { %1479 = vrot.lane.b32.xlu1 %v8271_v48, %s7352_s3 }
 0x33a   : > { %v1570_v6 = vpop.permute.xlu2 %1569  ;;  %v1510_v41 = vpop.permute.xlu0 %1509 }
 0x33b   : > { %v1474_v11 = vpop.permute.xlu1 %1473  ;;  %v1620_v59 = vsel %vm12700_vm11, %v1604_v8, %v1510_v41  ;;  %v12798_v41 = vrot.slane %v8138_v62, 6 }
 0x33c   : > { %v8297_v54 = vsel %vm12699_vm12, %v1620_v59, %v1558_v10  ;;  %v8316_v10 = vperm.slane %v12800_v49, 0 }
 0x33d   : > { %v8301_v37 = vmul.f32 %v3533_v56, %v8297_v54  ;;  %v8304_v8 = vmul.f32 %v4349_v42, %v8297_v54  ;;  %v8308_v27 = vperm.slane %v12798_v41, 0  ;;  %v1607_v56 = vsel %vm12702_vm10, %v12801_v50, %v1468_v14 }
 0x33e   : > { %v12802_v41 = vrot.slane %v7903_v7, 7  ;;  %v1906_v40 = vmul.f32 %v1890_v38, %v8297_v54 }
 0x340   : > { %1487 = vrot.lane.b32.xlu0 %v8308_v27, %s7352_s3  ;;  %1489 = vrot.lane.b32.xlu2 %v8312_v58, %s7352_s3  ;;  %v1370_v49 = vsel %vm12702_vm10, %v12802_v41, %v8194_v63 }
 0x341   : > { %1485 = vrot.lane.b32.xlu1 %v8316_v10, %s7352_s3  ;;  %v1387_v14 = vsel %vm12700_vm11, %v1370_v49, %v8215_v17  ;;  %v12803_v17 = vrot.slane %v7916_v19, 7  ;;  %v12804_v49 = vrot.slane %v7903_v7, 2 }
 0x342   : > { %v8331_v42 = vpop.permute.xlu2 %1282  ;;  %v1516_v61 = vpop.permute.xlu0 %1515 }
 0x343   : > { %v1514_v59 = vpop.permute.xlu1 %1513  ;;  %v1623_v0 = vsel %vm12700_vm11, %v1607_v56, %v1516_v61  ;;  %v8353_v61 = vsel %vm12699_vm12, %v1387_v14, %v8190_v4  ;;  %v1610_v63 = vsel %vm12702_vm10, %v12803_v17, %v1474_v11  ;;  %v1365_v14 = vsel %vm12702_vm10, %v12804_v49, %v8162_v15 }
 0x344   : > { %v8341_v9 = vsel %vm12699_vm12, %v1623_v0, %v1564_v21  ;;  %v4355_v41 = vperm.slane %v8353_v61, 3  ;;  %v12805_v11 = vrot.slane %v7903_v7, 3  ;;  %v1382_v15 = vsel %vm12700_vm11, %v1365_v14, %v8122_v60 }
 0x345   : > { %v8346_v50 = vmul.f32 %v3536_v28, %v8341_v9  ;;  %v8349_v56 = vmul.f32 %v4352_v51, %v8341_v9  ;;  %v3539_v51 = vperm.slane %v8353_v61, 2 }
 0x346   : > { %v1366_v17 = vsel %vm12702_vm10, %v12805_v11, %v8077_v57  ;;  %v12808_v57 = vrot.slane %v7916_v19, 2 }
 0x348   : > { %1527 = vrot.lane.b32.xlu0 %v8271_v48, %s7351_s2  ;;  %1529 = vrot.lane.b32.xlu2 %v8263_v13, %s7351_s2 }
 0x349   : > { %1525 = vrot.lane.b32.xlu1 %v8245_v32, %s7351_s2 }
 0x34a   : > { %v8364_v21 = vpop.permute.xlu2 %1523  ;;  %v1522_v0 = vpop.permute.xlu0 %1521 }
 0x34b   : > { %v1520_v28 = vpop.permute.xlu1 %1519  ;;  %v1626_v4 = vsel %vm12700_vm11, %v1610_v63, %v1522_v0  ;;  %v1383_v0 = vsel %vm12700_vm11, %v1366_v17, %v8208_v45  ;;  %v12809_v45 = vrot.slane %v7916_v19, 3 }
 0x34c   : > { %v8374_v43 = vsel %vm12699_vm12, %v1626_v4, %v1570_v6  ;;  %v8392_v6 = vsel %vm12699_vm12, %v1383_v0, %v8224_v12  ;;  %v8396_v4 = vsel %vm12699_vm12, %v1382_v15, %v8226_v52  ;;  %v12810_v0 = vrot.slane %v7903_v7, 5 }
 0x34d   : > { %v8381_v33 = vmul.f32 %v3539_v51, %v8374_v43  ;;  %v8384_v63 = vmul.f32 %v4355_v41, %v8374_v43  ;;  %v1605_v51 = vsel %vm12702_vm10, %v12808_v57, %v8240_v30  ;;  %v1606_v12 = vsel %vm12702_vm10, %v12809_v45, %v8206_v1 }
 0x34e   : > { %v1622_v52 = vsel %vm12700_vm11, %v1606_v12, %v1514_v59  ;;  %v3535_v30 = vperm.slane %v8392_v6, 2  ;;  %v1621_v14 = vsel %vm12700_vm11, %v1605_v51, %v8222_v31  ;;  %v3534_v17 = vperm.slane %v8396_v4, 2 }
 0x34f   : > { %12806 = vst [vmem:[#allocation64_spill] sm:$0xff] %v8381_v33  ;;  %v4351_v1 = vperm.slane %v8392_v6, 3  ;;  %v1368_v59 = vsel %vm12702_vm10, %v12810_v0, %v8174_v35  ;;  %v4350_v31 = vperm.slane %v8396_v4, 3  ;;  %v12811_v51 = vrot.slane %v7903_v7, 6 }
 0x350   : > { %12807 = vst [vmem:[#allocation65_spill] sm:$0xff] %v8384_v63  ;;  %1533 = vrot.lane.b32.xlu0 %v8316_v10, %s7351_s2  ;;  %1535 = vrot.lane.b32.xlu2 %v8308_v27, %s7351_s2  ;;  %v1891_v34 = vperm.slane %v8396_v4, 0  ;;  %v1892_v47 = vperm.slane %v8392_v6, 0 }
 0x351   : > { %1531 = vrot.lane.b32.xlu1 %v8267_v20, %s7351_s2  ;;  %v1369_v45 = vsel %vm12702_vm10, %v12811_v51, %v8102_v39 }
 0x352   : > { %v8413_v60 = vpop.permute.xlu2 %1236  ;;  %v1562_v41 = vpop.permute.xlu0 %1561  ;;  %v1386_v35 = vsel %vm12700_vm11, %v1369_v45, %v8217_v5 }
 0x353   : > { %v1560_v49 = vpop.permute.xlu1 %1559  ;;  %v8419_v11 = vsel %vm12699_vm12, %v1622_v52, %v1562_v41  ;;  %v8453_v7 = vsel %vm12699_vm12, %v1386_v35, %v8233_v46 }
 0x354   : > { %v8428_v15 = vsel %vm12699_vm12, %v1621_v14, %v1560_v49  ;;  %v8431_v57 = vmul.f32 %v3535_v30, %v8419_v11  ;;  %v8442_v52 = vmul.f32 %v4351_v1, %v8419_v11  ;;  %v1385_v30 = vsel %vm12700_vm11, %v1368_v59, %v8140_v36 }
 0x355   : > { %v8439_v12 = vmul.f32 %v3534_v17, %v8428_v15  ;;  %v8447_v41 = vmul.f32 %v4350_v31, %v8428_v15  ;;  %v8457_v39 = vsel %vm12699_vm12, %v1385_v30, %v8235_v3  ;;  %v12813_v49 = vrot.slane %v7916_v19, 5 }
 0x356   : > { %12812 = vst [vmem:[#allocation66_spill] sm:$0xff] %v8442_v52  ;;  %v12814_v36 = vrot.slane %v7916_v19, 6  ;;  %v3537_v19 = vperm.slane %v8457_v39, 2  ;;  %v4353_v59 = vperm.slane %v8457_v39, 3  ;;  %v1908_v38 = vmul.f32 %v1892_v47, %v8419_v11 }
 0x357   : > { %v1608_v14 = vsel %vm12702_vm10, %v12813_v49, %v8251_v23  ;;  %v3538_v23 = vperm.slane %v8453_v7, 2 }
 0x358   : > { %1573 = vrot.lane.b32.xlu0 %v8245_v32, %s7350_s15  ;;  %1575 = vrot.lane.b32.xlu2 %v8271_v48, %s7350_s15  ;;  %v1609_v46 = vsel %vm12702_vm10, %v12814_v36, %v8213_v44  ;;  %v1624_v32 = vsel %vm12700_vm11, %v1608_v14, %v8231_v53  ;;  %v4354_v44 = vperm.slane %v8453_v7, 3 }
 0x359   : > { %1537 = vrot.lane.b32.xlu1 %v8312_v58, %s7351_s2  ;;  %v1625_v3 = vsel %vm12700_vm11, %v1609_v46, %v1520_v28 }
 0x35a   : > { %v8474_v5 = vpop.permute.xlu2 %1242  ;;  %v1568_v17 = vpop.permute.xlu0 %1567 }
 0x35b   : > { %v1566_v1 = vpop.permute.xlu1 %1565  ;;  %v8480_v48 = vsel %vm12699_vm12, %v1625_v3, %v1568_v17 }
 0x35c   : > { %v8485_v0 = vsel %vm12699_vm12, %v1624_v32, %v1566_v1  ;;  %v8488_v28 = vmul.f32 %v3538_v23, %v8480_v48  ;;  %v8495_v53 = vmul.f32 %v4354_v44, %v8480_v48  ;;  %v1889_v23 = vperm.slane %v8135_v24, 0 }
 0x35d   : > { %v8492_v31 = vmul.f32 %v3537_v19, %v8485_v0  ;;  %v8498_v51 = vmul.f32 %v4353_v59, %v8485_v0  ;;  %v1925_v24 = vsel %vm12645_vm13, %v1906_v40, 0.0 }
 0x35e   : > { %12815 = vst [vmem:[#allocation67_spill] sm:$0xff] %v8488_v28  ;;  %v1905_v32 = vmul.f32 %v1889_v23, %v8148_v22  ;;  %v1907_v23 = vmul.f32 %v1891_v34, %v8428_v15  ;;  %v1894_v34 = vperm.slane %v8457_v39, 0 }
 0x35f   : > { %12816 = vst [vmem:[#allocation68_spill] sm:$0xff] %v8492_v31 }
 0x360   : > { %12817 = vst [vmem:[#allocation69_spill] sm:$0xff] %v8495_v53  ;;  %1579 = vrot.lane.b32.xlu0 %v8267_v20, %s7350_s15  ;;  %1581 = vrot.lane.b32.xlu2 %v8316_v10, %s7350_s15  ;;  %v1922_v19 = vsel %vm12645_vm13, %v1905_v32, 0.0  ;;  %v2748_v32 = vsel %vm12645_vm13, %v2732_v55, 0.0  ;;  %v1893_v55 = vperm.slane %v8320_v26, 0 }
 0x361   : > { %12818 = vst [vmem:[#allocation70_spill] sm:$0xff] %v8498_v51  ;;  %1577 = vrot.lane.b32.xlu1 %v8263_v13, %s7350_s15 }
 0x362   : > { %v8506_v45 = vpop.permute.xlu2 %1248  ;;  %v8508_v35 = vpop.permute.xlu0 %1234 }
 0x363   : > { %v8510_v30 = vpop.permute.xlu1 %1330 }
 0x368   : > { %1585 = vrot.lane.b32.xlu0 %v8312_v58, %s7350_s15 }
 0x369   : > { %1583 = vrot.lane.b32.xlu1 %v8308_v27, %s7350_s15 }
 0x36a   : > { %v8516_v49 = vpop.permute.xlu2 %1288  ;;  %v8518_v20 = vpop.permute.xlu0 %1475 }
 0x36b   : > { %v8520_v10 = vpop.permute.xlu1 %1571 }
 0x372   : > { %v8522_v14 = vpop.permute.xlu2 %1294  ;;  %v8524_v13 = vpop.permute.xlu0 %1240 }
 0x373   : > { %v8526_v36 = vpop.permute.xlu1 %1238 }
 0x37a   : > { %v8528_v46 = vpop.permute.xlu2 %1334  ;;  %v8530_v3 = vpop.permute.xlu0 %1246 }
 0x37b   : > { %v8532_v58 = vpop.permute.xlu1 %1244 }
 0x382   : > { %v8534_v17 = vpop.permute.xlu2 %1340  ;;  %v8536_v27 = vpop.permute.xlu0 %1286 }
 0x383   : > { %v8539_v1 = vpop.permute.xlu1 %1284 }
 0x389   : > { %1923 = vadd.xlane.f32.xlu2 %v1922_v19  ;;  %v1928_v19 = vsel %vm12645_vm13, %v1907_v23, 0.0  ;;  %v1910_v23 = vmul.f32 %v1894_v34, %v8485_v0  ;;  %v2717_v34 = vperm.slane %v8275_v18, 1  ;;  %v2719_v18 = vperm.slane %v8392_v6, 1 }
 0x38a   : > { %v8543_v44 = vpop.permute.xlu2 %1477  ;;  %v8545_v59 = vpop.permute.xlu0 %1292 }
 0x38b   : > { %v8548_v2 = vpop.permute.xlu1 %1290  ;;  %v1937_v40 = vsel %vm12645_vm13, %v1910_v23, 0.0  ;;  %v2733_v23 = vmul.f32 %v2717_v34, %v8297_v54  ;;  %v2735_v54 = vmul.f32 %v2719_v18, %v8419_v11  ;;  %v2718_v34 = vperm.slane %v8396_v4, 1 }
 0x38c   : > { %v2722_v4 = vperm.slane %v8453_v7, 1  ;;  %v2721_v18 = vperm.slane %v8457_v39, 1 }
 0x391   : > { %2749 = vadd.xlane.f32.xlu2 %v2748_v32  ;;  %v1909_v32 = vmul.f32 %v1893_v55, %v8341_v9 }
 0x392   : > { %v8557_v63 = vpop.permute.xlu2 %1483  ;;  %1929 = vadd.xlane.f32.xlu0 %v1928_v19  ;;  %v8560_v53 = vpop.permute.xlu0 %1332  ;;  %v1931_v19 = vsel %vm12645_vm13, %v1908_v38, 0.0  ;;  %v1896_v38 = vperm.slane %v8353_v61, 0 }
 0x393   : > { %v8563_v22 = vpop.permute.xlu1 %1296  ;;  %1926 = vadd.xlane.f32.xlu1 %v1925_v24  ;;  %v1934_v51 = vsel %vm12645_vm13, %v1909_v32, 0.0  ;;  %v1895_v24 = vperm.slane %v8453_v7, 0 }
 0x395   : > { %v1911_v55 = vmul.f32 %v1895_v24, %v8480_v48  ;;  %v2720_v24 = vperm.slane %v8320_v26, 1 }
 0x397   : > { %v1940_v32 = vsel %vm12645_vm13, %v1911_v55, 0.0 }
 0x399   : > { %1932 = vadd.xlane.f32.xlu2 %v1931_v19  ;;  %v1912_v19 = vmul.f32 %v1896_v38, %v8374_v43  ;;  %v2736_v38 = vmul.f32 %v2720_v24, %v8341_v9  ;;  %v2723_v9 = vperm.slane %v8353_v61, 1 }
 0x39a   : > { %1938 = vadd.xlane.f32.xlu0 %v1937_v40  ;;  %v8573_v28 = vpop.permute.xlu0 %1338  ;;  %v8578_v47 = vpop.permute.xlu2 %1489  ;;  %v2751_v40 = vsel %vm12645_vm13, %v2733_v23, 0.0  ;;  %v2734_v23 = vmul.f32 %v2718_v34, %v8428_v15  ;;  %v1611_v15 = vsel %vm12702_vm10, %v8138_v62, %v8518_v20 }
 0x39b   : > { %v8576_v31 = vpop.permute.xlu1 %1336  ;;  %1935 = vadd.xlane.f32.xlu1 %v1934_v51  ;;  %v1943_v33 = vsel %vm12645_vm13, %v1912_v19, 0.0  ;;  %v2757_v19 = vsel %vm12645_vm13, %v2735_v54, 0.0  ;;  %v2760_v6 = vsel %vm12645_vm13, %v2736_v38, 0.0  ;;  %v2739_v24 = vmul.f32 %v2723_v9, %v8374_v43 }
 0x39c   : > { %v2754_v26 = vsel %vm12645_vm13, %v2734_v23, 0.0  ;;  %v2737_v54 = vmul.f32 %v2721_v18, %v8485_v0  ;;  %v1627_v7 = vsel %vm12700_vm11, %v1611_v15, %v8364_v21  ;;  %v12820_v9 = vrot.slane %v8138_v62, 2 }
 0x39d   : > { %v2769_v39 = vsel %vm12645_vm13, %v2739_v24, 0.0 }
 0x39e   : > { %v2763_v43 = vsel %vm12645_vm13, %v2737_v54, 0.0 }
 0x3a1   : > { %1941 = vadd.xlane.f32.xlu2 %v1940_v32 }
 0x3a2   : > { %2752 = vadd.xlane.f32.xlu0 %v2751_v40  ;;  %v8588_v52 = vpop.permute.xlu0 %1344  ;;  %v8596_v55 = vpop.permute.xlu2 %1529  ;;  %v2738_v40 = vmul.f32 %v2722_v4, %v8480_v48 }
 0x3a3   : > { %v8591_v51 = vpop.permute.xlu1 %1342  ;;  %1944 = vadd.xlane.f32.xlu1 %v1943_v33  ;;  %v1371_v33 = vsel %vm12702_vm10, %v8120_v16, %v8508_v35 }
 0x3a4   : > { %v1388_v35 = vsel %vm12700_vm11, %v1371_v33, %v8331_v42  ;;  %v2766_v48 = vsel %vm12645_vm13, %v2738_v40, 0.0  ;;  %v8631_v42 = vsel %vm12699_vm12, %v1627_v7, %v8520_v10 }
 0x3a5   : > { %v8625_v61 = vsel %vm12699_vm12, %v1388_v35, %v8510_v30  ;;  %v12819_v30 = vrot.slane %v8120_v16, 2 }
 0x3a6   : > { %v1897_v20 = vperm.slane %v8625_v61, 0  ;;  %v2724_v23 = vperm.slane %v8625_v61, 1 }
 0x3a7   : > { %v1373_v38 = vsel %vm12702_vm10, %v12819_v30, %v8526_v36 }
 0x3a8   : > { %v1390_v10 = vsel %vm12700_vm11, %v1373_v38, %v8536_v27 }
 0x3a9   : > { %2758 = vadd.xlane.f32.xlu2 %v2757_v19  ;;  %v1913_v19 = vmul.f32 %v1897_v20, %v8631_v42  ;;  %v8648_v33 = vsel %vm12699_vm12, %v1390_v10, %v8528_v46  ;;  %v12821_v46 = vrot.slane %v8120_v16, 5  ;;  %v12822_v20 = vrot.slane %v8138_v62, 5 }
 0x3aa   : > { %2761 = vadd.xlane.f32.xlu0 %v2760_v6  ;;  %v8606_v11 = vpop.permute.xlu0 %1481  ;;  %v8621_v34 = vpop.permute.xlu2 %1535  ;;  %v2740_v6 = vmul.f32 %v2724_v23, %v8631_v42  ;;  %v4358_v35 = vperm.slane %v8648_v33, 3 }
 0x3ab   : > { %v1480_v32 = vpop.permute.xlu1 %1479  ;;  %2755 = vadd.xlane.f32.xlu1 %v2754_v26  ;;  %v1946_v4 = vsel %vm12645_vm13, %v1913_v19, 0.0  ;;  %v1376_v24 = vsel %vm12702_vm10, %v12821_v46, %v8532_v58 }
 0x3ac   : > { %v1613_v36 = vsel %vm12702_vm10, %v12820_v9, %v1480_v32  ;;  %v2772_v15 = vsel %vm12645_vm13, %v2740_v6, 0.0  ;;  %v1899_v32 = vperm.slane %v8648_v33, 0  ;;  %v1393_v7 = vsel %vm12700_vm11, %v1376_v24, %v8545_v59 }
 0x3b1   : > { %2767 = vadd.xlane.f32.xlu2 %v2766_v48 }
 0x3b2   : > { %2770 = vadd.xlane.f32.xlu0 %v2769_v39  ;;  %v8634_v0 = vpop.permute.xlu0 %1487  ;;  %v1576_v26 = vpop.permute.xlu2 %1575 }
 0x3b3   : > { %v1486_v21 = vpop.permute.xlu1 %1485  ;;  %2764 = vadd.xlane.f32.xlu1 %v2763_v43  ;;  %v8673_v43 = vsel %vm12699_vm12, %v1393_v7, %v8534_v17 }
 0x3b4   : > { %v1616_v58 = vsel %vm12702_vm10, %v12822_v20, %v1486_v21  ;;  %v3545_v19 = vperm.slane %v8673_v43, 2  ;;  %v4361_v6 = vperm.slane %v8673_v43, 3  ;;  %v1902_v17 = vperm.slane %v8673_v43, 0 }
 0x3b5   : > { %v12823_v21 = vrot.slane %v8120_v16, 1  ;;  %v12825_v20 = vrot.slane %v8120_v16, 3 }
 0x3ba   : > { %1947 = vadd.xlane.f32.xlu0 %v1946_v4  ;;  %v1528_v40 = vpop.permute.xlu0 %1527  ;;  %v1582_v23 = vpop.permute.xlu2 %1581  ;;  %v1372_v4 = vsel %vm12702_vm10, %v12823_v21, %v8413_v60 }
 0x3bb   : > { %v1526_v27 = vpop.permute.xlu1 %1525  ;;  %2773 = vadd.xlane.f32.xlu1 %v2772_v15  ;;  %v1629_v18 = vsel %vm12700_vm11, %v1613_v36, %v1528_v40  ;;  %v1389_v15 = vsel %vm12700_vm11, %v1372_v4, %v8539_v1  ;;  %v12830_v4 = vrot.slane %v8120_v16, 6 }
 0x3bc   : > { %v8662_v54 = vsel %vm12699_vm12, %v1629_v18, %v1576_v26  ;;  %v8701_v18 = vsel %vm12699_vm12, %v1389_v15, %v8560_v53 }
 0x3bd   : > { %v8668_v48 = vmul.f32 %v4358_v35, %v8662_v54  ;;  %v1915_v39 = vmul.f32 %v1899_v32, %v8662_v54  ;;  %v12824_v35 = vrot.slane %v8138_v62, 1  ;;  %v1898_v7 = vperm.slane %v8701_v18, 0 }
 0x3be   : > { %v4357_v53 = vperm.slane %v8701_v18, 3 }
 0x3bf   : > { %v1952_v30 = vsel %vm12645_vm13, %v1915_v39, 0.0  ;;  %v1612_v60 = vsel %vm12702_vm10, %v12824_v35, %v8543_v44 }
 0x3c0   : > { %v1628_v46 = vsel %vm12700_vm11, %v1612_v60, %v1526_v27  ;;  %v12826_v27 = vrot.slane %v8120_v16, 4 }
 0x3c2   : > { %v1534_v38 = vpop.permute.xlu0 %1533 }
 0x3c3   : > { %v1532_v10 = vpop.permute.xlu1 %1531  ;;  %1953 = vadd.xlane.f32.xlu1 %v1952_v30  ;;  %v1632_v59 = vsel %vm12700_vm11, %v1616_v58, %v1534_v38  ;;  %v1374_v58 = vsel %vm12702_vm10, %v12825_v20, %v8524_v13  ;;  %v1375_v30 = vsel %vm12702_vm10, %v12826_v27, %v8474_v5  ;;  %v12827_v5 = vrot.slane %v8138_v62, 3 }
 0x3c4   : > { %v8683_v26 = vsel %vm12699_vm12, %v1632_v59, %v1582_v23  ;;  %v1392_v23 = vsel %vm12700_vm11, %v1375_v30, %v8548_v2  ;;  %v12828_v2 = vrot.slane %v8120_v16, 7 }
 0x3c5   : > { %v8691_v9 = vmul.f32 %v3545_v19, %v8683_v26  ;;  %v8694_v36 = vmul.f32 %v4361_v6, %v8683_v26  ;;  %v1918_v40 = vmul.f32 %v1902_v17, %v8683_v26  ;;  %v1391_v19 = vsel %vm12700_vm11, %v1374_v58, %v8516_v49 }
 0x3c6   : > { %v8733_v13 = vsel %vm12699_vm12, %v1392_v23, %v8573_v28  ;;  %v8737_v6 = vsel %vm12699_vm12, %v1391_v19, %v8576_v31  ;;  %v1614_v17 = vsel %vm12702_vm10, %v12827_v5, %v8606_v11  ;;  %v1378_v21 = vsel %vm12702_vm10, %v12828_v2, %v8506_v45 }
 0x3c7   : > { %v1961_v24 = vsel %vm12645_vm13, %v1918_v40, 0.0  ;;  %v12829_v49 = vrot.slane %v8138_v62, 4  ;;  %v1377_v31 = vsel %vm12702_vm10, %v12830_v4, %v8530_v3  ;;  %v1901_v11 = vperm.slane %v8733_v13, 0 }
 0x3c8   : > { %v3544_v35 = vperm.slane %v8733_v13, 2  ;;  %v1630_v45 = vsel %vm12700_vm11, %v1614_v17, %v8596_v55  ;;  %v2727_v16 = vperm.slane %v8737_v6, 1  ;;  %v1395_v55 = vsel %vm12700_vm11, %v1378_v21, %v8563_v22 }
 0x3c9   : > { %v1615_v28 = vsel %vm12702_vm10, %v12829_v49, %v8557_v63  ;;  %v1900_v63 = vperm.slane %v8737_v6, 0  ;;  %v1394_v20 = vsel %vm12700_vm11, %v1377_v31, %v8522_v14  ;;  %v8781_v58 = vsel %vm12699_vm12, %v1395_v55, %v8588_v52 }
 0x3ca   : > { %v1574_v32 = vpop.permute.xlu0 %1573  ;;  %v1631_v15 = vsel %vm12700_vm11, %v1615_v28, %v1532_v10  ;;  %v1411_v30 = vsel %vm12699_vm12, %v1394_v20, %v8591_v51  ;;  %v12831_v14 = vrot.slane %v8138_v62, 6  ;;  %v12832_v52 = vrot.slane %v8138_v62, 7 }
 0x3cb   : > { %v1538_v39 = vpop.permute.xlu1 %1537  ;;  %1962 = vadd.xlane.f32.xlu1 %v1961_v24  ;;  %v8711_v1 = vsel %vm12699_vm12, %v1628_v46, %v1574_v32  ;;  %v4360_v32 = vperm.slane %v8733_v13, 3  ;;  %v1904_v5 = vperm.slane %v8781_v58, 0  ;;  %v1903_v2 = vperm.slane %v1411_v30, 0 }
 0x3cc   : > { %v1914_v44 = vmul.f32 %v1898_v7, %v8711_v1  ;;  %v8724_v38 = vmul.f32 %v4357_v53, %v8711_v1  ;;  %v1618_v19 = vsel %vm12702_vm10, %v12832_v52, %v8578_v47  ;;  %v2730_v21 = vperm.slane %v1411_v30, 1 }
 0x3cd   : > { %v1634_v51 = vsel %vm12700_vm11, %v1618_v19, %v1538_v39  ;;  %v4363_v49 = vperm.slane %v8781_v58, 3  ;;  %v3546_v31 = vperm.slane %v1411_v30, 2  ;;  %v3547_v39 = vperm.slane %v8781_v58, 2 }
 0x3ce   : > { %v1949_v59 = vsel %vm12645_vm13, %v1914_v44, 0.0  ;;  %v2726_v55 = vperm.slane %v8648_v33, 1  ;;  %v3542_v52 = vperm.slane %v8648_v33, 2 }
 0x3cf   : > { %1950 = vadd.xlane.f32.xlu2 %v1949_v59  ;;  %v1617_v59 = vsel %vm12702_vm10, %v12831_v14, %v8634_v0  ;;  %v2728_v14 = vperm.slane %v8733_v13, 1  ;;  %v2731_v13 = vperm.slane %v8781_v58, 1 }
 0x3d0   : > { %v1633_v0 = vsel %vm12700_vm11, %v1617_v59, %v8621_v34  ;;  %v2742_v20 = vmul.f32 %v2726_v55, %v8662_v54  ;;  %v2729_v59 = vperm.slane %v8673_v43, 1  ;;  %v4356_v43 = vperm.slane %v8625_v61, 3 }
 0x3d2   : > { %v1580_v40 = vpop.permute.xlu0 %1579 }
 0x3d3   : > { %v1578_v60 = vpop.permute.xlu1 %1577  ;;  %v8761_v46 = vsel %vm12699_vm12, %v1631_v15, %v1580_v40  ;;  %v4362_v15 = vperm.slane %v1411_v30, 3 }
 0x3d4   : > { %v8766_v3 = vsel %vm12699_vm12, %v1630_v45, %v1578_v60  ;;  %v1917_v10 = vmul.f32 %v1901_v11, %v8761_v46  ;;  %v8770_v24 = vmul.f32 %v3544_v35, %v8761_v46  ;;  %v8785_v27 = vmul.f32 %v4360_v32, %v8761_v46 }
 0x3d5   : > { %v1916_v7 = vmul.f32 %v1900_v63, %v8766_v3  ;;  %v2743_v53 = vmul.f32 %v2727_v16, %v8766_v3  ;;  %v2725_v32 = vperm.slane %v8701_v18, 1  ;;  %v2744_v19 = vmul.f32 %v2728_v14, %v8761_v46 }
 0x3d6   : > { %v1958_v44 = vsel %vm12645_vm13, %v1917_v10, 0.0  ;;  %v4372_v46 = vmul.f32 %v4356_v43, %v8631_v42 }
 0x3d7   : > { %v1955_v22 = vsel %vm12645_vm13, %v1916_v7, 0.0  ;;  %v2781_v23 = vsel %vm12645_vm13, %v2743_v53, 0.0  ;;  %1959 = vadd.xlane.f32.xlu2 %v1958_v44  ;;  %v3540_v7 = vperm.slane %v8625_v61, 2  ;;  %v2741_v53 = vmul.f32 %v2725_v32, %v8711_v1 }
 0x3d8   : > { %1956 = vadd.xlane.f32.xlu0 %v1955_v22  ;;  %2782 = vadd.xlane.f32.xlu1 %v2781_v23  ;;  %v2778_v22 = vsel %vm12645_vm13, %v2742_v20, 0.0  ;;  %v3564_v61 = vsel %vm12645_vm13, %v8152_v25, 0.0  ;;  %v3576_v25 = vsel %vm12645_vm13, %v8346_v50, 0.0 }
 0x3d9   : > { %v3556_v44 = vmul.f32 %v3540_v7, %v8631_v42  ;;  %v2775_v30 = vsel %vm12645_vm13, %v2741_v53, 0.0  ;;  %v3570_v42 = vsel %vm12645_vm13, %v8439_v12, 0.0  ;;  %v4386_v7 = vsel %vm12645_vm13, %v8447_v41, 0.0  ;;  %v12833_v53 = vld [vmem:[#allocation66_spill] sm:$0xff] }
 0x3da   : > { %v1586_v17 = vpop.permute.xlu0 %1585 }
 0x3db   : > { %v1584_v28 = vpop.permute.xlu1 %1583  ;;  %v1650_v4 = vsel %vm12699_vm12, %v1634_v51, %v1586_v17  ;;  %v3588_v23 = vsel %vm12645_vm13, %v3556_v44, 0.0  ;;  %v3558_v51 = vmul.f32 %v3542_v52, %v8662_v54  ;;  %v2784_v17 = vsel %vm12645_vm13, %v2744_v19, 0.0 }
 0x3dc   : > { %v1649_v62 = vsel %vm12699_vm12, %v1633_v0, %v1584_v28  ;;  %v1920_v47 = vmul.f32 %v1904_v5, %v1650_v4  ;;  %v8806_v40 = vmul.f32 %v4363_v49, %v1650_v4  ;;  %v8814_v34 = vmul.f32 %v3547_v39, %v1650_v4 }
 0x3dd   : > { %v1919_v11 = vmul.f32 %v1903_v2, %v1649_v62  ;;  %v2746_v35 = vmul.f32 %v2730_v21, %v1649_v62  ;;  %v8809_v60 = vmul.f32 %v3546_v31, %v1649_v62  ;;  %v8811_v45 = vmul.f32 %v4362_v15, %v1649_v62 }
 0x3de   : > { %v1967_v63 = vsel %vm12645_vm13, %v1920_v47, 0.0  ;;  %v2745_v5 = vmul.f32 %v2729_v59, %v8683_v26  ;;  %v3594_v21 = vsel %vm12645_vm13, %v3558_v51, 0.0  ;;  %v2747_v33 = vmul.f32 %v2731_v13, %v1650_v4 }
 0x3df   : > { %v1964_v16 = vsel %vm12645_vm13, %v1919_v11, 0.0  ;;  %v2790_v10 = vsel %vm12645_vm13, %v2746_v35, 0.0  ;;  %1968 = vadd.xlane.f32.xlu2 %v1967_v63  ;;  %v3567_v54 = vsel %vm12645_vm13, %v8301_v37, 0.0  ;;  %v4404_v49 = vsel %vm12645_vm13, %v4372_v46, 0.0 }
 0x3e0   : > { %1965 = vadd.xlane.f32.xlu0 %v1964_v16  ;;  %2791 = vadd.xlane.f32.xlu1 %v2790_v10  ;;  %v2787_v2 = vsel %vm12645_vm13, %v2745_v5, 0.0  ;;  %v2793_v26 = vsel %vm12645_vm13, %v2747_v33, 0.0  ;;  %v3543_v28 = vperm.slane %v8737_v6, 2  ;;  %v3541_v37 = vperm.slane %v8701_v18, 2 }
 0x3e1   : > { %v4383_v62 = vsel %vm12645_vm13, %v8304_v8, 0.0  ;;  %v4359_v47 = vperm.slane %v8737_v6, 3  ;;  %v3573_v11 = vsel %vm12645_vm13, %v8431_v57, 0.0  ;;  %v4407_v6 = vsel %vm12645_vm13, %v8724_v38, 0.0 }
 0x3e2   : > { %v3559_v0 = vmul.f32 %v3543_v28, %v8766_v3  ;;  %v3557_v4 = vmul.f32 %v3541_v37, %v8711_v1  ;;  %v4380_v1 = vsel %vm12645_vm13, %v8155_v29, 0.0  ;;  %v4392_v29 = vsel %vm12645_vm13, %v8349_v56, 0.0  ;;  %v12835_v28 = vld [vmem:[#allocation68_spill] sm:$0xff] }
 0x3e3   : > { %v4375_v39 = vmul.f32 %v4359_v47, %v8766_v3  ;;  %v4410_v3 = vsel %vm12645_vm13, %v8668_v48, 0.0  ;;  %v2002_v16 = vlaneseq  ;;  %v4389_v38 = vsel %vm12645_vm13, %v12833_v53, 0.0 }
 0x3e4   : > { %v3597_v58 = vsel %vm12645_vm13, %v3559_v0, 0.0  ;;  %v3591_v15 = vsel %vm12645_vm13, %v3557_v4, 0.0  ;;  %v3606_v48 = vsel %vm12645_vm13, %v8809_v60, 0.0  ;;  %v3600_v51 = vsel %vm12645_vm13, %v8770_v24, 0.0 }
 0x3e5   : > { %v4413_v8 = vsel %vm12645_vm13, %v4375_v39, 0.0  ;;  %v8880_v56 = vand.u32 127, %v2002_v16  ;;  %v3579_v0 = vsel %vm12645_vm13, %v12835_v28, 0.0  ;;  %v4422_v4 = vsel %vm12645_vm13, %v8811_v45, 0.0 }
 0x3e6   : > { %v4416_v45 = vsel %vm12645_vm13, %v8785_v27, 0.0 }
 0x3e7   : > { %2776 = vadd.xlane.f32.xlu2 %v2775_v30 }
 0x3e8   : > { %2779 = vadd.xlane.f32.xlu0 %v2778_v22  ;;  %3589 = vadd.xlane.f32.xlu1 %v3588_v23 }
 0x3ef   : > { %2785 = vadd.xlane.f32.xlu2 %v2784_v17  ;;  %v3603_v17 = vsel %vm12645_vm13, %v8691_v9, 0.0 }
 0x3f0   : > { %2788 = vadd.xlane.f32.xlu0 %v2787_v2  ;;  %3595 = vadd.xlane.f32.xlu1 %v3594_v21  ;;  %v12834_v2 = vld [vmem:[#allocation64_spill] sm:$0xff] }
 0x3f1   : > { %v3585_v21 = vsel %vm12645_vm13, %v12834_v2, 0.0 }
 0x3f7   : > { %2794 = vadd.xlane.f32.xlu2 %v2793_v26 }
 0x3f8   : > { %3568 = vadd.xlane.f32.xlu0 %v3567_v54  ;;  %4405 = vadd.xlane.f32.xlu1 %v4404_v49 }
 0x3fc   : > { %v1924_v12 = vpop.xlane.xlu2 %1923 }
 0x3fd   : > { %v8882_v20 = vmul.f32 0.17677669, %v1924_v12 }
 0x3ff   : > { %3565 = vadd.xlane.f32.xlu2 %v3564_v61  ;;  %v2004_v41 = vperm.slane %v8882_v20, %v8880_v56 }
 0x400   : > { %3571 = vadd.xlane.f32.xlu0 %v3570_v42  ;;  %3598 = vadd.xlane.f32.xlu1 %v3597_v58  ;;  %v12836_v58 = vld [vmem:[#allocation67_spill] sm:$0xff] }
 0x401   : > { %v3582_v37 = vsel %vm12645_vm13, %v12836_v58, 0.0 }
 0x404   : > { %v8864_v35 = vpop.xlane.xlu2 %2749 }
 0x405   : > { %v1930_v50 = vpop.xlane.xlu0 %1929 }
 0x406   : > { %v1927_v31 = vpop.xlane.xlu1 %1926  ;;  %v8884_v44 = vmul.f32 0.17677669, %v1930_v50 }
 0x407   : > { %3592 = vadd.xlane.f32.xlu2 %v3591_v15  ;;  %v8872_v32 = vmul.f32 0.17677669, %v1927_v31 }
 0x408   : > { %4384 = vadd.xlane.f32.xlu0 %v4383_v62  ;;  %3577 = vadd.xlane.f32.xlu1 %v3576_v25  ;;  %v2006_v60 = vperm.slane %v8884_v44, %v8880_v56 }
 0x409   : > { %v2005_v30 = vperm.slane %v8872_v32, %v8880_v56 }
 0x40b   : > { %v2021_v59 = vsel %vm12644_vm14, %v2005_v30, %v2004_v41 }
 0x40c   : > { %v1933_v10 = vpop.xlane.xlu2 %1932  ;;  %v2023_v43 = vsel %vm12643_vm15, %v2006_v60, %v2021_v59 }
 0x40d   : > { %v1939_v57 = vpop.xlane.xlu0 %1938  ;;  %v8888_v22 = vmul.f32 0.17677669, %v1933_v10 }
 0x40e   : > { %v1936_v18 = vpop.xlane.xlu1 %1935  ;;  %v8905_v13 = vmul.f32 0.17677669, %v1939_v57  ;;  %v12837_v57 = vld [vmem:[#allocation70_spill] sm:$0xff] }
 0x40f   : > { %4381 = vadd.xlane.f32.xlu2 %v4380_v1  ;;  %v8894_v23 = vmul.f32 0.17677669, %v1936_v18  ;;  %v2007_v52 = vperm.slane %v8888_v22, %v8880_v56  ;;  %v4419_v18 = vsel %vm12645_vm13, %v8694_v36, 0.0  ;;  %v4395_v16 = vsel %vm12645_vm13, %v12837_v57, 0.0 }
 0x410   : > { %3574 = vadd.xlane.f32.xlu0 %v3573_v11  ;;  %4414 = vadd.xlane.f32.xlu1 %v4413_v8  ;;  %v2009_v9 = vperm.slane %v8905_v13, %v8880_v56  ;;  %v8943_v11 = vmul.f32 0.17677669, %v8864_v35 }
 0x411   : > { %v2008_v33 = vperm.slane %v8894_v23, %v8880_v56  ;;  %v2025_v24 = vsel %vm12642_vm0, %v2007_v52, %v2023_v43 }
 0x412   : > { %v2828_v36 = vperm.slane %v8943_v11, %v8880_v56 }
 0x413   : > { %v2027_v54 = vsel %vm12641_vm1, %v2008_v33, %v2025_v24 }
 0x414   : > { %v1942_v19 = vpop.xlane.xlu2 %1941  ;;  %v2029_v62 = vsel %vm12640_vm2, %v2009_v9, %v2027_v54 }
 0x415   : > { %v2753_v14 = vpop.xlane.xlu0 %2752  ;;  %v8910_v46 = vmul.f32 0.17677669, %v1942_v19 }
 0x416   : > { %v1945_v63 = vpop.xlane.xlu1 %1944  ;;  %v8933_v47 = vmul.f32 0.17677669, %v2753_v14 }
 0x417   : > { %4408 = vadd.xlane.f32.xlu2 %v4407_v6  ;;  %v8915_v26 = vmul.f32 0.17677669, %v1945_v63  ;;  %v2010_v49 = vperm.slane %v8910_v46, %v8880_v56 }
 0x418   : > { %4411 = vadd.xlane.f32.xlu0 %v4410_v3  ;;  %4393 = vadd.xlane.f32.xlu1 %v4392_v29  ;;  %v2829_v63 = vperm.slane %v8933_v47, %v8880_v56 }
 0x419   : > { %v2011_v31 = vperm.slane %v8915_v26, %v8880_v56  ;;  %v2031_v25 = vsel %vm12701_vm3, %v2010_v49, %v2029_v62  ;;  %v12840_v49 = vld [vmem:[#allocation65_spill] sm:$0xff] }
 0x41a   : > { %v2844_v35 = vsel %vm12644_vm14, %v2829_v63, %v2828_v36  ;;  %v4401_v28 = vsel %vm12645_vm13, %v12840_v49, 0.0 }
 0x41b   : > { %v2033_v12 = vsel %vm12647_vm4, %v2011_v31, %v2031_v25 }
 0x41c   : > { %v2759_v15 = vpop.xlane.xlu2 %2758  ;;  %v2044_v1 = vsel %vm12646_vm5, %v2033_v12, -inf }
 0x41d   : > { %v2762_v61 = vpop.xlane.xlu0 %2761  ;;  %v8953_v3 = vmul.f32 0.17677669, %v2759_v15 }
 0x41e   : > { %v2756_v55 = vpop.xlane.xlu1 %2755 }
 0x41f   : > { %4387 = vadd.xlane.f32.xlu2 %v4386_v7  ;;  %v8937_v39 = vmul.f32 0.17677669, %v2756_v55  ;;  %v8961_v55 = vmul.f32 0.17677669, %v2762_v61  ;;  %v12838_v7 = vld [vmem:[#allocation69_spill] sm:$0xff] }
 0x420   : > { %4390 = vadd.xlane.f32.xlu0 %v4389_v38  ;;  %3607 = vadd.xlane.f32.xlu1 %v3606_v48  ;;  %v4398_v53 = vsel %vm12645_vm13, %v12838_v7, 0.0  ;;  %v2831_v38 = vperm.slane %v8953_v3, %v8880_v56 }
 0x421   : > { %v2830_v6 = vperm.slane %v8937_v39, %v8880_v56  ;;  %v2832_v60 = vperm.slane %v8961_v55, %v8880_v56 }
 0x423   : > { %v2845_v10 = vsel %vm12643_vm15, %v2830_v6, %v2844_v35 }
 0x424   : > { %v2768_v27 = vpop.xlane.xlu2 %2767  ;;  %v2846_v48 = vsel %vm12642_vm0, %v2831_v38, %v2845_v10 }
 0x425   : > { %v2771_v8 = vpop.xlane.xlu0 %2770  ;;  %v8974_v14 = vmul.f32 0.17677669, %v2768_v27  ;;  %v2847_v19 = vsel %vm12641_vm1, %v2832_v60, %v2846_v48 }
 0x426   : > { %v2765_v5 = vpop.xlane.xlu1 %2764 }
 0x427   : > { %3601 = vadd.xlane.f32.xlu2 %v3600_v51  ;;  %v8956_v29 = vmul.f32 0.17677669, %v2765_v5  ;;  %12839 = vst [vmem:[#allocation66_spill] sm:$0xff] %v8974_v14  ;;  %v8981_v5 = vmul.f32 0.17677669, %v2771_v8  ;;  %v3609_v51 = vsel %vm12645_vm13, %v8814_v34, 0.0  ;;  %v2834_v2 = vperm.slane %v8974_v14, %v8880_v56 }
 0x428   : > { %3604 = vadd.xlane.f32.xlu0 %v3603_v17  ;;  %3586 = vadd.xlane.f32.xlu1 %v3585_v21  ;;  %v4425_v21 = vsel %vm12645_vm13, %v8806_v40, 0.0 }
 0x429   : > { %v2833_v30 = vperm.slane %v8956_v29, %v8880_v56  ;;  %v2835_v33 = vperm.slane %v8981_v5, %v8880_v56 }
 0x42b   : > { %v2848_v17 = vsel %vm12640_vm2, %v2833_v30, %v2847_v19 }
 0x42c   : > { %v2849_v43 = vsel %vm12701_vm3, %v2834_v2, %v2848_v17 }
 0x42d   : > { %v8976_v59 = vpop.xlane.xlu0 %1947  ;;  %v2850_v34 = vsel %vm12647_vm4, %v2835_v33, %v2849_v43 }
 0x42e   : > { %v8922_v42 = vpop.xlane.xlu1 %2773  ;;  %v2860_v40 = vsel %vm12646_vm5, %v2850_v34, -inf }
 0x42f   : > { %3580 = vadd.xlane.f32.xlu2 %v3579_v0 }
 0x430   : > { %3583 = vadd.xlane.f32.xlu0 %v3582_v37  ;;  %4423 = vadd.xlane.f32.xlu1 %v4422_v4 }
 0x436   : > { %v8945_v50 = vpop.xlane.xlu1 %1953 }
 0x437   : > { %4417 = vadd.xlane.f32.xlu2 %v4416_v45 }
 0x438   : > { %4420 = vadd.xlane.f32.xlu0 %v4419_v18  ;;  %2045 = vmax.xlane.f32.xlu1 %v2044_v1 }
 0x43e   : > { %v8978_v52 = vpop.xlane.xlu1 %1962 }
 0x43f   : > { %4396 = vadd.xlane.f32.xlu2 %v4395_v16 }
 0x440   : > { %4399 = vadd.xlane.f32.xlu0 %v4398_v53 }
 0x442   : > { %v8970_v41 = vpop.xlane.xlu2 %1950 }
 0x447   : > { %3610 = vadd.xlane.f32.xlu2 %v3609_v51  ;;  %v9036_v51 = vmul.f32 0.17677669, %v8922_v42 }
 0x448   : > { %4426 = vadd.xlane.f32.xlu0 %v4425_v21 }
 0x449   : > { %12843 = vst [vmem:[#allocation67_spill] sm:$0xff] %v9036_v51  ;;  %v2836_v42 = vperm.slane %v9036_v51, %v8880_v56 }
 0x44a   : > { %v8993_v24 = vpop.xlane.xlu2 %1959 }
 0x44b   : > { %v2783_v9 = vpop.xlane.xlu1 %2782  ;;  %v8995_v54 = vpop.xlane.xlu0 %1956 }
 0x44f   : > { %4402 = vadd.xlane.f32.xlu2 %v4401_v28 }
 0x450   : > { %2861 = vmax.xlane.f32.xlu0 %v2860_v40 }
 0x452   : > { %v9001_v0 = vpop.xlane.xlu2 %1968 }
 0x453   : > { %v9003_v61 = vpop.xlane.xlu1 %2791  ;;  %v9005_v58 = vpop.xlane.xlu0 %1965 }
 0x45a   : > { %v2777_v37 = vpop.xlane.xlu2 %2776 }
 0x45b   : > { %v9007_v4 = vpop.xlane.xlu1 %3589  ;;  %v2780_v31 = vpop.xlane.xlu0 %2779  ;;  %v9031_v60 = vmul.f32 0.17677669, %v2777_v37 }
 0x45c   : > { %v9040_v2 = vmul.f32 0.17677669, %v2780_v31 }
 0x45d   : > { %12841 = vst [vmem:[#allocation64_spill] sm:$0xff] %v9031_v60  ;;  %v2837_v33 = vperm.slane %v9031_v60, %v8880_v56 }
 0x45e   : > { %12845 = vst [vmem:[#allocation69_spill] sm:$0xff] %v9040_v2  ;;  %v2838_v37 = vperm.slane %v9040_v2, %v8880_v56 }
 0x462   : > { %v2786_v15 = vpop.xlane.xlu2 %2785 }
 0x463   : > { %v9009_v62 = vpop.xlane.xlu1 %3595  ;;  %v2789_v25 = vpop.xlane.xlu0 %2788  ;;  %v9066_v60 = vmul.f32 0.17677669, %v2786_v15 }
 0x46a   : > { %v2795_v12 = vpop.xlane.xlu2 %2794 }
 0x46b   : > { %v9011_v45 = vpop.xlane.xlu1 %4405  ;;  %v3569_v18 = vpop.xlane.xlu0 %3568 }
 0x46c   : > { %v9038_v17 = vmul.f32 0.17677669, %v3569_v18  ;;  %v2851_v18 = vsel %vm12644_vm14, %v2837_v33, %v2836_v42 }
 0x46e   : > { %12844 = vst [vmem:[#allocation70_spill] sm:$0xff] %v9038_v17  ;;  %v3645_v40 = vperm.slane %v9038_v17, %v8880_v56 }
 0x472   : > { %v3566_v1 = vpop.xlane.xlu2 %3565 }
 0x473   : > { %v9013_v8 = vpop.xlane.xlu1 %3598  ;;  %v3572_v63 = vpop.xlane.xlu0 %3571  ;;  %v9033_v19 = vmul.f32 0.17677669, %v3566_v1 }
 0x474   : > { %v9042_v21 = vmul.f32 0.17677669, %v3572_v63 }
 0x475   : > { %12842 = vst [vmem:[#allocation68_spill] sm:$0xff] %v9033_v19  ;;  %v3644_v34 = vperm.slane %v9033_v19, %v8880_v56  ;;  %v2852_v19 = vsel %vm12643_vm15, %v2838_v37, %v2851_v18  ;;  %v9095_v18 = vmul.f32 0.17677669, %v2795_v12 }
 0x476   : > { %12846 = vst [vmem:[#allocation65_spill] sm:$0xff] %v9042_v21  ;;  %v3646_v31 = vperm.slane %v9042_v21, %v8880_v56  ;;  %v9072_v21 = vmul.f32 0.17677669, %v2789_v25 }
 0x477   : > { %v3660_v1 = vsel %vm12644_vm14, %v3645_v40, %v3644_v34  ;;  %12850 = vst [vmem:[#allocation74_spill] sm:$0xff] %v9095_v18 }
 0x478   : > { %v3661_v2 = vsel %vm12643_vm15, %v3646_v31, %v3660_v1  ;;  %v2841_v31 = vperm.slane %v9072_v21, %v8880_v56 }
 0x47a   : > { %v3593_v27 = vpop.xlane.xlu2 %3592 }
 0x47b   : > { %v3578_v6 = vpop.xlane.xlu1 %3577  ;;  %v9015_v36 = vpop.xlane.xlu0 %4384 }
 0x47c   : > { %v9068_v51 = vmul.f32 0.17677669, %v3578_v6  ;;  %v2840_v6 = vperm.slane %v9066_v60, %v8880_v56 }
 0x47e   : > { %12847 = vst [vmem:[#allocation71_spill] sm:$0xff] %v9068_v51  ;;  %v3648_v40 = vperm.slane %v9068_v51, %v8880_v56 }
 0x482   : > { %v9017_v35 = vpop.xlane.xlu2 %4381 }
 0x483   : > { %v9019_v57 = vpop.xlane.xlu1 %4414  ;;  %v3575_v16 = vpop.xlane.xlu0 %3574 }
 0x484   : > { %v9048_v49 = vmul.f32 0.17677669, %v3575_v16  ;;  %v9064_v16 = vmul.f32 0.17677669, %v2783_v9 }
 0x486   : > { %v3647_v63 = vperm.slane %v9048_v49, %v8880_v56  ;;  %v2839_v15 = vperm.slane %v9064_v16, %v8880_v56 }
 0x488   : > { %v3662_v33 = vsel %vm12642_vm0, %v3647_v63, %v3661_v2 }
 0x489   : > { %v3663_v2 = vsel %vm12641_vm1, %v3648_v40, %v3662_v33 }
 0x48a   : > { %v4409_v10 = vpop.xlane.xlu2 %4408 }
 0x48b   : > { %v9021_v7 = vpop.xlane.xlu0 %4411  ;;  %v9023_v53 = vpop.xlane.xlu1 %4393  ;;  %v9108_v40 = vmul.f32 0.17677669, %v4409_v10 }
 0x492   : > { %v9025_v38 = vpop.xlane.xlu2 %4387 }
 0x493   : > { %v9027_v48 = vpop.xlane.xlu0 %4390  ;;  %v9029_v30 = vpop.xlane.xlu1 %3607 }
 0x49a   : > { %v3602_v43 = vpop.xlane.xlu2 %3601 }
 0x49b   : > { %v9050_v28 = vpop.xlane.xlu0 %3604  ;;  %v3587_v17 = vpop.xlane.xlu1 %3586 }
 0x49c   : > { %v9075_v34 = vmul.f32 0.17677669, %v3587_v17  ;;  %v2853_v17 = vsel %vm12642_vm0, %v2839_v15, %v2852_v19 }
 0x49d   : > { %v2854_v19 = vsel %vm12641_vm1, %v2840_v6, %v2853_v17  ;;  %v9120_v17 = vmul.f32 0.17677669, %v9011_v45 }
 0x49e   : > { %12848 = vst [vmem:[#allocation72_spill] sm:$0xff] %v9075_v34  ;;  %v3651_v1 = vperm.slane %v9075_v34, %v8880_v56  ;;  %v9112_v34 = vmul.f32 0.17677669, %v9007_v4  ;;  %v2855_v6 = vsel %vm12640_vm2, %v2841_v31, %v2854_v19  ;;  %v9128_v4 = vmul.f32 0.17677669, %v9009_v62 }
 0x4a0   : > { %v3652_v31 = vperm.slane %v9112_v34, %v8880_v56 }
 0x4a2   : > { %v3581_v14 = vpop.xlane.xlu2 %3580 }
 0x4a3   : > { %v9077_v42 = vmul.f32 0.17677669, %v3581_v14  ;;  %v3584_v9 = vpop.xlane.xlu0 %3583 }
 0x4a4   : > { %v9085_v37 = vmul.f32 0.17677669, %v3584_v9  ;;  %v9101_v9 = vmul.f32 0.17677669, %v9003_v61  ;;  %v2843_v61 = vperm.slane %v9095_v18, %v8880_v56  ;;  %v7356_v18 = vmov 0  }
 0x4a5   : > { %v3649_v25 = vperm.slane %v9077_v42, %v8880_v56  ;;  %6922 = vset.pattern.permute.xlu2 %v7356_v18  ;;  %6923 = vset.pattern.permute.xlu1 %v7356_v18 }
 0x4a6   : > { %12849 = vst [vmem:[#allocation73_spill] sm:$0xff] %v9085_v37  ;;  %v3650_v14 = vperm.slane %v9085_v37, %v8880_v56  ;;  %v9105_v37 = vmul.f32 0.17677669, %v3593_v27  ;;  %v2842_v27 = vperm.slane %v9101_v9, %v8880_v56  ;;  %6924 = vset.pattern.permute.xlu0 %v7356_v18 }
 0x4a7   : > { %v3664_v63 = vsel %vm12640_vm2, %v3649_v25, %v3663_v2  ;;  %12851 = vst [vmem:[#allocation75_spill] sm:$0xff] %v9101_v9 }
 0x4a8   : > { %v3665_v15 = vsel %vm12701_vm3, %v3650_v14, %v3664_v63  ;;  %v3653_v10 = vperm.slane %v9105_v37, %v8880_v56  ;;  %v9125_v14 = vmul.f32 0.17677669, %v9021_v7  ;;  %v2856_v2 = vsel %vm12701_vm3, %v2842_v27, %v2855_v6 }
 0x4a9   : > { %v3666_v33 = vsel %vm12647_vm4, %v3651_v1, %v3665_v15  ;;  %v2857_v45 = vsel %vm12647_vm4, %v2843_v61, %v2856_v2  ;;  %v4468_v1 = vperm.slane %v9120_v17, %v8880_v56  ;;  %v9138_v63 = vmul.f32 0.17677669, %v3602_v43 }
 0x4aa   : > { %v4418_v12 = vpop.xlane.xlu2 %4417  ;;  %v3676_v51 = vsel %vm12646_vm5, %v3666_v33, -inf  ;;  %v9141_v7 = vmul.f32 0.17677669, %v9013_v8  ;;  %v3667_v62 = vsel %vm12644_vm14, %v3653_v10, %v3652_v31  ;;  %v4470_v19 = vperm.slane %v9125_v14, %v8880_v56 }
 0x4ab   : > { %v4421_v25 = vpop.xlane.xlu0 %4420  ;;  %3677 = vmax.xlane.f32.xlu1 %v3676_v51  ;;  %v4469_v51 = vperm.slane %v9108_v40, %v8880_v56  ;;  %12852 = vst [vmem:[#allocation76_spill] sm:$0xff] %v9138_v63  ;;  %v9146_v15 = vmul.f32 0.17677669, %v4418_v12  ;;  %v3654_v33 = vperm.slane %v9128_v4, %v8880_v56  ;;  %v9151_v61 = vmul.f32 0.17677669, %v9019_v57 }
 0x4ac   : > { %v2863_v27 = vsel %vm12646_vm5, %v2857_v45, -inf  ;;  %v9156_v8 = vmul.f32 0.17677669, %v9017_v35  ;;  %v9159_v10 = vmul.f32 0.17677669, %v9050_v28  ;;  %v3656_v31 = vperm.slane %v9138_v63, %v8880_v56 }
 0x4ad   : > { %12853 = vst [vmem:[#allocation77_spill] sm:$0xff] %v9146_v15  ;;  %v4483_v6 = vsel %vm12644_vm14, %v4469_v51, %v4468_v1  ;;  %v3668_v12 = vsel %vm12643_vm15, %v3654_v33, %v3667_v62  ;;  %v9164_v57 = vmul.f32 0.17677669, %v4421_v25  ;;  %v3655_v51 = vperm.slane %v9141_v7, %v8880_v56  ;;  %v4424_v33 = vpop.xlane.xlu1 %4423 }
 0x4ae   : > { %12854 = vst [vmem:[#allocation78_spill] sm:$0xff] %v9151_v61  ;;  %v4484_v35 = vsel %vm12643_vm15, %v4470_v19, %v4483_v6  ;;  %v4472_v28 = vperm.slane %v9146_v15, %v8880_v56  ;;  %v9172_v45 = vmul.f32 0.17677669, %v8976_v59  ;;  %v9175_v1 = vmul.f32 0.17677669, %v9015_v36 }
 0x4af   : > { %12855 = vst [vmem:[#allocation79_spill] sm:$0xff] %v9159_v10  ;;  %v4471_v25 = vperm.slane %v9151_v61, %v8880_v56  ;;  %v9180_v62 = vmul.f32 0.17677669, %v9025_v38  ;;  %v4460_v19 = vperm.slane %v9156_v8, %v8880_v56  ;;  %v3669_v18 = vsel %vm12642_vm0, %v3655_v51, %v3668_v12 }
 0x4b0   : > { %12856 = vst [vmem:[#allocation80_spill] sm:$0xff] %v9164_v57  ;;  %v3657_v59 = vperm.slane %v9159_v10, %v8880_v56  ;;  %v9191_v36 = vmul.f32 0.17677669, %v9029_v30  ;;  %v3670_v6 = vsel %vm12641_vm1, %v3656_v31, %v3669_v18  ;;  %v4473_v9 = vperm.slane %v9164_v57, %v8880_v56 }
 0x4b1   : > { %v4485_v38 = vsel %vm12642_vm0, %v4471_v25, %v4484_v35  ;;  %v9200_v61 = vmul.f32 0.17677669, %v4424_v33  ;;  %v2012_v51 = vperm.slane %v9172_v45, %v8880_v56  ;;  %v9206_v30 = vmul.f32 0.17677669, %v8945_v50 }
 0x4b2   : > { %v4397_v43 = vpop.xlane.xlu2 %4396  ;;  %v4486_v12 = vsel %vm12641_vm1, %v4472_v28, %v4485_v38  ;;  %v4461_v31 = vperm.slane %v9175_v1, %v8880_v56  ;;  %v4462_v35 = vperm.slane %v9180_v62, %v8880_v56  ;;  %v9215_v33 = vmul.f32 0.17677669, %v8995_v54 }
 0x4b3   : > { %v4400_v2 = vpop.xlane.xlu0 %4399  ;;  %2864 = vmax.xlane.f32.xlu1 %v2863_v27  ;;  %v9183_v27 = vmul.f32 0.17677669, %v8970_v41  ;;  %v9198_v41 = vmul.f32 0.17677669, %v9027_v48  ;;  %12857 = vst [vmem:[#allocation81_spill] sm:$0xff] %v9200_v61  ;;  %v3671_v38 = vsel %vm12640_vm2, %v3657_v59, %v3670_v6  ;;  %v3658_v57 = vperm.slane %v9191_v36, %v8880_v56 }
 0x4b4   : > { %v4476_v50 = vsel %vm12644_vm14, %v4461_v31, %v4460_v19  ;;  %v4487_v63 = vsel %vm12640_vm2, %v4473_v9, %v4486_v12  ;;  %v4474_v54 = vperm.slane %v9200_v61, %v8880_v56  ;;  %v9235_v19 = vmul.f32 0.17677669, %v9023_v53 }
 0x4b5   : > { %v2013_v48 = vperm.slane %v9183_v27, %v8880_v56  ;;  %v4463_v15 = vperm.slane %v9198_v41, %v8880_v56  ;;  %v4477_v6 = vsel %vm12643_vm15, %v4462_v35, %v4476_v50  ;;  %v3672_v9 = vsel %vm12701_vm3, %v3658_v57, %v3671_v38 }
 0x4b6   : > { %v2014_v12 = vperm.slane %v9206_v30, %v8880_v56  ;;  %v4488_v61 = vsel %vm12701_vm3, %v4474_v54, %v4487_v63  ;;  %v9249_v53 = vmul.f32 0.17677669, %v4400_v2  ;;  %v2015_v57 = vperm.slane %v9215_v33, %v8880_v56  ;;  %v9262_v54 = vpop.xlane.xlu1 %2045 }
 0x4b7   : > { %v4478_v38 = vsel %vm12642_vm0, %v4463_v15, %v4477_v6 }
 0x4b8   : > { %v4466_v6 = vperm.slane %v9249_v53, %v8880_v56 }
 0x4ba   : > { %v3611_v25 = vpop.xlane.xlu2 %3610 }
 0x4bb   : > { %v9217_v28 = vmul.f32 0.17677669, %v3611_v25  ;;  %v4427_v18 = vpop.xlane.xlu0 %4426  ;;  %v9230_v25 = vmul.f32 0.17677669, %v4397_v43 }
 0x4bc   : > { %v9223_v10 = vmul.f32 0.17677669, %v4427_v18  ;;  %v2034_v18 = vsel %vm12644_vm14, %v2013_v48, %v2012_v51 }
 0x4bd   : > { %12858 = vst [vmem:[#allocation82_spill] sm:$0xff] %v9217_v28  ;;  %v3659_v59 = vperm.slane %v9217_v28, %v8880_v56  ;;  %v9247_v28 = vmul.f32 0.17677669, %v8993_v24  ;;  %v4465_v51 = vperm.slane %v9230_v25, %v8880_v56  ;;  %v4464_v24 = vperm.slane %v9235_v19, %v8880_v56 }
 0x4be   : > { %v4475_v31 = vperm.slane %v9223_v10, %v8880_v56  ;;  %v2035_v48 = vsel %vm12643_vm15, %v2014_v12, %v2034_v18 }
 0x4bf   : > { %v3673_v43 = vsel %vm12647_vm4, %v3659_v59, %v3672_v9  ;;  %v2016_v15 = vperm.slane %v9247_v28, %v8880_v56  ;;  %v9269_v59 = vmul.f32 0.17677669, %v9005_v58  ;;  %v9275_v9 = vmul.f32 0.17677669, %v8978_v52 }
 0x4c0   : > { %v3679_v35 = vsel %vm12646_vm5, %v3673_v43, -inf  ;;  %v4489_v50 = vsel %vm12647_vm4, %v4475_v31, %v4488_v61  ;;  %v4479_v31 = vsel %vm12641_vm1, %v4464_v24, %v4478_v38  ;;  %v2036_v12 = vsel %vm12642_vm0, %v2015_v57, %v2035_v48 }
 0x4c1   : > { %3680 = vmax.xlane.f32.xlu2 %v3679_v35  ;;  %v4495_v63 = vsel %vm12646_vm5, %v4489_v50, -inf  ;;  %v4480_v43 = vsel %vm12640_vm2, %v4465_v51, %v4479_v31  ;;  %v2052_v35 = vperm.slane %v9262_v54, 0  ;;  %v9283_v58 = vmul.f32 0.17677669, %v9001_v0 }
 0x4c2   : > { %4496 = vmax.xlane.f32.xlu1 %v4495_v63  ;;  %v4403_v2 = vpop.xlane.xlu2 %4402  ;;  %v2018_v50 = vperm.slane %v9269_v59, %v8880_v56  ;;  %v2053_v38 = vperm.slane %v9262_v54, 1  ;;  %v4481_v52 = vsel %vm12701_vm3, %v4466_v6, %v4480_v43  ;;  %v2037_v63 = vsel %vm12641_vm1, %v2016_v15, %v2036_v12 }
 0x4c3   : > { %v9264_v61 = vmul.f32 0.17677669, %v4403_v2  ;;  %v2017_v57 = vperm.slane %v9275_v9, %v8880_v56  ;;  %v2084_v51 = vsub.f32 %v8882_v20, %v2052_v35  ;;  %v2019_v0 = vperm.slane %v9283_v58, %v8880_v56 }
 0x4c4   : > { %v2085_v31 = vsub.f32 %v8872_v32, %v2053_v38  ;;  %v2055_v15 = vperm.slane %v9262_v54, 3 }
 0x4c5   : > { %v4467_v18 = vperm.slane %v9264_v61, %v8880_v56  ;;  %v2038_v48 = vsel %vm12640_vm2, %v2017_v57, %v2037_v63  ;;  %v2100_v12 = vmul.f32 1.442695, %v2084_v51  ;;  %v2054_v63 = vperm.slane %v9262_v54, 2 }
 0x4c6   : > { %v2039_v6 = vsel %vm12701_vm3, %v2018_v50, %v2038_v48  ;;  %v2102_v20 = vmul.f32 1.442695, %v2085_v31  ;;  %v2087_v35 = vsub.f32 %v8888_v22, %v2055_v15  ;;  %v2057_v50 = vperm.slane %v9262_v54, 5  ;;  %v9312_v22 = vpop.xlane.xlu0 %2861 }
 0x4c7   : > { %v4482_v24 = vsel %vm12647_vm4, %v4467_v18, %v4481_v52  ;;  %v2040_v43 = vsel %vm12647_vm4, %v2019_v0, %v2039_v6  ;;  %v2056_v18 = vperm.slane %v9262_v54, 4  ;;  %6936 = vpow2.f32 %v2100_v12 }
 0x4c8   : > { %v4492_v2 = vsel %vm12646_vm5, %v4482_v24, -inf  ;;  %v2047_v52 = vsel %vm12646_vm5, %v2040_v43, -inf  ;;  %6938 = vpow2.f32 %v2102_v20  ;;  %v2106_v38 = vmul.f32 1.442695, %v2087_v35 }
 0x4c9   : > { %4493 = vmax.xlane.f32.xlu0 %v4492_v2  ;;  %v2088_v32 = vsub.f32 %v8894_v23, %v2056_v18  ;;  %v2058_v24 = vperm.slane %v9262_v54, 6  ;;  %v2086_v51 = vsub.f32 %v8884_v44, %v2054_v63  ;;  %v2089_v48 = vsub.f32 %v8905_v13, %v2057_v50 }
 0x4ca   : > { %6940 = vpow2.f32 %v2106_v38  ;;  %v2869_v6 = vperm.slane %v9312_v22, 1  ;;  %v2059_v44 = vperm.slane %v9262_v54, 7  ;;  %v2870_v18 = vperm.slane %v9312_v22, 2 }
 0x4cb   : > { %v2108_v2 = vmul.f32 1.442695, %v2088_v32  ;;  %v2090_v23 = vsub.f32 %v8910_v46, %v2058_v24  ;;  %v2104_v31 = vmul.f32 1.442695, %v2086_v51  ;;  %v2110_v15 = vmul.f32 1.442695, %v2089_v48 }
 0x4cc   : > { %v2901_v20 = vsub.f32 %v8933_v47, %v2869_v6  ;;  %v2091_v46 = vsub.f32 %v8915_v26, %v2059_v44  ;;  %v2872_v54 = vperm.slane %v9312_v22, 4  ;;  %v2902_v35 = vsub.f32 %v8937_v39, %v2870_v18 }
 0x4cd   : > { %v9308_v57 = vpop.eup %6936  ;;  %6942 = vpow2.f32 %v2108_v2  ;;  %v2112_v43 = vmul.f32 1.442695, %v2090_v23  ;;  %v2868_v47 = vperm.slane %v9312_v22, 0  ;;  %v2873_v26 = vperm.slane %v9312_v22, 5 }
 0x4ce   : > { %v9315_v0 = vpop.eup %6938  ;;  %6944 = vpow2.f32 %v2104_v31  ;;  %v2114_v32 = vmul.f32 1.442695, %v2091_v46  ;;  %v2904_v38 = vsub.f32 %v8961_v55, %v2872_v54  ;;  %v2920_v24 = vmul.f32 1.442695, %v2902_v35 }
 0x4cf   : > { %6946 = vpow2.f32 %v2110_v15  ;;  %v2900_v51 = vsub.f32 %v8943_v11, %v2868_v47  ;;  %v2875_v2 = vperm.slane %v9312_v22, 7  ;;  %v2905_v48 = vsub.f32 %v8956_v29, %v2873_v26 }
 0x4d0   : > { %v9322_v12 = vpop.eup %6940  ;;  %6948 = vpow2.f32 %v2112_v43  ;;  %v2924_v23 = vmul.f32 1.442695, %v2904_v38  ;;  %v2871_v55 = vperm.slane %v9312_v22, 3  ;;  %v2874_v46 = vperm.slane %v9312_v22, 6 }
 0x4d1   : > { %2048 = vmax.xlane.f32.xlu0 %v2047_v52  ;;  %v2918_v52 = vmul.f32 1.442695, %v2901_v20  ;;  %v2916_v6 = vmul.f32 1.442695, %v2900_v51  ;;  %v2907_v11 = vsub.f32 %v8981_v5, %v2875_v2  ;;  %v2926_v15 = vmul.f32 1.442695, %v2905_v48 }
 0x4d2   : > { %v2903_v29 = vsub.f32 %v8953_v3, %v2871_v55  ;;  %v12862_v3 = vld [vmem:[#allocation66_spill] sm:$0xff]  ;;  %v12866_v48 = vld [vmem:[#allocation68_spill] sm:$0xff] }
 0x4d3   : > { %v9327_v13 = vpop.eup %6942  ;;  %6950 = vpow2.f32 %v2918_v52  ;;  %v2930_v18 = vmul.f32 1.442695, %v2907_v11  ;;  %v2906_v52 = vsub.f32 %v12862_v3, %v2874_v46  ;;  %v12867_v55 = vld [vmem:[#allocation70_spill] sm:$0xff] }
 0x4d4   : > { %v9333_v63 = vpop.eup %6944  ;;  %6952 = vpow2.f32 %v2114_v32  ;;  %v2922_v54 = vmul.f32 1.442695, %v2903_v29  ;;  %v12868_v29 = vld [vmem:[#allocation65_spill] sm:$0xff] }
 0x4d5   : > { %v9337_v50 = vpop.eup %6946  ;;  %6954 = vpow2.f32 %v2920_v24  ;;  %v2928_v47 = vmul.f32 1.442695, %v2906_v52 }
 0x4d6   : > { %v9342_v39 = vpop.eup %6948  ;;  %6956 = vpow2.f32 %v2924_v23 }
 0x4d7   : > { %12859 = vst [vmem:[#allocation83_spill] sm:$0xff] %v9342_v39  ;;  %6958 = vpow2.f32 %v2916_v6 }
 0x4d8   : > { %6960 = vpow2.f32 %v2926_v15 }
 0x4d9   : > { %2149 = vperm.xlu2 %6922, %v9308_v57   ;;  %v9348_v31 = vpop.eup %6950  ;;  %6962 = vpow2.f32 %v2930_v18 }
 0x4da   : > { %v9352_v44 = vpop.eup %6952  ;;  %6964 = vpow2.f32 %v2922_v54 }
 0x4db   : > { %2152 = vperm.xlu1 %6923, %v9315_v0   ;;  %v9356_v43 = vpop.eup %6954  ;;  %6966 = vpow2.f32 %v2928_v47 }
 0x4dc   : > { %12860 = vst [vmem:[#allocation84_spill] sm:$0xff] %v9356_v43  ;;  %v9360_v20 = vpop.eup %6956 }
 0x4dd   : > { %v9364_v5 = vpop.eup %6958 }
 0x4de   : > { %v9367_v35 = vpop.eup %6960 }
 0x4df   : > { %12861 = vst [vmem:[#allocation85_spill] sm:$0xff] %v9367_v35  ;;  %v9371_v32 = vpop.eup %6962 }
 0x4e0   : > { %12863 = vst [vmem:[#allocation66_spill] sm:$0xff] %v9371_v32  ;;  %v9374_v22 = vpop.eup %6964 }
 0x4e1   : > { %2158 = vperm.xlu2 %6922, %v9322_v12   ;;  %12864 = vst [vmem:[#allocation86_spill] sm:$0xff] %v9374_v22  ;;  %v9377_v26 = vpop.eup %6966 }
 0x4e2   : > { %12865 = vst [vmem:[#allocation87_spill] sm:$0xff] %v9377_v26 }
 0x4e3   : > { %2161 = vperm.xlu1 %6923, %v9327_v13  }
 0x4e5   : > { %2155 = vperm.xlu0 %6924, %v9333_v63  }
 0x4e9   : > { %2164 = vperm.xlu2 %6922, %v9337_v50  }
 0x4eb   : > { %2167 = vperm.xlu1 %6923, %v9342_v39  }
 0x4ed   : > { %2968 = vperm.xlu0 %6924, %v9348_v31  }
 0x4f1   : > { %2170 = vperm.xlu2 %6922, %v9352_v44  }
 0x4f3   : > { %2971 = vperm.xlu1 %6923, %v9356_v43  }
 0x4f5   : > { %2977 = vperm.xlu0 %6924, %v9360_v20  }
 0x4f9   : > { %2965 = vperm.xlu2 %6922, %v9364_v5  }
 0x4fb   : > { %2980 = vperm.xlu1 %6923, %v9367_v35  }
 0x4fd   : > { %2986 = vperm.xlu0 %6924, %v9371_v32  }
 0x501   : > { %2974 = vperm.xlu2 %6922, %v9374_v22  }
 0x509   : > { %2983 = vperm.xlu2 %6922, %v9377_v26  }
 0x51e   : > { %v9380_v38 = vpop.xlane.xlu1 %3677 }
 0x51f   : > { %v3684_v24 = vperm.slane %v9380_v38, 0  ;;  %v3685_v51 = vperm.slane %v9380_v38, 1  ;;  %v3686_v2 = vperm.slane %v9380_v38, 2 }
 0x521   : > { %v3716_v23 = vsub.f32 %v12866_v48, %v3684_v24  ;;  %v3717_v6 = vsub.f32 %v12867_v55, %v3685_v51  ;;  %v3718_v18 = vsub.f32 %v12868_v29, %v3686_v2 }
 0x523   : > { %v3732_v11 = vmul.f32 1.442695, %v3716_v23  ;;  %v3734_v15 = vmul.f32 1.442695, %v3717_v6  ;;  %v3736_v46 = vmul.f32 1.442695, %v3718_v18 }
 0x525   : > { %6968 = vpow2.f32 %v3732_v11 }
 0x526   : > { %6970 = vpow2.f32 %v3734_v15 }
 0x527   : > { %6972 = vpow2.f32 %v3736_v46 }
 0x52b   : > { %v9388_v54 = vpop.eup %6968 }
 0x52c   : > { %v9390_v3 = vpop.eup %6970  ;;  %3781 = vperm.xlu2 %6922, %v9388_v54  }
 0x52d   : > { %12869 = vst [vmem:[#allocation68_spill] sm:$0xff] %v9390_v3  ;;  %3784 = vperm.xlu0 %6924, %v9390_v3   ;;  %v9394_v52 = vpop.eup %6972 }
 0x534   : > { %3787 = vperm.xlu2 %6922, %v9394_v52   ;;  %v9401_v2 = vpop.xlane.xlu2 %3680 }
 0x535   : > { %v3697_v43 = vperm.slane %v9401_v2, 5 }
 0x53c   : > { %v9397_v47 = vpop.xlane.xlu0 %4493  ;;  %v9408_v26 = vpop.permute.xlu2 %2149 }
 0x53d   : > { %v4501_v24 = vperm.slane %v9397_v47, 1  ;;  %v4500_v51 = vperm.slane %v9397_v47, 0 }
 0x53f   : > { %v4533_v48 = vsub.f32 %v9175_v1, %v4501_v24  ;;  %v4532_v23 = vsub.f32 %v9156_v8, %v4500_v51 }
 0x541   : > { %v4550_v6 = vmul.f32 1.442695, %v4533_v48  ;;  %v4548_v18 = vmul.f32 1.442695, %v4532_v23 }
 0x543   : > { %6974 = vpow2.f32 %v4550_v6 }
 0x544   : > { %v2049_v55 = vpop.xlane.xlu0 %2048  ;;  %6976 = vpow2.f32 %v4548_v18 }
 0x545   : > { %v2060_v11 = vperm.slane %v2049_v55, 0  ;;  %v2061_v15 = vperm.slane %v2049_v55, 1  ;;  %v2062_v29 = vperm.slane %v2049_v55, 2  ;;  %v2064_v22 = vperm.slane %v2049_v55, 4 }
 0x546   : > { %v2063_v24 = vperm.slane %v2049_v55, 3  ;;  %v2065_v48 = vperm.slane %v2049_v55, 5 }
 0x547   : > { %v2092_v46 = vsub.f32 %v9172_v45, %v2060_v11  ;;  %v2093_v32 = vsub.f32 %v9183_v27, %v2061_v15  ;;  %v2094_v3 = vsub.f32 %v9206_v30, %v2062_v29  ;;  %v2096_v51 = vsub.f32 %v9247_v28, %v2064_v22  ;;  %v9421_v28 = vpop.xlane.xlu1 %2864 }
 0x548   : > { %v2067_v27 = vperm.slane %v2049_v55, 7  ;;  %v2095_v30 = vsub.f32 %v9215_v33, %v2063_v24  ;;  %v2066_v11 = vperm.slane %v2049_v55, 6  ;;  %v2877_v18 = vperm.slane %v9421_v28, 1  ;;  %v12873_v55 = vld [vmem:[#allocation64_spill] sm:$0xff] }
 0x549   : > { %v2118_v35 = vmul.f32 1.442695, %v2093_v32  ;;  %v2116_v1 = vmul.f32 1.442695, %v2092_v46  ;;  %v2120_v8 = vmul.f32 1.442695, %v2094_v3  ;;  %v9411_v23 = vpop.eup %6974  ;;  %v2097_v3 = vsub.f32 %v9275_v9, %v2065_v48 }
 0x54a   : > { %12870 = vst [vmem:[#allocation70_spill] sm:$0xff] %v9411_v23  ;;  %v9413_v45 = vpop.eup %6976  ;;  %4600 = vperm.xlu1 %6923, %v9411_v23   ;;  %v2124_v32 = vmul.f32 1.442695, %v2096_v51  ;;  %v2099_v15 = vsub.f32 %v9283_v58, %v2067_v27  ;;  %v2122_v29 = vmul.f32 1.442695, %v2095_v30  ;;  %v2878_v46 = vperm.slane %v9421_v28, 2 }
 0x54b   : > { %6978 = vpow2.f32 %v2118_v35  ;;  %4597 = vperm.xlu2 %6922, %v9413_v45   ;;  %v9423_v35 = vpop.permute.xlu2 %2158  ;;  %v2126_v9 = vmul.f32 1.442695, %v2097_v3  ;;  %v2909_v24 = vsub.f32 %v12873_v55, %v2877_v18  ;;  %v2876_v48 = vperm.slane %v9421_v28, 0  ;;  %v12874_v27 = vld [vmem:[#allocation69_spill] sm:$0xff]  ;;  %v12876_v18 = vld [vmem:[#allocation67_spill] sm:$0xff] }
 0x54c   : > { %6980 = vpow2.f32 %v2116_v1  ;;  %v2098_v1 = vsub.f32 %v9269_v59, %v2066_v11  ;;  %v2910_v30 = vsub.f32 %v12874_v27, %v2878_v46 }
 0x54d   : > { %6982 = vpow2.f32 %v2120_v8  ;;  %v2130_v8 = vmul.f32 1.442695, %v2099_v15  ;;  %v2934_v59 = vmul.f32 1.442695, %v2909_v24 }
 0x54e   : > { %6984 = vpow2.f32 %v2124_v32  ;;  %v2128_v32 = vmul.f32 1.442695, %v2098_v1  ;;  %v2936_v55 = vmul.f32 1.442695, %v2910_v30 }
 0x54f   : > { %6986 = vpow2.f32 %v2122_v29  ;;  %v9439_v51 = vpop.xlane.xlu1 %4496 }
 0x550   : > { %6988 = vpow2.f32 %v2126_v9  ;;  %v4509_v11 = vperm.slane %v9439_v51, 1  ;;  %v2908_v9 = vsub.f32 %v12876_v18, %v2876_v48  ;;  %v3695_v48 = vperm.slane %v9401_v2, 3 }
 0x551   : > { %v9419_v6 = vpop.eup %6978  ;;  %6990 = vpow2.f32 %v2130_v8  ;;  %v2879_v8 = vperm.slane %v9421_v28, 3 }
 0x552   : > { %12871 = vst [vmem:[#allocation65_spill] sm:$0xff] %v9419_v6  ;;  %2176 = vperm.xlu0 %6924, %v9419_v6   ;;  %v9426_v22 = vpop.eup %6980  ;;  %v3693_v6 = vperm.slane %v9401_v2, 1  ;;  %6992 = vpow2.f32 %v2128_v32  ;;  %v4541_v46 = vsub.f32 %v9108_v40, %v4509_v11  ;;  %v2932_v24 = vmul.f32 1.442695, %v2908_v9 }
 0x553   : > { %12872 = vst [vmem:[#allocation88_spill] sm:$0xff] %v9426_v22  ;;  %v9429_v33 = vpop.eup %6982  ;;  %2173 = vperm.xlu1 %6923, %v9426_v22   ;;  %v9444_v3 = vpop.permute.xlu2 %2164  ;;  %6994 = vpow2.f32 %v2934_v59  ;;  %v2911_v40 = vsub.f32 %v9064_v16, %v2879_v8  ;;  %v3694_v59 = vperm.slane %v9401_v2, 2  ;;  %v2881_v16 = vperm.slane %v9421_v28, 5  ;;  %v12894_v22 = vld [vmem:[#allocation76_spill] sm:$0xff] }
 0x554   : > { %2179 = vperm.xlu2 %6922, %v9429_v33   ;;  %v9437_v58 = vpop.eup %6984  ;;  %6996 = vpow2.f32 %v2936_v55  ;;  %v3725_v27 = vsub.f32 %v9105_v37, %v3693_v6  ;;  %v4566_v30 = vmul.f32 1.442695, %v4541_v46  ;;  %v3727_v37 = vsub.f32 %v9141_v7, %v3695_v48 }
 0x555   : > { %v9447_v15 = vpop.eup %6986  ;;  %6998 = vpow2.f32 %v2932_v24  ;;  %v2938_v9 = vmul.f32 1.442695, %v2911_v40  ;;  %v3692_v55 = vperm.slane %v9401_v2, 0  ;;  %v3726_v46 = vsub.f32 %v9128_v4, %v3694_v59 }
 0x556   : > { %12875 = vst [vmem:[#allocation64_spill] sm:$0xff] %v9447_v15  ;;  %v9449_v29 = vpop.eup %6988  ;;  %v3750_v11 = vmul.f32 1.442695, %v3725_v27  ;;  %7000 = vpow2.f32 %v4566_v30  ;;  %v3754_v8 = vmul.f32 1.442695, %v3727_v37  ;;  %v4508_v30 = vperm.slane %v9439_v51, 0 }
 0x557   : > { %v9456_v1 = vpop.eup %6990  ;;  %v3724_v7 = vsub.f32 %v9112_v34, %v3692_v55  ;;  %v3752_v48 = vmul.f32 1.442695, %v3726_v46  ;;  %v2913_v4 = vsub.f32 %v9072_v21, %v2881_v16  ;;  %v9490_v59 = vpop.permute.xlu0 %2155  ;;  %v2880_v37 = vperm.slane %v9421_v28, 4 }
 0x558   : > { %v9462_v18 = vpop.eup %6992  ;;  %7002 = vpow2.f32 %v3750_v11  ;;  %v4540_v34 = vsub.f32 %v9120_v17, %v4508_v30  ;;  %v4503_v46 = vperm.slane %v9397_v47, 3  ;;  %v3687_v21 = vperm.slane %v9380_v38, 3 }
 0x559   : > { %12877 = vst [vmem:[#allocation69_spill] sm:$0xff] %v9462_v18  ;;  %v9466_v32 = vpop.eup %6994  ;;  %7004 = vpow2.f32 %v2938_v9  ;;  %v3748_v9 = vmul.f32 1.442695, %v3724_v7  ;;  %v2942_v55 = vmul.f32 1.442695, %v2913_v4  ;;  %v2912_v16 = vsub.f32 %v9066_v60, %v2880_v37 }
 0x55a   : > { %2185 = vperm.xlu0 %6924, %v9437_v58   ;;  %12878 = vst [vmem:[#allocation67_spill] sm:$0xff] %v9466_v32  ;;  %v9473_v6 = vpop.eup %6996  ;;  %7006 = vpow2.f32 %v3754_v8  ;;  %v4564_v8 = vmul.f32 1.442695, %v4540_v34  ;;  %v4535_v17 = vsub.f32 %v9198_v41, %v4503_v46  ;;  %v3719_v4 = vsub.f32 %v9048_v49, %v3687_v21 }
 0x55b   : > { %2182 = vperm.xlu1 %6923, %v9447_v15   ;;  %v9464_v15 = vpop.permute.xlu2 %2170  ;;  %12879 = vst [vmem:[#allocation89_spill] sm:$0xff] %v9473_v6  ;;  %v9479_v24 = vpop.eup %6998  ;;  %7008 = vpow2.f32 %v3752_v48  ;;  %v4502_v60 = vperm.slane %v9397_v47, 2  ;;  %v3689_v37 = vperm.slane %v9380_v38, 5  ;;  %v4510_v46 = vperm.slane %v9439_v51, 2 }
 0x55c   : > { %2188 = vperm.xlu2 %6922, %v9449_v29   ;;  %12880 = vst [vmem:[#allocation90_spill] sm:$0xff] %v9479_v24  ;;  %v9481_v27 = vpop.eup %7000  ;;  %7010 = vpow2.f32 %v3748_v9  ;;  %v4554_v9 = vmul.f32 1.442695, %v4535_v17 }
 0x55d   : > { %12881 = vst [vmem:[#allocation91_spill] sm:$0xff] %v9481_v27  ;;  %7012 = vpow2.f32 %v2942_v55  ;;  %v3738_v55 = vmul.f32 1.442695, %v3719_v4  ;;  %v3721_v49 = vsub.f32 %v9077_v42, %v3689_v37  ;;  %v12891_v37 = vld [vmem:[#allocation71_spill] sm:$0xff] }
 0x55e   : > { %v9492_v11 = vpop.eup %7002  ;;  %7014 = vpow2.f32 %v4564_v8  ;;  %v4542_v8 = vsub.f32 %v9125_v14, %v4510_v46  ;;  %v12892_v14 = vld [vmem:[#allocation77_spill] sm:$0xff] }
 0x55f   : > { %12882 = vst [vmem:[#allocation92_spill] sm:$0xff] %v9492_v11  ;;  %v9511_v30 = vpop.permute.xlu0 %2968  ;;  %v3742_v4 = vmul.f32 1.442695, %v3721_v49 }
 0x562   : > { %2194 = vperm.xlu0 %6924, %v9456_v1  }
 0x563   : > { %2191 = vperm.xlu1 %6923, %v9462_v18   ;;  %v9486_v40 = vpop.permute.xlu2 %2965  ;;  %v2940_v18 = vmul.f32 1.442695, %v2912_v16  ;;  %v3688_v16 = vperm.slane %v9380_v38, 4 }
 0x564   : > { %2992 = vperm.xlu2 %6922, %v9466_v32  }
 0x565   : > { %7016 = vpow2.f32 %v2940_v18 }
 0x566   : > { %7018 = vpow2.f32 %v4554_v9  ;;  %v3720_v9 = vsub.f32 %v12891_v37, %v3688_v16  ;;  %v3698_v37 = vperm.slane %v9401_v2, 6 }
 0x567   : > { %7020 = vpow2.f32 %v3738_v55  ;;  %v3696_v55 = vperm.slane %v9401_v2, 4 }
 0x568   : > { %v3740_v49 = vmul.f32 1.442695, %v3720_v9 }
 0x56a   : > { %2995 = vperm.xlu0 %6924, %v9473_v6  }
 0x56b   : > { %2989 = vperm.xlu1 %6923, %v9479_v24   ;;  %v9498_v24 = vpop.eup %7004  ;;  %v9509_v48 = vpop.permute.xlu2 %2974 }
 0x56c   : > { %4624 = vperm.xlu2 %6922, %v9481_v27   ;;  %12883 = vst [vmem:[#allocation93_spill] sm:$0xff] %v9498_v24  ;;  %v9500_v27 = vpop.eup %7006 }
 0x56d   : > { %12884 = vst [vmem:[#allocation94_spill] sm:$0xff] %v9500_v27  ;;  %v9507_v7 = vpop.eup %7008 }
 0x56e   : > { %12885 = vst [vmem:[#allocation95_spill] sm:$0xff] %v9507_v7  ;;  %v9517_v34 = vpop.eup %7010 }
 0x56f   : > { %12886 = vst [vmem:[#allocation96_spill] sm:$0xff] %v9517_v34  ;;  %v9519_v41 = vpop.eup %7012 }
 0x570   : > { %12887 = vst [vmem:[#allocation97_spill] sm:$0xff] %v9519_v41  ;;  %v9526_v21 = vpop.eup %7014 }
 0x571   : > { %12888 = vst [vmem:[#allocation98_spill] sm:$0xff] %v9526_v21 }
 0x572   : > { %3808 = vperm.xlu0 %6924, %v9492_v11  }
 0x573   : > { %2998 = vperm.xlu1 %6923, %v9498_v24   ;;  %v9531_v18 = vpop.permute.xlu2 %2983 }
 0x574   : > { %3814 = vperm.xlu2 %6922, %v9500_v27   ;;  %v3728_v27 = vsub.f32 %v12894_v22, %v3696_v55  ;;  %v12897_v22 = vld [vmem:[#allocation78_spill] sm:$0xff] }
 0x576   : > { %v3756_v9 = vmul.f32 1.442695, %v3728_v27  ;;  %v3691_v27 = vperm.slane %v9380_v38, 7 }
 0x57a   : > { %3811 = vperm.xlu0 %6924, %v9507_v7   ;;  %v4534_v7 = vsub.f32 %v9180_v62, %v4502_v60  ;;  %v4512_v62 = vperm.slane %v9439_v51, 4  ;;  %v9534_v60 = vpop.permute.xlu0 %2977 }
 0x57b   : > { %3805 = vperm.xlu1 %6923, %v9517_v34  }
 0x57c   : > { %3004 = vperm.xlu2 %6922, %v9519_v41   ;;  %v4552_v17 = vmul.f32 1.442695, %v4534_v7  ;;  %v9536_v41 = vpop.eup %7016  ;;  %v4544_v7 = vsub.f32 %v12892_v14, %v4512_v62  ;;  %v9562_v14 = vpop.permute.xlu1 %2152 }
 0x57d   : > { %12889 = vst [vmem:[#allocation99_spill] sm:$0xff] %v9536_v41  ;;  %v9538_v42 = vpop.eup %7018 }
 0x57e   : > { %12890 = vst [vmem:[#allocation100_spill] sm:$0xff] %v9538_v42  ;;  %7022 = vpow2.f32 %v4552_v17  ;;  %v9545_v46 = vpop.eup %7020 }
 0x57f   : > { %7024 = vpow2.f32 %v3742_v4  ;;  %12893 = vst [vmem:[#allocation71_spill] sm:$0xff] %v9545_v46  ;;  %v2882_v4 = vperm.slane %v9421_v28, 6 }
 0x582   : > { %4621 = vperm.xlu0 %6924, %v9526_v21   ;;  %v4568_v21 = vmul.f32 1.442695, %v4542_v8  ;;  %v4572_v8 = vmul.f32 1.442695, %v4544_v7  ;;  %v9556_v62 = vpop.permute.xlu0 %2986 }
 0x583   : > { %3001 = vperm.xlu1 %6923, %v9536_v41   ;;  %v4511_v41 = vperm.slane %v9439_v51, 3 }
 0x584   : > { %4606 = vperm.xlu2 %6922, %v9538_v42   ;;  %7026 = vpow2.f32 %v4568_v21  ;;  %v9551_v24 = vpop.eup %7022  ;;  %v3730_v21 = vsub.f32 %v9191_v36, %v3698_v37  ;;  %v12899_v42 = vld [vmem:[#allocation75_spill] sm:$0xff] }
 0x585   : > { %12895 = vst [vmem:[#allocation77_spill] sm:$0xff] %v9551_v24  ;;  %v9553_v17 = vpop.eup %7024  ;;  %7028 = vpow2.f32 %v3740_v49  ;;  %v4543_v55 = vsub.f32 %v12897_v22, %v4511_v41 }
 0x586   : > { %v3782_v16 = vpop.permute.xlu2 %3781  ;;  %12896 = vst [vmem:[#allocation76_spill] sm:$0xff] %v9553_v17  ;;  %7030 = vpow2.f32 %v4572_v8  ;;  %v3760_v41 = vmul.f32 1.442695, %v3730_v21  ;;  %v12902_v8 = vld [vmem:[#allocation79_spill] sm:$0xff]  ;;  %v12903_v21 = vld [vmem:[#allocation72_spill] sm:$0xff] }
 0x587   : > { %7032 = vpow2.f32 %v3756_v9  ;;  %v4570_v49 = vmul.f32 1.442695, %v4543_v55  ;;  %v3828_v9 = vperm.slane %v3782_v16, %v8880_v56  ;;  %v2883_v16 = vperm.slane %v9421_v28, 7 }
 0x589   : > { %7034 = vpow2.f32 %v4570_v49 }
 0x58a   : > { %3790 = vperm.xlu0 %6924, %v9545_v46   ;;  %v9564_v7 = vpop.eup %7026  ;;  %v2914_v46 = vsub.f32 %v12899_v42, %v2882_v4  ;;  %v4504_v4 = vperm.slane %v9397_v47, 4  ;;  %7036 = vpow2.f32 %v3760_v41 }
 0x58b   : > { %4603 = vperm.xlu1 %6923, %v9551_v24   ;;  %12898 = vst [vmem:[#allocation78_spill] sm:$0xff] %v9564_v7  ;;  %v9570_v22 = vpop.eup %7028  ;;  %v3729_v24 = vsub.f32 %v12902_v8, %v3697_v43  ;;  %v9585_v8 = vpop.permute.xlu1 %2161 }
 0x58c   : > { %3796 = vperm.xlu2 %6922, %v9553_v17   ;;  %12900 = vst [vmem:[#allocation75_spill] sm:$0xff] %v9570_v22  ;;  %v9572_v36 = vpop.eup %7030  ;;  %v2944_v37 = vmul.f32 1.442695, %v2914_v46 }
 0x58d   : > { %12901 = vst [vmem:[#allocation101_spill] sm:$0xff] %v9572_v36  ;;  %v9582_v46 = vpop.eup %7032 }
 0x58e   : > { %v3788_v17 = vpop.permute.xlu2 %3787  ;;  %12904 = vst [vmem:[#allocation79_spill] sm:$0xff] %v9582_v46  ;;  %7038 = vpow2.f32 %v2944_v37  ;;  %v4505_v37 = vperm.slane %v9397_v47, 5 }
 0x58f   : > { %v3830_v23 = vperm.slane %v3788_v17, %v8880_v56 }
 0x592   : > { %4627 = vperm.xlu0 %6924, %v9564_v7   ;;  %v3723_v7 = vsub.f32 %v12903_v21, %v3691_v27  ;;  %v4536_v27 = vsub.f32 %v9235_v19, %v4504_v4  ;;  %v9593_v21 = vpop.eup %7034  ;;  %v12909_v19 = vld [vmem:[#allocation73_spill] sm:$0xff] }
 0x593   : > { %3793 = vperm.xlu1 %6923, %v9570_v22   ;;  %12905 = vst [vmem:[#allocation72_spill] sm:$0xff] %v9593_v21  ;;  %v9595_v17 = vpop.eup %7036  ;;  %v9606_v4 = vpop.permute.xlu1 %2167 }
 0x594   : > { %4633 = vperm.xlu2 %6922, %v9572_v36   ;;  %v3746_v41 = vmul.f32 1.442695, %v3723_v7  ;;  %12906 = vst [vmem:[#allocation102_spill] sm:$0xff] %v9595_v17  ;;  %v9601_v28 = vpop.eup %7038 }
 0x59a   : > { %3817 = vperm.xlu0 %6924, %v9582_v46  }
 0x59b   : > { %4630 = vperm.xlu1 %6923, %v9593_v21  }
 0x59c   : > { %3823 = vperm.xlu2 %6922, %v9595_v17  }
 0x59f   : > { %v3785_v42 = vpop.permute.xlu0 %3784 }
 0x5a0   : > { %v3829_v55 = vperm.slane %v3785_v42, %v8880_v56  ;;  %v3758_v42 = vmul.f32 1.442695, %v3729_v24 }
 0x5a2   : > { %v3844_v43 = vsel %vm12644_vm14, %v3829_v55, %v3828_v9  ;;  %v3690_v9 = vperm.slane %v9380_v38, 6  ;;  %v12907_v55 = vld [vmem:[#allocation74_spill] sm:$0xff]  ;;  %7040 = vpow2.f32 %v3758_v42  ;;  %3007 = vperm.xlu0 %6924, %v9601_v28   ;;  %v4513_v42 = vperm.slane %v9439_v51, 5 }
 0x5a3   : > { %v9589_v49 = vsel %vm12643_vm15, %v3830_v23, %v3844_v43  ;;  %v2915_v36 = vsub.f32 %v12907_v55, %v2883_v16  ;;  %v4556_v23 = vmul.f32 1.442695, %v4536_v27  ;;  %7042 = vpow2.f32 %v3746_v41  ;;  %12908 = vst [vmem:[#allocation74_spill] sm:$0xff] %v9601_v28 }
 0x5a4   : > { %v3722_v24 = vsub.f32 %v12909_v19, %v3690_v9  ;;  %v4537_v27 = vsub.f32 %v9230_v25, %v4505_v37  ;;  %v3699_v41 = vperm.slane %v9401_v2, 7  ;;  %v12913_v9 = vld [vmem:[#allocation80_spill] sm:$0xff]  ;;  %v4506_v37 = vperm.slane %v9397_v47, 6 }
 0x5a5   : > { %v2946_v7 = vmul.f32 1.442695, %v2915_v36  ;;  %7044 = vpow2.f32 %v4556_v23  ;;  %v4545_v55 = vsub.f32 %v12913_v9, %v4513_v42  ;;  %v4507_v2 = vperm.slane %v9397_v47, 7  ;;  %v4598_v9 = vpop.permute.xlu2 %4597 }
 0x5a6   : > { %v3744_v16 = vmul.f32 1.442695, %v3722_v24  ;;  %v4558_v23 = vmul.f32 1.442695, %v4537_v27  ;;  %v2972_v24 = vpop.permute.xlu1 %2971  ;;  %v4538_v42 = vsub.f32 %v9249_v53, %v4506_v37  ;;  %v2198_v53 = vperm.slane %v9490_v59, %v8880_v56 }
 0x5a7   : > { %7046 = vpow2.f32 %v2946_v7  ;;  %v12915_v7 = vld [vmem:[#allocation82_spill] sm:$0xff]  ;;  %v4574_v25 = vmul.f32 1.442695, %v4545_v55  ;;  %v4539_v55 = vsub.f32 %v9264_v61, %v4507_v2  ;;  %v2196_v47 = vperm.slane %v9408_v26, %v8880_v56 }
 0x5a8   : > { %v9608_v38 = vpop.eup %7040  ;;  %7048 = vpow2.f32 %v3744_v16  ;;  %v3731_v21 = vsub.f32 %v12915_v7, %v3699_v41  ;;  %v4515_v41 = vperm.slane %v9439_v51, 7  ;;  %v2197_v7 = vperm.slane %v9562_v14, %v8880_v56 }
 0x5a9   : > { %12910 = vst [vmem:[#allocation73_spill] sm:$0xff] %v9608_v38  ;;  %v9610_v43 = vpop.eup %7042  ;;  %3820 = vperm.xlu1 %6923, %v9608_v38   ;;  %7050 = vpow2.f32 %v4558_v23  ;;  %v4560_v23 = vmul.f32 1.442695, %v4538_v42  ;;  %v2199_v42 = vperm.slane %v9423_v35, %v8880_v56  ;;  %v3013_v35 = vperm.slane %v9511_v30, %v8880_v56 }
 0x5aa   : > { %12911 = vst [vmem:[#allocation103_spill] sm:$0xff] %v9610_v43  ;;  %3802 = vperm.xlu2 %6922, %v9610_v43   ;;  %v3762_v16 = vmul.f32 1.442695, %v3731_v21  ;;  %7052 = vpow2.f32 %v4574_v25  ;;  %v4547_v37 = vsub.f32 %v9223_v10, %v4515_v41  ;;  %v2212_v61 = vsel %vm12644_vm14, %v2197_v7, %v2196_v47 }
 0x5ab   : > { %v9616_v36 = vpop.eup %7044  ;;  %v2213_v14 = vsel %vm12643_vm15, %v2198_v53, %v2212_v61  ;;  %v2200_v41 = vperm.slane %v9585_v8, %v8880_v56  ;;  %v3014_v7 = vperm.slane %v2972_v24, %v8880_v56  ;;  %v2201_v8 = vperm.slane %v9444_v3, %v8880_v56 }
 0x5ac   : > { %12912 = vst [vmem:[#allocation104_spill] sm:$0xff] %v9616_v36  ;;  %4609 = vperm.xlu0 %6924, %v9616_v36   ;;  %7054 = vpow2.f32 %v3762_v16  ;;  %v4562_v16 = vmul.f32 1.442695, %v4539_v55  ;;  %v4578_v59 = vmul.f32 1.442695, %v4547_v37  ;;  %v2214_v26 = vsel %vm12642_vm0, %v2199_v42, %v2213_v14 }
 0x5ad   : > { %v9621_v19 = vpop.eup %7046  ;;  %7056 = vpow2.f32 %v4560_v23  ;;  %v4644_v55 = vperm.slane %v4598_v9, %v8880_v56  ;;  %v2215_v47 = vsel %vm12641_vm1, %v2200_v41, %v2214_v26  ;;  %v3012_v9 = vperm.slane %v9486_v40, %v8880_v56 }
 0x5ae   : > { %12914 = vst [vmem:[#allocation80_spill] sm:$0xff] %v9621_v19  ;;  %v9626_v28 = vpop.eup %7048  ;;  %v2981_v21 = vpop.permute.xlu1 %2980  ;;  %7058 = vpow2.f32 %v4562_v16  ;;  %v2202_v30 = vperm.slane %v9606_v4, %v8880_v56  ;;  %v3015_v24 = vperm.slane %v9509_v48, %v8880_v56  ;;  %v2216_v61 = vsel %vm12640_vm2, %v2201_v8, %v2215_v47 }
 0x5af   : > { %12916 = vst [vmem:[#allocation82_spill] sm:$0xff] %v9626_v28  ;;  %v9631_v27 = vpop.eup %7050  ;;  %7060 = vpow2.f32 %v4578_v59  ;;  %v3028_v16 = vsel %vm12644_vm14, %v3013_v35, %v3012_v9  ;;  %v3016_v40 = vperm.slane %v9534_v60, %v8880_v56  ;;  %v2203_v26 = vperm.slane %v9464_v15, %v8880_v56 }
 0x5b0   : > { %12917 = vst [vmem:[#allocation105_spill] sm:$0xff] %v9631_v27  ;;  %v9638_v25 = vpop.eup %7052  ;;  %v3029_v3 = vsel %vm12643_vm15, %v3014_v7, %v3028_v16  ;;  %v2217_v4 = vsel %vm12701_vm3, %v2202_v30, %v2216_v61  ;;  %v3017_v41 = vperm.slane %v2981_v21, %v8880_v56  ;;  %v3018_v60 = vperm.slane %v9531_v18, %v8880_v56 }
 0x5b1   : > { %3010 = vperm.xlu1 %6923, %v9621_v19   ;;  %12918 = vst [vmem:[#allocation106_spill] sm:$0xff] %v9638_v25  ;;  %v3030_v48 = vsel %vm12642_vm0, %v3015_v24, %v3029_v3  ;;  %v3019_v15 = vperm.slane %v9556_v62, %v8880_v56 }
 0x5b2   : > { %v9647_v2 = vpop.eup %7054  ;;  %v3031_v35 = vsel %vm12641_vm1, %v3016_v40, %v3030_v48 }
 0x5b3   : > { %12919 = vst [vmem:[#allocation107_spill] sm:$0xff] %v9647_v2  ;;  %v9654_v10 = vpop.eup %7056  ;;  %v3032_v7 = vsel %vm12640_vm2, %v3017_v41, %v3031_v35 }
 0x5b4   : > { %3799 = vperm.xlu0 %6924, %v9626_v28   ;;  %12920 = vst [vmem:[#allocation108_spill] sm:$0xff] %v9654_v10  ;;  %v9672_v37 = vpop.eup %7058  ;;  %v3033_v21 = vsel %vm12701_vm3, %v3018_v60, %v3032_v7 }
 0x5b5   : > { %12921 = vst [vmem:[#allocation109_spill] sm:$0xff] %v9672_v37  ;;  %v9682_v42 = vpop.eup %7060  ;;  %v3034_v30 = vsel %vm12647_vm4, %v3019_v15, %v3033_v21 }
 0x5b6   : > { %12922 = vst [vmem:[#allocation110_spill] sm:$0xff] %v9682_v42  ;;  %v3044_v24 = vsel %vm12646_vm5, %v3034_v30, 0.0 }
 0x5b9   : > { %4612 = vperm.xlu1 %6923, %v9631_v27   ;;  %v2180_v27 = vpop.permute.xlu2 %2179 }
 0x5ba   : > { %v2206_v48 = vperm.slane %v2180_v27, %v8880_v56 }
 0x5bc   : > { %4636 = vperm.xlu0 %6924, %v9638_v25   ;;  %v4601_v25 = vpop.permute.xlu1 %4600 }
 0x5bd   : > { %v4645_v23 = vperm.slane %v4601_v25, %v8880_v56 }
 0x5bf   : > { %v9665_v53 = vsel %vm12644_vm14, %v4645_v23, %v4644_v55  ;;  %v2218_v55 = vsel %vm12647_vm4, %v2203_v26, %v2217_v4 }
 0x5c0   : > { %v2228_v47 = vsel %vm12646_vm5, %v2218_v55, 0.0 }
 0x5c1   : > { %3826 = vperm.xlu1 %6923, %v9647_v2   ;;  %v2189_v59 = vpop.permute.xlu2 %2188 }
 0x5c4   : > { %4615 = vperm.xlu0 %6924, %v9654_v10   ;;  %v2177_v25 = vpop.permute.xlu0 %2176 }
 0x5c5   : > { %v2174_v14 = vpop.permute.xlu1 %2173  ;;  %v2205_v3 = vperm.slane %v2177_v25, %v8880_v56 }
 0x5c6   : > { %v2204_v18 = vperm.slane %v2174_v14, %v8880_v56 }
 0x5c8   : > { %v2219_v62 = vsel %vm12644_vm14, %v2205_v3, %v2204_v18 }
 0x5c9   : > { %4618 = vperm.xlu1 %6923, %v9672_v37   ;;  %v2993_v9 = vpop.permute.xlu2 %2992  ;;  %v2220_v55 = vsel %vm12643_vm15, %v2206_v48, %v2219_v62 }
 0x5ca   : > { %v3021_v2 = vperm.slane %v2993_v9, %v8880_v56 }
 0x5cc   : > { %4642 = vperm.xlu0 %6924, %v9682_v42   ;;  %v2186_v23 = vpop.permute.xlu0 %2185 }
 0x5cd   : > { %v2183_v8 = vpop.permute.xlu1 %2182  ;;  %v2208_v35 = vperm.slane %v2186_v23, %v8880_v56 }
 0x5ce   : > { %v2207_v26 = vperm.slane %v2183_v8, %v8880_v56 }
 0x5d0   : > { %v2221_v60 = vsel %vm12642_vm0, %v2207_v26, %v2220_v55 }
 0x5d1   : > { %v4625_v4 = vpop.permute.xlu2 %4624  ;;  %v2222_v14 = vsel %vm12641_vm1, %v2208_v35, %v2221_v60 }
 0x5d3   : > { %2229 = vadd.xlane.f32.xlu2 %v2228_v47  ;;  %v2209_v47 = vperm.slane %v2189_v59, %v8880_v56  ;;  %v4653_v59 = vperm.slane %v4625_v4, %v8880_v56 }
 0x5d4   : > { %v2195_v16 = vpop.permute.xlu0 %2194 }
 0x5d5   : > { %v2192_v61 = vpop.permute.xlu1 %2191  ;;  %v2211_v8 = vperm.slane %v2195_v16, %v8880_v56  ;;  %v2223_v21 = vsel %vm12640_vm2, %v2209_v47, %v2222_v14 }
 0x5d6   : > { %v2210_v25 = vperm.slane %v2192_v61, %v8880_v56 }
 0x5d8   : > { %v2224_v30 = vsel %vm12701_vm3, %v2210_v25, %v2223_v21 }
 0x5d9   : > { %v9716_v15 = vpop.permute.xlu2 %3814  ;;  %v2225_v23 = vsel %vm12647_vm4, %v2211_v8, %v2224_v30 }
 0x5da   : > { %v2231_v18 = vsel %vm12646_vm5, %v2225_v23, 0.0 }
 0x5db   : > { %3045 = vadd.xlane.f32.xlu2 %v3044_v24 }
 0x5dc   : > { %v2996_v40 = vpop.permute.xlu0 %2995 }
 0x5dd   : > { %v2990_v41 = vpop.permute.xlu1 %2989 }
 0x5de   : > { %v3020_v42 = vperm.slane %v2990_v41, %v8880_v56 }
 0x5e1   : > { %v3005_v61 = vpop.permute.xlu2 %3004 }
 0x5e4   : > { %v9711_v7 = vpop.permute.xlu0 %3808 }
 0x5e5   : > { %v2999_v27 = vpop.permute.xlu1 %2998 }
 0x5e6   : > { %v3023_v10 = vperm.slane %v2999_v27, %v8880_v56 }
 0x5e9   : > { %v9728_v55 = vpop.permute.xlu2 %4606 }
 0x5ec   : > { %v9722_v24 = vpop.permute.xlu0 %3811 }
 0x5ed   : > { %v3806_v3 = vpop.permute.xlu1 %3805 }
 0x5f1   : > { %v3797_v25 = vpop.permute.xlu2 %3796 }
 0x5f3   : > { %2232 = vadd.xlane.f32.xlu1 %v2231_v18 }
 0x5f4   : > { %v4622_v62 = vpop.permute.xlu0 %4621 }
 0x5f5   : > { %v4652_v26 = vperm.slane %v4622_v62, %v8880_v56  ;;  %v3002_v48 = vpop.permute.xlu1 %3001 }
 0x5f7   : > { %v4667_v16 = vsel %vm12644_vm14, %v4653_v59, %v4652_v26 }
 0x5f9   : > { %v4634_v23 = vpop.permute.xlu2 %4633 }
 0x5fa   : > { %v4656_v62 = vperm.slane %v4634_v23, %v8880_v56 }
 0x5fc   : > { %v3791_v35 = vpop.permute.xlu0 %3790 }
 0x5fd   : > { %v9730_v60 = vpop.permute.xlu1 %4603  ;;  %v3831_v41 = vperm.slane %v3791_v35, %v8880_v56 }
 0x601   : > { %v3824_v19 = vpop.permute.xlu2 %3823 }
 0x604   : > { %v4628_v14 = vpop.permute.xlu0 %4627 }
 0x605   : > { %v4654_v47 = vperm.slane %v4628_v14, %v8880_v56  ;;  %v3794_v21 = vpop.permute.xlu1 %3793  ;;  %v3022_v14 = vperm.slane %v2996_v40, %v8880_v56  ;;  %v3025_v40 = vperm.slane %v3005_v61, %v8880_v56  ;;  %v3833_v61 = vperm.slane %v3797_v25, %v8880_v56 }
 0x607   : > { %v4668_v8 = vsel %vm12643_vm15, %v4654_v47, %v4667_v16  ;;  %v3035_v47 = vsel %vm12644_vm14, %v3021_v2, %v3020_v42  ;;  %v3832_v2 = vperm.slane %v3794_v21, %v8880_v56 }
 0x608   : > { %v3036_v23 = vsel %vm12643_vm15, %v3022_v14, %v3035_v47  ;;  %v3836_v14 = vperm.slane %v3806_v3, %v8880_v56 }
 0x609   : > { %v3803_v47 = vpop.permute.xlu2 %3802 }
 0x60a   : > { %v3835_v3 = vperm.slane %v3803_v47, %v8880_v56 }
 0x60c   : > { %v3818_v30 = vpop.permute.xlu0 %3817 }
 0x60d   : > { %v4631_v4 = vpop.permute.xlu1 %4630 }
 0x60e   : > { %v4655_v18 = vperm.slane %v4631_v4, %v8880_v56  ;;  %v3024_v4 = vperm.slane %v3002_v48, %v8880_v56 }
 0x610   : > { %v4669_v59 = vsel %vm12642_vm0, %v4655_v18, %v4668_v8  ;;  %v3037_v18 = vsel %vm12642_vm0, %v3023_v10, %v3036_v23  ;;  %v3837_v23 = vperm.slane %v9711_v7, %v8880_v56 }
 0x611   : > { %v4670_v37 = vsel %vm12641_vm1, %v4656_v62, %v4669_v59  ;;  %v3038_v62 = vsel %vm12641_vm1, %v3024_v4, %v3037_v18  ;;  %v3846_v59 = vsel %vm12642_vm0, %v3831_v41, %v9589_v49  ;;  %v3838_v18 = vperm.slane %v9722_v24, %v8880_v56 }
 0x612   : > { %v3039_v48 = vsel %vm12640_vm2, %v3025_v40, %v3038_v62  ;;  %v3847_v35 = vsel %vm12641_vm1, %v3832_v2, %v3846_v59  ;;  %v3851_v41 = vsel %vm12644_vm14, %v3837_v23, %v3836_v14  ;;  %v3839_v24 = vperm.slane %v9716_v15, %v8880_v56 }
 0x613   : > { %v3848_v62 = vsel %vm12640_vm2, %v3833_v61, %v3847_v35  ;;  %v3852_v7 = vsel %vm12643_vm15, %v3838_v18, %v3851_v41  ;;  %v4646_v14 = vperm.slane %v9730_v60, %v8880_v56  ;;  %v4647_v60 = vperm.slane %v9728_v55, %v8880_v56 }
 0x614   : > { %v3008_v26 = vpop.permute.xlu0 %3007  ;;  %v3853_v59 = vsel %vm12642_vm0, %v3839_v24, %v3852_v7 }
 0x615   : > { %v3026_v9 = vperm.slane %v3008_v26, %v8880_v56  ;;  %v4661_v61 = vsel %vm12643_vm15, %v4646_v14, %v9665_v53 }
 0x616   : > { %v4662_v18 = vsel %vm12642_vm0, %v4647_v60, %v4661_v61 }
 0x617   : > { %v3040_v10 = vsel %vm12701_vm3, %v3026_v9, %v3039_v48 }
 0x61b   : > { %v3821_v16 = vpop.permute.xlu1 %3820 }
 0x61e   : > { %v4610_v8 = vpop.permute.xlu0 %4609 }
 0x623   : > { %v3011_v42 = vpop.permute.xlu1 %3010 }
 0x624   : > { %v3027_v27 = vperm.slane %v3011_v42, %v8880_v56  ;;  %v3840_v42 = vperm.slane %v3818_v30, %v8880_v56 }
 0x626   : > { %v3041_v26 = vsel %vm12647_vm4, %v3027_v27, %v3040_v10  ;;  %v3800_v4 = vpop.permute.xlu0 %3799  ;;  %v3841_v27 = vperm.slane %v3821_v16, %v8880_v56  ;;  %v3854_v47 = vsel %vm12641_vm1, %v3840_v42, %v3853_v59 }
 0x627   : > { %v3047_v21 = vsel %vm12646_vm5, %v3041_v26, 0.0  ;;  %v3834_v49 = vperm.slane %v3800_v4, %v8880_v56  ;;  %v3842_v26 = vperm.slane %v3824_v19, %v8880_v56 }
 0x628   : > { %3048 = vadd.xlane.f32.xlu1 %v3047_v21  ;;  %v3855_v35 = vsel %vm12640_vm2, %v3841_v27, %v3854_v47  ;;  %v4648_v21 = vperm.slane %v4610_v8, %v8880_v56 }
 0x629   : > { %v3849_v25 = vsel %vm12701_vm3, %v3834_v49, %v3848_v62  ;;  %v3856_v4 = vsel %vm12701_vm3, %v3842_v26, %v3855_v35 }
 0x62a   : > { %v3850_v40 = vsel %vm12647_vm4, %v3835_v3, %v3849_v25  ;;  %v4663_v53 = vsel %vm12641_vm1, %v4648_v21, %v4662_v18  ;;  %v4514_v25 = vperm.slane %v9439_v51, 6 }
 0x62b   : > { %v4613_v9 = vpop.permute.xlu1 %4612  ;;  %v3860_v2 = vsel %vm12646_vm5, %v3850_v40, 0.0 }
 0x62c   : > { %3861 = vadd.xlane.f32.xlu0 %v3860_v2  ;;  %v4649_v23 = vperm.slane %v4613_v9, %v8880_v56  ;;  %v12923_v2 = vld [vmem:[#allocation81_spill] sm:$0xff] }
 0x62d   : > { %v4546_v7 = vsub.f32 %v12923_v2, %v4514_v25 }
 0x62e   : > { %v4637_v48 = vpop.permute.xlu0 %4636  ;;  %v4664_v8 = vsel %vm12640_vm2, %v4649_v23, %v4663_v53 }
 0x62f   : > { %v4657_v10 = vperm.slane %v4637_v48, %v8880_v56  ;;  %v4576_v42 = vmul.f32 1.442695, %v4546_v7 }
 0x631   : > { %v9784_v30 = vsel %vm12640_vm2, %v4657_v10, %v4670_v37  ;;  %7062 = vpow2.f32 %v4576_v42 }
 0x633   : > { %v3827_v15 = vpop.permute.xlu1 %3826 }
 0x634   : > { %v3843_v16 = vperm.slane %v3827_v15, %v8880_v56 }
 0x636   : > { %v3857_v37 = vsel %vm12647_vm4, %v3843_v16, %v3856_v4  ;;  %v4616_v19 = vpop.permute.xlu0 %4615 }
 0x637   : > { %v3863_v49 = vsel %vm12646_vm5, %v3857_v37, 0.0  ;;  %v4650_v3 = vperm.slane %v4616_v19, %v8880_v56  ;;  %v9813_v10 = vpop.eup %7062 }
 0x638   : > { %3864 = vadd.xlane.f32.xlu2 %v3863_v49  ;;  %12924 = vst [vmem:[#allocation81_spill] sm:$0xff] %v9813_v10 }
 0x639   : > { %v4665_v41 = vsel %vm12701_vm3, %v4650_v3, %v4664_v8 }
 0x63b   : > { %v4619_v62 = vpop.permute.xlu1 %4618 }
 0x63c   : > { %v4651_v55 = vperm.slane %v4619_v62, %v8880_v56  ;;  %v12929_v62 = vld [vmem:[#allocation16_spill] sm:$0xff] }
 0x63e   : > { %v4666_v9 = vsel %vm12647_vm4, %v4651_v55, %v4665_v41 }
 0x63f   : > { %v4676_v40 = vsel %vm12646_vm5, %v4666_v9, 0.0 }
 0x640   : > { %4677 = vadd.xlane.f32.xlu1 %v4676_v40 }
 0x646   : > { %v9807_v24 = vpop.xlane.xlu2 %2229 }
 0x647   : > { %v2241_v27 = vperm.slane %v9807_v24, 5  ;;  %v2243_v48 = vperm.slane %v9807_v24, 7 }
 0x649   : > { %7064 = vrcp.f32 %v2241_v27  ;;  %v2352_v35 = vand.u32 2147483647, %v2241_v27  ;;  %v2354_v26 = vand.u32 2147483648, %v2241_v27  ;;  %v2382_v61 = vand.u32 2147483647, %v2243_v48 }
 0x64a   : > { %7066 = vrcp.f32 %v2243_v48  ;;  %v2384_v21 = vand.u32 2147483648, %v2243_v48  ;;  %vm2348_vm6 = vweird.f32 %v2241_v27  ;;  %vm2378_vm8 = vweird.f32 %v2243_v48 }
 0x64b   : > { %vm9821_vm9 = vcmp.eq.f32.partialorder %v2352_v35, 8.507059e+37  ;;  %v2355_v19 = vor.u32 1.1754944e-38, %v2354_v26  ;;  %vm9826_vm2 = vcmp.eq.f32.partialorder %v2382_v61, 8.507059e+37 }
 0x64c   : > { %v2385_v41 = vor.u32 1.1754944e-38, %v2384_v21 }
 0x64e   : > { %v9811_v59 = vpop.xlane.xlu2 %3045 }
 0x64f   : > { %v3052_v51 = vperm.slane %v9811_v59, 0  ;;  %v9817_v14 = vperm.slane %v9811_v59, 1  ;;  %v7065_v47 = vpop.eup %7064 }
 0x650   : > { %4639 = vperm.xlu2 %6922, %v9813_v10   ;;  %v2344_v15 = vmul.f32 %v7065_v47, %v2241_v27  ;;  %v7067_v16 = vpop.eup %7066  ;;  %vm2349_vm7 = vweird.f32 %v7065_v47 }
 0x651   : > { %7068 = vrcp.f32 %v3052_v51  ;;  %v2374_v23 = vmul.f32 %v7067_v16, %v2243_v48  ;;  %vm3089_vm1 = vweird.f32 %v3052_v51  ;;  %vm2379_vm0 = vweird.f32 %v7067_v16  ;;  %vm2350_vm15 = vmor %vm2348_vm6, %vm2349_vm7 }
 0x652   : > { %7070 = vrcp.f32 %v9817_v14  ;;  %v2345_v60 = vsub.f32 1.0, %v2344_v15  ;;  %v3093_v7 = vand.u32 2147483647, %v3052_v51  ;;  %v3095_v42 = vand.u32 2147483648, %v3052_v51  ;;  %vm2380_vm5 = vmor %vm2378_vm8, %vm2379_vm0 }
 0x653   : > { %v2375_v53 = vsub.f32 1.0, %v2374_v23  ;;  %vm3104_vm4 = vweird.f32 %v9817_v14 }
 0x654   : > { %v2346_v3 = vmul.f32 %v7065_v47, %v2345_v60  ;;  %v3110_v60 = vand.u32 2147483648, %v9817_v14  ;;  %vm3094_vm8 = vcmp.eq.f32.partialorder %v3093_v7, 8.507059e+37  ;;  %v9866_v7 = vperm.slane %v9807_v24, 2 }
 0x655   : > { %v2376_v9 = vmul.f32 %v7067_v16, %v2375_v53 }
 0x656   : > { %v2347_v25 = vadd.f32 %v7065_v47, %v2346_v3 }
 0x657   : > { %v7069_v4 = vpop.eup %7068  ;;  %v2377_v26 = vadd.f32 %v7067_v16, %v2376_v9  ;;  %v12932_v9 = vld [vmem:[#allocation24_spill] sm:$0xff] }
 0x658   : > { %v7071_v37 = vpop.eup %7070  ;;  %v3085_v18 = vmul.f32 %v7069_v4, %v3052_v51  ;;  %vm3090_vm14 = vweird.f32 %v7069_v4  ;;  %v2351_v35 = vsel %vm2350_vm15, %v7065_v47, %v2347_v25  ;;  %v3108_v47 = vand.u32 2147483647, %v9817_v14 }
 0x659   : > { %v3100_v8 = vmul.f32 %v7071_v37, %v9817_v14  ;;  %vm3105_vm13 = vweird.f32 %v7071_v37  ;;  %v2356_v61 = vsel %vm9821_vm9, %v2355_v19, %v2351_v35  ;;  %v2381_v23 = vsel %vm2380_vm5, %v7067_v16, %v2377_v26  ;;  %vm3091_vm7 = vmor %vm3089_vm1, %vm3090_vm14  ;;  %v12934_v35 = vld [vmem:[#allocation25_spill] sm:$0xff] }
 0x65a   : > { %v3086_v55 = vsub.f32 1.0, %v3085_v18  ;;  %v2357_v27 = vmul.f32 %v9337_v50, %v2356_v61  ;;  %v2386_v3 = vsel %vm9826_vm2, %v2385_v41, %v2381_v23  ;;  %v3096_v19 = vor.u32 1.1754944e-38, %v3095_v42  ;;  %vm3106_vm9 = vmor %vm3104_vm4, %vm3105_vm13  ;;  %v12931_v41 = vld [vmem:[#allocation22_spill] sm:$0xff]  ;;  %v12936_v61 = vld [vmem:[#allocation28_spill] sm:$0xff] }
 0x65b   : > { %v3101_v40 = vsub.f32 1.0, %v3100_v8  ;;  %v2387_v48 = vmul.f32 %v9352_v44, %v2386_v3  ;;  %vm3109_vm15 = vcmp.eq.f32.partialorder %v3108_v47, 8.507059e+37  ;;  %v9845_v16 = vperm.slane %v9807_v24, 0  ;;  %v12940_v3 = vld [vmem:[#allocation17_spill] sm:$0xff] }
 0x65c   : > { %v3087_v2 = vmul.f32 %v7069_v4, %v3086_v55  ;;  %2535 = vperm.xlu2 %6922, %v2357_v27   ;;  %v3111_v55 = vor.u32 1.1754944e-38, %v3110_v60  ;;  %v12938_v27 = vld [vmem:[#allocation27_spill] sm:$0xff] }
 0x65d   : > { %v3102_v15 = vmul.f32 %v7071_v37, %v3101_v40  ;;  %2545 = vperm.xlu1 %6923, %v2387_v48   ;;  %7072 = vrcp.f32 %v9845_v16  ;;  %v12942_v48 = vld [vmem:[#allocation30_spill] sm:$0xff]  ;;  %vm2273_vm13 = vweird.f32 %v9845_v16 }
 0x65e   : > { %v3088_v21 = vadd.f32 %v7069_v4, %v3087_v2 }
 0x65f   : > { %v3103_v18 = vadd.f32 %v7071_v37, %v3102_v15 }
 0x660   : > { %v3092_v49 = vsel %vm3091_vm7, %v7069_v4, %v3088_v21  ;;  %v9848_v4 = vperm.slane %v9807_v24, 1  ;;  %vm2303_vm7 = vweird.f32 %v9866_v7 }
 0x661   : > { %v3107_v53 = vsel %vm3106_vm9, %v7071_v37, %v3103_v18  ;;  %v3097_v8 = vsel %vm3094_vm8, %v3096_v19, %v3092_v49 }
 0x662   : > { %v3112_v50 = vsel %vm3109_vm15, %v3111_v55, %v3107_v53  ;;  %v3098_v51 = vmul.f32 %v9364_v5, %v3097_v8  ;;  %7074 = vrcp.f32 %v9848_v4  ;;  %v12930_v5 = vld [vmem:[#allocation14_spill] sm:$0xff]  ;;  %v12943_v8 = vld [vmem:[#allocation33_spill] sm:$0xff]  ;;  %vm2288_vm2 = vweird.f32 %v9848_v4 }
 0x663   : > { %v3113_v14 = vmul.f32 %v9348_v31, %v3112_v50  ;;  %v9852_v44 = vpop.eup %7072  ;;  %v1841_v31 = vsel %vm12702_vm10, %v12930_v5, %v12929_v62  ;;  %v12933_v40 = vrot.slane %v12930_v5, 2  ;;  %v12935_v26 = vrot.slane %v12930_v5, 1  ;;  %v12944_v50 = vld [vmem:[#allocation18_spill] sm:$0xff]  ;;  %v12946_v62 = vld [vmem:[#allocation21_spill] sm:$0xff] }
 0x664   : > { %3326 = vperm.xlu2 %6922, %v3098_v51   ;;  %v1857_v25 = vsel %vm12700_vm11, %v1841_v31, %v12931_v41  ;;  %v2269_v42 = vmul.f32 %v9852_v44, %v9845_v16  ;;  %v12937_v21 = vrot.slane %v12930_v5, 4  ;;  %v12939_v23 = vrot.slane %v12930_v5, 5  ;;  %v12948_v41 = vld [vmem:[#allocation31_spill] sm:$0xff] }
 0x665   : > { %3331 = vperm.xlu1 %6923, %v3113_v14   ;;  %v1843_v2 = vsel %vm12702_vm10, %v12933_v40, %v12932_v9  ;;  %v1842_v15 = vsel %vm12702_vm10, %v12935_v26, %v12934_v35  ;;  %v12941_v49 = vrot.slane %v12930_v5, 3  ;;  %v12945_v51 = vrot.slane %v12930_v5, 6  ;;  %v12950_v35 = vld [vmem:[#allocation19_spill] sm:$0xff] }
 0x666   : > { %v1845_v60 = vsel %vm12702_vm10, %v12937_v21, %v12936_v61  ;;  %v1846_v18 = vsel %vm12702_vm10, %v12939_v23, %v12938_v27  ;;  %v1858_v53 = vsel %vm12700_vm11, %v1842_v15, %v12942_v48  ;;  %v9898_v31 = vsel %vm12699_vm12, %v1857_v25, %v12946_v62  ;;  %v12951_v15 = vld [vmem:[#allocation36_spill] sm:$0xff]  ;;  %v12953_v23 = vld [vmem:[#allocation23_spill] sm:$0xff]  ;;  %v12961_v62 = vld [vmem:[#allocation45_spill] sm:$0xff] }
 0x667   : > { %v1844_v19 = vsel %vm12702_vm10, %v12941_v49, %v12940_v3  ;;  %v1861_v55 = vsel %vm12700_vm11, %v1845_v60, %v12943_v8  ;;  %v1847_v14 = vsel %vm12702_vm10, %v12945_v51, %v12944_v50  ;;  %12947 = vst [vmem:[#allocation16_spill] sm:$0xff] %v9898_v31  ;;  %v12949_v9 = vrot.slane %v12930_v5, 7  ;;  %v12952_v21 = vld [vmem:[#allocation20_spill] sm:$0xff]  ;;  %v12955_v3 = vld [vmem:[#allocation34_spill] sm:$0xff]  ;;  %v12958_v8 = vld [vmem:[#allocation35_spill] sm:$0xff] }
 0x668   : > { %v9854_v37 = vpop.eup %7074  ;;  %v1859_v26 = vsel %vm12700_vm11, %v1843_v2, %v12950_v35  ;;  %v1862_v60 = vsel %vm12700_vm11, %v1846_v18, %v12952_v21  ;;  %7076 = vrcp.f32 %v9866_v7  ;;  %v2270_v27 = vsub.f32 1.0, %v2269_v42  ;;  %v12956_v49 = vld [vmem:[#allocation26_spill] sm:$0xff]  ;;  %v12959_v50 = vld [vmem:[#allocation15_spill] sm:$0xff] }
 0x669   : > { %v2284_v47 = vmul.f32 %v9854_v37, %v9848_v4  ;;  %v1848_v40 = vsel %vm12702_vm10, %v12949_v9, %v12948_v41  ;;  %v9913_v25 = vsel %vm12699_vm12, %v1858_v53, %v12953_v23  ;;  %v1860_v5 = vsel %vm12700_vm11, %v1844_v19, %v12955_v3  ;;  %v12962_v41 = vld [vmem:[#allocation49_spill] sm:$0xff]  ;;  %v12968_v3 = vld [vmem:[#allocation40_spill] sm:$0xff] }
 0x66a   : > { %v1864_v61 = vsel %vm12700_vm11, %v1848_v40, %v12951_v15  ;;  %12954 = vst [vmem:[#allocation14_spill] sm:$0xff] %v9913_v25  ;;  %v9919_v48 = vsel %vm12699_vm12, %v1861_v55, %v12956_v49  ;;  %v12960_v51 = vrot.slane %v12959_v50, 1  ;;  %v1849_v42 = vsel %vm12702_vm10, %v12959_v50, %v12961_v62  ;;  %v12964_v55 = vld [vmem:[#allocation37_spill] sm:$0xff]  ;;  %v12967_v15 = vld [vmem:[#allocation54_spill] sm:$0xff]  ;;  %v9954_v62 = vpop.permute.xlu0 %4642 }
 0x66b   : > { %12957 = vst [vmem:[#allocation22_spill] sm:$0xff] %v9919_v48  ;;  %v2285_v2 = vsub.f32 1.0, %v2284_v47  ;;  %v12963_v53 = vrot.slane %v12959_v50, 2  ;;  %v9933_v19 = vperm.slane %v9807_v24, 3  ;;  %v1863_v47 = vsel %vm12700_vm11, %v1847_v14, %v12964_v55  ;;  %v12965_v40 = vld [vmem:[#allocation29_spill] sm:$0xff] }
 0x66c   : > { %v1850_v18 = vsel %vm12702_vm10, %v12960_v51, %v12958_v8  ;;  %v9939_v35 = vsel %vm12699_vm12, %v1864_v61, %v12965_v40  ;;  %v9944_v23 = vperm.slane %v9807_v24, 4  ;;  %v9948_v49 = vsel %vm12699_vm12, %v1859_v26, %v12968_v3  ;;  %v12970_v8 = vld [vmem:[#allocation39_spill] sm:$0xff]  ;;  %v12976_v26 = vld [vmem:[#allocation32_spill] sm:$0xff] }
 0x66d   : > { %v1851_v9 = vsel %vm12702_vm10, %v12963_v53, %v12962_v41  ;;  %12966 = vst [vmem:[#allocation24_spill] sm:$0xff] %v9939_v35  ;;  %v9952_v51 = vsel %vm12699_vm12, %v1860_v5, %v12970_v8  ;;  %v9957_v14 = vperm.slane %v9807_v24, 6  ;;  %v2271_v61 = vmul.f32 %v9852_v44, %v2270_v27  ;;  %v12972_v41 = vld [vmem:[#allocation43_spill] sm:$0xff]  ;;  %v12978_v8 = vld [vmem:[#allocation50_spill] sm:$0xff] }
 0x66e   : > { %v1867_v21 = vsel %vm12700_vm11, %v1851_v9, %v12967_v15  ;;  %12969 = vst [vmem:[#allocation25_spill] sm:$0xff] %v9948_v49  ;;  %v9962_v53 = vsel %vm12699_vm12, %v1862_v60, %v12972_v41  ;;  %v12974_v9 = vld [vmem:[#allocation42_spill] sm:$0xff]  ;;  %v1865_v40 = vsel %vm12700_vm11, %v1849_v42, %v12976_v26  ;;  %v2286_v5 = vmul.f32 %v9854_v37, %v2285_v2  ;;  %v9971_v15 = vpop.eup %7076  ;;  %v12977_v3 = vld [vmem:[#allocation55_spill] sm:$0xff] }
 0x66f   : > { %12971 = vst [vmem:[#allocation28_spill] sm:$0xff] %v9952_v51  ;;  %v9966_v55 = vsel %vm12699_vm12, %v1863_v47, %v12974_v9  ;;  %v1866_v24 = vsel %vm12700_vm11, %v1850_v18, %v12977_v3  ;;  %v9977_v27 = vsel %vm12699_vm12, %v1867_v21, %v12978_v8  ;;  %7078 = vrcp.f32 %v9933_v19  ;;  %v10006_v3 = vpop.xlane.xlu1 %2232  ;;  %v12991_v51 = vld [vmem:[#allocation46_spill] sm:$0xff] }
 0x670   : > { %12973 = vst [vmem:[#allocation27_spill] sm:$0xff] %v9962_v53  ;;  %v9981_v60 = vperm.slane %v9811_v59, 2  ;;  %7080 = vrcp.f32 %v9944_v23  ;;  %v9985_v42 = vperm.slane %v9811_v59, 3  ;;  %v2279_v2 = vand.u32 2147483648, %v9845_v16 }
 0x671   : > { %12975 = vst [vmem:[#allocation17_spill] sm:$0xff] %v9966_v55  ;;  %7082 = vrcp.f32 %v9957_v14  ;;  %v9991_v18 = vperm.slane %v9811_v59, 4  ;;  %v2272_v47 = vadd.f32 %v9852_v44, %v2271_v61  ;;  %vm2274_vm14 = vweird.f32 %v9852_v44  ;;  %v12986_v55 = vld [vmem:[#allocation58_spill] sm:$0xff] }
 0x672   : > { %12979 = vst [vmem:[#allocation30_spill] sm:$0xff] %v9977_v27  ;;  %v9996_v21 = vperm.slane %v9811_v59, 5  ;;  %v2287_v41 = vadd.f32 %v9854_v37, %v2286_v5  ;;  %vm2289_vm0 = vweird.f32 %v9854_v37  ;;  %v2299_v9 = vmul.f32 %v9971_v15, %v9866_v7  ;;  %vm10016_vm1 = vmor %vm2273_vm13, %vm2274_vm14 }
 0x673   : > { %12980 = vst [vmem:[#allocation33_spill] sm:$0xff] %v9985_v42  ;;  %v10003_v26 = vperm.slane %v9811_v59, 6  ;;  %7084 = vrcp.f32 %v9981_v60  ;;  %v2277_v61 = vand.u32 2147483647, %v9845_v16  ;;  %v2294_v8 = vand.u32 2147483648, %v9848_v4  ;;  %vm10036_vm4 = vmor %vm2288_vm2, %vm2289_vm0 }
 0x674   : > { %12981 = vst [vmem:[#allocation18_spill] sm:$0xff] %v9996_v21  ;;  %v10011_v50 = vperm.slane %v9811_v59, 7  ;;  %7086 = vrcp.f32 %v9985_v42  ;;  %v2292_v35 = vand.u32 2147483647, %v9848_v4  ;;  %v10026_v36 = vsel %vm12699_vm12, %v1866_v24, %v12986_v55 }
 0x675   : > { %12982 = vst [vmem:[#allocation21_spill] sm:$0xff] %v10003_v26  ;;  %v10022_v28 = vpop.eup %7078  ;;  %7088 = vrcp.f32 %v9991_v18  ;;  %v2276_v16 = vsel %vm10016_vm1, %v9852_v44, %v2272_v47  ;;  %v2280_v53 = vor.u32 1.1754944e-38, %v2279_v2  ;;  %v10044_v55 = vperm.slane %v10006_v3, 2 }
 0x676   : > { %12983 = vst [vmem:[#allocation31_spill] sm:$0xff] %v10011_v50  ;;  %v10040_v4 = vpop.eup %7080  ;;  %7090 = vrcp.f32 %v9996_v21  ;;  %v2291_v24 = vsel %vm10036_vm4, %v9854_v37, %v2287_v41  ;;  %v2300_v5 = vsub.f32 1.0, %v2299_v9  ;;  %vm2278_vm5 = vcmp.eq.f32.partialorder %v2277_v61, 8.507059e+37 }
 0x677   : > { %12987 = vst [vmem:[#allocation19_spill] sm:$0xff] %v10026_v36  ;;  %v10049_v44 = vpop.eup %7082  ;;  %7092 = vrcp.f32 %v10003_v26  ;;  %v2295_v47 = vor.u32 1.1754944e-38, %v2294_v8  ;;  %v2281_v48 = vsel %vm2278_vm5, %v2280_v53, %v2276_v16  ;;  %vm2293_vm6 = vcmp.eq.f32.partialorder %v2292_v35, 8.507059e+37 }
 0x678   : > { %7094 = vrcp.f32 %v10011_v50  ;;  %v10058_v49 = vsel %vm12699_vm12, %v1865_v40, %v12991_v51  ;;  %v2307_v9 = vand.u32 2147483647, %v9866_v7  ;;  %v2309_v36 = vand.u32 2147483648, %v9866_v7 }
 0x679   : > { %12992 = vst [vmem:[#allocation20_spill] sm:$0xff] %v10058_v49  ;;  %v10060_v27 = vpop.eup %7084  ;;  %v2296_v41 = vsel %vm2293_vm6, %v2295_v47, %v2291_v24  ;;  %7096 = vrcp.f32 %v10044_v55  ;;  %v2301_v35 = vmul.f32 %v9971_v15, %v2300_v5  ;;  %v2314_v51 = vmul.f32 %v10022_v28, %v9933_v19 }
 0x67a   : > { %v10067_v61 = vpop.eup %7086  ;;  %v10078_v8 = vperm.slane %v10006_v3, 0  ;;  %v10082_v16 = vmul.f32 %v9308_v57, %v2281_v48  ;;  %v10088_v47 = vperm.slane %v10006_v3, 1  ;;  %v10091_v5 = vperm.slane %v10006_v3, 4 }
 0x67b   : > { %12993 = vst [vmem:[#allocation23_spill] sm:$0xff] %v10067_v61  ;;  %v10075_v40 = vpop.eup %7088  ;;  %v10094_v53 = vmul.f32 %v9315_v0, %v2296_v41  ;;  %vm2304_vm9 = vweird.f32 %v9971_v15  ;;  %v10100_v57 = vperm.slane %v10006_v3, 5  ;;  %v2429_v48 = vand.u32 2147483648, %v10044_v55 }
 0x67c   : > { %12994 = vst [vmem:[#allocation34_spill] sm:$0xff] %v10078_v8  ;;  %v10085_v24 = vpop.eup %7090  ;;  %vm10104_vm8 = vcmp.eq.f32.partialorder %v2307_v9, 8.507059e+37  ;;  %v2310_v22 = vor.u32 1.1754944e-38, %v2309_v36  ;;  %v10111_v0 = vperm.slane %v10006_v3, 7  ;;  %v2302_v41 = vadd.f32 %v9971_v15, %v2301_v35  ;;  %vm10147_vm14 = vmor %vm2303_vm7, %vm2304_vm9 }
 0x67d   : > { %12995 = vst [vmem:[#allocation26_spill] sm:$0xff] %v10085_v24  ;;  %v10097_v49 = vpop.eup %7092  ;;  %v2315_v17 = vsub.f32 1.0, %v2314_v51  ;;  %vm2319_vm15 = vweird.f32 %v10022_v28  ;;  %v2322_v38 = vand.u32 2147483647, %v9933_v19  ;;  %v10117_v46 = vperm.slane %v10006_v3, 3 }
 0x67e   : > { %12996 = vst [vmem:[#allocation35_spill] sm:$0xff] %v10088_v47  ;;  %v10108_v43 = vpop.eup %7094  ;;  %v2324_v9 = vand.u32 2147483648, %v9933_v19  ;;  %v2329_v36 = vmul.f32 %v10040_v4, %v9944_v23  ;;  %v10126_v25 = vperm.slane %v10006_v3, 6  ;;  %v2459_v50 = vand.u32 2147483648, %v10091_v5 }
 0x67f   : > { %12997 = vst [vmem:[#allocation45_spill] sm:$0xff] %v10094_v53  ;;  %v10123_v31 = vpop.eup %7096  ;;  %vm2318_vm13 = vweird.f32 %v9933_v19  ;;  %v2504_v11 = vand.u32 2147483648, %v10111_v0  ;;  %v2316_v3 = vmul.f32 %v10022_v28, %v2315_v17  ;;  %vm2333_vm0 = vweird.f32 %v9944_v23 }
 0x680   : > { %12998 = vst [vmem:[#allocation49_spill] sm:$0xff] %v10097_v49  ;;  %v2419_v26 = vmul.f32 %v10123_v31, %v10044_v55  ;;  %vm2334_vm1 = vweird.f32 %v10040_v4  ;;  %vm10197_vm2 = vcmp.eq.f32.partialorder %v2322_v38, 8.507059e+37  ;;  %vm10219_vm4 = vmor %vm2318_vm13, %vm2319_vm15  ;;  %vm2424_vm6 = vweird.f32 %v10123_v31 }
 0x681   : > { %13001 = vst [vmem:[#allocation37_spill] sm:$0xff] %v10108_v43  ;;  %v10167_v43 = vor.u32 1.1754944e-38, %v2459_v50  ;;  %v10185_v17 = vadd.f32 %v10022_v28, %v2316_v3  ;;  %vm13015_vm9 = vcmask 1047559   ;;  %vm2423_vm13 = vweird.f32 %v10044_v55 }
 0x682   : > { %13002 = vst [vmem:[#allocation29_spill] sm:$0xff] %v10117_v46 }
 0x683   : > { %13003 = vst [vmem:[#allocation54_spill] sm:$0xff] %v10126_v25  ;;  %v2321_v53 = vsel %vm10219_vm4, %v10022_v28, %v10185_v17  ;;  %v13014_v17 = vperm.slane %v9954_v62, %v8880_v56 }
 0x69b   : > { %v10129_v35 = vpop.xlane.xlu1 %3048 }
 0x69f   : > { %v10029_v59 = vpop.xlane.xlu0 %3861 }
 0x6a0   : > { %12988 = vst [vmem:[#allocation36_spill] sm:$0xff] %v10029_v59  ;;  %v10053_v2 = vperm.slane %v10029_v59, 0  ;;  %v10063_v37 = vperm.slane %v10029_v59, 2  ;;  %v2330_v59 = vsub.f32 1.0, %v2329_v36 }
 0x6a2   : > { %7098 = vrcp.f32 %v10053_v2  ;;  %v3909_v38 = vand.u32 2147483647, %v10053_v2  ;;  %vm3905_vm7 = vweird.f32 %v10053_v2 }
 0x6a3   : > { %7100 = vrcp.f32 %v10063_v37 }
 0x6a4   : > { %7102 = vrcp.f32 %v10078_v8  ;;  %v10139_v8 = vor.u32 1.1754944e-38, %v2429_v48  ;;  %v2306_v48 = vsel %vm10147_vm14, %v9971_v15, %v2302_v41  ;;  %vm3910_vm15 = vcmp.eq.f32.partialorder %v3909_v38, 8.507059e+37 }
 0x6a5   : > { %7104 = vrcp.f32 %v10088_v47  ;;  %v2474_v47 = vand.u32 2147483648, %v10100_v57  ;;  %v10182_v50 = vsel %vm10104_vm8, %v2310_v22, %v2306_v48  ;;  %vm13016_vm14 = vcmask 31744  }
 0x6a6   : > { %7106 = vrcp.f32 %v10091_v5  ;;  %v10266_v38 = vperm.slane %v10129_v35, 2 }
 0x6a7   : > { %7108 = vrcp.f32 %v10100_v57  ;;  %v10173_v39 = vor.u32 1.1754944e-38, %v2474_v47  ;;  %v2331_v47 = vmul.f32 %v10040_v4, %v2330_v59  ;;  %v10205_v59 = vmul.f32 %v10075_v40, %v9991_v18 }
 0x6a8   : > { %v10136_v34 = vpop.eup %7098  ;;  %7110 = vrcp.f32 %v10111_v0 }
 0x6a9   : > { %v10157_v49 = vpop.eup %7100  ;;  %v3901_v7 = vmul.f32 %v10136_v34, %v10053_v2  ;;  %7112 = vrcp.f32 %v10117_v46  ;;  %v10178_v46 = vor.u32 1.1754944e-38, %v2504_v11  ;;  %vm3906_vm5 = vweird.f32 %v10136_v34 }
 0x6aa   : > { %v3931_v6 = vmul.f32 %v10157_v49, %v10063_v37  ;;  %v10170_v15 = vpop.eup %7102  ;;  %7114 = vrcp.f32 %v10126_v25  ;;  %v2420_v25 = vsub.f32 1.0, %v2419_v26  ;;  %vm3907_vm8 = vmor %vm3905_vm7, %vm3906_vm5  ;;  %vm3936_vm4 = vweird.f32 %v10157_v49 }
 0x6ab   : > { %v10131_v51 = vpop.xlane.xlu2 %3864  ;;  %13006 = vst [vmem:[#allocation40_spill] sm:$0xff] %v10170_v15  ;;  %v3902_v41 = vsub.f32 1.0, %v3901_v7  ;;  %v10176_v42 = vpop.eup %7104  ;;  %v2325_v7 = vor.u32 1.1754944e-38, %v2324_v9  ;;  %vm3935_vm5 = vweird.f32 %v10063_v37  ;;  %vm10275_vm7 = vmor %vm2333_vm0, %vm2334_vm1  ;;  %vm2468_vm1 = vweird.f32 %v10100_v57 }
 0x6ac   : > { %13007 = vst [vmem:[#allocation39_spill] sm:$0xff] %v10176_v42  ;;  %v3932_v36 = vsub.f32 1.0, %v3931_v6  ;;  %v10187_v15 = vpop.eup %7106  ;;  %v2421_v19 = vmul.f32 %v10123_v31, %v2420_v25  ;;  %v10250_v25 = vperm.slane %v10129_v35, 1 }
 0x6ad   : > { %v10192_v6 = vpop.eup %7108  ;;  %v3903_v22 = vmul.f32 %v10136_v34, %v3902_v41  ;;  %v3911_v41 = vand.u32 2147483648, %v10053_v2  ;;  %v2449_v32 = vmul.f32 %v10187_v15, %v10091_v5 }
 0x6ae   : > { %v10207_v3 = vpop.eup %7110 }
 0x6af   : > { %v10223_v26 = vpop.eup %7112  ;;  %v3904_v9 = vadd.f32 %v10136_v34, %v3903_v22  ;;  %v2494_v28 = vmul.f32 %v10207_v3, %v10111_v0  ;;  %v2450_v62 = vsub.f32 1.0, %v2449_v32 }
 0x6b0   : > { %13012 = vst [vmem:[#allocation43_spill] sm:$0xff] %v10223_v26  ;;  %v10233_v24 = vpop.eup %7114  ;;  %v2464_v26 = vmul.f32 %v10192_v6, %v10100_v57 }
 0x6b1   : > { %13013 = vst [vmem:[#allocation42_spill] sm:$0xff] %v10233_v24  ;;  %v2451_v10 = vmul.f32 %v10187_v15, %v2450_v62  ;;  %v13024_v62 = vand.u32 2147483647, %v9944_v23 }
 0x6b3   : > { %v4640_v11 = vpop.permute.xlu2 %4639  ;;  %v10194_v61 = vpop.xlane.xlu1 %4677 }
 0x6b4   : > { %v4658_v48 = vperm.slane %v4640_v11, %v8880_v56  ;;  %v10211_v42 = vperm.slane %v10194_v61, 0  ;;  %v3933_v11 = vmul.f32 %v10157_v49, %v3932_v36  ;;  %v10241_v36 = vadd.f32 %v10040_v4, %v2331_v47 }
 0x6b5   : > { %v3908_v47 = vsel %vm3907_vm8, %v10136_v34, %v3904_v9  ;;  %v3941_v56 = vand.u32 2147483648, %v10063_v37  ;;  %v3939_v34 = vand.u32 2147483647, %v10063_v37  ;;  %vm10280_vm8 = vmor %vm3935_vm5, %vm3936_vm4  ;;  %v10288_v37 = vsel %vm10197_vm2, %v2325_v7, %v2321_v53 }
 0x6b6   : > { %7116 = vrcp.f32 %v10211_v42  ;;  %v4672_v21 = vsel %vm12701_vm3, %v4658_v48, %v9784_v30  ;;  %v3912_v30 = vor.u32 1.1754944e-38, %v3911_v41  ;;  %v3934_v22 = vadd.f32 %v10157_v49, %v3933_v11 }
 0x6b7   : > { %v4673_v24 = vsel %vm13015_vm9, %v13014_v17, %v4672_v21  ;;  %vm2454_vm9 = vweird.f32 %v10187_v15  ;;  %v2465_v21 = vsub.f32 1.0, %v2464_v26  ;;  %7118 = vrcp.f32 %v10250_v25 }
 0x6b8   : > { %v4679_v2 = vsel %vm13016_vm14, %v4673_v24, 0.0  ;;  %v3913_v48 = vsel %vm3910_vm15, %v3912_v30, %v3908_v47  ;;  %vm2453_vm15 = vweird.f32 %v10091_v5  ;;  %vm2469_vm14 = vweird.f32 %v10192_v6 }
 0x6b9   : > { %4680 = vadd.xlane.f32.xlu0 %v4679_v2  ;;  %v3914_v41 = vmul.f32 %v9388_v54, %v3913_v48  ;;  %v2495_v54 = vsub.f32 1.0, %v2494_v28  ;;  %v3938_v11 = vsel %vm10280_vm8, %v10157_v49, %v3934_v22  ;;  %v13021_v17 = vand.u32 2147483647, %v10044_v55  ;;  %vm10376_vm2 = vmor %vm2453_vm15, %vm2454_vm9 }
 0x6ba   : > { %vm2499_vm4 = vweird.f32 %v10207_v3  ;;  %v3942_v7 = vor.u32 1.1754944e-38, %v3941_v56  ;;  %v2422_v49 = vadd.f32 %v10123_v31, %v2421_v19  ;;  %v3146_v28 = vsub.f32 1.0, %v10205_v59 }
 0x6bb   : > { %4142 = vperm.xlu2 %6922, %v3914_v41   ;;  %vm10296_vm0 = vcmp.eq.f32.partialorder %v13021_v17, 8.507059e+37  ;;  %7120 = vrcp.f32 %v10266_v38  ;;  %vm3940_vm5 = vcmp.eq.f32.partialorder %v3939_v34, 8.507059e+37  ;;  %v2466_v47 = vmul.f32 %v10192_v6, %v2465_v21 }
 0x6bc   : > { %v7117_v32 = vpop.eup %7116  ;;  %v10313_v22 = vperm.slane %v10131_v51, 1  ;;  %v3943_v48 = vsel %vm3940_vm5, %v3942_v7, %v3938_v11  ;;  %v4727_v56 = vand.u32 2147483648, %v10211_v42  ;;  %v2496_v19 = vmul.f32 %v10207_v3, %v2495_v54  ;;  %vm10329_vm5 = vmor %vm2423_vm13, %vm2424_vm6 }
 0x6bd   : > { %v4717_v9 = vmul.f32 %v7117_v32, %v10211_v42  ;;  %vm10319_vm8 = vcmp.eq.f32.partialorder %v13024_v62, 8.507059e+37  ;;  %vm4722_vm11 = vweird.f32 %v7117_v32  ;;  %v4725_v21 = vand.u32 2147483647, %v10211_v42  ;;  %v10335_v11 = vpop.eup %7118 }
 0x6be   : > { %v13029_v26 = vand.u32 2147483648, %v9944_v23  ;;  %v2452_v17 = vadd.f32 %v10187_v15, %v2451_v10  ;;  %v13030_v7 = vand.u32 2147483647, %v10091_v5  ;;  %v13033_v55 = vand.u32 2147483647, %v10100_v57 }
 0x6bf   : > { %v4718_v2 = vsub.f32 1.0, %v4717_v9  ;;  %v2426_v9 = vsel %vm10329_vm5, %v10123_v31, %v2422_v49  ;;  %v13036_v23 = vand.u32 2147483647, %v10111_v0  ;;  %v3147_v31 = vmul.f32 %v10075_v40, %v3146_v28 }
 0x6c0   : > { %v2340_v54 = vor.u32 1.1754944e-38, %v13029_v26  ;;  %vm10343_vm3 = vcmp.eq.f32.partialorder %v13030_v7, 8.507059e+37  ;;  %vm10349_vm6 = vcmp.eq.f32.partialorder %v13033_v55, 8.507059e+37  ;;  %v3944_v49 = vmul.f32 %v9394_v52, %v3943_v48 }
 0x6c1   : > { %v4719_v59 = vmul.f32 %v7117_v32, %v4718_v2  ;;  %vm10355_vm13 = vcmp.eq.f32.partialorder %v13036_v23, 8.507059e+37  ;;  %vm4721_vm10 = vweird.f32 %v10211_v42  ;;  %v2467_v34 = vadd.f32 %v10192_v6, %v2466_v47  ;;  %v10370_v28 = vpop.eup %7120 }
 0x6c2   : > { %v10365_v7 = vperm.slane %v10131_v51, 0  ;;  %7122 = vrcp.f32 %v10313_v22  ;;  %vm4723_vm12 = vmor %vm4721_vm10, %vm4722_vm11  ;;  %v4728_v55 = vor.u32 1.1754944e-38, %v4727_v56  ;;  %v2497_v23 = vadd.f32 %v10207_v3, %v2496_v19 }
 0x6c3   : > { %v4720_v10 = vadd.f32 %v7117_v32, %v4719_v59  ;;  %4152 = vperm.xlu2 %6922, %v3944_v49   ;;  %vm4726_vm5 = vcmp.eq.f32.partialorder %v4725_v21, 8.507059e+37  ;;  %v3220_v42 = vmul.f32 %v10335_v11, %v10250_v25  ;;  %v3153_v47 = vand.u32 2147483647, %v9991_v18  ;;  %vm10390_vm10 = vmor %vm2468_vm1, %vm2469_vm14 }
 0x6c4   : > { %v2431_v56 = vsel %vm10296_vm0, %v10139_v8, %v2426_v9  ;;  %v2359_v19 = vmul.f32 %v10049_v44, %v9957_v14  ;;  %v2456_v30 = vsel %vm10376_vm2, %v10187_v15, %v2452_v17  ;;  %v2471_v8 = vsel %vm10390_vm10, %v10192_v6, %v2467_v34 }
 0x6c5   : > { %v4724_v53 = vsel %vm4723_vm12, %v7117_v32, %v4720_v10  ;;  %v3148_v32 = vadd.f32 %v10075_v40, %v3147_v31  ;;  %vm13043_vm11 = vweird.f32 %v10111_v0  ;;  %7124 = vrcp.f32 %v10365_v7 }
 0x6c6   : > { %v4729_v48 = vsel %vm4726_vm5, %v4728_v55, %v4724_v53  ;;  %vm10408_vm12 = vmor %vm13043_vm11, %vm2499_vm4  ;;  %v3155_v53 = vand.u32 2147483648, %v9991_v18  ;;  %v3235_v6 = vmul.f32 %v10370_v28, %v10266_v38  ;;  %v3221_v0 = vsub.f32 1.0, %v3220_v42 }
 0x6c7   : > { %v4730_v59 = vmul.f32 %v9413_v45, %v4729_v48  ;;  %v10415_v45 = vperm.slane %v10194_v61, 1  ;;  %v2501_v15 = vsel %vm10408_vm12, %v10207_v3, %v2497_v23  ;;  %v10424_v21 = vmul.f32 %v9333_v63, %v10182_v50 }
 0x6c8   : > { %v10428_v9 = vmul.f32 %v9322_v12, %v10288_v37  ;;  %v13046_v17 = vsel %vm10275_vm7, %v10040_v4, %v10241_v36  ;;  %vm13047_vm9 = vweird.f32 %v10075_v40  ;;  %vm13048_vm15 = vweird.f32 %v9991_v18  ;;  %v10445_v63 = vpop.eup %7122 }
 0x6c9   : > { %4958 = vperm.xlu1 %6923, %v4730_v59   ;;  %v2341_v3 = vsel %vm10319_vm8, %v2340_v54, %v13046_v17  ;;  %vm10441_vm14 = vmor %vm13048_vm15, %vm13047_vm9  ;;  %v2432_v12 = vmul.f32 %v9429_v33, %v2431_v56  ;;  %vm3154_vm7 = vcmp.eq.f32.partialorder %v3153_v47, 8.507059e+37  ;;  %v2360_v4 = vsub.f32 1.0, %v2359_v19  ;;  %v13053_v19 = vld [vmem:[#allocation18_spill] sm:$0xff] }
 0x6ca   : > { %v3152_v50 = vsel %vm10441_vm14, %v10075_v40, %v3148_v32  ;;  %v2461_v36 = vsel %vm10343_vm3, %v10167_v43, %v2456_v30  ;;  %v2476_v18 = vsel %vm10349_vm6, %v10173_v39, %v2471_v8  ;;  %v2506_v24 = vsel %vm10355_vm13, %v10178_v46, %v2501_v15  ;;  %v13054_v59 = vld [vmem:[#allocation26_spill] sm:$0xff]  ;;  %v13068_v8 = vld [vmem:[#allocation89_spill] sm:$0xff] }
 0x6cb   : > { %v3156_v37 = vor.u32 1.1754944e-38, %v3155_v53  ;;  %v10461_v33 = vperm.slane %v10129_v35, 3  ;;  %7126 = vrcp.f32 %v10415_v45  ;;  %v3236_v40 = vsub.f32 1.0, %v3235_v6  ;;  %2560 = vperm.xlu2 %6922, %v2432_v12   ;;  %v10470_v46 = vpop.eup %7124  ;;  %v13059_v12 = vld [vmem:[#allocation45_spill] sm:$0xff] }
 0x6cc   : > { %v3115_v41 = vmul.f32 %v10060_v27, %v9981_v60  ;;  %v3222_v43 = vmul.f32 %v10335_v11, %v3221_v0  ;;  %v4036_v39 = vmul.f32 %v10445_v63, %v10313_v22  ;;  %v2367_v2 = vand.u32 2147483647, %v9957_v14 }
 0x6cd   : > { %v3157_v54 = vsel %vm3154_vm7, %v3156_v37, %v3152_v50  ;;  %2510 = vperm.xlu0 %6924, %v10082_v16   ;;  %v2462_v62 = vmul.f32 %v9437_v58, %v2461_v36  ;;  %v10475_v26 = vmul.f32 %v9327_v13, %v2341_v3  ;;  %v2361_v49 = vmul.f32 %v10049_v44, %v2360_v4 }
 0x6ce   : > { %v2369_v10 = vand.u32 2147483648, %v9957_v14  ;;  %v2477_v34 = vmul.f32 %v9449_v29, %v2476_v18  ;;  %v2507_v55 = vmul.f32 %v9456_v1, %v2506_v24  ;;  %vm2363_vm3 = vweird.f32 %v9957_v14 }
 0x6cf   : > { %vm2364_vm0 = vweird.f32 %v10049_v44  ;;  %7128 = vrcp.f32 %v10461_v33  ;;  %v3237_v16 = vmul.f32 %v10370_v28, %v3236_v40  ;;  %v10486_v58 = vmul.f32 %v9360_v20, %v3157_v54 }
 0x6d0   : > { %v3116_v13 = vsub.f32 1.0, %v3115_v41  ;;  %v3223_v23 = vadd.f32 %v10335_v11, %v3222_v43  ;;  %vm3225_vm1 = vweird.f32 %v10335_v11  ;;  %v4037_v29 = vsub.f32 1.0, %v4036_v39  ;;  %vm10526_vm13 = vmor %vm2363_vm3, %vm2364_vm0 }
 0x6d1   : > { %2570 = vperm.xlu1 %6923, %v2462_v62   ;;  %v4021_v1 = vmul.f32 %v10470_v46, %v10365_v7  ;;  %vm10492_vm4 = vcmp.eq.f32.partialorder %v2367_v2, 8.507059e+37  ;;  %v10496_v42 = vpop.eup %7126  ;;  %v3230_v47 = vand.u32 2147483648, %v10250_v25  ;;  %v2362_v20 = vadd.f32 %v10049_v44, %v2361_v49  ;;  %v13062_v49 = vld [vmem:[#allocation67_spill] sm:$0xff] }
 0x6d2   : > { %v2370_v48 = vor.u32 1.1754944e-38, %v2369_v10  ;;  %v3123_v56 = vand.u32 2147483647, %v9981_v60  ;;  %vm3224_vm2 = vweird.f32 %v10250_v25  ;;  %v3228_v5 = vand.u32 2147483647, %v10250_v25 }
 0x6d3   : > { %v3125_v32 = vand.u32 2147483648, %v9981_v60  ;;  %v10506_v30 = vmul.f32 %v13054_v59, %v13053_v19  ;;  %vm10508_vm8 = vmor %vm3224_vm2, %vm3225_vm1  ;;  %v3238_v57 = vadd.f32 %v10370_v28, %v3237_v16  ;;  %vm3240_vm6 = vweird.f32 %v10370_v28  ;;  %2575 = vperm.xlu2 %6922, %v2477_v34  }
 0x6d4   : > { %v3117_v53 = vmul.f32 %v10060_v27, %v3116_v13  ;;  %v3168_v15 = vand.u32 2147483647, %v13053_v19  ;;  %v3227_v25 = vsel %vm10508_vm8, %v10335_v11, %v3223_v23  ;;  %v4038_v6 = vmul.f32 %v10445_v63, %v4037_v29  ;;  %v13065_v13 = vld [vmem:[#allocation33_spill] sm:$0xff]  ;;  %v13066_v23 = vld [vmem:[#allocation23_spill] sm:$0xff] }
 0x6d5   : > { %v4022_v0 = vsub.f32 1.0, %v4021_v1  ;;  %v4732_v17 = vmul.f32 %v10496_v42, %v10415_v45  ;;  %v10530_v31 = vpop.eup %7128  ;;  %2515 = vperm.xlu0 %6924, %v13059_v12   ;;  %v3231_v50 = vor.u32 1.1754944e-38, %v3230_v47  ;;  %vm3239_vm5 = vweird.f32 %v10266_v38 }
 0x6d6   : > { %v3245_v11 = vand.u32 2147483648, %v10266_v38  ;;  %v2366_v4 = vsel %vm10526_vm13, %v10049_v44, %v2362_v20  ;;  %vm3120_vm10 = vweird.f32 %v10060_v27  ;;  %vm3229_vm11 = vcmp.eq.f32.partialorder %v3228_v5, 8.507059e+37  ;;  %vm10541_vm12 = vmor %vm3239_vm5, %vm3240_vm6  ;;  %v13067_v5 = vld [vmem:[#allocation83_spill] sm:$0xff] }
 0x6d7   : > { %v3243_v36 = vand.u32 2147483647, %v10266_v38  ;;  %v10546_v18 = vor.u32 1.1754944e-38, %v3125_v32  ;;  %v3161_v24 = vsub.f32 1.0, %v10506_v30  ;;  %v10550_v37 = vperm.slane %v10131_v51, 3 }
 0x6d8   : > { %v3232_v40 = vsel %vm3229_vm11, %v3231_v50, %v3227_v25  ;;  %v3242_v44 = vsel %vm10541_vm12, %v10370_v28, %v3238_v57  ;;  %vm4041_vm9 = vweird.f32 %v10445_v63  ;;  %vm3119_vm15 = vweird.f32 %v9981_v60  ;;  %v13069_v25 = vld [vmem:[#allocation36_spill] sm:$0xff] }
 0x6d9   : > { %2585 = vperm.xlu1 %6923, %v2507_v55   ;;  %v4039_v41 = vadd.f32 %v10445_v63, %v4038_v6  ;;  %v4023_v38 = vmul.f32 %v10470_v46, %v4022_v0  ;;  %v4733_v43 = vsub.f32 1.0, %v4732_v17  ;;  %v3250_v39 = vmul.f32 %v10530_v31, %v10461_v33  ;;  %vm10620_vm11 = vmor %vm3119_vm15, %vm3120_vm10 }
 0x6da   : > { %v3246_v54 = vor.u32 1.1754944e-38, %v3245_v11  ;;  %v4046_v2 = vand.u32 2147483648, %v10313_v22  ;;  %v2371_v62 = vsel %vm10492_vm4, %v2370_v48, %v2366_v4  ;;  %v3170_v28 = vand.u32 2147483648, %v13053_v19 }
 0x6db   : > { %v3233_v10 = vmul.f32 %v13062_v49, %v3232_v40  ;;  %vm3244_vm14 = vcmp.eq.f32.partialorder %v3243_v36, 8.507059e+37  ;;  %vm4040_vm7 = vweird.f32 %v10313_v22  ;;  %v4044_v34 = vand.u32 2147483647, %v10313_v22  ;;  %v13076_v36 = vld [vmem:[#allocation21_spill] sm:$0xff] }
 0x6dc   : > { %7130 = vrcp.f32 %v10550_v37  ;;  %v3247_v55 = vsel %vm3244_vm14, %v3246_v54, %v3242_v44  ;;  %vm10571_vm3 = vmor %vm4040_vm7, %vm4041_vm9  ;;  %vm4026_vm0 = vweird.f32 %v10470_v46  ;;  %v3130_v29 = vmul.f32 %v13066_v23, %v13065_v13  ;;  %v13078_v44 = vld [vmem:[#allocation92_spill] sm:$0xff] }
 0x6dd   : > { %3371 = vperm.xlu2 %6922, %v3233_v10   ;;  %v4043_v1 = vsel %vm10571_vm3, %v10445_v63, %v4039_v41  ;;  %v4024_v22 = vadd.f32 %v10470_v46, %v4023_v38  ;;  %v4734_v52 = vmul.f32 %v10496_v42, %v4733_v43  ;;  %v3251_v47 = vsub.f32 1.0, %v3250_v39  ;;  %2520 = vperm.xlu0 %6924, %v10424_v21   ;;  %v13100_v43 = vld [vmem:[#allocation85_spill] sm:$0xff] }
 0x6de   : > { %v4047_v20 = vor.u32 1.1754944e-38, %v4046_v2  ;;  %v4031_v48 = vand.u32 2147483648, %v10365_v7  ;;  %v10586_v32 = vmul.f32 %v13067_v5, %v2371_v62  ;;  %v3118_v30 = vadd.f32 %v10060_v27, %v3117_v53  ;;  %v13108_v5 = vld [vmem:[#allocation37_spill] sm:$0xff] }
 0x6df   : > { %vm3165_vm1 = vweird.f32 %v13054_v59  ;;  %v3248_v57 = vmul.f32 %v13068_v8, %v3247_v55  ;;  %vm4045_vm4 = vcmp.eq.f32.partialorder %v4044_v34, 8.507059e+37  ;;  %vm4025_vm2 = vweird.f32 %v10365_v7  ;;  %v13083_v34 = vld [vmem:[#allocation34_spill] sm:$0xff]  ;;  %v13084_v55 = vld [vmem:[#allocation40_spill] sm:$0xff] }
 0x6e0   : > { %v4029_v63 = vand.u32 2147483647, %v10365_v7  ;;  %v10594_v6 = vperm.slane %v13069_v25, 1  ;;  %v4048_v21 = vsel %vm4045_vm4, %v4047_v20, %v4043_v1  ;;  %vm10598_vm8 = vmor %vm4025_vm2, %vm4026_vm0  ;;  %vm10604_vm6 = vcmp.eq.f32.partialorder %v3123_v56, 8.507059e+37 }
 0x6e1   : > { %v3162_v17 = vmul.f32 %v13054_v59, %v3161_v24  ;;  %vm3164_vm13 = vweird.f32 %v13053_v19  ;;  %v3131_v7 = vsub.f32 1.0, %v3130_v29  ;;  %3376 = vperm.xlu1 %6923, %v3248_v57   ;;  %v4028_v3 = vsel %vm10598_vm8, %v10470_v46, %v4024_v22  ;;  %v13077_v24 = vld [vmem:[#allocation49_spill] sm:$0xff]  ;;  %v13085_v29 = vld [vmem:[#allocation96_spill] sm:$0xff] }
 0x6e2   : > { %v4735_v12 = vadd.f32 %v10496_v42, %v4734_v52  ;;  %vm4737_vm5 = vweird.f32 %v10496_v42  ;;  %v3252_v50 = vmul.f32 %v10530_v31, %v3251_v47  ;;  %v10624_v11 = vpop.eup %7130  ;;  %v4032_v4 = vor.u32 1.1754944e-38, %v4031_v48  ;;  %vm10682_vm2 = vmor %vm3164_vm13, %vm3165_vm1 }
 0x6e3   : > { %v4742_v14 = vand.u32 2147483648, %v10415_v45  ;;  %v3122_v46 = vsel %vm10620_vm11, %v10060_v27, %v3118_v30  ;;  %v3175_v40 = vmul.f32 %v13077_v24, %v13076_v36  ;;  %v4049_v41 = vmul.f32 %v13078_v44, %v4048_v21  ;;  %v13098_v44 = vld [vmem:[#allocation93_spill] sm:$0xff] }
 0x6e4   : > { %vm4030_vm12 = vcmp.eq.f32.partialorder %v4029_v63, 8.507059e+37  ;;  %vm4736_vm10 = vweird.f32 %v10415_v45  ;;  %v4740_v60 = vand.u32 2147483647, %v10415_v45  ;;  %7132 = vrcp.f32 %v10594_v6  ;;  %v13090_v63 = vld [vmem:[#allocation70_spill] sm:$0xff] }
 0x6e5   : > { %v4033_v38 = vsel %vm4030_vm12, %v4032_v4, %v4028_v3  ;;  %vm10636_vm9 = vmor %vm4736_vm10, %vm4737_vm5  ;;  %v3163_v39 = vadd.f32 %v13054_v59, %v3162_v17  ;;  %vm10643_vm15 = vcmp.eq.f32.partialorder %v3168_v15, 8.507059e+37  ;;  %v3132_v54 = vmul.f32 %v13066_v23, %v3131_v7  ;;  %4187 = vperm.xlu2 %6922, %v4049_v41   ;;  %2525 = vperm.xlu0 %6924, %v10428_v9   ;;  %v13091_v17 = vld [vmem:[#allocation84_spill] sm:$0xff] }
 0x6e6   : > { %v4739_v45 = vsel %vm10636_vm9, %v10496_v42, %v4735_v12  ;;  %v3253_v2 = vadd.f32 %v10530_v31, %v3252_v50  ;;  %vm3255_vm14 = vweird.f32 %v10530_v31  ;;  %v4066_v62 = vmul.f32 %v10624_v11, %v10550_v37 }
 0x6e7   : > { %v4743_v15 = vor.u32 1.1754944e-38, %v4742_v14  ;;  %v3260_v49 = vand.u32 2147483648, %v10461_v33  ;;  %v3176_v10 = vsub.f32 1.0, %v3175_v40  ;;  %v2389_v16 = vmul.f32 %v13084_v55, %v13083_v34  ;;  %v13096_v14 = vld [vmem:[#allocation35_spill] sm:$0xff] }
 0x6e8   : > { %v4034_v1 = vmul.f32 %v13085_v29, %v4033_v38  ;;  %vm4741_vm7 = vcmp.eq.f32.partialorder %v4740_v60, 8.507059e+37  ;;  %vm3254_vm3 = vweird.f32 %v10461_v33  ;;  %v3258_v42 = vand.u32 2147483647, %v10461_v33 }
 0x6e9   : > { %v10663_v22 = vperm.slane %v10131_v51, 4  ;;  %v4744_v52 = vsel %vm4741_vm7, %v4743_v15, %v4739_v45  ;;  %vm10665_vm0 = vmor %vm3254_vm3, %vm3255_vm14  ;;  %v3171_v47 = vor.u32 1.1754944e-38, %v3170_v28  ;;  %vm3135_vm4 = vweird.f32 %v13066_v23 }
 0x6ea   : > { %4182 = vperm.xlu1 %6923, %v4034_v1   ;;  %v3257_v20 = vsel %vm10665_vm0, %v10530_v31, %v3253_v2  ;;  %v4067_v48 = vsub.f32 1.0, %v4066_v62  ;;  %v3127_v33 = vsel %vm10604_vm6, %v10546_v18, %v3122_v46  ;;  %v3138_v28 = vand.u32 2147483647, %v13065_v13  ;;  %v10687_v30 = vpop.eup %7132  ;;  %v13097_v46 = vld [vmem:[#allocation39_spill] sm:$0xff] }
 0x6eb   : > { %v3261_v8 = vor.u32 1.1754944e-38, %v3260_v49  ;;  %v3167_v31 = vsel %vm10682_vm2, %v13054_v59, %v3163_v39  ;;  %v3133_v57 = vadd.f32 %v13066_v23, %v3132_v54  ;;  %v3140_v18 = vand.u32 2147483648, %v13065_v13  ;;  %v10735_v54 = vpop.permute.xlu2 %2535 }
 0x6ec   : > { %v4745_v21 = vmul.f32 %v13090_v63, %v4744_v52  ;;  %vm3259_vm8 = vcmp.eq.f32.partialorder %v3258_v42, 8.507059e+37  ;;  %v3177_v19 = vmul.f32 %v13077_v24, %v3176_v10  ;;  %v2390_v0 = vsub.f32 1.0, %v2389_v16  ;;  %13101 = vst [vmem:[#allocation55_spill] sm:$0xff] %v10735_v54 }
 0x6ed   : > { %7134 = vrcp.f32 %v10663_v22  ;;  %v3262_v53 = vsel %vm3259_vm8, %v3261_v8, %v3257_v20  ;;  %v10698_v7 = vmul.f32 %v13091_v17, %v3127_v33  ;;  %vm3134_vm1 = vweird.f32 %v13065_v13  ;;  %2530 = vperm.xlu0 %6924, %v10475_v26   ;;  %v10727_v26 = vpop.permute.xlu1 %2545  ;;  %v13107_v33 = vld [vmem:[#allocation31_spill] sm:$0xff] }
 0x6ee   : > { %4963 = vperm.xlu2 %6922, %v4745_v21   ;;  %v4068_v59 = vmul.f32 %v10624_v11, %v4067_v48  ;;  %v3172_v3 = vsel %vm10643_vm15, %v3171_v47, %v3167_v31  ;;  %vm10706_vm6 = vmor %vm3134_vm1, %vm3135_vm4  ;;  %vm10710_vm13 = vcmp.eq.f32.partialorder %v3138_v28, 8.507059e+37  ;;  %vm3179_vm5 = vweird.f32 %v13076_v36  ;;  %13099 = vst [vmem:[#allocation32_spill] sm:$0xff] %v10727_v26 }
 0x6ef   : > { %v3916_v13 = vmul.f32 %v10687_v30, %v10594_v6  ;;  %v3137_v56 = vsel %vm10706_vm6, %v13066_v23, %v3133_v57  ;;  %v3141_v4 = vor.u32 1.1754944e-38, %v3140_v18  ;;  %v2404_v40 = vmul.f32 %v13097_v46, %v13096_v14 }
 0x6f0   : > { %v3263_v41 = vmul.f32 %v13098_v44, %v3262_v53  ;;  %v3178_v60 = vadd.f32 %v13077_v24, %v3177_v19  ;;  %vm3180_vm11 = vweird.f32 %v13077_v24  ;;  %v2391_v38 = vmul.f32 %v13084_v55, %v2390_v0  ;;  %v13111_v0 = vld [vmem:[#allocation87_spill] sm:$0xff] }
 0x6f1   : > { %v10730_v39 = vmul.f32 %v13100_v43, %v3172_v3  ;;  %v3183_v27 = vand.u32 2147483647, %v13076_v36  ;;  %v3185_v23 = vand.u32 2147483648, %v13076_v36  ;;  %vm2393_vm12 = vweird.f32 %v13083_v34  ;;  %vm10749_vm15 = vmor %vm3179_vm5, %vm3180_vm11  ;;  %v13106_v36 = vld [vmem:[#allocation86_spill] sm:$0xff]  ;;  %v13114_v43 = vld [vmem:[#allocation43_spill] sm:$0xff] }
 0x6f2   : > { %3381 = vperm.xlu1 %6923, %v3263_v41   ;;  %v4069_v45 = vadd.f32 %v10624_v11, %v4068_v59  ;;  %vm4071_vm10 = vweird.f32 %v10624_v11  ;;  %v3142_v2 = vsel %vm10710_vm13, %v3141_v4, %v3137_v56  ;;  %vm2394_vm9 = vweird.f32 %v13084_v55  ;;  %v13112_v56 = vld [vmem:[#allocation94_spill] sm:$0xff] }
 0x6f3   : > { %v10742_v62 = vpop.eup %7134  ;;  %v4076_v15 = vand.u32 2147483648, %v10550_v37  ;;  %v3917_v49 = vsub.f32 1.0, %v3916_v13  ;;  %v2397_v16 = vand.u32 2147483647, %v13083_v34  ;;  %v2405_v29 = vsub.f32 1.0, %v2404_v40  ;;  %vm10783_vm4 = vmor %vm2393_vm12, %vm2394_vm9  ;;  %v3327_v13 = vpop.permute.xlu2 %3326 }
 0x6f4   : > { %vm4070_vm14 = vweird.f32 %v10550_v37  ;;  %v4074_v1 = vand.u32 2147483647, %v10550_v37  ;;  %v3182_v42 = vsel %vm10749_vm15, %v13077_v24, %v3178_v60  ;;  %v2392_v52 = vadd.f32 %v13084_v55, %v2391_v38  ;;  %v13113_v38 = vld [vmem:[#allocation29_spill] sm:$0xff] }
 0x6f5   : > { %vm10760_vm7 = vmor %vm4070_vm14, %vm4071_vm10  ;;  %v10765_v47 = vmul.f32 %v13106_v36, %v3142_v2  ;;  %vm3184_vm3 = vcmp.eq.f32.partialorder %v3183_v27, 8.507059e+37  ;;  %v3186_v20 = vor.u32 1.1754944e-38, %v3185_v23  ;;  %v2399_v48 = vand.u32 2147483648, %v13083_v34  ;;  %2540 = vperm.xlu0 %6924, %v10586_v32   ;;  %v3332_v3 = vpop.permute.xlu1 %3331  ;;  %v13115_v23 = vld [vmem:[#allocation14_spill] sm:$0xff] }
 0x6f6   : > { %3346 = vperm.xlu2 %6922, %v10486_v58   ;;  %v4073_v37 = vsel %vm10760_vm7, %v10624_v11, %v4069_v45  ;;  %v4081_v24 = vmul.f32 %v10742_v62, %v10663_v22  ;;  %vm2408_vm0 = vweird.f32 %v13096_v14  ;;  %v3190_v28 = vmul.f32 %v13108_v5, %v13107_v33 }
 0x6f7   : > { %v4077_v8 = vor.u32 1.1754944e-38, %v4076_v15  ;;  %v3918_v31 = vmul.f32 %v10687_v30, %v3917_v49  ;;  %v3187_v57 = vsel %vm3184_vm3, %v3186_v20, %v3182_v42  ;;  %v2406_v11 = vmul.f32 %v13097_v46, %v2405_v29  ;;  %v13118_v49 = vld [vmem:[#allocation88_spill] sm:$0xff] }
 0x6f8   : > { %v10789_v18 = vperm.slane %v10131_v51, 5  ;;  %vm4075_vm2 = vcmp.eq.f32.partialorder %v4074_v1, 8.507059e+37  ;;  %v2396_v32 = vsel %vm10783_vm4, %v13084_v55, %v2392_v52  ;;  %vm2398_vm8 = vcmp.eq.f32.partialorder %v2397_v16, 8.507059e+37  ;;  %v13119_v29 = vld [vmem:[#allocation16_spill] sm:$0xff] }
 0x6f9   : > { %v4078_v63 = vsel %vm4075_vm2, %v4077_v8, %v4073_v37  ;;  %v2400_v21 = vor.u32 1.1754944e-38, %v2399_v48  ;;  %vm2409_vm1 = vweird.f32 %v13097_v46  ;;  %v2414_v34 = vand.u32 2147483648, %v13096_v14 }
 0x6fa   : > { %v4082_v19 = vsub.f32 1.0, %v4081_v24  ;;  %v10797_v53 = vmul.f32 %v13111_v0, %v3187_v57  ;;  %v2412_v17 = vand.u32 2147483647, %v13096_v14  ;;  %v3191_v59 = vsub.f32 1.0, %v3190_v28  ;;  %vm10839_vm11 = vmor %vm2408_vm0, %vm2409_vm1 }
 0x6fb   : > { %v3919_v12 = vadd.f32 %v10687_v30, %v3918_v31  ;;  %vm3921_vm6 = vweird.f32 %v10687_v30  ;;  %v2401_v55 = vsel %vm2398_vm8, %v2400_v21, %v2396_v32  ;;  %v10803_v50 = vadd.f32 %v13097_v46, %v2406_v11 }
 0x6fc   : > { %7136 = vrcp.f32 %v10789_v18  ;;  %v4079_v4 = vmul.f32 %v13112_v56, %v4078_v63  ;;  %v3926_v40 = vand.u32 2147483648, %v10594_v6  ;;  %v3200_v44 = vand.u32 2147483648, %v13107_v33 }
 0x6fd   : > { %vm3920_vm13 = vweird.f32 %v10594_v6  ;;  %v3924_v41 = vand.u32 2147483647, %v10594_v6  ;;  %v10811_v60 = vor.u32 1.1754944e-38, %v2414_v34  ;;  %v10815_v27 = vmul.f32 %v13114_v43, %v13113_v38  ;;  %3336 = vperm.xlu0 %6924, %v10698_v7  }
 0x6fe   : > { %v3405_v45 = vmul.f32 %v3332_v3, %v13115_v23  ;;  %4197 = vperm.xlu2 %6922, %v4079_v4   ;;  %vm10818_vm5 = vmor %vm3920_vm13, %vm3921_vm6  ;;  %v4083_v15 = vmul.f32 %v10742_v62, %v4082_v19  ;;  %v10824_v10 = vmul.f32 %v13118_v49, %v2401_v55  ;;  %v3198_v6 = vand.u32 2147483647, %v13107_v33 }
 0x6ff   : > { %v10828_v16 = vperm.slane %v10129_v35, 0  ;;  %v3404_v1 = vmul.f32 %v3327_v13, %v13119_v29  ;;  %v3923_v42 = vsel %vm10818_vm5, %v10687_v30, %v3919_v12  ;;  %v3192_v9 = vmul.f32 %v13108_v5, %v3191_v59  ;;  %v13132_v13 = vld [vmem:[#allocation42_spill] sm:$0xff] }
 0x700   : > { %v10845_v36 = vperm.slane %v10129_v35, 4  ;;  %v3927_v20 = vor.u32 1.1754944e-38, %v3926_v40  ;;  %v2411_v7 = vsel %vm10839_vm11, %v13097_v46, %v10803_v50  ;;  %vm3195_vm12 = vweird.f32 %v13108_v5  ;;  %v13131_v50 = vld [vmem:[#allocation54_spill] sm:$0xff] }
 0x701   : > { %v10852_v30 = vor.u32 1.1754944e-38, %v3200_v44  ;;  %v10855_v14 = vperm.slane %v10129_v35, 5  ;;  %v10858_v48 = vperm.slane %v10129_v35, 6  ;;  %vm3925_vm10 = vcmp.eq.f32.partialorder %v3924_v41, 8.507059e+37 }
 0x702   : > { %vm10860_vm9 = vcmp.eq.f32.partialorder %v2412_v17, 8.507059e+37  ;;  %v2435_v24 = vsub.f32 1.0, %v10815_v27  ;;  %v10865_v28 = vpop.eup %7136  ;;  %vm13124_vm15 = vcmask 257024   ;;  %v3928_v8 = vsel %vm3925_vm10, %v3927_v20, %v3923_v42  ;;  %v13136_v20 = vld [vmem:[#allocation79_spill] sm:$0xff] }
 0x703   : > { %v3427_v46 = vsel %vm13124_vm15, %v3405_v45, 0.0  ;;  %v4084_v31 = vadd.f32 %v10742_v62, %v4083_v15  ;;  %vm4086_vm14 = vweird.f32 %v10742_v62  ;;  %vm3194_vm7 = vweird.f32 %v13107_v33  ;;  %vm13125_vm3 = vmmov %vm13124_vm15 }
 0x704   : > { %v10872_v57 = vperm.slane %v10129_v35, 7  ;;  %7138 = vrcp.f32 %v10828_v16  ;;  %v3420_v58 = vsel %vm13125_vm3, %v3404_v1, 0.0  ;;  %v4091_v11 = vand.u32 2147483648, %v10663_v22  ;;  %v13126_v35 = vld [vmem:[#allocation68_spill] sm:$0xff]  ;;  %vm10939_vm6 = vmor %vm3194_vm7, %vm3195_vm12 }
 0x705   : > { %7140 = vrcp.f32 %v10845_v36  ;;  %v10879_v32 = vperm.slane %v13069_v25, 3  ;;  %vm4085_vm0 = vweird.f32 %v10663_v22  ;;  %v4089_v63 = vand.u32 2147483647, %v10663_v22 }
 0x706   : > { %7142 = vrcp.f32 %v10855_v14  ;;  %v3428_v21 = vrot.slane %v3427_v46, 4  ;;  %v3929_v34 = vmul.f32 %v13126_v35, %v3928_v8  ;;  %vm10885_vm4 = vmor %vm4085_vm0, %vm4086_vm14  ;;  %v4096_v0 = vmul.f32 %v10865_v28, %v10789_v18  ;;  %3351 = vperm.xlu2 %6922, %v10730_v39  }
 0x707   : > { %7144 = vrcp.f32 %v10858_v48  ;;  %v10893_v17 = vperm.slane %v13069_v25, 4  ;;  %v3421_v59 = vrot.slane %v3420_v58, 4  ;;  %v4088_v22 = vsel %vm10885_vm4, %v10742_v62, %v4084_v31 }
 0x708   : > { %vm10899_vm2 = vcmp.eq.f32.partialorder %v3198_v6, 8.507059e+37  ;;  %7146 = vrcp.f32 %v10872_v57  ;;  %v10905_v12 = vperm.slane %v13069_v25, 5  ;;  %4147 = vperm.xlu0 %6924, %v3929_v34   ;;  %v4092_v55 = vor.u32 1.1754944e-38, %v4091_v11 }
 0x709   : > { %v2479_v56 = vmul.f32 %v13132_v13, %v13131_v50  ;;  %v10910_v39 = vperm.slane %v13069_v25, 6  ;;  %7148 = vrcp.f32 %v10879_v32  ;;  %vm4090_vm8 = vcmp.eq.f32.partialorder %v4089_v63, 8.507059e+37 }
 0x70a   : > { %v3193_v62 = vadd.f32 %v13108_v5, %v3192_v9  ;;  %v10914_v4 = vpop.eup %7138  ;;  %v10917_v40 = vperm.slane %v10131_v51, 6  ;;  %v3429_v44 = vadd.f32 %v3428_v21, %v3427_v46  ;;  %v4093_v41 = vsel %vm4090_vm8, %v4092_v55, %v4088_v22 }
 0x70b   : > { %v4097_v27 = vsub.f32 1.0, %v4096_v0  ;;  %v10919_v45 = vpop.eup %7140  ;;  %v10922_v2 = vperm.slane %v13069_v25, 7  ;;  %7150 = vrcp.f32 %v10893_v17  ;;  %v3422_v15 = vadd.f32 %v3421_v59, %v3420_v58  ;;  %v13138_v58 = vld [vmem:[#allocation65_spill] sm:$0xff] }
 0x70c   : > { %v2416_v49 = vsel %vm10860_vm9, %v10811_v60, %v2411_v7  ;;  %vm2439_vm1 = vweird.f32 %v13114_v43  ;;  %v10929_v6 = vpop.eup %7142  ;;  %7152 = vrcp.f32 %v10905_v12  ;;  %v10933_v1 = vperm.slane %v10131_v51, 2 }
 0x70d   : > { %v2436_v42 = vmul.f32 %v13114_v43, %v2435_v24  ;;  %v2480_v60 = vsub.f32 1.0, %v2479_v56  ;;  %v10944_v52 = vpop.eup %7144  ;;  %7154 = vrcp.f32 %v10910_v39  ;;  %v10948_v9 = vperm.slane %v10131_v51, 7 }
 0x70e   : > { %v4094_v7 = vmul.f32 %v13136_v20, %v4093_v41  ;;  %v3197_v33 = vsel %vm10939_vm6, %v13108_v5, %v3193_v62  ;;  %vm2438_vm13 = vweird.f32 %v13113_v38  ;;  %v10955_v37 = vpop.eup %7146  ;;  %7156 = vrcp.f32 %v10917_v40 }
 0x70f   : > { %13135 = vst [vmem:[#allocation50_spill] sm:$0xff] %v10948_v9  ;;  %v10959_v24 = vperm.slane %v10194_v61, 2  ;;  %v3430_v46 = vrot.slane %v3429_v44, 2  ;;  %v4098_v8 = vmul.f32 %v10865_v28, %v4097_v27  ;;  %v10962_v51 = vpop.eup %7148  ;;  %7158 = vrcp.f32 %v10922_v2  ;;  %vm11027_vm9 = vmor %vm2438_vm13, %vm2439_vm1 }
 0x710   : > { %13137 = vst [vmem:[#allocation58_spill] sm:$0xff] %v10955_v37  ;;  %v10966_v31 = vperm.slane %v10194_v61, 3  ;;  %v3423_v5 = vrot.slane %v3422_v15, 2  ;;  %4202 = vperm.xlu2 %6922, %v4094_v7   ;;  %v10969_v11 = vmul.f32 %v13138_v58, %v2416_v49  ;;  %7160 = vrcp.f32 %v10933_v1  ;;  %3341 = vperm.xlu0 %6924, %v10765_v47  }
 0x711   : > { %v3202_v63 = vsel %vm10899_vm2, %v10852_v30, %v3197_v33  ;;  %v2437_v21 = vadd.f32 %v13114_v43, %v2436_v42  ;;  %v2481_v35 = vmul.f32 %v13132_v13, %v2480_v60  ;;  %v10978_v34 = vpop.eup %7150  ;;  %7162 = vrcp.f32 %v10948_v9 }
 0x712   : > { %v10982_v19 = vperm.slane %v10194_v61, 4  ;;  %v10985_v0 = vperm.slane %v10194_v61, 5  ;;  %v10988_v47 = vperm.slane %v10194_v61, 6  ;;  %v10990_v59 = vpop.eup %7152  ;;  %7164 = vrcp.f32 %v10959_v24 }
 0x713   : > { %v3431_v30 = vadd.f32 %v3430_v46, %v3429_v44  ;;  %v4099_v22 = vadd.f32 %v10865_v28, %v4098_v8  ;;  %vm4101_vm5 = vweird.f32 %v10865_v28  ;;  %v10995_v3 = vpop.eup %7154  ;;  %7166 = vrcp.f32 %v10966_v31 }
 0x714   : > { %13139 = vst [vmem:[#allocation46_spill] sm:$0xff] %v10985_v0  ;;  %v3424_v55 = vadd.f32 %v3423_v5, %v3422_v15  ;;  %vm4100_vm11 = vweird.f32 %v10789_v18  ;;  %v4106_v56 = vand.u32 2147483648, %v10789_v18  ;;  %v11000_v62 = vpop.eup %7156  ;;  %v4104_v41 = vand.u32 2147483647, %v10789_v18 }
 0x715   : > { %13140 = vst [vmem:[#allocation18_spill] sm:$0xff] %v10988_v47  ;;  %v2444_v27 = vand.u32 2147483648, %v13113_v38  ;;  %v2482_v44 = vadd.f32 %v13132_v13, %v2481_v35  ;;  %vm2484_vm12 = vweird.f32 %v13132_v13  ;;  %v11006_v49 = vpop.eup %7158  ;;  %v11009_v25 = vperm.slane %v10194_v61, 7  ;;  %vm11012_vm10 = vmor %vm4100_vm11, %vm4101_vm5  ;;  %v11056_v35 = vpop.permute.xlu2 %4142 }
 0x716   : > { %7168 = vrcp.f32 %v10982_v19  ;;  %v2442_v42 = vand.u32 2147483647, %v13113_v38  ;;  %v2489_v18 = vand.u32 2147483648, %v13131_v50  ;;  %v11018_v60 = vpop.eup %7160  ;;  %v3432_v20 = vrot.slane %v3431_v30, 1 }
 0x717   : > { %13141 = vst [vmem:[#allocation26_spill] sm:$0xff] %v11009_v25  ;;  %v4103_v7 = vsel %vm11012_vm10, %v10865_v28, %v4099_v22  ;;  %vm2483_vm15 = vweird.f32 %v13131_v50  ;;  %v2487_v33 = vand.u32 2147483647, %v13131_v50  ;;  %v11033_v46 = vpop.eup %7162  ;;  %7170 = vrcp.f32 %v10985_v0 }
 0x718   : > { %13146 = vst [vmem:[#allocation45_spill] sm:$0xff] %v11033_v46  ;;  %3356 = vperm.xlu2 %6922, %v10797_v53   ;;  %v4107_v8 = vor.u32 1.1754944e-38, %v4106_v56  ;;  %v2441_v28 = vsel %vm11027_vm9, %v13114_v43, %v2437_v21  ;;  %v4111_v38 = vmul.f32 %v11000_v62, %v10917_v40  ;;  %vm11044_vm14 = vmor %vm2483_vm15, %vm2484_vm12  ;;  %v11048_v50 = vpop.eup %7164  ;;  %v3425_v58 = vrot.slane %v3424_v55, 1  ;;  %2550 = vperm.xlu0 %6924, %v10824_v10  }
 0x719   : > { %vm4105_vm7 = vcmp.eq.f32.partialorder %v4104_v41, 8.507059e+37  ;;  %v2445_v53 = vor.u32 1.1754944e-38, %v2444_v27  ;;  %v2486_v43 = vsel %vm11044_vm14, %v13132_v13, %v2482_v44  ;;  %v11054_v21 = vpop.eup %7166  ;;  %vm2443_vm3 = vcmp.eq.f32.partialorder %v2442_v42, 8.507059e+37  ;;  %v13149_v13 = vld [vmem:[#allocation66_spill] sm:$0xff] }
 0x71a   : > { %v4108_v22 = vsel %vm4105_vm7, %v4107_v8, %v4103_v7  ;;  %v2490_v56 = vor.u32 1.1754944e-38, %v2489_v18  ;;  %v3205_v15 = vmul.f32 %v10914_v4, %v10828_v16  ;;  %7172 = vrcp.f32 %v10988_v47  ;;  %v13150_v7 = vld [vmem:[#allocation73_spill] sm:$0xff] }
 0x71b   : > { %v3433_v61 = vadd.f32 %v3432_v20, %v3431_v30  ;;  %v2446_v10 = vsel %vm2443_vm3, %v2445_v53, %v2441_v28  ;;  %vm2488_vm0 = vcmp.eq.f32.partialorder %v2487_v33, 8.507059e+37  ;;  %7174 = vrcp.f32 %v11009_v25  ;;  %v13152_v30 = vld [vmem:[#allocation64_spill] sm:$0xff] }
 0x71c   : > { %v11061_v41 = vpop.eup %7168  ;;  %v3203_v27 = vmul.f32 %v13149_v13, %v3202_v63  ;;  %v4112_v44 = vsub.f32 1.0, %v4111_v38  ;;  %v2491_v5 = vsel %vm2488_vm0, %v2490_v56, %v2486_v43  ;;  %v3426_v26 = vadd.f32 %v3425_v58, %v3424_v55  ;;  %v13155_v38 = vld [vmem:[#allocation69_spill] sm:$0xff] }
 0x71d   : > { %v4109_v42 = vmul.f32 %v13150_v7, %v4108_v22  ;;  %v3215_v18 = vand.u32 2147483648, %v10828_v16  ;;  %v3275_v8 = vand.u32 2147483648, %v10845_v36  ;;  %v11068_v54 = vpop.eup %7170  ;;  %v2447_v20 = vmul.f32 %v13152_v30, %v2446_v10 }
 0x71e   : > { %13151 = vst [vmem:[#allocation67_spill] sm:$0xff] %v11068_v54  ;;  %v3206_v33 = vsub.f32 1.0, %v3205_v15  ;;  %v3290_v28 = vand.u32 2147483648, %v10855_v14  ;;  %v3305_v53 = vand.u32 2147483648, %v10858_v48  ;;  %vm13153_vm4 = vcmask 1041409  }
 0x71f   : > { %v11074_v63 = vsel %vm13153_vm4, %v3433_v61, %v3426_v26  ;;  %v11077_v55 = vmul.f32 %v13155_v38, %v2491_v5  ;;  %v3213_v58 = vand.u32 2147483647, %v10828_v16  ;;  %v3265_v43 = vmul.f32 %v10919_v45, %v10845_v36 }
 0x720   : > { %13154 = vst [vmem:[#allocation33_spill] sm:$0xff] %v11074_v63  ;;  %4207 = vperm.xlu2 %6922, %v4109_v42   ;;  %v4113_v22 = vmul.f32 %v11000_v62, %v4112_v44  ;;  %v4006_v56 = vmul.f32 %v11006_v49, %v10922_v2  ;;  %vm3209_vm2 = vweird.f32 %v10828_v16  ;;  %v3273_v15 = vand.u32 2147483647, %v10845_v36  ;;  %v11088_v61 = vpop.eup %7172  ;;  %2555 = vperm.xlu0 %6924, %v10969_v11   ;;  %v11100_v42 = vpop.permute.xlu2 %4152 }
 0x721   : > { %13156 = vst [vmem:[#allocation23_spill] sm:$0xff] %v11088_v61  ;;  %v11091_v10 = vor.u32 1.1754944e-38, %v3215_v18  ;;  %v3946_v13 = vmul.f32 %v10962_v51, %v10879_v32  ;;  %v11095_v5 = vor.u32 1.1754944e-38, %v3275_v8  ;;  %v11098_v7 = vpop.eup %7174  ;;  %v3207_v30 = vmul.f32 %v10914_v4, %v3206_v33 }
 0x722   : > { %13157 = vst [vmem:[#allocation83_spill] sm:$0xff] %v11098_v7  ;;  %vm3210_vm8 = vweird.f32 %v10914_v4  ;;  %v11104_v38 = vor.u32 1.1754944e-38, %v3290_v28  ;;  %v11106_v11 = vor.u32 1.1754944e-38, %v3305_v53  ;;  %v3266_v18 = vsub.f32 1.0, %v3265_v43 }
 0x723   : > { %vm3270_vm1 = vweird.f32 %v10919_v45  ;;  %v3961_v8 = vmul.f32 %v10978_v34, %v10893_v17  ;;  %v3280_v44 = vmul.f32 %v10929_v6, %v10855_v14  ;;  %v4114_v26 = vadd.f32 %v11000_v62, %v4113_v22  ;;  %vm11150_vm14 = vmor %vm3209_vm2, %vm3210_vm8 }
 0x724   : > { %vm4116_vm6 = vweird.f32 %v11000_v62  ;;  %v4007_v33 = vsub.f32 1.0, %v4006_v56  ;;  %vm11115_vm13 = vcmp.eq.f32.partialorder %v3213_v58, 8.507059e+37  ;;  %v11121_v28 = vmul.f32 %v10944_v52, %v10858_v48 }
 0x725   : > { %v4121_v53 = vand.u32 2147483648, %v10917_v40  ;;  %v4016_v43 = vand.u32 2147483648, %v10922_v2  ;;  %v4051_v25 = vmul.f32 %v11018_v60, %v10933_v1  ;;  %v3947_v63 = vsub.f32 1.0, %v3946_v13 }
 0x726   : > { %vm3269_vm5 = vweird.f32 %v10845_v36  ;;  %vm4115_vm11 = vweird.f32 %v10917_v40  ;;  %v4119_v58 = vand.u32 2147483647, %v10917_v40  ;;  %vm4010_vm12 = vweird.f32 %v10922_v2 }
 0x727   : > { %v4014_v22 = vand.u32 2147483647, %v10922_v2  ;;  %v3208_v56 = vadd.f32 %v10914_v4, %v3207_v30  ;;  %vm11133_vm10 = vmor %vm4115_vm11, %vm4116_vm6  ;;  %v3954_v9 = vand.u32 2147483647, %v10879_v32  ;;  %v3956_v13 = vand.u32 2147483648, %v10879_v32 }
 0x728   : > { %v3267_v61 = vmul.f32 %v10919_v45, %v3266_v18  ;;  %v3962_v47 = vsub.f32 1.0, %v3961_v8  ;;  %3361 = vperm.xlu2 %6922, %v3203_v27   ;;  %v4118_v40 = vsel %vm11133_vm10, %v11000_v62, %v4114_v26  ;;  %v4008_v54 = vmul.f32 %v11006_v49, %v4007_v33  ;;  %2565 = vperm.xlu0 %6924, %v2447_v20   ;;  %vm11194_vm10 = vmor %vm3269_vm5, %vm3270_vm1 }
 0x729   : > { %vm3950_vm9 = vweird.f32 %v10879_v32  ;;  %v3281_v30 = vsub.f32 1.0, %v3280_v44  ;;  %vm3285_vm15 = vweird.f32 %v10929_v6  ;;  %v4122_v0 = vor.u32 1.1754944e-38, %v4121_v53  ;;  %v11159_v44 = vpop.permute.xlu2 %2560 }
 0x72a   : > { %v4017_v37 = vor.u32 1.1754944e-38, %v4016_v43  ;;  %v4052_v46 = vsub.f32 1.0, %v4051_v25  ;;  %v3948_v62 = vmul.f32 %v10962_v51, %v3947_v63  ;;  %vm11155_vm7 = vcmp.eq.f32.partialorder %v3273_v15, 8.507059e+37 }
 0x72b   : > { %vm4120_vm3 = vcmp.eq.f32.partialorder %v4119_v58, 8.507059e+37  ;;  %vm11161_vm0 = vcmp.eq.f32.partialorder %v4014_v22, 8.507059e+37  ;;  %v3212_v16 = vsel %vm11150_vm14, %v10914_v4, %v3208_v56  ;;  %vm3965_vm4 = vweird.f32 %v10893_v17 }
 0x72c   : > { %v3969_v25 = vand.u32 2147483647, %v10893_v17  ;;  %vm3284_vm2 = vweird.f32 %v10855_v14  ;;  %v4123_v63 = vsel %vm4120_vm3, %v4122_v0, %v4118_v40  ;;  %vm11171_vm8 = vcmp.eq.f32.partialorder %v3954_v9, 8.507059e+37  ;;  %v11220_v2 = vpop.xlane.xlu0 %4680 }
 0x72d   : > { %v3957_v18 = vor.u32 1.1754944e-38, %v3956_v13  ;;  %v3268_v8 = vadd.f32 %v10919_v45, %v3267_v61  ;;  %v3963_v33 = vmul.f32 %v10978_v34, %v3962_v47  ;;  %v4009_v53 = vadd.f32 %v11006_v49, %v4008_v54  ;;  %v13170_v61 = vld [vmem:[#allocation102_spill] sm:$0xff] }
 0x72e   : > { %vm4011_vm6 = vweird.f32 %v11006_v49  ;;  %v3971_v4 = vand.u32 2147483648, %v10893_v17  ;;  %v3282_v43 = vmul.f32 %v10929_v6, %v3281_v30  ;;  %v3217_v9 = vsel %vm11115_vm13, %v11091_v10, %v3212_v16 }
 0x72f   : > { %v4053_v0 = vmul.f32 %v11018_v60, %v4052_v46  ;;  %v3949_v58 = vadd.f32 %v10962_v51, %v3948_v62  ;;  %vm3951_vm11 = vweird.f32 %v10962_v51  ;;  %v4124_v47 = vmul.f32 %v13170_v61, %v4123_v63  ;;  %vm11204_vm14 = vmor %vm4010_vm12, %vm4011_vm6  ;;  %v13180_v46 = vld [vmem:[#allocation90_spill] sm:$0xff] }
 0x730   : > { %v4059_v54 = vand.u32 2147483647, %v10933_v1  ;;  %v4061_v22 = vand.u32 2147483648, %v10933_v1  ;;  %vm11198_vm13 = vcmp.eq.f32.partialorder %v3969_v25, 8.507059e+37  ;;  %vm4055_vm3 = vweird.f32 %v10933_v1  ;;  %vm11231_vm6 = vmor %vm3950_vm9, %vm3951_vm11  ;;  %2580 = vperm.xlu0 %6924, %v11077_v55  }
 0x731   : > { %v3272_v36 = vsel %vm11194_vm10, %v10919_v45, %v3268_v8  ;;  %v3964_v13 = vadd.f32 %v10978_v34, %v3963_v33  ;;  %vm3966_vm1 = vweird.f32 %v10978_v34  ;;  %v13177_v40 = vand.u32 2147483647, %v10855_v14  ;;  %4212 = vperm.xlu2 %6922, %v4124_v47   ;;  %v11247_v8 = vpop.permute.xlu2 %2575  ;;  %v13194_v45 = vld [vmem:[#allocation75_spill] sm:$0xff] }
 0x732   : > { %v4013_v27 = vsel %vm11204_vm14, %v11006_v49, %v4009_v53  ;;  %v3218_v62 = vmul.f32 %v13180_v46, %v3217_v9  ;;  %vm4056_vm12 = vweird.f32 %v11018_v60  ;;  %v3283_v16 = vadd.f32 %v10929_v6, %v3282_v43  ;;  %vm11260_vm11 = vmor %vm3965_vm4, %vm3966_vm1 }
 0x733   : > { %vm11216_vm5 = vcmp.eq.f32.partialorder %v13177_v40, 8.507059e+37  ;;  %v11237_v25 = vperm.slane %v11220_v2, 0  ;;  %v11240_v63 = vperm.slane %v11220_v2, 1  ;;  %v4054_v49 = vadd.f32 %v11018_v60, %v4053_v0 }
 0x734   : > { %v3953_v32 = vsel %vm11231_vm6, %v10962_v51, %v3949_v58  ;;  %vm11249_vm9 = vcmp.eq.f32.partialorder %v4059_v54, 8.507059e+37  ;;  %v4062_v53 = vor.u32 1.1754944e-38, %v4061_v22  ;;  %v3277_v43 = vsel %vm11155_vm7, %v11095_v5, %v3272_v36  ;;  %vm11274_vm7 = vmor %vm3284_vm2, %vm3285_vm15  ;;  %v13192_v54 = vld [vmem:[#allocation71_spill] sm:$0xff] }
 0x735   : > { %v3972_v51 = vor.u32 1.1754944e-38, %v3971_v4  ;;  %7176 = vrcp.f32 %v11237_v25  ;;  %v4018_v9 = vsel %vm11161_vm0, %v4017_v37, %v4013_v27  ;;  %v3968_v0 = vsel %vm11260_vm11, %v10978_v34, %v3964_v13  ;;  %vm11285_vm0 = vmor %vm4055_vm3, %vm4056_vm12 }
 0x736   : > { %v3976_v5 = vmul.f32 %v10990_v59, %v10905_v12  ;;  %7178 = vrcp.f32 %v11240_v63  ;;  %v3958_v14 = vsel %vm11171_vm8, %v3957_v18, %v3953_v32  ;;  %v4757_v34 = vand.u32 2147483648, %v10959_v24 }
 0x737   : > { %v3287_v26 = vsel %vm11274_vm7, %v10929_v6, %v3283_v16  ;;  %v11296_v20 = vperm.slane %v11220_v2, 6  ;;  %v4058_v1 = vsel %vm11285_vm0, %v11018_v60, %v4054_v49  ;;  %v4747_v4 = vmul.f32 %v11048_v50, %v10959_v24  ;;  %v13191_v6 = vld [vmem:[#allocation103_spill] sm:$0xff] }
 0x738   : > { %v4762_v15 = vmul.f32 %v11054_v21, %v10966_v31  ;;  %v4220_v18 = vmul.f32 %v11056_v35, %v13119_v29  ;;  %v11308_v58 = vperm.slane %v11220_v2, 2  ;;  %v4019_v61 = vmul.f32 %v13191_v6, %v4018_v9  ;;  %v13193_v60 = vld [vmem:[#allocation99_spill] sm:$0xff]  ;;  %3366 = vperm.xlu0 %6924, %v3218_v62  }
 0x739   : > { %v3973_v47 = vsel %vm11198_vm13, %v3972_v51, %v3968_v0  ;;  %v11314_v22 = vmul.f32 %v13192_v54, %v3958_v14  ;;  %v11317_v56 = vmul.f32 %v13193_v60, %v3277_v43  ;;  %v4755_v7 = vand.u32 2147483647, %v10959_v24  ;;  %v11340_v30 = vpop.permute.xlu2 %3371  ;;  %v13196_v62 = vld [vmem:[#allocation95_spill] sm:$0xff]  ;;  %v13197_v51 = vld [vmem:[#allocation97_spill] sm:$0xff] }
 0x73a   : > { %v4772_v36 = vand.u32 2147483648, %v10966_v31  ;;  %4177 = vperm.xlu2 %6922, %v4019_v61   ;;  %v4063_v35 = vsel %vm11249_vm9, %v4062_v53, %v4058_v1  ;;  %v11323_v13 = vor.u32 1.1754944e-38, %v4757_v34  ;;  %v3292_v10 = vsel %vm11216_vm5, %v11104_v38, %v3287_v26 }
 0x73b   : > { %v3977_v40 = vsub.f32 1.0, %v3976_v5  ;;  %v11328_v27 = vpop.eup %7176  ;;  %7180 = vrcp.f32 %v11296_v20  ;;  %v4748_v46 = vsub.f32 1.0, %v4747_v4  ;;  %v11332_v16 = vmul.f32 %v13194_v45, %v3973_v47 }
 0x73c   : > { %v4763_v49 = vsub.f32 1.0, %v4762_v15  ;;  %v11334_v32 = vpop.eup %7178  ;;  %vm13195_vm15 = vcmask 257024   ;;  %7182 = vrcp.f32 %v11308_v58  ;;  %v4837_v38 = vmul.f32 %v11328_v27, %v11237_v25  ;;  %v4959_v15 = vpop.permute.xlu1 %4958 }
 0x73d   : > { %v11337_v33 = vsel %vm13195_vm15, %v4220_v18, 0.0  ;;  %v4770_v53 = vand.u32 2147483647, %v10966_v31  ;;  %v4064_v43 = vmul.f32 %v13196_v62, %v4063_v35  ;;  %v4852_v55 = vmul.f32 %v11334_v32, %v11240_v63  ;;  %vm13198_vm14 = vmmov %vm13195_vm15 }
 0x73e   : > { %v11349_v9 = vmul.f32 %v13197_v51, %v3292_v10  ;;  %v11351_v0 = vor.u32 1.1754944e-38, %v4772_v36  ;;  %v4838_v17 = vsub.f32 1.0, %v4837_v38  ;;  %v3978_v5 = vmul.f32 %v10990_v59, %v3977_v40 }
 0x73f   : > { %v3984_v37 = vand.u32 2147483647, %v10905_v12  ;;  %v3986_v14 = vand.u32 2147483648, %v10905_v12  ;;  %v4237_v34 = vrot.slane %v11337_v33, 4  ;;  %v4853_v26 = vsub.f32 1.0, %v4852_v55 }
 0x740   : > { %v11358_v1 = vmul.f32 %v11048_v50, %v4748_v46  ;;  %v11361_v4 = vmul.f32 %v11054_v21, %v4763_v49  ;;  %vm4857_vm4 = vweird.f32 %v11334_v32  ;;  %v4860_v18 = vand.u32 2147483647, %v11240_v63  ;;  %4192 = vperm.xlu0 %6924, %v4064_v43  }
 0x741   : > { %v4862_v6 = vand.u32 2147483648, %v11240_v63  ;;  %v4839_v61 = vmul.f32 %v11328_v27, %v4838_v17  ;;  %vm3981_vm2 = vweird.f32 %v10990_v59  ;;  %v11368_v47 = vpop.eup %7180  ;;  %v5036_v54 = vmul.f32 %v4959_v15, %v13119_v29  ;;  %v11394_v62 = vpop.permute.xlu2 %4187 }
 0x742   : > { %v4854_v60 = vmul.f32 %v11334_v32, %v4853_v26  ;;  %vm4842_vm8 = vweird.f32 %v11328_v27  ;;  %v4847_v36 = vand.u32 2147483648, %v11237_v25  ;;  %v11374_v35 = vpop.eup %7182  ;;  %v4927_v10 = vmul.f32 %v11368_v47, %v11296_v20  ;;  %v2511_v26 = vpop.permute.xlu0 %2510 }
 0x743   : > { %vm4856_vm10 = vweird.f32 %v11240_v63  ;;  %v4845_v40 = vand.u32 2147483647, %v11237_v25  ;;  %v11381_v46 = vadd.f32 %v10990_v59, %v3978_v5  ;;  %vm3980_vm13 = vweird.f32 %v10905_v12  ;;  %v13206_v5 = vld [vmem:[#allocation91_spill] sm:$0xff] }
 0x744   : > { %v5052_v45 = vsel %vm13198_vm14, %v5036_v54, 0.0  ;;  %v4855_v49 = vadd.f32 %v11334_v32, %v4854_v60  ;;  %vm11388_vm3 = vmor %vm4856_vm10, %vm4857_vm4  ;;  %v4840_v63 = vadd.f32 %v11328_v27, %v4839_v61  ;;  %vm4841_vm1 = vweird.f32 %v11237_v25 }
 0x745   : > { %v4928_v55 = vsub.f32 1.0, %v4927_v10  ;;  %v4937_v51 = vand.u32 2147483648, %v11296_v20  ;;  %vm11397_vm5 = vcmp.eq.f32.partialorder %v4860_v18, 8.507059e+37  ;;  %v4863_v43 = vor.u32 1.1754944e-38, %v4862_v6  ;;  %vm11403_vm12 = vmor %vm4841_vm1, %vm4842_vm8 }
 0x746   : > { %vm4752_vm6 = vweird.f32 %v11048_v50  ;;  %v4859_v25 = vsel %vm11388_vm3, %v11334_v32, %v4855_v49  ;;  %v4844_v15 = vsel %vm11403_vm12, %v11328_v27, %v4840_v63  ;;  %v4848_v18 = vor.u32 1.1754944e-38, %v4847_v36  ;;  %vm13205_vm4 = vmmov %vm13198_vm14  ;;  %v11429_v49 = vpop.permute.xlu1 %2570 }
 0x747   : > { %v4867_v6 = vmul.f32 %v11374_v35, %v11308_v58  ;;  %vm4767_vm9 = vweird.f32 %v11054_v21  ;;  %v5053_v61 = vrot.slane %v5052_v45, 4  ;;  %v2588_v54 = vmul.f32 %v2511_v26, %v13119_v29  ;;  %vm11449_vm1 = vmor %vm3980_vm13, %vm3981_vm2 }
 0x748   : > { %v4929_v60 = vmul.f32 %v11368_v47, %v4928_v55  ;;  %vm4846_vm11 = vcmp.eq.f32.partialorder %v4845_v40, 8.507059e+37  ;;  %vm4751_vm7 = vweird.f32 %v10959_v24  ;;  %vm4932_vm0 = vweird.f32 %v11368_v47  ;;  %vm13215_vm13 = vmmov %vm13205_vm4 }
 0x749   : > { %v4935_v32 = vand.u32 2147483647, %v11296_v20  ;;  %v4864_v27 = vsel %vm11397_vm5, %v4863_v43, %v4859_v25  ;;  %v4849_v36 = vsel %vm4846_vm11, %v4848_v18, %v4844_v15  ;;  %vm4766_vm15 = vweird.f32 %v10966_v31  ;;  %v13207_v25 = vld [vmem:[#allocation98_spill] sm:$0xff]  ;;  %vm11488_vm12 = vmor %vm4751_vm7, %vm4752_vm6 }
 0x74a   : > { %v11426_v10 = vperm.slane %v11220_v2, 3  ;;  %v2604_v29 = vsel %vm13205_vm4, %v2588_v54, 0.0  ;;  %v4868_v40 = vsub.f32 1.0, %v4867_v6  ;;  %v3987_v38 = vor.u32 1.1754944e-38, %v3986_v14  ;;  %vm13218_vm11 = vmmov %vm13205_vm4  ;;  %v13221_v14 = vld [vmem:[#allocation19_spill] sm:$0xff] }
 0x74b   : > { %v2605_v63 = vrot.slane %v2604_v29, 4  ;;  %v4930_v55 = vadd.f32 %v11368_v47, %v4929_v60  ;;  %vm4931_vm8 = vweird.f32 %v11296_v20  ;;  %v4865_v17 = vmul.f32 %v13206_v5, %v4864_v27  ;;  %v13214_v60 = vld [vmem:[#allocation81_spill] sm:$0xff]  ;;  %vm11504_vm6 = vmor %vm4766_vm15, %vm4767_vm9 }
 0x74c   : > { %v5054_v43 = vadd.f32 %v5053_v61, %v5052_v45  ;;  %vm4933_vm10 = vmor %vm4931_vm8, %vm4932_vm0  ;;  %v4938_v26 = vor.u32 1.1754944e-38, %v4937_v51  ;;  %v4850_v15 = vmul.f32 %v13207_v25, %v4849_v36  ;;  %v3296_v18 = vsub.f32 1.0, %v11121_v28  ;;  %v4964_v45 = vpop.permute.xlu2 %4963  ;;  %v2516_v36 = vpop.permute.xlu0 %2515 }
 0x74d   : > { %v2606_v54 = vadd.f32 %v2605_v63, %v2604_v29  ;;  %v4934_v6 = vsel %vm4933_vm10, %v11368_v47, %v4930_v55  ;;  %vm4936_vm14 = vcmp.eq.f32.partialorder %v4935_v32, 8.507059e+37  ;;  %5003 = vperm.xlu1 %6923, %v4865_v17   ;;  %vm11441_vm3 = vcmp.eq.f32.partialorder %v4755_v7, 8.507059e+37  ;;  %vm13225_vm10 = vmmov %vm13218_vm11 }
 0x74e   : > { %v11455_v28 = vmul.f32 %v11061_v41, %v10982_v19  ;;  %7184 = vrcp.f32 %v11426_v10  ;;  %v4939_v47 = vsel %vm4936_vm14, %v4938_v26, %v4934_v6  ;;  %4998 = vperm.xlu0 %6924, %v4850_v15   ;;  %v4869_v7 = vmul.f32 %v11374_v35, %v4868_v40 }
 0x74f   : > { %vm11461_vm5 = vcmp.eq.f32.partialorder %v4770_v53, 8.507059e+37  ;;  %v3983_v61 = vsel %vm11449_vm1, %v10990_v59, %v11381_v46  ;;  %v4940_v32 = vmul.f32 %v13214_v60, %v4939_v47  ;;  %v5037_v27 = vmul.f32 %v4964_v45, %v13115_v23 }
 0x750   : > { %v4750_v29 = vadd.f32 %v11048_v50, %v11358_v1  ;;  %v4765_v40 = vadd.f32 %v11054_v21, %v11361_v4  ;;  %v11478_v53 = vadd.f32 %v4237_v34, %v11337_v33  ;;  %v5055_v63 = vrot.slane %v5054_v43, 2 }
 0x751   : > { %v2589_v55 = vmul.f32 %v2516_v36, %v13115_v23  ;;  %vm3985_vm2 = vcmp.eq.f32.partialorder %v3984_v37, 8.507059e+37  ;;  %v2607_v59 = vrot.slane %v2606_v54, 2  ;;  %5028 = vperm.xlu2 %6922, %v4940_v32   ;;  %v5059_v46 = vsel %vm13215_vm13, %v5037_v27, 0.0  ;;  %v11496_v37 = vpop.permute.xlu1 %2585 }
 0x752   : > { %v11492_v33 = vsel %vm3985_vm2, %v3987_v38, %v3983_v61  ;;  %v3297_v34 = vmul.f32 %v10944_v52, %v3296_v18  ;;  %v5060_v4 = vrot.slane %v5059_v46, 4  ;;  %v4870_v5 = vadd.f32 %v11374_v35, %v4869_v7 }
 0x753   : > { %v2611_v12 = vsel %vm13218_vm11, %v2589_v55, 0.0  ;;  %vm4872_vm0 = vweird.f32 %v11374_v35  ;;  %v4754_v17 = vsel %vm11488_vm12, %v11048_v50, %v4750_v29  ;;  %v4769_v26 = vsel %vm11504_vm6, %v11054_v21, %v4765_v40  ;;  %v13224_v40 = vld [vmem:[#allocation25_spill] sm:$0xff] }
 0x754   : > { %v2612_v38 = vrot.slane %v2611_v12, 4  ;;  %vm3300_vm7 = vweird.f32 %v10944_v52  ;;  %v4778_v25 = vsub.f32 1.0, %v11455_v28  ;;  %v11516_v15 = vpop.eup %7184  ;;  %v5056_v31 = vadd.f32 %v5055_v63, %v5054_v43  ;;  %v11532_v60 = vpop.permute.xlu2 %3346 }
 0x755   : > { %v5061_v18 = vadd.f32 %v5060_v4, %v5059_v46  ;;  %vm4871_vm9 = vweird.f32 %v11308_v58  ;;  %v4875_v6 = vand.u32 2147483647, %v11308_v58  ;;  %v4229_v47 = vmul.f32 %v11394_v62, %v13221_v14  ;;  %4157 = vperm.xlu1 %6923, %v11314_v22   ;;  %v2521_v32 = vpop.permute.xlu0 %2520 }
 0x756   : > { %v2608_v50 = vadd.f32 %v2607_v59, %v2606_v54  ;;  %v2613_v45 = vadd.f32 %v2612_v38, %v2611_v12  ;;  %vm11525_vm15 = vmor %vm4871_vm9, %vm4872_vm0  ;;  %v4877_v43 = vand.u32 2147483648, %v11308_v58  ;;  %vm3299_vm4 = vweird.f32 %v10858_v48  ;;  %3386 = vperm.xlu0 %6924, %v11317_v56   ;;  %v13230_v38 = vld [vmem:[#allocation78_spill] sm:$0xff] }
 0x757   : > { %v4239_v7 = vrot.slane %v11478_v53, 2  ;;  %v5062_v61 = vrot.slane %v5061_v18, 2  ;;  %v4874_v22 = vsel %vm11525_vm15, %v11374_v35, %v4870_v5  ;;  %v4759_v62 = vsel %vm11441_vm3, %v11323_v13, %v4754_v17  ;;  %vm13229_vm3 = vmmov %vm13225_vm10 }
 0x758   : > { %v2614_v54 = vrot.slane %v2613_v45, 2  ;;  %v4878_v58 = vor.u32 1.1754944e-38, %v4877_v43  ;;  %v4882_v27 = vmul.f32 %v11516_v15, %v11426_v10  ;;  %v4774_v36 = vsel %vm11461_vm5, %v11351_v0, %v4769_v26  ;;  %v13231_v26 = vld [vmem:[#allocation77_spill] sm:$0xff]  ;;  %vm11584_vm5 = vmor %vm3299_vm4, %vm3300_vm7 }
 0x759   : > { %v5057_v29 = vrot.slane %v5056_v31, 1  ;;  %v5063_v56 = vadd.f32 %v5062_v61, %v5061_v18  ;;  %v2590_v63 = vmul.f32 %v2521_v32, %v13224_v40  ;;  %vm4876_vm8 = vcmp.eq.f32.partialorder %v4875_v6, 8.507059e+37  ;;  %v11555_v0 = vpop.permute.xlu1 %3376  ;;  %vm13239_vm11 = vmmov %vm13229_vm3 }
 0x75a   : > { %v4299_v35 = vsel %vm13225_vm10, %v4229_v47, 0.0  ;;  %v2609_v55 = vrot.slane %v2608_v50, 1  ;;  %v2615_v20 = vadd.f32 %v2614_v54, %v2613_v45  ;;  %v4879_v13 = vsel %vm4876_vm8, %v4878_v58, %v4874_v22  ;;  %v13233_v58 = vld [vmem:[#allocation76_spill] sm:$0xff]  ;;  %vm13241_vm7 = vmmov %vm13229_vm3 }
 0x75b   : > { %v13226_v59 = vand.u32 2147483647, %v10858_v48  ;;  %v5064_v1 = vrot.slane %v5063_v56, 1  ;;  %v2618_v51 = vsel %vm13229_vm3, %v2590_v63, 0.0  ;;  %v4883_v4 = vsub.f32 1.0, %v4882_v27  ;;  %v13237_v48 = vld [vmem:[#allocation28_spill] sm:$0xff] }
 0x75c   : > { %v3298_v12 = vadd.f32 %v10944_v52, %v3297_v34  ;;  %v2616_v5 = vrot.slane %v2615_v20, 1  ;;  %v2619_v24 = vrot.slane %v2618_v51, 4  ;;  %v4880_v17 = vmul.f32 %v13230_v38, %v4879_v13 }
 0x75d   : > { %vm11550_vm14 = vcmp.eq.f32.partialorder %v13226_v59, 8.507059e+37  ;;  %v4760_v18 = vmul.f32 %v13231_v26, %v4759_v62  ;;  %v11561_v6 = vperm.slane %v11220_v2, 4  ;;  %v5058_v47 = vadd.f32 %v5057_v29, %v5056_v31  ;;  %v11573_v62 = vpop.permute.xlu2 %4197  ;;  %v2526_v27 = vpop.permute.xlu0 %2525 }
 0x75e   : > { %v4300_v45 = vrot.slane %v4299_v35, 4  ;;  %v5065_v21 = vadd.f32 %v5064_v1, %v5063_v56  ;;  %v11564_v43 = vadd.f32 %v4239_v7, %v11478_v53  ;;  %v2610_v61 = vadd.f32 %v2609_v55, %v2608_v50  ;;  %5008 = vperm.xlu1 %6923, %v4880_v17   ;;  %v13238_v55 = vld [vmem:[#allocation100_spill] sm:$0xff] }
 0x75f   : > { %v2617_v22 = vadd.f32 %v2616_v5, %v2615_v20  ;;  %v2620_v54 = vadd.f32 %v2619_v24, %v2618_v51  ;;  %v11568_v34 = vmul.f32 %v11100_v42, %v13224_v40  ;;  %vm13232_vm1 = vcmask 1041409   ;;  %4968 = vperm.xlu0 %6924, %v4760_v18  }
 0x760   : > { %v11571_v32 = vsel %vm13232_vm1, %v5065_v21, %v5058_v47  ;;  %v4884_v31 = vmul.f32 %v11516_v15, %v4883_v4  ;;  %v11578_v53 = vmul.f32 %v13233_v58, %v11492_v33  ;;  %vm13236_vm2 = vmmov %vm13232_vm1  ;;  %v3302_v29 = vsel %vm11584_vm5, %v10944_v52, %v3298_v12  ;;  %v13240_v4 = vld [vmem:[#allocation20_spill] sm:$0xff]  ;;  %v13247_v58 = vld [vmem:[#allocation22_spill] sm:$0xff] }
 0x761   : > { %v5180_v42 = vsel %vm13236_vm2, %v2617_v22, %v2610_v61  ;;  %v2621_v7 = vrot.slane %v2620_v54, 2  ;;  %v4779_v33 = vmul.f32 %v11061_v41, %v4778_v25  ;;  %7186 = vrcp.f32 %v11561_v6  ;;  %v4183_v25 = vpop.permute.xlu1 %4182  ;;  %vm13257_vm5 = vmmov %vm13241_vm7 }
 0x762   : > { %v4301_v56 = vadd.f32 %v4300_v45, %v4299_v35  ;;  %v2591_v63 = vmul.f32 %v2526_v27, %v13237_v48  ;;  %v11598_v20 = vmul.f32 %v13238_v55, %v4774_v36  ;;  %vm4781_vm13 = vweird.f32 %v10982_v19 }
 0x763   : > { %v4241_v13 = vrot.slane %v11564_v43, 1  ;;  %v2622_v59 = vadd.f32 %v2621_v7, %v2620_v54  ;;  %vm4782_vm12 = vweird.f32 %v11061_v41  ;;  %v4785_v52 = vand.u32 2147483647, %v10982_v19  ;;  %v13244_v54 = vld [vmem:[#allocation74_spill] sm:$0xff] }
 0x764   : > { %v2625_v28 = vsel %vm13239_vm11, %v2591_v63, 0.0  ;;  %v4885_v1 = vadd.f32 %v11516_v15, %v4884_v31  ;;  %vm4887_vm0 = vweird.f32 %v11516_v15  ;;  %v3307_v36 = vsel %vm11550_vm14, %v11106_v11, %v3302_v29  ;;  %vm11648_vm10 = vmor %vm4781_vm13, %vm4782_vm12 }
 0x765   : > { %v2623_v35 = vrot.slane %v2622_v59, 1  ;;  %v2626_v51 = vrot.slane %v2625_v28, 4  ;;  %v4228_v12 = vmul.f32 %v4183_v25, %v13240_v4  ;;  %v4780_v5 = vadd.f32 %v11061_v41, %v4779_v33  ;;  %v3352_v61 = vpop.permute.xlu2 %3351  ;;  %v11639_v27 = vpop.permute.xlu0 %2530  ;;  %vm13251_vm14 = vmmov %vm13229_vm3 }
 0x766   : > { %v4302_v24 = vrot.slane %v4301_v56, 2  ;;  %vm4886_vm6 = vweird.f32 %v11426_v10  ;;  %v4890_v38 = vand.u32 2147483647, %v11426_v10  ;;  %v3991_v17 = vmul.f32 %v10995_v3, %v10910_v39  ;;  %4162 = vperm.xlu1 %6923, %v11332_v16  }
 0x767   : > { %v2624_v26 = vadd.f32 %v2623_v35, %v2622_v59  ;;  %v2627_v18 = vadd.f32 %v2626_v51, %v2625_v28  ;;  %v4292_v11 = vsel %vm13241_vm7, %v4228_v12, 0.0  ;;  %vm11618_vm9 = vmor %vm4886_vm6, %vm4887_vm0  ;;  %v4892_v47 = vand.u32 2147483648, %v11426_v10  ;;  %v11623_v45 = vpop.eup %7186  ;;  %3391 = vperm.xlu0 %6924, %v11349_v9  }
 0x768   : > { %v4293_v21 = vrot.slane %v4292_v11, 4  ;;  %v4889_v22 = vsel %vm11618_vm9, %v11516_v15, %v4885_v1  ;;  %v11630_v16 = vmul.f32 %v13244_v54, %v3307_v36  ;;  %vm11632_vm15 = vcmp.eq.f32.partialorder %v4785_v52, 8.507059e+37  ;;  %vm13264_vm6 = vmmov %vm13257_vm5 }
 0x769   : > { %v3408_v10 = vmul.f32 %v11532_v60, %v13247_v58  ;;  %vm13248_vm4 = vcmask 1042434   ;;  %v2628_v7 = vrot.slane %v2627_v18, 2  ;;  %v4893_v9 = vor.u32 1.1754944e-38, %v4892_v47 }
 0x76a   : > { %v5181_v50 = vsel %vm13248_vm4, %v2624_v26, %v5180_v42  ;;  %v4303_v29 = vadd.f32 %v4302_v24, %v4301_v56  ;;  %v4294_v33 = vadd.f32 %v4293_v21, %v4292_v11  ;;  %vm4891_vm8 = vcmp.eq.f32.partialorder %v4890_v38, 8.507059e+37  ;;  %v13254_v38 = vld [vmem:[#allocation30_spill] sm:$0xff] }
 0x76b   : > { %v4787_v15 = vand.u32 2147483648, %v10982_v19  ;;  %v2629_v63 = vadd.f32 %v2628_v7, %v2627_v18  ;;  %v4894_v55 = vsel %vm4891_vm8, %v4893_v9, %v4889_v22  ;;  %v4897_v59 = vmul.f32 %v11623_v45, %v11561_v6  ;;  %v13252_v19 = vld [vmem:[#allocation72_spill] sm:$0xff] }
 0x76c   : > { %v3992_v42 = vsub.f32 1.0, %v3991_v17  ;;  %v11653_v56 = vadd.f32 %v4241_v13, %v11564_v43  ;;  %v11656_v52 = vperm.slane %v11220_v2, 5  ;;  %v4295_v28 = vrot.slane %v4294_v33, 2  ;;  %v13253_v43 = vld [vmem:[#allocation58_spill] sm:$0xff] }
 0x76d   : > { %v4784_v25 = vsel %vm11648_vm10, %v11061_v41, %v4780_v5  ;;  %v3448_v1 = vsel %vm13251_vm14, %v3408_v10, 0.0  ;;  %v2630_v36 = vrot.slane %v2629_v63, 1  ;;  %v4895_v35 = vmul.f32 %v13252_v19, %v4894_v55  ;;  %v11670_v46 = vpop.permute.xlu2 %4202  ;;  %v11677_v22 = vpop.permute.xlu0 %2540  ;;  %vm13272_vm14 = vmmov %vm13257_vm5 }
 0x76e   : > { %vm3995_vm3 = vweird.f32 %v10910_v39  ;;  %v4304_v51 = vrot.slane %v4303_v29, 1  ;;  %v4296_v12 = vadd.f32 %v4295_v28, %v4294_v33  ;;  %v4898_v24 = vsub.f32 1.0, %v4897_v59  ;;  %v13256_v33 = vld [vmem:[#allocation27_spill] sm:$0xff] }
 0x76f   : > { %v3310_v13 = vmul.f32 %v13253_v43, %v10872_v57  ;;  %v2598_v17 = vmul.f32 %v11159_v44, %v13254_v38  ;;  %v2631_v26 = vadd.f32 %v2630_v36, %v2629_v63  ;;  %5013 = vperm.xlu1 %6923, %v4895_v35   ;;  %v4788_v18 = vor.u32 1.1754944e-38, %v4787_v15  ;;  %4973 = vperm.xlu0 %6924, %v11598_v20   ;;  %v13259_v59 = vld [vmem:[#allocation67_spill] sm:$0xff] }
 0x770   : > { %v3993_v41 = vmul.f32 %v10995_v3, %v3992_v42  ;;  %7188 = vrcp.f32 %v11656_v52  ;;  %v3449_v5 = vrot.slane %v3448_v1, 4  ;;  %v4297_v11 = vrot.slane %v4296_v12, 1 }
 0x771   : > { %v4899_v47 = vmul.f32 %v11623_v45, %v4898_v24  ;;  %vm13255_vm1 = vcmask 1043459   ;;  %v4789_v44 = vsel %vm11632_vm15, %v4788_v18, %v4784_v25  ;;  %v3999_v54 = vand.u32 2147483647, %v10910_v39 }
 0x772   : > { %v11675_v21 = vsel %vm13255_vm1, %v2631_v26, %v5181_v50  ;;  %v4001_v10 = vand.u32 2147483648, %v10910_v39  ;;  %v4305_v7 = vadd.f32 %v4304_v51, %v4303_v29  ;;  %v4298_v9 = vadd.f32 %v4297_v11, %v4296_v12  ;;  %v13258_v50 = vld [vmem:[#allocation46_spill] sm:$0xff] }
 0x773   : > { %v3409_v15 = vmul.f32 %v3352_v61, %v13256_v33  ;;  %v3311_v63 = vsub.f32 1.0, %v3310_v13  ;;  %v2674_v20 = vsel %vm13257_vm5, %v2598_v17, 0.0  ;;  %v3994_v55 = vadd.f32 %v10995_v3, %v3993_v41  ;;  %v13261_v61 = vld [vmem:[#allocation104_spill] sm:$0xff] }
 0x774   : > { %vm3996_vm2 = vweird.f32 %v10995_v3  ;;  %v4792_v60 = vmul.f32 %v13259_v59, %v13258_v50  ;;  %v3450_v31 = vadd.f32 %v3449_v5, %v3448_v1  ;;  %vm13260_vm13 = vcmask 1041409  }
 0x775   : > { %v11690_v42 = vsel %vm13260_vm13, %v4305_v7, %v4298_v9  ;;  %v4900_v28 = vadd.f32 %v11623_v45, %v4899_v47  ;;  %vm4902_vm12 = vweird.f32 %v11623_v45  ;;  %vm3314_vm11 = vweird.f32 %v10872_v57  ;;  %vm11710_vm9 = vmor %vm3995_vm3, %vm3996_vm2  ;;  %v3357_v41 = vpop.permute.xlu2 %3356 }
 0x776   : > { %v4790_v29 = vmul.f32 %v13261_v61, %v4789_v44  ;;  %vm11696_vm0 = vcmp.eq.f32.partialorder %v3999_v54, 8.507059e+37  ;;  %v4002_v36 = vor.u32 1.1754944e-38, %v4001_v10  ;;  %v3318_v19 = vand.u32 2147483647, %v10872_v57  ;;  %v11701_v35 = vpop.eup %7188  ;;  %v13269_v44 = vld [vmem:[#allocation17_spill] sm:$0xff]  ;;  %v3337_v54 = vpop.permute.xlu0 %3336  ;;  %vm13273_vm3 = vmmov %vm13257_vm5 }
 0x777   : > { %v3455_v1 = vsel %vm13264_vm6, %v3409_v15, 0.0  ;;  %vm4901_vm7 = vweird.f32 %v11561_v6  ;;  %v4905_v51 = vand.u32 2147483647, %v11561_v6  ;;  %v3312_v24 = vmul.f32 %v13253_v43, %v3311_v63  ;;  %4167 = vperm.xlu1 %6923, %v11578_v53   ;;  %3396 = vperm.xlu0 %6924, %v11630_v16  }
 0x778   : > { %v2675_v13 = vrot.slane %v2674_v20, 4  ;;  %vm11716_vm15 = vmor %vm4901_vm7, %vm4902_vm12  ;;  %v4907_v26 = vand.u32 2147483648, %v11561_v6  ;;  %vm3315_vm4 = vweird.f32 %v13253_v43  ;;  %v3320_v18 = vand.u32 2147483648, %v10872_v57 }
 0x779   : > { %v3451_v39 = vrot.slane %v3450_v31, 2  ;;  %v4904_v5 = vsel %vm11716_vm15, %v11623_v45, %v4900_v28  ;;  %v3998_v53 = vsel %vm11710_vm9, %v10995_v3, %v3994_v55  ;;  %v4793_v11 = vsub.f32 1.0, %v4792_v60  ;;  %vm11749_vm1 = vmor %vm3314_vm11, %vm3315_vm4 }
 0x77a   : > { %v3456_v47 = vrot.slane %v3455_v1, 4  ;;  %v3410_v6 = vmul.f32 %v3357_v41, %v13269_v44  ;;  %v4908_v10 = vor.u32 1.1754944e-38, %v4907_v26  ;;  %v4912_v7 = vmul.f32 %v11701_v35, %v11656_v52 }
 0x77b   : > { %v3406_v9 = vmul.f32 %v3337_v54, %v13224_v40  ;;  %vm4906_vm8 = vcmp.eq.f32.partialorder %v4905_v51, 8.507059e+37  ;;  %v3313_v16 = vadd.f32 %v13253_v43, %v3312_v24  ;;  %vm11735_vm10 = vcmp.eq.f32.partialorder %v3318_v19, 8.507059e+37  ;;  %v13274_v24 = vld [vmem:[#allocation101_spill] sm:$0xff] }
 0x77c   : > { %v3462_v3 = vsel %vm13272_vm14, %v3410_v6, 0.0  ;;  %v4909_v15 = vsel %vm4906_vm8, %v4908_v10, %v4904_v5  ;;  %v4003_v63 = vsel %vm11696_vm0, %v4002_v36, %v3998_v53  ;;  %v4913_v55 = vsub.f32 1.0, %v4912_v7  ;;  %vm13280_vm0 = vmmov %vm13273_vm3 }
 0x77d   : > { %v3452_v60 = vadd.f32 %v3451_v39, %v3450_v31  ;;  %v3463_v28 = vrot.slane %v3462_v3, 4  ;;  %v3434_v61 = vsel %vm13273_vm3, %v3406_v9, 0.0  ;;  %v4794_v12 = vmul.f32 %v13259_v59, %v4793_v11  ;;  %v11765_v11 = vpop.permute.xlu2 %4207  ;;  %vm13290_vm4 = vmmov %vm13280_vm0 }
 0x77e   : > { %v3457_v51 = vadd.f32 %v3456_v47, %v3455_v1  ;;  %v3435_v17 = vrot.slane %v3434_v61, 4  ;;  %v4910_v19 = vmul.f32 %v13274_v24, %v4909_v15  ;;  %v4914_v25 = vmul.f32 %v11701_v35, %v4913_v55  ;;  %v4148_v6 = vpop.permute.xlu0 %4147  ;;  %v13282_v55 = vld [vmem:[#allocation23_spill] sm:$0xff] }
 0x77f   : > { %v11754_v31 = vadd.f32 %v2675_v13, %v2674_v20  ;;  %v3317_v36 = vsel %vm11749_vm1, %v13253_v43, %v3313_v16  ;;  %v3321_v1 = vor.u32 1.1754944e-38, %v3320_v18  ;;  %vm4917_vm5 = vweird.f32 %v11701_v35  ;;  %4978 = vperm.xlu0 %6924, %v4790_v29   ;;  %v13277_v20 = vld [vmem:[#allocation82_spill] sm:$0xff] }
 0x780   : > { %v3464_v39 = vadd.f32 %v3463_v28, %v3462_v3  ;;  %v3436_v41 = vadd.f32 %v3435_v17, %v3434_v61  ;;  %5018 = vperm.xlu1 %6923, %v4910_v19   ;;  %v4915_v57 = vadd.f32 %v11701_v35, %v4914_v25  ;;  %v4922_v5 = vand.u32 2147483648, %v11656_v52 }
 0x781   : > { %v11763_v53 = vperm.slane %v11220_v2, 7  ;;  %v4004_v13 = vmul.f32 %v13277_v20, %v4003_v63  ;;  %vm4916_vm2 = vweird.f32 %v11656_v52  ;;  %v4920_v43 = vand.u32 2147483647, %v11656_v52  ;;  %v13281_v63 = vld [vmem:[#allocation18_spill] sm:$0xff] }
 0x782   : > { %v3453_v18 = vrot.slane %v3452_v60, 1  ;;  %v3458_v47 = vrot.slane %v3457_v51, 2  ;;  %v3322_v54 = vsel %vm11735_vm10, %v3321_v1, %v3317_v36  ;;  %vm11774_vm13 = vmor %vm4916_vm2, %vm4917_vm5  ;;  %v4795_v29 = vadd.f32 %v13259_v59, %v4794_v12  ;;  %v13286_v20 = vld [vmem:[#allocation106_spill] sm:$0xff] }
 0x783   : > { %v3437_v10 = vrot.slane %v3436_v41, 2  ;;  %v4221_v7 = vmul.f32 %v4148_v6, %v13115_v23  ;;  %v4919_v52 = vsel %vm11774_vm13, %v11701_v35, %v4915_v57  ;;  %vm4797_vm12 = vweird.f32 %v13259_v59  ;;  %v13283_v35 = vld [vmem:[#allocation80_spill] sm:$0xff]  ;;  %vm13291_vm10 = vmmov %vm13280_vm0 }
 0x784   : > { %v3465_v9 = vrot.slane %v3464_v39, 2  ;;  %v4923_v16 = vor.u32 1.1754944e-38, %v4922_v5  ;;  %vm4796_vm11 = vweird.f32 %v13258_v50  ;;  %v4802_v45 = vand.u32 2147483648, %v13258_v50 }
 0x785   : > { %v4243_v3 = vsel %vm13280_vm0, %v4221_v7, 0.0  ;;  %vm4921_vm6 = vcmp.eq.f32.partialorder %v4920_v43, 8.507059e+37  ;;  %v4800_v15 = vand.u32 2147483647, %v13258_v50  ;;  %v4807_v23 = vmul.f32 %v13282_v55, %v13281_v63  ;;  %vm11792_vm7 = vmor %vm4796_vm11, %vm4797_vm12  ;;  %v3362_v5 = vpop.permute.xlu2 %3361 }
 0x786   : > { %7190 = vrcp.f32 %v11763_v53  ;;  %v4244_v28 = vrot.slane %v4243_v3, 4  ;;  %v3323_v61 = vmul.f32 %v13283_v35, %v3322_v54  ;;  %v4924_v12 = vsel %vm4921_vm6, %v4923_v16, %v4919_v52  ;;  %vm13298_vm11 = vmmov %vm13280_vm0 }
 0x787   : > { %v11796_v24 = vadd.f32 %v3453_v18, %v3452_v60  ;;  %v11798_v19 = vadd.f32 %v3437_v10, %v3436_v41  ;;  %v4799_v50 = vsel %vm11792_vm7, %v13259_v59, %v4795_v29  ;;  %v4808_v26 = vsub.f32 1.0, %v4807_v23  ;;  %v13287_v41 = vld [vmem:[#allocation50_spill] sm:$0xff]  ;;  %v13288_v18 = vld [vmem:[#allocation45_spill] sm:$0xff]  ;;  %v13289_v59 = vld [vmem:[#allocation24_spill] sm:$0xff] }
 0x788   : > { %v11803_v25 = vadd.f32 %v3458_v47, %v3457_v51  ;;  %v11805_v36 = vadd.f32 %v3465_v9, %v3464_v39  ;;  %v4245_v1 = vadd.f32 %v4244_v28, %v4243_v3  ;;  %4172 = vperm.xlu1 %6923, %v4004_v13   ;;  %v4803_v57 = vor.u32 1.1754944e-38, %v4802_v45  ;;  %3401 = vperm.xlu0 %6924, %v3323_v61   ;;  %v3342_v51 = vpop.permute.xlu0 %3341 }
 0x789   : > { %v4925_v43 = vmul.f32 %v13286_v20, %v4924_v12  ;;  %vm4801_vm9 = vcmp.eq.f32.partialorder %v4800_v15, 8.507059e+37  ;;  %v4809_v60 = vmul.f32 %v13282_v55, %v4808_v26  ;;  %v4126_v6 = vmul.f32 %v13288_v18, %v13287_v41  ;;  %v13292_v15 = vld [vmem:[#allocation105_spill] sm:$0xff]  ;;  %v13300_v12 = vld [vmem:[#allocation107_spill] sm:$0xff] }
 0x78a   : > { %v4246_v54 = vrot.slane %v4245_v1, 2  ;;  %v3411_v2 = vmul.f32 %v3362_v5, %v13289_v59  ;;  %v4804_v47 = vsel %vm4801_vm9, %v4803_v57, %v4799_v50  ;;  %v4817_v39 = vand.u32 2147483648, %v13281_v63 }
 0x78b   : > { %v3439_v13 = vrot.slane %v11798_v19, 1  ;;  %v3407_v29 = vmul.f32 %v3342_v51, %v13237_v48  ;;  %v4810_v10 = vadd.f32 %v13282_v55, %v4809_v60  ;;  %vm4812_vm15 = vweird.f32 %v13282_v55 }
 0x78c   : > { %v11817_v7 = vpop.eup %7190  ;;  %v4247_v52 = vadd.f32 %v4246_v54, %v4245_v1  ;;  %v3469_v9 = vsel %vm13290_vm4, %v3411_v2, 0.0  ;;  %vm4811_vm8 = vweird.f32 %v13281_v63  ;;  %v4127_v16 = vsub.f32 1.0, %v4126_v6 }
 0x78d   : > { %v3470_v45 = vrot.slane %v3469_v9, 4  ;;  %v3441_v3 = vsel %vm13291_vm10, %v3407_v29, 0.0  ;;  %v4805_v23 = vmul.f32 %v13292_v15, %v4804_v47  ;;  %v4815_v28 = vand.u32 2147483647, %v13281_v63  ;;  %vm11824_vm14 = vmor %vm4811_vm8, %vm4812_vm15  ;;  %v13299_v15 = vld [vmem:[#allocation108_spill] sm:$0xff] }
 0x78e   : > { %v4248_v35 = vrot.slane %v4247_v52, 1  ;;  %v3442_v61 = vrot.slane %v3441_v3, 4  ;;  %v4818_v17 = vor.u32 1.1754944e-38, %v4817_v39  ;;  %v4128_v50 = vmul.f32 %v13288_v18, %v4127_v16 }
 0x78f   : > { %v3471_v26 = vadd.f32 %v3470_v45, %v3469_v9  ;;  %v4814_v1 = vsel %vm11824_vm14, %v13282_v55, %v4810_v10  ;;  %vm4130_vm3 = vweird.f32 %v13287_v41  ;;  %vm4131_vm1 = vweird.f32 %v13288_v18 }
 0x790   : > { %v4249_v57 = vadd.f32 %v4248_v35, %v4247_v52  ;;  %v3443_v63 = vadd.f32 %v3442_v61, %v3441_v3  ;;  %5023 = vperm.xlu1 %6923, %v4925_v43   ;;  %v4129_v5 = vadd.f32 %v13288_v18, %v4128_v50  ;;  %v4134_v20 = vand.u32 2147483647, %v13287_v41  ;;  %4983 = vperm.xlu0 %6924, %v4805_v23   ;;  %vm11836_vm2 = vmor %vm4130_vm3, %vm4131_vm1  ;;  %v2551_v51 = vpop.permute.xlu0 %2550 }
 0x791   : > { %v3472_v60 = vrot.slane %v3471_v26, 2  ;;  %vm4816_vm5 = vcmp.eq.f32.partialorder %v4815_v28, 8.507059e+37  ;;  %v4136_v55 = vand.u32 2147483648, %v13287_v41  ;;  %v4942_v54 = vmul.f32 %v11817_v7, %v11763_v53  ;;  %vm13312_vm1 = vmmov %vm13291_vm10 }
 0x792   : > { %vm13297_vm13 = vcmask 1041409   ;;  %v3444_v43 = vrot.slane %v3443_v63, 2  ;;  %v4819_v47 = vsel %vm4816_vm5, %v4818_v17, %v4814_v1  ;;  %v4133_v39 = vsel %vm11836_vm2, %v13288_v18, %v4129_v5 }
 0x793   : > { %v11845_v2 = vsel %vm13297_vm13, %v4249_v57, %v11653_v56  ;;  %v3460_v29 = vrot.slane %v11803_v25, 1  ;;  %v3467_v10 = vrot.slane %v11805_v36, 1  ;;  %v2596_v41 = vmul.f32 %v2551_v51, %v13240_v4  ;;  %v13305_v51 = vld [vmem:[#allocation83_spill] sm:$0xff] }
 0x794   : > { %v4137_v52 = vor.u32 1.1754944e-38, %v4136_v55  ;;  %v3473_v9 = vadd.f32 %v3472_v60, %v3471_v26  ;;  %v3445_v16 = vadd.f32 %v3444_v43, %v3443_v63  ;;  %vm4135_vm12 = vcmp.eq.f32.partialorder %v4134_v20, 8.507059e+37  ;;  %v13301_v20 = vld [vmem:[#allocation33_spill] sm:$0xff]  ;;  %v13304_v43 = vld [vmem:[#allocation26_spill] sm:$0xff] }
 0x795   : > { %v4943_v45 = vsub.f32 1.0, %v4942_v54  ;;  %v3440_v56 = vadd.f32 %v3439_v13, %v11798_v19  ;;  %v2660_v3 = vsel %vm13298_vm11, %v2596_v41, 0.0  ;;  %v4820_v23 = vmul.f32 %v13299_v15, %v4819_v47 }
 0x796   : > { %v4138_v28 = vsel %vm4135_vm12, %v4137_v52, %v4133_v39  ;;  %v3446_v35 = vrot.slane %v3445_v16, 1  ;;  %v2661_v18 = vrot.slane %v2660_v3, 4  ;;  %vm4947_vm0 = vweird.f32 %v11817_v7 }
 0x797   : > { %v4944_v61 = vmul.f32 %v11817_v7, %v4943_v45  ;;  %v4139_v17 = vmul.f32 %v13300_v12, %v4138_v28  ;;  %vm4946_vm6 = vweird.f32 %v11763_v53  ;;  %v4950_v50 = vand.u32 2147483647, %v11763_v53  ;;  %v13309_v45 = vld [vmem:[#allocation15_spill] sm:$0xff] }
 0x798   : > { %v4952_v26 = vand.u32 2147483648, %v11763_v53  ;;  %v3474_v19 = vrot.slane %v3473_v9, 1  ;;  %v3447_v13 = vadd.f32 %v3446_v35, %v3445_v16  ;;  %v2662_v1 = vadd.f32 %v2661_v18, %v2660_v3  ;;  %4988 = vperm.xlu1 %6923, %v4820_v23   ;;  %vm4948_vm9 = vmor %vm4946_vm6, %vm4947_vm0  ;;  %v2556_v54 = vpop.permute.xlu0 %2555  ;;  %v13308_v16 = vld [vmem:[#allocation48_spill] sm:$0xff]  ;;  %v13314_v35 = vld [vmem:[#allocation110_spill] sm:$0xff] }
 0x799   : > { %v4945_v57 = vadd.f32 %v11817_v7, %v4944_v61  ;;  %v3461_v63 = vadd.f32 %v3460_v29, %v11803_v25  ;;  %v3468_v5 = vadd.f32 %v3467_v10, %v11805_v36  ;;  %vm13302_vm7 = vcmask 1042434   ;;  %4217 = vperm.xlu0 %6924, %v4139_v17  }
 0x79a   : > { %v5213_v60 = vsel %vm13302_vm7, %v3440_v56, %v13301_v20  ;;  %v4953_v6 = vor.u32 1.1754944e-38, %v4952_v26  ;;  %vm13303_vm15 = vcmask 1043459   ;;  %vm4951_vm4 = vcmp.eq.f32.partialorder %v4950_v50, 8.507059e+37 }
 0x79b   : > { %v5214_v55 = vsel %vm13303_vm15, %v3447_v13, %v5213_v60  ;;  %v4949_v53 = vsel %vm4948_vm9, %v11817_v7, %v4945_v57  ;;  %v4822_v47 = vmul.f32 %v13305_v51, %v13304_v43  ;;  %v2663_v39 = vrot.slane %v2662_v1, 2  ;;  %vm13320_vm9 = vmmov %vm13312_vm1 }
 0x79c   : > { %v2597_v25 = vmul.f32 %v2556_v54, %v13221_v14  ;;  %v4954_v29 = vsel %vm4951_vm4, %v4953_v6, %v4949_v53  ;;  %vm13306_vm8 = vcmask 1044484   ;;  %v4250_v10 = vsel %vm13291_vm10, %v11568_v34, 0.0  ;;  %vm13322_vm15 = vmmov %vm13312_vm1 }
 0x79d   : > { %v5215_v36 = vsel %vm13306_vm8, %v11796_v24, %v5214_v55  ;;  %v3475_v41 = vadd.f32 %v3474_v19, %v3473_v9  ;;  %vm13307_vm14 = vcmask 1045509   ;;  %v13310_v7 = vrot.slane %v13309_v45, 3  ;;  %v13316_v19 = vld [vmem:[#allocation44_spill] sm:$0xff]  ;;  %vm13323_vm4 = vmmov %vm13312_vm1 }
 0x79e   : > { %v5216_v52 = vsel %vm13307_vm14, %v3461_v63, %v5215_v36  ;;  %vm13311_vm3 = vcmask 1040384   ;;  %v2677_v3 = vrot.slane %v11754_v31, 2  ;;  %v2667_v15 = vsel %vm13312_vm1, %v2597_v25, 0.0  ;;  %v13318_v63 = vld [vmem:[#allocation61_spill] sm:$0xff] }
 0x79f   : > { %v1852_v56 = vsel %vm13311_vm3, %v13310_v7, %v13308_v16  ;;  %vm13313_vm5 = vcmask 1046534   ;;  %v2668_v28 = vrot.slane %v2667_v15, 4  ;;  %v4955_v24 = vmul.f32 %v13314_v35, %v4954_v29  ;;  %vm13327_vm3 = vmmov %vm13312_vm1 }
 0x7a0   : > { %v5217_v23 = vsel %vm13313_vm5, %v3468_v5, %v5216_v52  ;;  %vm13315_vm2 = vcmask 1047559   ;;  %v4823_v34 = vsub.f32 1.0, %v4822_v47  ;;  %v4251_v9 = vrot.slane %v4250_v10, 4  ;;  %v2566_v60 = vpop.permute.xlu0 %2565  ;;  %vm13329_vm5 = vmmov %vm13327_vm3 }
 0x7a1   : > { %v5218_v18 = vsel %vm13315_vm2, %v3475_v41, %v5217_v23  ;;  %v2664_v61 = vadd.f32 %v2663_v39, %v2662_v1  ;;  %vm4827_vm13 = vweird.f32 %v13305_v51  ;;  %v2669_v12 = vadd.f32 %v2668_v28, %v2667_v15  ;;  %5033 = vperm.xlu1 %6923, %v4955_v24   ;;  %v13321_v41 = vld [vmem:[#allocation109_spill] sm:$0xff] }
 0x7a2   : > { %5226 = vrot.lane.b32.xlu2 %v5218_v18, %s7350_s15  ;;  %v4824_v17 = vmul.f32 %v13305_v51, %v4823_v34  ;;  %v4830_v50 = vand.u32 2147483647, %v13304_v43  ;;  %v4832_v26 = vand.u32 2147483648, %v13304_v43  ;;  %vm13317_vm12 = vcmask 1041408  }
 0x7a3   : > { %v1868_v13 = vsel %vm13317_vm12, %v1852_v56, %v13316_v19  ;;  %v2678_v57 = vadd.f32 %v2677_v3, %v11754_v31  ;;  %vm13319_vm11 = vcmask 1042432   ;;  %v2670_v5 = vrot.slane %v2669_v12, 2  ;;  %vm13332_vm12 = vmmov %vm13327_vm3 }
 0x7a4   : > { %v11896_v1 = vsel %vm13319_vm11, %v1868_v13, %v13318_v63  ;;  %v4825_v20 = vadd.f32 %v13305_v51, %v4824_v17  ;;  %vm4826_vm0 = vweird.f32 %v13304_v43  ;;  %v4252_v6 = vadd.f32 %v4251_v9, %v4250_v10  ;;  %vm13333_vm11 = vmmov %vm13327_vm3 }
 0x7a5   : > { %vm4828_vm6 = vmor %vm4826_vm0, %vm4827_vm13  ;;  %v4833_v55 = vor.u32 1.1754944e-38, %v4832_v26  ;;  %v2599_v54 = vmul.f32 %v2566_v60, %v11896_v1  ;;  %v2665_v53 = vrot.slane %v2664_v61, 1  ;;  %v2671_v47 = vadd.f32 %v2670_v5, %v2669_v12 }
 0x7a6   : > { %v4829_v39 = vsel %vm4828_vm6, %v13305_v51, %v4825_v20  ;;  %vm4831_vm7 = vcmp.eq.f32.partialorder %v4830_v50, 8.507059e+37  ;;  %v2679_v31 = vrot.slane %v2678_v57, 1  ;;  %v3413_v25 = vmul.f32 %v11340_v30, %v13221_v14  ;;  %vm13336_vm6 = vmmov %vm13327_vm3 }
 0x7a7   : > { %v4834_v29 = vsel %vm4831_vm7, %v4833_v55, %v4829_v39  ;;  %v2681_v36 = vsel %vm13320_vm9, %v2599_v54, 0.0  ;;  %v3414_v43 = vmul.f32 %v11555_v0, %v13254_v38  ;;  %v2672_v10 = vrot.slane %v2671_v47, 1  ;;  %vm13338_vm7 = vmmov %vm13327_vm3 }
 0x7a8   : > { %v4835_v52 = vmul.f32 %v13321_v41, %v4834_v29  ;;  %v2682_v16 = vrot.slane %v2681_v36, 4  ;;  %v2666_v7 = vadd.f32 %v2665_v53, %v2664_v61  ;;  %v2680_v51 = vadd.f32 %v2679_v31, %v2678_v57  ;;  %v11911_v24 = vpop.permute.xlu0 %2580  ;;  %v11923_v31 = vpop.permute.xlu1 %3381  ;;  %vm13339_vm9 = vmmov %vm13327_vm3 }
 0x7a9   : > { %v2673_v56 = vadd.f32 %v2672_v10, %v2671_v47  ;;  %v3483_v15 = vsel %vm13322_vm15, %v3413_v25, 0.0  ;;  %v4253_v23 = vrot.slane %v4252_v6, 2  ;;  %v3490_v30 = vsel %vm13323_vm4, %v3414_v43, 0.0  ;;  %vm13340_vm15 = vmmov %vm13327_vm3 }
 0x7aa   : > { %4993 = vperm.xlu0 %6924, %v4835_v52   ;;  %v2683_v3 = vadd.f32 %v2682_v16, %v2681_v36  ;;  %vm13324_vm8 = vcmask 1041409   ;;  %vm13325_vm10 = vcmask 1042434   ;;  %v3484_v18 = vrot.slane %v3483_v15, 4 }
 0x7ab   : > { %v5187_v28 = vsel %vm13324_vm8, %v2673_v56, %v2666_v7  ;;  %v3491_v9 = vrot.slane %v3490_v30, 4  ;;  %v4254_v61 = vadd.f32 %v4253_v23, %v4252_v6  ;;  %vm13326_vm14 = vcmask 1043459   ;;  %vm13328_vm1 = vmmov %vm13325_vm10 }
 0x7ac   : > { %v2684_v35 = vrot.slane %v2683_v3, 2  ;;  %v5188_v0 = vsel %vm13325_vm10, %v2680_v51, %v5187_v28  ;;  %v3485_v17 = vadd.f32 %v3484_v18, %v3483_v15  ;;  %vm13330_vm2 = vmmov %vm13324_vm8  ;;  %vm13345_vm10 = vcmask 1040384  }
 0x7ad   : > { %v3492_v26 = vadd.f32 %v3491_v9, %v3490_v30  ;;  %v4255_v19 = vrot.slane %v4254_v61, 1  ;;  %vm13331_vm13 = vmmov %vm13328_vm1 }
 0x7ae   : > { %v2685_v34 = vadd.f32 %v2684_v35, %v2683_v3  ;;  %v3486_v5 = vrot.slane %v3485_v17, 2  ;;  %vm13334_vm0 = vmmov %vm13328_vm1 }
 0x7af   : > { %v3493_v20 = vrot.slane %v3492_v26, 2  ;;  %v4256_v55 = vadd.f32 %v4255_v19, %v4254_v61  ;;  %vm13341_vm4 = vmmov %vm13330_vm2 }
 0x7b0   : > { %v2686_v12 = vrot.slane %v2685_v34, 1  ;;  %v3367_v57 = vpop.permute.xlu0 %3366  ;;  %v3487_v53 = vadd.f32 %v3486_v5, %v3485_v17  ;;  %vm13342_vm8 = vmmov %vm13327_vm3 }
 0x7b1   : > { %v3412_v63 = vmul.f32 %v3367_v57, %v13240_v4  ;;  %v11921_v6 = vsel %vm13328_vm1, %v4256_v55, %v11845_v2  ;;  %v3494_v39 = vadd.f32 %v3493_v20, %v3492_v26  ;;  %v2592_v57 = vmul.f32 %v11639_v27, %v13247_v58 }
 0x7b2   : > { %v2687_v50 = vadd.f32 %v2686_v12, %v2685_v34  ;;  %v3488_v43 = vrot.slane %v3487_v53, 1  ;;  %v2594_v55 = vmul.f32 %v11677_v22, %v13269_v44 }
 0x7b3   : > { %v3476_v60 = vsel %vm13327_vm3, %v3412_v63, 0.0  ;;  %v3495_v41 = vrot.slane %v3494_v39, 1  ;;  %v2632_v27 = vsel %vm13336_vm6, %v2592_v57, 0.0  ;;  %v13346_v57 = vld [vmem:[#allocation52_spill] sm:$0xff]  ;;  %vm13350_vm3 = vcmask 1041408  }
 0x7b4   : > { %v11915_v13 = vsel %vm13326_vm14, %v2687_v50, %v5188_v0  ;;  %v3477_v54 = vrot.slane %v3476_v60, 4  ;;  %v3489_v56 = vadd.f32 %v3488_v43, %v3487_v53  ;;  %v2646_v43 = vsel %vm13339_vm9, %v2594_v55, 0.0  ;;  %vm13348_vm14 = vmmov %vm13345_vm10  ;;  %v13349_v55 = vld [vmem:[#allocation57_spill] sm:$0xff] }
 0x7b5   : > { %v3496_v15 = vadd.f32 %v3495_v41, %v3494_v39  ;;  %v2633_v41 = vrot.slane %v2632_v27, 4  ;;  %vm13352_vm1 = vmmov %vm13350_vm3 }
 0x7b6   : > { %v3478_v47 = vadd.f32 %v3477_v54, %v3476_v60 }
 0x7b8   : > { %v3479_v25 = vrot.slane %v3478_v47, 2  ;;  %v4193_v29 = vpop.permute.xlu0 %4192 }
 0x7b9   : > { %v4230_v36 = vmul.f32 %v4193_v29, %v13254_v38 }
 0x7ba   : > { %v3480_v10 = vadd.f32 %v3479_v25, %v3478_v47  ;;  %v13337_v25 = vld [vmem:[#allocation32_spill] sm:$0xff] }
 0x7bb   : > { %v4306_v52 = vsel %vm13329_vm5, %v4230_v36, 0.0  ;;  %vm13354_vm5 = vcmask 1042432  }
 0x7bc   : > { %v3481_v16 = vrot.slane %v3480_v10, 1  ;;  %v4307_v7 = vrot.slane %v4306_v52, 4 }
 0x7be   : > { %v3482_v3 = vadd.f32 %v3481_v16, %v3480_v10  ;;  %v4308_v51 = vadd.f32 %v4307_v7, %v4306_v52 }
 0x7bf   : > { %v5004_v30 = vpop.permute.xlu1 %5003 }
 0x7c0   : > { %v5219_v2 = vsel %vm13330_vm2, %v3489_v56, %v3482_v3  ;;  %v4309_v23 = vrot.slane %v4308_v51, 2  ;;  %v5045_v35 = vmul.f32 %v5004_v30, %v13221_v14  ;;  %v4999_v0 = vpop.permute.xlu0 %4998  ;;  %v2647_v56 = vrot.slane %v2646_v43, 4  ;;  %vm13356_vm2 = vmmov %vm13354_vm5 }
 0x7c1   : > { %v11929_v28 = vsel %vm13331_vm13, %v3496_v15, %v5219_v2  ;;  %v5044_v34 = vmul.f32 %v4999_v0, %v13240_v4  ;;  %v13335_v4 = vld [vmem:[#allocation55_spill] sm:$0xff]  ;;  %v2634_v2 = vadd.f32 %v2633_v41, %v2632_v27  ;;  %vm13357_vm13 = vmmov %vm13336_vm6 }
 0x7c2   : > { %v4310_v18 = vadd.f32 %v4309_v23, %v4308_v51  ;;  %v5115_v9 = vsel %vm13332_vm12, %v5045_v35, 0.0  ;;  %v2593_v60 = vmul.f32 %v13335_v4, %v13256_v33  ;;  %v2648_v0 = vadd.f32 %v2647_v56, %v2646_v43  ;;  %vm13358_vm12 = vmmov %vm13336_vm6 }
 0x7c3   : > { %v5116_v12 = vrot.slane %v5115_v9, 4  ;;  %v5108_v17 = vsel %vm13333_vm11, %v5044_v34, 0.0  ;;  %v11962_v34 = vpop.permute.xlu2 %4212  ;;  %vm13359_vm11 = vmmov %vm13336_vm6 }
 0x7c4   : > { %v4311_v61 = vrot.slane %v4310_v18, 1  ;;  %v5109_v50 = vrot.slane %v5108_v17, 4  ;;  %v2639_v36 = vsel %vm13338_vm7, %v2593_v60, 0.0  ;;  %v2649_v4 = vrot.slane %v2648_v0, 2  ;;  %vm13364_vm7 = vmmov %vm13345_vm10 }
 0x7c5   : > { %v5117_v19 = vadd.f32 %v5116_v12, %v5115_v9  ;;  %v2640_v22 = vrot.slane %v2639_v36, 4 }
 0x7c6   : > { %v4312_v26 = vadd.f32 %v4311_v61, %v4310_v18  ;;  %v5110_v63 = vadd.f32 %v5109_v50, %v5108_v17  ;;  %v2635_v61 = vrot.slane %v2634_v2, 2  ;;  %v13343_v50 = vld [vmem:[#allocation38_spill] sm:$0xff] }
 0x7c7   : > { %v5118_v5 = vrot.slane %v5117_v19, 2  ;;  %v11941_v20 = vpop.permute.xlu1 %4157  ;;  %v2641_v35 = vadd.f32 %v2640_v22, %v2639_v36  ;;  %v4231_v36 = vmul.f32 %v11573_v62, %v11896_v1  ;;  %v13355_v22 = vld [vmem:[#allocation53_spill] sm:$0xff] }
 0x7c8   : > { %v11939_v14 = vsel %vm13334_vm0, %v4312_v26, %v11690_v42  ;;  %v5111_v54 = vrot.slane %v5110_v63, 2  ;;  %v11947_v53 = vpop.permute.xlu0 %3386  ;;  %v2595_v42 = vmul.f32 %v13337_v25, %v13289_v59  ;;  %v13344_v26 = vrot.slane %v13309_v45, 4  ;;  %vm13360_vm0 = vmmov %vm13336_vm6 }
 0x7c9   : > { %v5119_v47 = vadd.f32 %v5118_v5, %v5117_v19  ;;  %v2642_v5 = vrot.slane %v2641_v35, 2  ;;  %v2636_v43 = vadd.f32 %v2635_v61, %v2634_v2  ;;  %v4313_v62 = vsel %vm13357_vm13, %v4231_v36, 0.0  ;;  %vm13365_vm9 = vmmov %vm13360_vm0 }
 0x7ca   : > { %v5112_v39 = vadd.f32 %v5111_v54, %v5110_v63  ;;  %v2653_v7 = vsel %vm13340_vm15, %v2595_v42, 0.0  ;;  %v1853_v19 = vsel %vm13345_vm10, %v13344_v26, %v13343_v50  ;;  %v13347_v63 = vrot.slane %v13309_v45, 5  ;;  %v13353_v42 = vld [vmem:[#allocation60_spill] sm:$0xff]  ;;  %vm13367_vm15 = vmmov %vm13352_vm1 }
 0x7cb   : > { %v5120_v29 = vrot.slane %v5119_v47, 1  ;;  %v2654_v30 = vrot.slane %v2653_v7, 4  ;;  %v1869_v54 = vsel %vm13350_vm3, %v1853_v19, %v13349_v55  ;;  %v2643_v56 = vadd.f32 %v2642_v5, %v2641_v35  ;;  %vm13371_vm10 = vmmov %vm13356_vm2 }
 0x7cc   : > { %v5113_v10 = vrot.slane %v5112_v39, 1  ;;  %v2637_v2 = vrot.slane %v2636_v43, 1  ;;  %v4223_v35 = vmul.f32 %v11941_v20, %v13237_v48  ;;  %v4314_v26 = vrot.slane %v4313_v62, 4  ;;  %vm13373_vm3 = vmmov %vm13360_vm0 }
 0x7cd   : > { %v5121_v52 = vadd.f32 %v5120_v29, %v5119_v47  ;;  %v2655_v12 = vadd.f32 %v2654_v30, %v2653_v7  ;;  %v13351_v47 = vld [vmem:[#allocation56_spill] sm:$0xff]  ;;  %v11978_v29 = vsel %vm13354_vm5, %v1869_v54, %v13353_v42  ;;  %vm13361_vm6 = vcmask 1042434   ;;  %v13366_v42 = vld [vmem:[#allocation47_spill] sm:$0xff]  ;;  %vm13377_vm13 = vmmov %vm13360_vm0 }
 0x7ce   : > { %v5114_v16 = vadd.f32 %v5113_v10, %v5112_v39  ;;  %v3415_v10 = vmul.f32 %v11923_v31, %v11896_v1  ;;  %vm13375_vm5 = vcmask 1047559  }
 0x7cf   : > { %v2656_v41 = vrot.slane %v2655_v12, 2 }
 0x7d0   : > { %v11955_v3 = vpop.permute.xlu1 %5008  ;;  %v11958_v51 = vsel %vm13341_vm4, %v5121_v52, %v5114_v16  ;;  %v4232_v52 = vmul.f32 %v11670_v46, %v11978_v29  ;;  %v3497_v31 = vsel %vm13358_vm12, %v3415_v10, 0.0  ;;  %v4178_v46 = vpop.permute.xlu2 %4177  ;;  %vm13368_vm4 = vmmov %vm13360_vm0 }
 0x7d1   : > { %v4969_v15 = vpop.permute.xlu0 %4968  ;;  %v4227_v20 = vmul.f32 %v4178_v46, %v13289_v59  ;;  %vm13378_vm12 = vmmov %vm13360_vm0 }
 0x7d2   : > { %v5038_v23 = vmul.f32 %v4969_v15, %v13224_v40  ;;  %v1854_v40 = vsel %vm13348_vm14, %v13347_v63, %v13346_v57  ;;  %v2650_v15 = vadd.f32 %v2649_v4, %v2648_v0  ;;  %v13362_v63 = vld [vmem:[#allocation51_spill] sm:$0xff]  ;;  %v2638_v4 = vadd.f32 %v2637_v2, %v2636_v43 }
 0x7d3   : > { %v1870_v27 = vsel %vm13352_vm1, %v1854_v40, %v13351_v47  ;;  %v13363_v40 = vrot.slane %v13309_v45, 6  ;;  %v4285_v43 = vsel %vm13368_vm4, %v4227_v20, 0.0  ;;  %vm13372_vm14 = vcmask 1045509  }
 0x7d4   : > { %v5066_v18 = vsel %vm13342_vm8, %v5038_v23, 0.0  ;;  %v11988_v7 = vsel %vm13356_vm2, %v1870_v27, %v13355_v22  ;;  %v2651_v50 = vrot.slane %v2650_v15, 1  ;;  %vm13369_vm8 = vcmask 1044484   ;;  %vm13376_vm2 = vmmov %vm13360_vm0 }
 0x7d5   : > { %v5067_v9 = vrot.slane %v5066_v18, 4  ;;  %v4233_v23 = vmul.f32 %v11765_v11, %v11988_v7  ;;  %v3498_v11 = vrot.slane %v3497_v31, 4  ;;  %v1855_v5 = vsel %vm13364_vm7, %v13363_v40, %v13362_v63  ;;  %vm13389_vm4 = vmmov %vm13376_vm2 }
 0x7d6   : > { %v2652_v47 = vadd.f32 %v2651_v50, %v2650_v15  ;;  %v1871_v36 = vsel %vm13367_vm15, %v1855_v5, %v13366_v42  ;;  %v5183_v15 = vsel %vm13369_vm8, %v2638_v4, %v11675_v21  ;;  %vm13374_vm1 = vcmask 1046534   ;;  %vm13390_vm8 = vmmov %vm13376_vm2 }
 0x7d7   : > { %v5068_v17 = vadd.f32 %v5067_v9, %v5066_v18  ;;  %v2657_v18 = vadd.f32 %v2656_v41, %v2655_v12  ;;  %v4320_v9 = vsel %vm13359_vm11, %v4232_v52, 0.0  ;;  %v4327_v19 = vsel %vm13360_vm0, %v4233_v23, 0.0  ;;  %v13370_v23 = vld [vmem:[#allocation63_spill] sm:$0xff]  ;;  %vm13379_vm11 = vmmov %vm13360_vm0 }
 0x7d8   : > { %v4163_v60 = vpop.permute.xlu1 %4162  ;;  %v4321_v55 = vrot.slane %v4320_v9, 4  ;;  %v4328_v27 = vrot.slane %v4327_v19, 4  ;;  %v4315_v41 = vadd.f32 %v4314_v26, %v4313_v62  ;;  %v3499_v52 = vadd.f32 %v3498_v11, %v3497_v31  ;;  %vm13382_vm0 = vmmov %vm13364_vm7 }
 0x7d9   : > { %v5069_v39 = vrot.slane %v5068_v17, 2  ;;  %v3392_v25 = vpop.permute.xlu0 %3391  ;;  %v2658_v54 = vrot.slane %v2657_v18, 1  ;;  %v4224_v22 = vmul.f32 %v4163_v60, %v13247_v58  ;;  %vm13385_vm7 = vmmov %vm13367_vm15 }
 0x7da   : > { %v3417_v62 = vmul.f32 %v3392_v25, %v11988_v7  ;;  %v4316_v60 = vrot.slane %v4315_v41, 2  ;;  %vm13388_vm15 = vmmov %vm13376_vm2 }
 0x7db   : > { %v5070_v16 = vadd.f32 %v5069_v39, %v5068_v17  ;;  %v2644_v17 = vrot.slane %v2643_v56, 1  ;;  %v4257_v39 = vsel %vm13365_vm9, %v4223_v35, 0.0  ;;  %v2659_v2 = vadd.f32 %v2658_v54, %v2657_v18  ;;  %vm13387_vm9 = vmmov %vm13371_vm10 }
 0x7dc   : > { %v3500_v18 = vrot.slane %v3499_v52, 2  ;;  %v4264_v11 = vsel %vm13376_vm2, %v4224_v22, 0.0  ;;  %v3511_v4 = vsel %vm13378_vm12, %v3417_v62, 0.0  ;;  %vm13398_vm12 = vcmask 1045509  }
 0x7dd   : > { %v5071_v30 = vrot.slane %v5070_v16, 1  ;;  %v2645_v10 = vadd.f32 %v2644_v17, %v2643_v56  ;;  %v4286_v17 = vrot.slane %v4285_v43, 4  ;;  %v4265_v54 = vrot.slane %v4264_v11, 4 }
 0x7df   : > { %v5072_v61 = vadd.f32 %v5071_v30, %v5070_v16  ;;  %v4322_v16 = vadd.f32 %v4321_v55, %v4320_v9  ;;  %v12022_v30 = vsel %vm13371_vm10, %v1871_v36, %v13370_v23  ;;  %v5184_v46 = vsel %vm13372_vm14, %v2645_v10, %v5183_v15  ;;  %vm13391_vm10 = vmmov %vm13376_vm2 }
 0x7e0   : > { %v5185_v9 = vsel %vm13374_vm1, %v2652_v47, %v5184_v46  ;;  %v4234_v55 = vmul.f32 %v11962_v34, %v12022_v30  ;;  %v4287_v20 = vadd.f32 %v4286_v17, %v4285_v43  ;;  %v13381_v46 = vrot.slane %v13309_v45, 7  ;;  %v13384_v45 = vld [vmem:[#allocation59_spill] sm:$0xff]  ;;  %vm13392_vm14 = vmmov %vm13376_vm2 }
 0x7e1   : > { %v11997_v0 = vpop.permute.xlu1 %5013  ;;  %v12002_v57 = vsel %vm13361_vm6, %v5072_v61, %v11571_v32  ;;  %v12004_v12 = vpop.permute.xlu0 %4973  ;;  %v3416_v32 = vmul.f32 %v11947_v53, %v11978_v29  ;;  %v4258_v53 = vrot.slane %v4257_v39, 4  ;;  %v4329_v61 = vadd.f32 %v4328_v27, %v4327_v19  ;;  %vm13383_vm6 = vmmov %vm13376_vm2 }
 0x7e2   : > { %v12030_v35 = vsel %vm13375_vm5, %v2659_v2, %v5185_v9  ;;  %v4323_v26 = vrot.slane %v4322_v16, 2  ;;  %v4317_v27 = vadd.f32 %v4316_v60, %v4315_v41  ;;  %v4334_v34 = vsel %vm13383_vm6, %v4234_v55, 0.0  ;;  %v5029_v60 = vpop.permute.xlu2 %5028  ;;  %vm13395_vm5 = vmmov %vm13376_vm2 }
 0x7e3   : > { %v3504_v56 = vsel %vm13373_vm3, %v3416_v32, 0.0  ;;  %v4259_v63 = vadd.f32 %v4258_v53, %v4257_v39  ;;  %v4330_v5 = vrot.slane %v4329_v61, 2  ;;  %v3501_v32 = vadd.f32 %v3500_v18, %v3499_v52  ;;  %v13380_v53 = vld [vmem:[#allocation41_spill] sm:$0xff]  ;;  %vm13393_vm3 = vmmov %vm13376_vm2 }
 0x7e4   : > { %v3505_v40 = vrot.slane %v3504_v56, 4  ;;  %v4324_v42 = vadd.f32 %v4323_v26, %v4322_v16  ;;  %v3512_v39 = vrot.slane %v3511_v4, 4  ;;  %v1856_v62 = vsel %vm13382_vm0, %v13381_v46, %v13380_v53  ;;  %vm13401_vm6 = vmmov %vm13398_vm12 }
 0x7e5   : > { %v4260_v10 = vrot.slane %v4259_v63, 2  ;;  %v4331_v15 = vadd.f32 %v4330_v5, %v4329_v61  ;;  %v4288_v43 = vrot.slane %v4287_v20, 2  ;;  %v4318_v41 = vrot.slane %v4317_v27, 1 }
 0x7e6   : > { %v3506_v22 = vadd.f32 %v3505_v40, %v3504_v56  ;;  %v3502_v52 = vrot.slane %v3501_v32, 1  ;;  %v4325_v16 = vrot.slane %v4324_v42, 1  ;;  %v1872_v18 = vsel %vm13385_vm7, %v1856_v62, %v13384_v45 }
 0x7e7   : > { %v4261_v17 = vadd.f32 %v4260_v10, %v4259_v63  ;;  %v4332_v26 = vrot.slane %v4331_v15, 1  ;;  %v4289_v55 = vadd.f32 %v4288_v43, %v4287_v20  ;;  %v12055_v63 = vadd.f32 %v4318_v41, %v4317_v27 }
 0x7e8   : > { %v3507_v61 = vrot.slane %v3506_v22, 2  ;;  %v5047_v20 = vmul.f32 %v11997_v0, %v11896_v1  ;;  %vm13394_vm1 = vcmask 1043459   ;;  %vm13396_vm2 = vcmask 1044484  }
 0x7e9   : > { %v4168_v31 = vpop.permute.xlu1 %4167  ;;  %v3397_v50 = vpop.permute.xlu0 %3396  ;;  %v4290_v62 = vrot.slane %v4289_v55, 1  ;;  %vm13400_vm0 = vmmov %vm13394_vm1 }
 0x7ea   : > { %v4225_v21 = vmul.f32 %v4168_v31, %v13256_v33  ;;  %v3418_v19 = vmul.f32 %v3397_v50, %v12022_v30  ;;  %v4266_v31 = vadd.f32 %v4265_v54, %v4264_v11  ;;  %v3513_v50 = vadd.f32 %v3512_v39, %v3511_v4  ;;  %v13386_v11 = vld [vmem:[#allocation62_spill] sm:$0xff]  ;;  %vm13402_vm7 = vmmov %vm13396_vm2 }
 0x7eb   : > { %v12052_v5 = vsel %vm13387_vm9, %v1872_v18, %v13386_v11  ;;  %v5050_v54 = vmul.f32 %v5029_v60, %v12022_v30  ;;  %v4262_v4 = vrot.slane %v4261_v17, 1  ;;  %v3508_v10 = vadd.f32 %v3507_v61, %v3506_v22 }
 0x7ec   : > { %v4271_v25 = vsel %vm13377_vm13, %v4225_v21, 0.0  ;;  %v3518_v47 = vsel %vm13379_vm11, %v3418_v19, 0.0  ;;  %v5046_v21 = vmul.f32 %v11955_v3, %v13254_v38  ;;  %v4335_v19 = vrot.slane %v4334_v34, 4  ;;  %vm13397_vm13 = vmmov %vm13394_vm1 }
 0x7ed   : > { %v4272_v36 = vrot.slane %v4271_v25, 4  ;;  %v3519_v23 = vrot.slane %v3518_v47, 4  ;;  %v12059_v38 = vadd.f32 %v4325_v16, %v4324_v42  ;;  %v4263_v16 = vadd.f32 %v4262_v4, %v4261_v17  ;;  %vm13399_vm11 = vmmov %vm13396_vm2 }
 0x7ee   : > { %v5122_v39 = vsel %vm13388_vm15, %v5046_v21, 0.0  ;;  %v12064_v53 = vadd.f32 %v4335_v19, %v4334_v34  ;;  %v3509_v60 = vrot.slane %v3508_v10, 1  ;;  %v5129_v0 = vsel %vm13391_vm10, %v5047_v20, 0.0 }
 0x7ef   : > { %v4273_v56 = vadd.f32 %v4272_v36, %v4271_v25  ;;  %v3520_v40 = vadd.f32 %v3519_v23, %v3518_v47  ;;  %v4267_v25 = vrot.slane %v4266_v31, 2  ;;  %v12057_v36 = vadd.f32 %v3502_v52, %v3501_v32 }
 0x7f0   : > { %v3514_v47 = vrot.slane %v3513_v50, 2  ;;  %v12062_v23 = vadd.f32 %v4332_v26, %v4331_v15  ;;  %v12069_v32 = vsel %vm13389_vm4, %v5050_v54, 0.0  ;;  %v5123_v41 = vrot.slane %v5122_v39, 4  ;;  %vm13405_vm4 = vmmov %vm13401_vm6 }
 0x7f1   : > { %v12044_v9 = vpop.permute.xlu0 %4978  ;;  %v4274_v3 = vrot.slane %v4273_v56, 2  ;;  %v3521_v46 = vrot.slane %v3520_v40, 2  ;;  %v4268_v42 = vadd.f32 %v4267_v25, %v4266_v31  ;;  %v4291_v26 = vadd.f32 %v4290_v62, %v4289_v55 }
 0x7f2   : > { %v5019_v2 = vpop.permute.xlu1 %5018  ;;  %v3515_v61 = vadd.f32 %v3514_v47, %v3513_v50  ;;  %v12078_v11 = vadd.f32 %v5123_v41, %v5122_v39  ;;  %v5151_v50 = vrot.slane %v12069_v32, 4  ;;  %v3510_v47 = vadd.f32 %v3509_v60, %v3508_v10 }
 0x7f3   : > { %v4275_v52 = vadd.f32 %v4274_v3, %v4273_v56  ;;  %v5048_v15 = vmul.f32 %v5019_v2, %v11978_v29  ;;  %v3522_v21 = vadd.f32 %v3521_v46, %v3520_v40  ;;  %v4269_v19 = vrot.slane %v4268_v42, 1 }
 0x7f4   : > { %v3516_v25 = vrot.slane %v3515_v61, 1  ;;  %v5130_v3 = vrot.slane %v5129_v0, 4  ;;  %v5250_v40 = vsel %vm13394_vm1, %v4263_v16, %v11921_v6  ;;  %v5125_v41 = vrot.slane %v12078_v11, 2  ;;  %vm13409_vm1 = vmmov %vm13393_vm3 }
 0x7f5   : > { %v4276_v2 = vrot.slane %v4275_v52, 1  ;;  %v5136_v17 = vsel %vm13393_vm3, %v5048_v15, 0.0  ;;  %v3523_v20 = vrot.slane %v3522_v21, 1  ;;  %v5039_v15 = vmul.f32 %v12004_v12, %v13237_v48 }
 0x7f6   : > { %v5137_v62 = vrot.slane %v5136_v17, 4  ;;  %v5221_v48 = vsel %vm13397_vm13, %v12057_v36, %v11929_v28  ;;  %vm13403_vm9 = vcmask 1046534   ;;  %vm13407_vm10 = vcmask 1047559   ;;  %vm13413_vm13 = vmmov %vm13409_vm1 }
 0x7f7   : > { %v3524_v16 = vadd.f32 %v3523_v20, %v3522_v21  ;;  %vm13404_vm15 = vmmov %vm13403_vm9 }
 0x7fa   : > { %v4173_v27 = vpop.permute.xlu1 %4172  ;;  %v3402_v22 = vpop.permute.xlu0 %3401 }
 0x7fb   : > { %v4226_v43 = vmul.f32 %v4173_v27, %v13269_v44  ;;  %v3419_v34 = vmul.f32 %v3402_v22, %v12052_v5  ;;  %v4270_v27 = vadd.f32 %v4269_v19, %v4268_v42  ;;  %v5040_v42 = vmul.f32 %v12044_v9, %v13247_v58 }
 0x7fd   : > { %v4278_v1 = vsel %vm13390_vm8, %v4226_v43, 0.0  ;;  %v3525_v31 = vsel %vm13392_vm14, %v3419_v34, 0.0  ;;  %v4277_v34 = vadd.f32 %v4276_v2, %v4275_v52  ;;  %v5251_v18 = vsel %vm13396_vm2, %v4270_v27, %v5250_v40  ;;  %vm13406_vm8 = vmmov %vm13393_vm3 }
 0x7fe   : > { %v4279_v45 = vrot.slane %v4278_v1, 4  ;;  %v3526_v56 = vrot.slane %v3525_v31, 4  ;;  %vm13408_vm14 = vmmov %vm13407_vm10  ;;  %v5080_v40 = vsel %vm13393_vm3, %v5040_v42, 0.0 }
 0x7ff   : > { %v5252_v52 = vsel %vm13398_vm12, %v4277_v34, %v5251_v18  ;;  %vm13411_vm2 = vmmov %vm13409_vm1 }
 0x800   : > { %v4280_v54 = vadd.f32 %v4279_v45, %v4278_v1  ;;  %v3527_v4 = vadd.f32 %v3526_v56, %v3525_v31  ;;  %v3517_v45 = vadd.f32 %v3516_v25, %v3515_v61  ;;  %v5131_v31 = vadd.f32 %v5130_v3, %v5129_v0  ;;  %vm13414_vm12 = vmmov %vm13403_vm9 }
 0x801   : > { %v5138_v56 = vadd.f32 %v5137_v62, %v5136_v17  ;;  %v5222_v61 = vsel %vm13399_vm11, %v3510_v47, %v5221_v48  ;;  %v5257_v0 = vsel %vm13400_vm0, %v12055_v63, %v11939_v14  ;;  %v5073_v25 = vsel %vm13406_vm8, %v5039_v15, 0.0  ;;  %vm13416_vm0 = vmmov %vm13407_vm10 }
 0x802   : > { %v4281_v46 = vrot.slane %v4280_v54, 2  ;;  %v5024_v55 = vpop.permute.xlu1 %5023  ;;  %v3528_v39 = vrot.slane %v3527_v4, 2  ;;  %v4984_v22 = vpop.permute.xlu0 %4983  ;;  %v5223_v21 = vsel %vm13401_vm6, %v3517_v45, %v5222_v61  ;;  %v5258_v2 = vsel %vm13402_vm7, %v12059_v38, %v5257_v0  ;;  %vm13418_vm7 = vmmov %vm13409_vm1 }
 0x803   : > { %v5049_v43 = vmul.f32 %v5024_v55, %v11988_v7  ;;  %v5041_v9 = vmul.f32 %v4984_v22, %v13256_v33  ;;  %v5224_v36 = vsel %vm13404_vm15, %v3524_v16, %v5223_v21  ;;  %v5259_v18 = vsel %vm13405_vm4, %v12062_v23, %v5258_v2  ;;  %vm13420_vm15 = vmmov %vm13405_vm4 }
 0x804   : > { %v4282_v1 = vadd.f32 %v4281_v46, %v4280_v54  ;;  %v3529_v6 = vadd.f32 %v3528_v39, %v3527_v4  ;;  %v5152_v38 = vadd.f32 %v5151_v50, %v12069_v32  ;;  %v5132_v4 = vrot.slane %v5131_v31, 2  ;;  %vm13421_vm4 = vmmov %vm13414_vm12 }
 0x805   : > { %v5143_v10 = vsel %vm13395_vm5, %v5049_v43, 0.0  ;;  %v5139_v23 = vrot.slane %v5138_v56, 2  ;;  %v5087_v20 = vsel %vm13409_vm1, %v5041_v9, 0.0  ;;  %vm13410_vm5 = vmmov %vm13409_vm1  ;;  %v5126_v32 = vadd.f32 %v5125_v41, %v12078_v11 }
 0x806   : > { %v4283_v60 = vrot.slane %v4282_v1, 1  ;;  %v5144_v19 = vrot.slane %v5143_v10, 4  ;;  %v3530_v55 = vrot.slane %v3529_v6, 1  ;;  %v5081_v50 = vrot.slane %v5080_v40, 4  ;;  %vm13422_vm8 = vmmov %vm13416_vm0 }
 0x807   : > { %v13412_v39 = vrot.slane %v12064_v53, 2  ;;  %v5153_v22 = vrot.slane %v5152_v38, 2  ;;  %v5133_v15 = vadd.f32 %v5132_v4, %v5131_v31  ;;  %v5088_v34 = vrot.slane %v5087_v20, 4  ;;  %vm13425_vm3 = vmmov %vm13420_vm15 }
 0x808   : > { %v4284_v12 = vadd.f32 %v4283_v60, %v4282_v1  ;;  %v3531_v58 = vadd.f32 %v3530_v55, %v3529_v6  ;;  %v5145_v17 = vadd.f32 %v5144_v19, %v5143_v10  ;;  %v5140_v1 = vadd.f32 %v5139_v23, %v5138_v56  ;;  %vm13426_vm1 = vmmov %vm13421_vm4 }
 0x809   : > { %v4338_v43 = vadd.f32 %v13412_v39, %v12064_v53  ;;  %v5127_v60 = vrot.slane %v5126_v32, 1  ;;  %v5082_v19 = vadd.f32 %v5081_v50, %v5080_v40  ;;  %v5154_v48 = vadd.f32 %v5153_v22, %v5152_v38 }
 0x80a   : > { %v4989_v54 = vpop.permute.xlu1 %4988  ;;  %v5253_v28 = vsel %vm13403_vm9, %v4284_v12, %v5252_v52  ;;  %v5225_v3 = vsel %vm13408_vm14, %v3531_v58, %v5224_v36  ;;  %v5146_v46 = vrot.slane %v5145_v17, 2  ;;  %v5134_v12 = vrot.slane %v5133_v15, 1 }
 0x80b   : > { %v5042_v14 = vmul.f32 %v4989_v54, %v13269_v44  ;;  %v5254_v33 = vsel %vm13407_vm10, %v4291_v26, %v5253_v28  ;;  %v4218_v63 = vpop.permute.xlu0 %4217  ;;  %5228 = vrot.lane.b32.xlu0 %v5225_v3, %s7350_s15  ;;  %v5074_v44 = vrot.slane %v5073_v25, 4  ;;  %v4339_v41 = vrot.slane %v4338_v43, 1 }
 0x80c   : > { %5262 = vrot.lane.b32.xlu1 %v5254_v33, %s7351_s2  ;;  %v4235_v47 = vmul.f32 %v4218_v63, %v12052_v5  ;;  %v5147_v16 = vadd.f32 %v5146_v46, %v5145_v17  ;;  %v5089_v52 = vadd.f32 %v5088_v34, %v5087_v20  ;;  %v5141_v61 = vrot.slane %v5140_v1, 1 }
 0x80d   : > { %v5094_v26 = vsel %vm13410_vm5, %v5042_v14, 0.0  ;;  %v5075_v10 = vadd.f32 %v5074_v44, %v5073_v25  ;;  %v5128_v21 = vadd.f32 %v5127_v60, %v5126_v32  ;;  %v5083_v2 = vrot.slane %v5082_v19, 2  ;;  %vm13427_vm5 = vmmov %vm13416_vm0 }
 0x80e   : > { %v4341_v27 = vsel %vm13411_vm2, %v4235_v47, 0.0  ;;  %v5095_v45 = vrot.slane %v5094_v26, 4  ;;  %v5148_v58 = vrot.slane %v5147_v16, 1  ;;  %v4340_v54 = vadd.f32 %v4339_v41, %v4338_v43 }
 0x80f   : > { %v4342_v62 = vrot.slane %v4341_v27, 4  ;;  %v5076_v56 = vrot.slane %v5075_v10, 2  ;;  %v5135_v28 = vadd.f32 %v5134_v12, %v5133_v15  ;;  %v5090_v36 = vrot.slane %v5089_v52, 2 }
 0x810   : > { %v5096_v53 = vadd.f32 %v5095_v45, %v5094_v26  ;;  %v5155_v14 = vrot.slane %v5154_v48, 1  ;;  %v5142_v33 = vadd.f32 %v5141_v61, %v5140_v1  ;;  %v5149_v4 = vadd.f32 %v5148_v58, %v5147_v16 }
 0x811   : > { %v4343_v6 = vadd.f32 %v4342_v62, %v4341_v27  ;;  %v5077_v38 = vadd.f32 %v5076_v56, %v5075_v10  ;;  %v5260_v23 = vsel %vm13414_vm12, %v4340_v54, %v5259_v18  ;;  %vm13415_vm11 = vcmask 1042434   ;;  %vm13429_vm12 = vmmov %vm13411_vm2 }
 0x812   : > { %v5097_v63 = vrot.slane %v5096_v53, 2  ;;  %v5292_v20 = vsel %vm13415_vm11, %v5128_v21, %v11958_v51  ;;  %v5084_v44 = vadd.f32 %v5083_v2, %v5082_v19  ;;  %vm13417_vm6 = vcmask 1043459   ;;  %vm13430_vm11 = vmmov %vm13411_vm2 }
 0x813   : > { %v5034_v42 = vpop.permute.xlu1 %5033  ;;  %v4344_v55 = vrot.slane %v4343_v6, 2  ;;  %v5293_v27 = vsel %vm13417_vm6, %v5135_v28, %v5292_v20  ;;  %v5091_v32 = vadd.f32 %v5090_v36, %v5089_v52  ;;  %vm13419_vm9 = vcmask 1044484   ;;  %vm13423_vm10 = vmmov %vm13417_vm6 }
 0x814   : > { %v5051_v11 = vmul.f32 %v5034_v42, %v12052_v5  ;;  %v5098_v62 = vadd.f32 %v5097_v63, %v5096_v53  ;;  %v5294_v43 = vsel %vm13419_vm9, %v5142_v33, %v5293_v27  ;;  %v5078_v18 = vrot.slane %v5077_v38, 1  ;;  %vm13424_vm14 = vmmov %vm13419_vm9 }
 0x815   : > { %v4345_v0 = vadd.f32 %v4344_v55, %v4343_v6  ;;  %v5295_v51 = vsel %vm13420_vm15, %v5149_v4, %v5294_v43  ;;  %v5156_v34 = vadd.f32 %v5155_v14, %v5154_v48  ;;  %v5092_v1 = vrot.slane %v5091_v32, 1  ;;  %vm13432_vm6 = vmmov %vm13425_vm3  ;;  %v5227_v43 = vpop.permute.xlu2 %5226 }
 0x816   : > { %v5157_v31 = vsel %vm13413_vm13, %v5051_v11, 0.0  ;;  %v5099_v10 = vrot.slane %v5098_v62, 1  ;;  %v5079_v42 = vadd.f32 %v5078_v18, %v5077_v38  ;;  %v2600_v58 = vmul.f32 %v11429_v49, %v11978_v29  ;;  %vm13428_vm13 = vmmov %vm13411_vm2 }
 0x817   : > { %v5158_v9 = vrot.slane %v5157_v31, 4  ;;  %v4346_v17 = vrot.slane %v4345_v0, 1  ;;  %v5296_v16 = vsel %vm13421_vm4, %v5156_v34, %v5295_v51  ;;  %v5093_v11 = vadd.f32 %v5092_v1, %v5091_v32 }
 0x818   : > { %v5100_v12 = vadd.f32 %v5099_v10, %v5098_v62  ;;  %v5286_v48 = vsel %vm13423_vm10, %v5079_v42, %v12002_v57  ;;  %v2601_v57 = vmul.f32 %v11247_v8, %v11988_v7  ;;  %v2603_v21 = vmul.f32 %v11496_v37, %v12052_v5 }
 0x819   : > { %v5159_v25 = vadd.f32 %v5158_v9, %v5157_v31  ;;  %v4347_v3 = vadd.f32 %v4346_v17, %v4345_v0  ;;  %v2602_v9 = vmul.f32 %v11911_v24, %v12022_v30  ;;  %v2688_v2 = vsel %vm13411_vm2, %v2600_v58, 0.0 }
 0x81a   : > { %v2695_v54 = vsel %vm13429_vm12, %v2601_v57, 0.0  ;;  %v2689_v28 = vrot.slane %v2688_v2, 4  ;;  %v2709_v36 = vsel %vm13430_vm11, %v2603_v21, 0.0  ;;  %vm13435_vm15 = vcmask 261120   ;;  %v6605_v57 = vld [vmem:[%s7509_s25 + $0xe8] sm:$0xf] }
 0x81b   : > { %v5160_v40 = vrot.slane %v5159_v25, 2  ;;  %v5261_v26 = vsel %vm13416_vm0, %v4347_v3, %v5260_v23  ;;  %v2702_v17 = vsel %vm13428_vm13, %v2602_v9, 0.0  ;;  %v2696_v49 = vrot.slane %v2695_v54, 4  ;;  %vm13431_vm0 = vmmov %vm13419_vm9  ;;  %v6599_v9 = vld [vmem:[%s7509_s25 + $0xf0] sm:$0xf0] }
 0x81c   : > { %v4994_v47 = vpop.permute.xlu0 %4993  ;;  %5264 = vrot.lane.b32.xlu2 %v5261_v26, %s7351_s2  ;;  %v2710_v29 = vrot.slane %v2709_v36, 4  ;;  %v2690_v14 = vadd.f32 %v2689_v28, %v2688_v2  ;;  %vm13434_vm9 = vmmov %vm13427_vm5  ;;  %vm13436_vm4 = vcmask 523264   ;;  %v6816_v21 = vld [vmem:[%s7509_s25 + $0xf4] sm:$0xf0]  ;;  %v6607_v28 = vld [vmem:[%s7509_s25 + $0xf8] sm:$0xf0] }
 0x81d   : > { %v5043_v46 = vmul.f32 %v4994_v47, %v13289_v59  ;;  %v5161_v50 = vadd.f32 %v5160_v40, %v5159_v25  ;;  %v5085_v59 = vrot.slane %v5084_v44, 1  ;;  %v2703_v25 = vrot.slane %v2702_v17, 4  ;;  %vm13438_vm10 = vmmov %vm13435_vm15 }
 0x81e   : > { %v2697_v30 = vadd.f32 %v2696_v49, %v2695_v54  ;;  %v2711_v33 = vadd.f32 %v2710_v29, %v2709_v36  ;;  %v2691_v8 = vrot.slane %v2690_v14, 2  ;;  %v6814_v54 = vld [vmem:[%s7509_s25 + $0xec] sm:$0xf]  ;;  %v6811_v49 = vld [vmem:[%s7509_s25 + $0xcc] sm:$0xf0] }
 0x81f   : > { %v5101_v39 = vsel %vm13418_vm7, %v5043_v46, 0.0  ;;  %v5162_v22 = vrot.slane %v5161_v50, 1  ;;  %v5086_v55 = vadd.f32 %v5085_v59, %v5084_v44  ;;  %v2704_v24 = vadd.f32 %v2703_v25, %v2702_v17  ;;  %vm13433_vm7 = vmmov %vm13426_vm1  ;;  %v6581_v25 = vld [vmem:[%s7509_s25 + $0xc0] sm:$0xf]  ;;  %v6809_v29 = vld [vmem:[%s7509_s25 + $0xc4] sm:$0xf] }
 0x820   : > { %v5102_v15 = vrot.slane %v5101_v39, 4  ;;  %v2698_v63 = vrot.slane %v2697_v30, 2  ;;  %v2712_v37 = vrot.slane %v2711_v33, 2  ;;  %v2692_v5 = vadd.f32 %v2691_v8, %v2690_v14  ;;  %v6812_v8 = vld [vmem:[%s7509_s25 + $0xd4] sm:$0xf0] }
 0x821   : > { %v5163_v45 = vadd.f32 %v5162_v22, %v5161_v50  ;;  %v5287_v61 = vsel %vm13424_vm14, %v5086_v55, %v5286_v48  ;;  %v2705_v7 = vrot.slane %v2704_v24, 2  ;;  %vm13439_vm14 = vmmov %vm13436_vm4  ;;  %v6606_v17 = vor.u32 %v6816_v21, %v6605_v57 }
 0x822   : > { %v5103_v6 = vadd.f32 %v5102_v15, %v5101_v39  ;;  %v5288_v0 = vsel %vm13425_vm3, %v5093_v11, %v5287_v61  ;;  %v2699_v38 = vadd.f32 %v2698_v63, %v2697_v30  ;;  %v2713_v4 = vadd.f32 %v2712_v37, %v2711_v33  ;;  %v6583_v30 = vld [vmem:[%s7509_s25 + $0xd0] sm:$0xf0]  ;;  %v6589_v33 = vld [vmem:[%s7509_s25 + $0xc8] sm:$0xf] }
 0x823   : > { %v5297_v19 = vsel %vm13422_vm8, %v5163_v45, %v5296_v16  ;;  %v5289_v31 = vsel %vm13426_vm1, %v5100_v12, %v5288_v0  ;;  %v2706_v3 = vadd.f32 %v2705_v7, %v2704_v24  ;;  %v2693_v40 = vrot.slane %v2692_v5, 1  ;;  %v6597_v0 = vld [vmem:[%s7509_s25 + $0xe0] sm:$0xf]  ;;  %5595 = vmatpush.bf16.msrb.mxu1 %v6606_v17  ;;  %v6793_v17 = vld [vmem:[%s7509_s25 + $0x44] sm:$0xf] }
 0x824   : > { %v5104_v60 = vrot.slane %v5103_v6, 2  ;;  %5300 = vrot.lane.b32.xlu1 %v5297_v19, %s7352_s3  ;;  %v2700_v23 = vrot.slane %v2699_v38, 1  ;;  %v2714_v20 = vrot.slane %v2713_v4, 1  ;;  %vm13437_vm8 = vcmask 785408  }
 0x825   : > { %v2707_v47 = vrot.slane %v2706_v3, 1  ;;  %v2694_v44 = vadd.f32 %v2693_v40, %v2692_v5  ;;  %vm13440_vm3 = vmmov %vm13437_vm8  ;;  %v6610_v36 = vor.u32 %v6814_v54, %v6607_v28  ;;  %v6582_v24 = vor.u32 %v6811_v49, %v6581_v25  ;;  %v6810_v5 = vld [vmem:[%s7509_s25 + $0xcc] sm:$0xf]  ;;  %v6807_v40 = vld [vmem:[%s7509_s25 + $0xac] sm:$0xf0] }
 0x826   : > { %v5105_v41 = vadd.f32 %v5104_v60, %v5103_v6  ;;  %v2701_v26 = vadd.f32 %v2700_v23, %v2699_v38  ;;  %v2715_v32 = vadd.f32 %v2714_v20, %v2713_v4  ;;  %v5304_v6 = vsel %vm13438_vm10, %v12030_v35, %v5227_v43  ;;  %v7229_v60 = vld [vmem:[%s12736_s21] sm:$0xff]  ;;  %v6567_v23 = vld [vmem:[%s7509_s25 + $0xb0] sm:$0xf0]  ;;  %v6525_v25 = vld [vmem:[%s7509_s25 + $0x48] sm:$0xf] }
 0x827   : > { %v2708_v46 = vadd.f32 %v2707_v47, %v2706_v3  ;;  %v5190_v27 = vsel %vm13431_vm0, %v2694_v44, %v11915_v13  ;;  %v7228_v13 = vld [vmem:[%s12736_s21 + $0x8] sm:$0xff]  ;;  %v13441_v35 = vld [vmem:[#allocation13_spill] sm:$0xff]  ;;  %5609 = vmatpush.bf16.msrb.mxu2 %v6610_v36  ;;  %v6586_v63 = vor.u32 %v6809_v29, %v6583_v30  ;;  %v6590_v37 = vor.u32 %v6812_v8, %v6589_v33  ;;  %v6591_v3 = vld [vmem:[%s7509_s25 + $0xd8] sm:$0xf0] }
 0x828   : > { %v5106_v52 = vrot.slane %v5105_v41, 1  ;;  %v5191_v50 = vsel %vm13432_vm6, %v2701_v26, %v5190_v27  ;;  %v6565_v38 = vld [vmem:[%s7509_s25 + $0xa0] sm:$0xf]  ;;  %v6594_v4 = vor.u32 %v6810_v5, %v6591_v3  ;;  %v6805_v47 = vld [vmem:[%s7509_s25 + $0xa4] sm:$0xf] }
 0x829   : > { %v5192_v62 = vsel %vm13433_vm7, %v2708_v46, %v5191_v50  ;;  %5596 = vmatpush.bf16.msrb.mxu1 %v6590_v37  ;;  %v6566_v44 = vor.u32 %v6807_v40, %v6565_v38  ;;  %v6570_v46 = vor.u32 %v6805_v47, %v6567_v23  ;;  %v6573_v26 = vld [vmem:[%s7509_s25 + $0xa8] sm:$0xf]  ;;  %v6808_v27 = vld [vmem:[%s7509_s25 + $0xb4] sm:$0xf0]  ;;  %v6806_v50 = vld [vmem:[%s7509_s25 + $0xac] sm:$0xf] }
 0x82a   : > { %v5107_v53 = vadd.f32 %v5106_v52, %v5105_v41  ;;  %v5193_v39 = vsel %vm13434_vm9, %v2715_v32, %v5192_v62  ;;  %v6574_v32 = vor.u32 %v6808_v27, %v6573_v26  ;;  %v6575_v62 = vld [vmem:[%s7509_s25 + $0xb8] sm:$0xf0]  ;;  %v6519_v36 = vld [vmem:[%s7509_s25 + $0x50] sm:$0xf0]  ;;  %v6796_v49 = vld [vmem:[%s7509_s25 + $0x54] sm:$0xf0] }
 0x82b   : > { %5610 = vmatpush.bf16.msrb.mxu2 %v6594_v4  ;;  %v6578_v43 = vor.u32 %v6806_v50, %v6575_v62  ;;  %v6794_v29 = vld [vmem:[%s7509_s25 + $0x4c] sm:$0xf]  ;;  %v6501_v33 = vld [vmem:[%s7509_s25 + $0x20] sm:$0xf]  ;;  %v6522_v8 = vor.u32 %v6793_v17, %v6519_v36  ;;  %v6789_v37 = vld [vmem:[%s7509_s25 + $0x24] sm:$0xf] }
 0x82c   : > { %v5290_v56 = vsel %vm13427_vm5, %v5107_v53, %v5289_v31  ;;  %v6815_v31 = vld [vmem:[%s7509_s25 + $0xec] sm:$0xf0]  ;;  %v6503_v5 = vld [vmem:[%s7509_s25 + $0x30] sm:$0xf0]  ;;  %v6509_v4 = vld [vmem:[%s7509_s25 + $0x28] sm:$0xf] }
 0x82d   : > { %5298 = vrot.lane.b32.xlu0 %v5290_v56, %s7352_s3  ;;  %v6813_v56 = vld [vmem:[%s7509_s25 + $0xe4] sm:$0xf]  ;;  %v6598_v58 = vor.u32 %v6815_v31, %v6597_v0  ;;  %5597 = vmatpush.bf16.msrb.mxu1 %v6574_v32  ;;  %v6798_v0 = vld [vmem:[%s7509_s25 + $0x6c] sm:$0xf]  ;;  %v6543_v31 = vld [vmem:[%s7509_s25 + $0x78] sm:$0xf0]  ;;  %v6506_v27 = vor.u32 %v6789_v37, %v6503_v5 }
 0x82e   : > { %v6602_v2 = vor.u32 %v6813_v56, %v6599_v9  ;;  %v6546_v28 = vor.u32 %v6798_v0, %v6543_v31  ;;  %v6792_v40 = vld [vmem:[%s7509_s25 + $0x34] sm:$0xf0]  ;;  %v6790_v47 = vld [vmem:[%s7509_s25 + $0x2c] sm:$0xf]  ;;  %v6511_v23 = vld [vmem:[%s7509_s25 + $0x38] sm:$0xf0] }
 0x82f   : > { %5567 = vmatpush.bf16.msra.mxu3 %v6598_v58  ;;  %5611 = vmatpush.bf16.msrb.mxu2 %v6578_v43  ;;  %v6517_v58 = vld [vmem:[%s7509_s25 + $0x40] sm:$0xf]  ;;  %v6510_v32 = vor.u32 %v6792_v40, %v6509_v4  ;;  %v6787_v62 = vld [vmem:[%s7509_s25 + $0xc] sm:$0xf0] }
 0x830   : > { %5581 = vmatpush.bf16.msrb.mxu0 %v6602_v2  ;;  %v6795_v2 = vld [vmem:[%s7509_s25 + $0x4c] sm:$0xf0]  ;;  %v6485_v50 = vld [vmem:[%s7509_s25] sm:$0xf] }
 0x831   : > { %v6518_v30 = vor.u32 %v6795_v2, %v6517_v58 }
 0x833   : > { %5568 = vmatpush.bf16.msra.mxu3 %v6582_v24 }
 0x834   : > { %5582 = vmatpush.bf16.msrb.mxu0 %v6586_v63  ;;  %v6791_v63 = vld [vmem:[%s7509_s25 + $0x2c] sm:$0xf0] }
 0x837   : > { %5569 = vmatpush.bf16.msra.mxu3 %v6566_v44 }
 0x838   : > { %5583 = vmatpush.bf16.msrb.mxu0 %v6570_v46  ;;  %v6502_v46 = vor.u32 %v6791_v63, %v6501_v33 }
 0x876   : > { %v5265_v51 = vpop.permute.xlu2 %5264 }
 0x87d   : > { %v5229_v22 = vpop.permute.xlu0 %5228 }
 0x87e   : > { %v5263_v18 = vpop.permute.xlu1 %5262  ;;  %v5305_v15 = vsel %vm13435_vm15, %v5193_v39, %v5229_v22  ;;  %v6549_v39 = vld [vmem:[%s7509_s25 + $0x80] sm:$0xf]  ;;  %v6801_v22 = vld [vmem:[%s7509_s25 + $0x84] sm:$0xf] }
 0x87f   : > { %v5307_v59 = vsel %vm13436_vm4, %v5305_v15, %v5265_v51  ;;  %v5306_v10 = vsel %vm13439_vm14, %v5304_v6, %v5263_v18  ;;  %v6803_v18 = vld [vmem:[%s7509_s25 + $0x8c] sm:$0xf0]  ;;  %v6551_v15 = vld [vmem:[%s7509_s25 + $0x90] sm:$0xf0] }
 0x880   : > { %v6550_v51 = vor.u32 %v6803_v18, %v6549_v39  ;;  %v6785_v39 = vld [vmem:[%s7509_s25 + $0x4] sm:$0xf] }
 0x882   : > { %5570 = vmatpush.bf16.msra.mxu3 %v6550_v51  ;;  %v6493_v51 = vld [vmem:[%s7509_s25 + $0x8] sm:$0xf] }
 0x896   : > { %v5301_v34 = vpop.permute.xlu1 %5300 }
 0x897   : > { %v5309_v1 = vsel %vm13437_vm8, %v5307_v59, %v5301_v34  ;;  %v6557_v34 = vld [vmem:[%s7509_s25 + $0x88] sm:$0xf]  ;;  %v6804_v59 = vld [vmem:[%s7509_s25 + $0x94] sm:$0xf0] }
 0x898   : > { %v12169_v45 = vadd.f32 %v7228_v13, %v5309_v1  ;;  %v6802_v1 = vld [vmem:[%s7509_s25 + $0x8c] sm:$0xf]  ;;  %v6554_v13 = vor.u32 %v6801_v22, %v6551_v15  ;;  %v6558_v6 = vor.u32 %v6804_v59, %v6557_v34  ;;  %v6514_v22 = vor.u32 %v6790_v47, %v6511_v23  ;;  %v6487_v15 = vld [vmem:[%s7509_s25 + $0x10] sm:$0xf0]  ;;  %v6788_v34 = vld [vmem:[%s7509_s25 + $0x14] sm:$0xf0] }
 0x899   : > { %v6786_v59 = vld [vmem:[%s7509_s25 + $0xc] sm:$0xf] }
 0x89a   : > { %5316 = vadd.xlane.f32.xlu0 %v12169_v45  ;;  %5584 = vmatpush.bf16.msrb.mxu0 %v6554_v13 }
 0x89b   : > { %5598 = vmatpush.bf16.msrb.mxu1 %v6558_v6  ;;  %v6486_v6 = vor.u32 %v6787_v62, %v6485_v50 }
 0x89f   : > { %v5299_v16 = vpop.permute.xlu0 %5298 }
 0x8a0   : > { %v5308_v42 = vsel %vm13440_vm3, %v5306_v10, %v5299_v16  ;;  %v6559_v10 = vld [vmem:[%s7509_s25 + $0x98] sm:$0xf0]  ;;  %v6533_v16 = vld [vmem:[%s7509_s25 + $0x60] sm:$0xf] }
 0x8a1   : > { %v12179_v19 = vadd.f32 %v7229_v60, %v5308_v42  ;;  %v6799_v42 = vld [vmem:[%s7509_s25 + $0x6c] sm:$0xf0] }
 0x8a2   : > { %v6534_v56 = vor.u32 %v6799_v42, %v6533_v16  ;;  %v6494_v16 = vor.u32 %v6788_v34, %v6493_v51 }
 0x8a3   : > { %5314 = vadd.xlane.f32.xlu2 %v12179_v19 }
 0x8a4   : > { %5571 = vmatpush.bf16.msra.mxu3 %v6534_v56 }
 0x8a8   : > { %5572 = vmatpush.bf16.msra.mxu3 %v6518_v30 }
 0x8ac   : > { %5573 = vmatpush.bf16.msra.mxu3 %v6502_v46 }
 0x8b0   : > { %5574 = vmatpush.bf16.msra.mxu3 %v6486_v6 }
 0x90d   : > { %v5317_v55 = vpop.xlane.xlu0 %5316 }
 0x90e   : > { %v5319_v11 = vmul.f32 %v5317_v55, %v13441_v35  ;;  %v6562_v55 = vor.u32 %v6802_v1, %v6559_v10  ;;  %v6495_v1 = vld [vmem:[%s7509_s25 + $0x18] sm:$0xf0]  ;;  %v6490_v10 = vor.u32 %v6785_v39, %v6487_v15 }
 0x910   : > { %v12184_v41 = vsub.f32 %v12169_v45, %v5319_v11  ;;  %v6797_v11 = vld [vmem:[%s7509_s25 + $0x64] sm:$0xf]  ;;  %5612 = vmatpush.bf16.msrb.mxu2 %v6562_v55  ;;  %v6498_v55 = vor.u32 %v6786_v59, %v6495_v1 }
 0x912   : > { %v5323_v12 = vmul.f32 %v12184_v41, %v12184_v41 }
 0x914   : > { %5326 = vadd.xlane.f32.xlu2 %v5323_v12  ;;  %v6535_v12 = vld [vmem:[%s7509_s25 + $0x70] sm:$0xf0]  ;;  %5613 = vmatpush.bf16.msrb.mxu2 %v6546_v28 }
 0x915   : > { %v6538_v21 = vor.u32 %v6797_v11, %v6535_v12  ;;  %v6927_v12 = vld [vmem:[%s13442_s27] ss:$0 sm:$0xff] }
 0x916   : > { %v5315_v48 = vpop.xlane.xlu2 %5314 }
 0x917   : > { %v5318_v52 = vmul.f32 %v5315_v48, %v13441_v35  ;;  %v6541_v48 = vld [vmem:[%s7509_s25 + $0x68] sm:$0xf]  ;;  %5585 = vmatpush.bf16.msrb.mxu0 %v6538_v21 }
 0x919   : > { %v12190_v61 = vsub.f32 %v12179_v19, %v5318_v52 }
 0x91b   : > { %v5322_v53 = vmul.f32 %v12190_v61, %v12190_v61  ;;  %5586 = vmatpush.bf16.msrb.mxu0 %v6522_v8 }
 0x91d   : > { %5324 = vadd.xlane.f32.xlu1 %v5322_v53  ;;  %v6800_v53 = vld [vmem:[%s7509_s25 + $0x74] sm:$0xf0] }
 0x91f   : > { %5587 = vmatpush.bf16.msrb.mxu0 %v6506_v27 }
 0x923   : > { %5588 = vmatpush.bf16.msrb.mxu0 %v6490_v10 }
 0x987   : > { %v5327_v14 = vpop.xlane.xlu2 %5326 }
 0x988   : > { %v5329_v7 = vmul.f32 %v5327_v14, %v13441_v35  ;;  %v6527_v14 = vld [vmem:[%s7509_s25 + $0x58] sm:$0xf0] }
 0x989   : > { %v6530_v38 = vor.u32 %v6794_v29, %v6527_v14 }
 0x98a   : > { %v12215_v20 = vadd.f32 1e-05, %v5329_v7  ;;  %v6526_v7 = vor.u32 %v6796_v49, %v6525_v25 }
 0x98b   : > { %5614 = vmatpush.bf16.msrb.mxu2 %v6530_v38 }
 0x98c   : > { %7192 = vrsqrt.f32 %v12215_v20  ;;  %vm5348_vm5 = vweird.f32 %v12215_v20 }
 0x98f   : > { %5615 = vmatpush.bf16.msrb.mxu2 %v6514_v22 }
 0x990   : > { %v5325_v60 = vpop.xlane.xlu1 %5324 }
 0x991   : > { %v5328_v52 = vmul.f32 %v5325_v60, %v13441_v35  ;;  %v6542_v35 = vor.u32 %v6800_v53, %v6541_v48 }
 0x992   : > { %v12240_v9 = vpop.eup %7192 }
 0x993   : > { %v12242_v57 = vadd.f32 1e-05, %v5328_v52  ;;  %v5343_v54 = vmul.f32 %v12240_v9, %v12215_v20  ;;  %5599 = vmatpush.bf16.msrb.mxu1 %v6542_v35  ;;  %vm5349_vm1 = vweird.f32 %v12240_v9  ;;  %5616 = vmatpush.bf16.msrb.mxu2 %v6498_v55 }
 0x994   : > { %vm5350_vm2 = vmor %vm5348_vm5, %vm5349_vm1 }
 0x995   : > { %7194 = vrsqrt.f32 %v12242_v57  ;;  %v5344_v24 = vmul.f32 %v12240_v9, %v5343_v54  ;;  %vm5338_vm12 = vweird.f32 %v12242_v57 }
 0x997   : > { %v5345_v3 = vmul.f32 0.5, %v5344_v24  ;;  %5600 = vmatpush.bf16.msrb.mxu1 %v6526_v7 }
 0x999   : > { %v5346_v44 = vsub.f32 1.5, %v5345_v3 }
 0x99b   : > { %v7195_v26 = vpop.eup %7194  ;;  %v5347_v43 = vmul.f32 %v12240_v9, %v5346_v44  ;;  %5601 = vmatpush.bf16.msrb.mxu1 %v6510_v32 }
 0x99c   : > { %v5333_v18 = vmul.f32 %v7195_v26, %v12242_v57  ;;  %vm5339_vm13 = vweird.f32 %v7195_v26  ;;  %v12290_v57 = vld [vmem:[%s7557_s23] sm:$0xf] }
 0x99d   : > { %v5351_v42 = vsel %vm5350_vm2, %v12240_v9, %v5347_v43  ;;  %vm5340_vm11 = vmor %vm5338_vm12, %vm5339_vm13  ;;  %v5400_v21 = vperm.slane %v12290_v57, 1  ;;  %v5401_v2 = vperm.slane %v12290_v57, 2  ;;  %v5399_v54 = vperm.slane %v12290_v57, 0 }
 0x99e   : > { %v5334_v13 = vmul.f32 %v7195_v26, %v5333_v18  ;;  %v5353_v20 = vmul.f32 %v5351_v42, %v12184_v41  ;;  %v6928_v41 = vld [vmem:[%s13443_s19] ss:$0 sm:$0xff]  ;;  %v5402_v36 = vperm.slane %v12290_v57, 3 }
 0x99f   : > { %5602 = vmatpush.bf16.msrb.mxu1 %v6494_v16 }
 0x9a0   : > { %v5335_v60 = vmul.f32 0.5, %v5334_v13  ;;  %v5358_v0 = vmul.f32 %v6927_v12, %v5353_v20 }
 0x9a2   : > { %v5336_v11 = vsub.f32 1.5, %v5335_v60  ;;  %v5363_v58 = vadd.f32 %v6928_v41, %v5358_v0 }
 0x9a4   : > { %v5337_v48 = vmul.f32 %v7195_v26, %v5336_v11 }
 0x9a6   : > { %v5341_v52 = vsel %vm5340_vm11, %v7195_v26, %v5337_v48 }
 0x9a7   : > { %v5352_v53 = vmul.f32 %v5341_v52, %v12190_v61 }
 0x9a9   : > { %v5357_v31 = vmul.f32 %v6927_v12, %v5352_v53 }
 0x9ab   : > { %v5362_v56 = vadd.f32 %v6928_v41, %v5357_v31 }
 0x9ad   : > { %v5364_v9 = vpack.c.bf16 %v5363_v58, %v5362_v56 }
 0x9af   : > { %5575 = vmatmul.bf16.vlgmr.msra.gmra.mxu3 %v5364_v9  ;;  %5589 = vmatmul.bf16.vlgmr.msrb.gmra.mxu0 %v5364_v9 }
 0x9b0   : > { %5603 = vmatmul.bf16.vlgmr.msrb.gmra.mxu1 %v5364_v9  ;;  %5617 = vmatmul.bf16.vlgmr.msrb.gmra.mxu2 %v5364_v9 }
 0xa2c   : > { %v5590_v35 = vpop.f32.mrf.mxu0 }
 0xa2d   : > { %v12293_v61 = vadd.f32 %v5590_v35, %v5400_v21  ;;  %v5604_v17 = vpop.f32.mrf.mxu1 }
 0xa2e   : > { %v12299_v29 = vadd.f32 %v5604_v17, %v5401_v2 }
 0xa2f   : > { %v5624_v25 = vand.u32 2147483647, %v12293_v61 }
 0xa30   : > { %v5625_v33 = vand.u32 2147483647, %v12299_v29 }
 0xa31   : > { %v12307_v30 = vmul.f32 0.70710677, %v5624_v25 }
 0xa32   : > { %v5576_v28 = vpop.f32.mrf.mxu3  ;;  %v12313_v5 = vmul.f32 0.70710677, %v5625_v33 }
 0xa33   : > { %v5618_v49 = vpop.f32.mrf.mxu2  ;;  %v12301_v14 = vadd.f32 %v5576_v28, %v5399_v54  ;;  %v5640_v37 = vmul.f32 0.3275911, %v12307_v30  ;;  %v5760_v56 = vsub.f32 0.0, %v12307_v30  ;;  %v12374_v57 = vmul.f32 0.70710677, %v12307_v30 }
 0xa34   : > { %v12305_v24 = vadd.f32 %v5618_v49, %v5402_v36  ;;  %v5592_v63 = vpop.f32.mrf.mxu0  ;;  %v5641_v23 = vmul.f32 0.3275911, %v12313_v5 }
 0xa35   : > { %v5623_v8 = vand.u32 2147483647, %v12301_v14  ;;  %v12315_v3 = vadd.f32 %v5592_v63, %v5400_v21  ;;  %v5648_v47 = vadd.f32 1.0, %v5640_v37  ;;  %v5606_v39 = vpop.f32.mrf.mxu1 }
 0xa36   : > { %v5626_v7 = vand.u32 2147483647, %v12305_v24  ;;  %v5649_v32 = vadd.f32 1.0, %v5641_v23  ;;  %v12328_v18 = vadd.f32 %v5606_v39, %v5401_v2 }
 0xa37   : > { %v12317_v38 = vmul.f32 0.70710677, %v5623_v8  ;;  %v5628_v40 = vand.u32 2147483647, %v12315_v3  ;;  %7196 = vrcp.f32 %v5648_v47  ;;  %v5768_v8 = vmul.f32 %v5760_v56, %v12307_v30  ;;  %v6840_v56 = vld [vmem:[%s7515_s26 + $0xb8] sm:$0xff] }
 0xa38   : > { %v12319_v4 = vmul.f32 0.70710677, %v5626_v7  ;;  %v5629_v15 = vand.u32 2147483647, %v12328_v18  ;;  %v12384_v30 = vmul.f32 0.70710677, %v12313_v5  ;;  %6099 = vmatpush.bf16.msra.mxu1 %v6840_v56 }
 0xa39   : > { %v12323_v44 = vmul.f32 0.70710677, %v5628_v40  ;;  %v5639_v46 = vmul.f32 0.3275911, %v12317_v38  ;;  %v12379_v39 = vmul.f32 1.442695, %v5768_v8 }
 0xa3a   : > { %v5642_v26 = vmul.f32 0.3275911, %v12319_v4  ;;  %v12333_v51 = vmul.f32 0.70710677, %v5629_v15  ;;  %v5578_v55 = vpop.f32.mrf.mxu3  ;;  %v6846_v56 = vld [vmem:[%s7515_s26 + $0xe8] sm:$0xff] }
 0xa3b   : > { %v5644_v27 = vmul.f32 0.3275911, %v12323_v44  ;;  %v5647_v62 = vadd.f32 1.0, %v5639_v46  ;;  %v12347_v20 = vadd.f32 %v5578_v55, %v5399_v54  ;;  %v5620_v28 = vpop.f32.mrf.mxu2  ;;  %v5761_v46 = vsub.f32 0.0, %v12313_v5 }
 0xa3c   : > { %v5650_v43 = vadd.f32 1.0, %v5642_v26  ;;  %v5645_v1 = vmul.f32 0.3275911, %v12333_v51  ;;  %v12364_v33 = vadd.f32 %v5620_v28, %v5402_v36  ;;  %v6831_v28 = vld [vmem:[%s7515_s26 + $0x70] sm:$0xff] }
 0xa3d   : > { %v5652_v50 = vadd.f32 1.0, %v5644_v27  ;;  %v12330_v22 = vpop.eup %7196  ;;  %v5627_v53 = vand.u32 2147483647, %v12347_v20 }
 0xa3e   : > { %v5664_v59 = vmul.f32 1.0614054, %v12330_v22  ;;  %v5653_v16 = vadd.f32 1.0, %v5645_v1  ;;  %v5630_v47 = vand.u32 2147483647, %v12364_v33 }
 0xa3f   : > { %7198 = vrcp.f32 %v5652_v50  ;;  %v12353_v31 = vmul.f32 0.70710677, %v5627_v53  ;;  %v5759_v50 = vsub.f32 0.0, %v12317_v38 }
 0xa40   : > { %7200 = vrcp.f32 %v5649_v32  ;;  %v6612_v60 = vadd.f32 -1.4531521, %v5664_v59  ;;  %v12376_v27 = vmul.f32 0.70710677, %v5630_v47 }
 0xa41   : > { %7202 = vrcp.f32 %v5647_v62  ;;  %v5643_v2 = vmul.f32 0.3275911, %v12353_v31  ;;  %v5767_v53 = vmul.f32 %v5759_v50, %v12317_v38 }
 0xa42   : > { %7204 = vrcp.f32 %v5650_v43  ;;  %v5680_v0 = vmul.f32 %v12330_v22, %v6612_v60  ;;  %v5646_v59 = vmul.f32 0.3275911, %v12376_v27 }
 0xa43   : > { %7206 = vrcp.f32 %v5653_v16  ;;  %v5651_v49 = vadd.f32 1.0, %v5643_v2  ;;  %v6824_v2 = vld [vmem:[%s7515_s26 + $0x38] sm:$0xff] }
 0xa44   : > { %v5688_v17 = vadd.f32 1.4214138, %v5680_v0  ;;  %6071 = vmatpush.bf16.msrb.mxu3 %v6824_v2  ;;  %v5766_v2 = vsub.f32 0.0, %v12376_v27 }
 0xa45   : > { %v12335_v34 = vpop.eup %7198  ;;  %7208 = vrcp.f32 %v5651_v49  ;;  %v6848_v49 = vld [vmem:[%s7515_s26 + $0xf8] sm:$0xff] }
 0xa46   : > { %v12339_v13 = vpop.eup %7200  ;;  %v5668_v10 = vmul.f32 1.0614054, %v12335_v34  ;;  %v5696_v23 = vmul.f32 %v12330_v22, %v5688_v17  ;;  %6113 = vmatpush.bf16.msra.mxu2 %v6848_v49 }
 0xa47   : > { %v12341_v6 = vpop.eup %7202  ;;  %v5665_v11 = vmul.f32 1.0614054, %v12339_v13 }
 0xa48   : > { %v12344_v42 = vpop.eup %7204  ;;  %v5663_v12 = vmul.f32 1.0614054, %v12341_v6  ;;  %v6616_v52 = vadd.f32 -1.4531521, %v5668_v10  ;;  %v6620_v1 = vadd.f32 -0.28449672, %v5696_v23  ;;  %v5769_v10 = vmul.f32 %v5761_v46, %v12313_v5 }
 0xa49   : > { %v5666_v48 = vmul.f32 1.0614054, %v12344_v42  ;;  %v6613_v41 = vadd.f32 -1.4531521, %v5665_v11  ;;  %v12356_v9 = vpop.eup %7206  ;;  %v5762_v11 = vsub.f32 0.0, %v12319_v4  ;;  %v5765_v5 = vsub.f32 0.0, %v12333_v51 }
 0xa4a   : > { %v6611_v58 = vadd.f32 -1.4531521, %v5663_v12  ;;  %v5684_v35 = vmul.f32 %v12335_v34, %v6616_v52  ;;  %v5669_v54 = vmul.f32 1.0614054, %v12356_v9  ;;  %v5764_v12 = vsub.f32 0.0, %v12323_v44 }
 0xa4b   : > { %v6614_v21 = vadd.f32 -1.4531521, %v5666_v48  ;;  %v5681_v25 = vmul.f32 %v12339_v13, %v6613_v41  ;;  %v12388_v60 = vpop.eup %7208  ;;  %v5654_v48 = vadd.f32 1.0, %v5646_v59  ;;  %v6832_v41 = vld [vmem:[%s7515_s26 + $0x78] sm:$0xff]  ;;  %v5712_v17 = vmul.f32 %v12330_v22, %v6620_v1  ;;  %v6830_v1 = vld [vmem:[%s7515_s26 + $0x68] sm:$0xff] }
 0xa4c   : > { %v5679_v7 = vmul.f32 %v12341_v6, %v6611_v58  ;;  %v6617_v63 = vadd.f32 -1.4531521, %v5669_v54  ;;  %v5692_v40 = vadd.f32 1.4214138, %v5684_v35  ;;  %v5667_v0 = vmul.f32 1.0614054, %v12388_v60  ;;  %6085 = vmatpush.bf16.msra.mxu0 %v6832_v41 }
 0xa4d   : > { %v5682_v37 = vmul.f32 %v12344_v42, %v6614_v21  ;;  %v5689_v36 = vadd.f32 1.4214138, %v5681_v25  ;;  %7210 = vrcp.f32 %v5654_v48  ;;  %v6839_v25 = vld [vmem:[%s7515_s26 + $0xb0] sm:$0xff]  ;;  %v5779_v47 = vmul.f32 1.442695, %v5769_v10  ;;  %v6838_v10 = vld [vmem:[%s7515_s26 + $0xa8] sm:$0xff] }
 0xa4e   : > { %v5685_v26 = vmul.f32 %v12356_v9, %v6617_v63  ;;  %v5687_v32 = vadd.f32 1.4214138, %v5679_v7  ;;  %v5700_v15 = vmul.f32 %v12335_v34, %v5692_v40  ;;  %v6615_v54 = vadd.f32 -1.4531521, %v5667_v0  ;;  %v6823_v40 = vld [vmem:[%s7515_s26 + $0x30] sm:$0xff]  ;;  %6100 = vmatpush.bf16.msra.mxu1 %v6839_v25  ;;  %v6837_v25 = vld [vmem:[%s7515_s26 + $0xa0] sm:$0xff] }
 0xa4f   : > { %v5690_v43 = vadd.f32 1.4214138, %v5682_v37  ;;  %v5697_v55 = vmul.f32 %v12339_v13, %v5689_v36  ;;  %v5770_v7 = vmul.f32 %v5762_v11, %v12319_v4  ;;  %v5772_v63 = vmul.f32 %v5764_v12, %v12323_v44  ;;  %v6847_v36 = vld [vmem:[%s7515_s26 + $0xf0] sm:$0xff]  ;;  %6072 = vmatpush.bf16.msrb.mxu3 %v6823_v40  ;;  %v6845_v40 = vld [vmem:[%s7515_s26 + $0xe0] sm:$0xff] }
 0xa50   : > { %v5693_v62 = vadd.f32 1.4214138, %v5685_v26  ;;  %v5695_v52 = vmul.f32 %v12341_v6, %v5687_v32  ;;  %v6624_v21 = vadd.f32 -0.28449672, %v5700_v15  ;;  %v5763_v37 = vsub.f32 0.0, %v12353_v31  ;;  %6086 = vmatpush.bf16.msra.mxu0 %v6831_v28  ;;  %6114 = vmatpush.bf16.msra.mxu2 %v6847_v36  ;;  %v6829_v28 = vld [vmem:[%s7515_s26 + $0x60] sm:$0xff] }
 0xa51   : > { %v5698_v58 = vmul.f32 %v12344_v42, %v5690_v43  ;;  %v6621_v8 = vadd.f32 -0.28449672, %v5697_v55  ;;  %v5773_v46 = vmul.f32 %v5765_v5, %v12333_v51  ;;  %v5683_v26 = vmul.f32 %v12388_v60, %v6615_v54 }
 0xa52   : > { %v5701_v16 = vmul.f32 %v12356_v9, %v5693_v62  ;;  %v6619_v23 = vadd.f32 -0.28449672, %v5695_v52  ;;  %v12412_v32 = vmul.f32 1.442695, %v5767_v53  ;;  %v5716_v62 = vmul.f32 %v12335_v34, %v6624_v21  ;;  %v6822_v52 = vld [vmem:[%s7515_s26 + $0x28] sm:$0xff]  ;;  %6101 = vmatpush.bf16.msra.mxu1 %v6838_v10 }
 0xa53   : > { %v6622_v50 = vadd.f32 -0.28449672, %v5698_v58  ;;  %v5720_v15 = vadd.f32 0.2548296, %v5712_v17  ;;  %v5691_v59 = vadd.f32 1.4214138, %v5683_v26  ;;  %v5713_v55 = vmul.f32 %v12339_v13, %v6621_v8  ;;  %6073 = vmatpush.bf16.msrb.mxu3 %v6822_v52 }
 0xa54   : > { %v6625_v35 = vadd.f32 -0.28449672, %v5701_v16  ;;  %v12418_v16 = vpop.eup %7210  ;;  %v12421_v11 = vmul.f32 1.442695, %v5770_v7  ;;  %v5785_v12 = vmul.f32 1.442695, %v5772_v63  ;;  %v5771_v48 = vmul.f32 %v5763_v37, %v12353_v31  ;;  %6087 = vmatpush.bf16.msra.mxu0 %v6830_v1  ;;  %6115 = vmatpush.bf16.msra.mxu2 %v6846_v56 }
 0xa55   : > { %v5711_v53 = vmul.f32 %v12341_v6, %v6619_v23  ;;  %v5787_v5 = vmul.f32 1.442695, %v5773_v46  ;;  %v5699_v0 = vmul.f32 %v12388_v60, %v5691_v59  ;;  %v5670_v41 = vmul.f32 1.0614054, %v12418_v16  ;;  %v6821_v7 = vld [vmem:[%s7515_s26 + $0x20] sm:$0xff]  ;;  %v6836_v59 = vld [vmem:[%s7515_s26 + $0x98] sm:$0xff] }
 0xa56   : > { %v5717_v43 = vmul.f32 %v12356_v9, %v6625_v35  ;;  %v5714_v58 = vmul.f32 %v12344_v42, %v6622_v50  ;;  %v5724_v21 = vadd.f32 0.2548296, %v5716_v62  ;;  %7212 = vpow2.f32 %v12379_v39  ;;  %6102 = vmatpush.bf16.msra.mxu1 %v6837_v25  ;;  %v6835_v56 = vld [vmem:[%s7515_s26 + $0x90] sm:$0xff] }
 0xa57   : > { %v6623_v17 = vadd.f32 -0.28449672, %v5699_v0  ;;  %v6618_v54 = vadd.f32 -1.4531521, %v5670_v41  ;;  %v5721_v49 = vadd.f32 0.2548296, %v5713_v55  ;;  %7214 = vpow2.f32 %v5779_v47  ;;  %6074 = vmatpush.bf16.msrb.mxu3 %v6821_v7 }
 0xa58   : > { %v5725_v35 = vadd.f32 0.2548296, %v5717_v43  ;;  %v5783_v8 = vmul.f32 1.442695, %v5771_v48  ;;  %v5719_v63 = vadd.f32 0.2548296, %v5711_v53  ;;  %7216 = vpow2.f32 %v5785_v12  ;;  %6088 = vmatpush.bf16.msra.mxu0 %v6829_v28  ;;  %6116 = vmatpush.bf16.msra.mxu2 %v6845_v40 }
 0xa59   : > { %v5715_v37 = vmul.f32 %v12388_v60, %v6623_v17  ;;  %v5686_v39 = vmul.f32 %v12418_v16, %v6618_v54  ;;  %v5722_v23 = vadd.f32 0.2548296, %v5714_v58  ;;  %v5732_v46 = vmul.f32 %v12335_v34, %v5724_v21  ;;  %v6828_v43 = vld [vmem:[%s7515_s26 + $0x58] sm:$0xff]  ;;  %v6827_v41 = vld [vmem:[%s7515_s26 + $0x50] sm:$0xff]  ;;  %v6818_v40 = vld [vmem:[%s7515_s26 + $0x8] sm:$0xff] }
 0xa5a   : > { %v5733_v26 = vmul.f32 %v12356_v9, %v5725_v35  ;;  %v5774_v47 = vmul.f32 %v5766_v2, %v12376_v27  ;;  %v5728_v36 = vmul.f32 %v12330_v22, %v5720_v15  ;;  %7218 = vpow2.f32 %v5787_v5  ;;  %v6820_v9 = vld [vmem:[%s7515_s26 + $0x18] sm:$0xff]  ;;  %6103 = vmatpush.bf16.msra.mxu1 %v6836_v59  ;;  %v6819_v21 = vld [vmem:[%s7515_s26 + $0x10] sm:$0xff] }
 0xa5b   : > { %v5723_v50 = vadd.f32 0.2548296, %v5715_v37  ;;  %v5694_v62 = vadd.f32 1.4214138, %v5686_v39  ;;  %v5729_v1 = vmul.f32 %v12339_v13, %v5721_v49  ;;  %v5748_v10 = vmul.f32 0.70710677, %v12323_v44  ;;  %6075 = vmatpush.bf16.msrb.mxu3 %v6820_v9 }
 0xa5c   : > { %v5749_v34 = vmul.f32 0.70710677, %v12333_v51  ;;  %7220 = vpow2.f32 %v5783_v8  ;;  %v7213_v55 = vpop.eup %7212  ;;  %v5727_v22 = vmul.f32 %v12341_v6, %v5719_v63  ;;  %v5747_v12 = vmul.f32 0.70710677, %v12353_v31  ;;  %v6844_v13 = vld [vmem:[%s7515_s26 + $0xd8] sm:$0xff]  ;;  %6089 = vmatpush.bf16.msra.mxu0 %v6828_v43  ;;  %v6843_v17 = vld [vmem:[%s7515_s26 + $0xd0] sm:$0xff] }
 0xa5d   : > { %v5731_v15 = vmul.f32 %v12388_v60, %v5723_v50  ;;  %v5702_v48 = vmul.f32 %v12418_v16, %v5694_v62  ;;  %v7215_v52 = vpop.eup %7214  ;;  %7222 = vpow2.f32 %v12412_v32  ;;  %v5756_v44 = vmul.f32 %v5748_v10, %v5732_v46  ;;  %6117 = vmatpush.bf16.msra.mxu2 %v6844_v13  ;;  %v6826_v49 = vld [vmem:[%s7515_s26 + $0x48] sm:$0xff] }
 0xa5e   : > { %v5757_v51 = vmul.f32 %v5749_v34, %v5733_v26  ;;  %v5789_v53 = vmul.f32 1.442695, %v5774_v47  ;;  %v7217_v5 = vpop.eup %7216  ;;  %v5743_v6 = vmul.f32 0.70710677, %v12317_v38  ;;  %v5730_v60 = vmul.f32 %v12344_v42, %v5722_v23  ;;  %6104 = vmatpush.bf16.msra.mxu1 %v6835_v56  ;;  %v6834_v8 = vld [vmem:[%s7515_s26 + $0x88] sm:$0xff] }
 0xa5f   : > { %v5755_v0 = vmul.f32 %v5747_v12, %v5731_v15  ;;  %v6626_v31 = vadd.f32 -0.28449672, %v5702_v48  ;;  %v5752_v58 = vmul.f32 %v12374_v57, %v5728_v36  ;;  %v5753_v32 = vmul.f32 %v12384_v30, %v5729_v1  ;;  %6076 = vmatpush.bf16.msrb.mxu3 %v6819_v21  ;;  %v6842_v36 = vld [vmem:[%s7515_s26 + $0xc8] sm:$0xff] }
 0xa60   : > { %7224 = vpow2.f32 %v12421_v11  ;;  %v7219_v35 = vpop.eup %7218  ;;  %v5751_v38 = vmul.f32 %v5743_v6, %v5727_v22  ;;  %v5746_v42 = vmul.f32 0.70710677, %v12319_v4  ;;  %v5796_v28 = vmul.f32 %v7217_v5, %v5756_v44  ;;  %6090 = vmatpush.bf16.msra.mxu0 %v6827_v41 }
 0xa61   : > { %v5718_v2 = vmul.f32 %v12418_v16, %v6626_v31  ;;  %v5797_v57 = vmul.f32 %v7219_v35, %v5757_v51  ;;  %7226 = vpow2.f32 %v5789_v53  ;;  %v5792_v63 = vmul.f32 %v7213_v55, %v5752_v58  ;;  %6118 = vmatpush.bf16.msra.mxu2 %v6843_v17 }
 0xa62   : > { %v7221_v54 = vpop.eup %7220  ;;  %v5754_v30 = vmul.f32 %v5746_v42, %v5730_v60  ;;  %v5793_v4 = vmul.f32 %v7215_v52, %v5753_v32  ;;  %v5740_v37 = vmax.f32 %v12315_v3, 0.0  ;;  %v5741_v39 = vmax.f32 %v12328_v18, 0.0  ;;  %6105 = vmatpush.bf16.msra.mxu1 %v6834_v8 }
 0xa63   : > { %v5795_v25 = vmul.f32 %v7221_v54, %v5755_v0  ;;  %v5726_v11 = vadd.f32 0.2548296, %v5718_v2  ;;  %v7223_v7 = vpop.eup %7222  ;;  %v5739_v46 = vmax.f32 %v12347_v20, 0.0  ;;  %v5750_v47 = vmul.f32 0.70710677, %v12376_v27  ;;  %v6833_v27 = vld [vmem:[%s7515_s26 + $0x80] sm:$0xff]  ;;  %6077 = vmatpush.bf16.msrb.mxu3 %v6818_v40 }
 0xa64   : > { %v5791_v23 = vmul.f32 %v7223_v7, %v5751_v38  ;;  %v5736_v62 = vmax.f32 %v12293_v61, 0.0  ;;  %v5737_v3 = vmax.f32 %v12299_v29, 0.0  ;;  %v5804_v18 = vsub.f32 %v5740_v37, %v5796_v28  ;;  %6091 = vmatpush.bf16.msra.mxu0 %v6826_v49  ;;  %v6817_v61 = vld [vmem:[%s7515_s26] sm:$0xff] }
 0xa65   : > { %v5734_v26 = vmul.f32 %v12418_v16, %v5726_v11  ;;  %v5805_v43 = vsub.f32 %v5741_v39, %v5797_v57  ;;  %v5735_v59 = vmax.f32 %v12301_v14, 0.0  ;;  %v5803_v20 = vsub.f32 %v5739_v46, %v5795_v25  ;;  %v6825_v16 = vld [vmem:[%s7515_s26 + $0x40] sm:$0xff]  ;;  %6119 = vmatpush.bf16.msra.mxu2 %v6842_v36 }
 0xa66   : > { %v7225_v50 = vpop.eup %7224  ;;  %v5800_v9 = vsub.f32 %v5736_v62, %v5792_v63  ;;  %v5801_v55 = vsub.f32 %v5737_v3, %v5793_v4  ;;  %v5738_v29 = vmax.f32 %v12305_v24, 0.0  ;;  %v5742_v15 = vmax.f32 %v12364_v33, 0.0  ;;  %v6841_v14 = vld [vmem:[%s7515_s26 + $0xc0] sm:$0xff]  ;;  %6106 = vmatpush.bf16.msra.mxu1 %v6833_v27 }
 0xa67   : > { %v5794_v1 = vmul.f32 %v7225_v50, %v5754_v30  ;;  %v5758_v10 = vmul.f32 %v5750_v47, %v5734_v26  ;;  %v7227_v34 = vpop.eup %7226  ;;  %v5799_v22 = vsub.f32 %v5735_v59, %v5791_v23  ;;  %6078 = vmatpush.bf16.msrb.mxu3 %v6817_v61  ;;  %v6929_v24 = vld [vmem:[%s13444_s17] ss:$0 sm:$0xff] }
 0xa68   : > { %v5808_v48 = vpack.c.bf16 %v5804_v18, %v5800_v9  ;;  %v5809_v13 = vpack.c.bf16 %v5805_v43, %v5801_v55  ;;  %6092 = vmatpush.bf16.msra.mxu0 %v6825_v16 }
 0xa69   : > { %v5798_v12 = vmul.f32 %v7227_v34, %v5758_v10  ;;  %v5802_v52 = vsub.f32 %v5738_v29, %v5794_v1  ;;  %v5807_v51 = vpack.c.bf16 %v5803_v20, %v5799_v22  ;;  %6120 = vmatpush.bf16.msra.mxu2 %v6841_v14 }
 0xa6a   : > { %6107 = vmatmul.bf16.vlgmr.msra.gmra.mxu1 %v5809_v13 }
 0xa6b   : > { %v5806_v44 = vsub.f32 %v5742_v15, %v5798_v12  ;;  %6093 = vmatmul.bf16.vlgmr.msra.gmra.mxu0 %v5808_v48  ;;  %6079 = vmatmul.bf16.vlgmr.msrb.gmra.mxu3 %v5807_v51 }
 0xa6d   : > { %v5810_v53 = vpack.c.bf16 %v5806_v44, %v5802_v52 }
 0xa6f   : > { %6121 = vmatmul.bf16.vlgmr.msra.gmra.mxu2 %v5810_v53 }
 0xae7   : > { %v6108_v60 = vpop.f32.mrf.mxu1 }
 0xae8   : > { %v6094_v33 = vpop.f32.mrf.mxu0 }
 0xaee   : > { %v6080_v5 = vpop.f32.mrf.mxu3 }
 0xaef   : > { %v6081_v6 = vadd.f32 %v6929_v24, %v6080_v5  ;;  %v6110_v42 = vpop.f32.mrf.mxu1 }
 0xaf0   : > { %v6096_v35 = vpop.f32.mrf.mxu0 }
 0xaf1   : > { %v6095_v0 = vadd.f32 %v6094_v33, %v6081_v6 }
 0xaf2   : > { %v6122_v31 = vpop.f32.mrf.mxu2 }
 0xaf3   : > { %v6109_v41 = vadd.f32 %v6108_v60, %v6095_v0 }
 0xaf5   : > { %v6123_v56 = vadd.f32 %v6122_v31, %v6109_v41 }
 0xaf6   : > { %v6082_v58 = vpop.f32.mrf.mxu3 }
 0xaf7   : > { %v6127_v32 = vadd.f32 %v6123_v56, %v12179_v19  ;;  %v6083_v21 = vadd.f32 %v6929_v24, %v6082_v58 }
 0xaf9   : > { %6129 = vst [vmem:[%s12736_s21] sm:$0xff] %v6127_v32  ;;  %v6097_v38 = vadd.f32 %v6096_v35, %v6083_v21 }
 0xafa   : > { %v6124_v17 = vpop.f32.mrf.mxu2 }
 0xafb   : > { %v6111_v2 = vadd.f32 %v6110_v42, %v6097_v38 }
 0xafd   : > { %v6125_v54 = vadd.f32 %v6124_v17, %v6111_v2 }
 0xaff   : > { %v6128_v28 = vadd.f32 %v6125_v54, %v12169_v45 }
 0xb01   : > { %6130 = vst [vmem:[%s12736_s21 + $0x8] sm:$0xff] %v6128_v28 }
 0xb02 PF: > { %s13445_s18 = sld [smem:[#allocation10_spill]]  ;;  %s13450_s29 = smov %s7328_s30 }
 0xb03   : > { %s13446_s15 = sld [smem:[#allocation8_spill]] }
 0xb04   : > { %s13447_s2 = sld [smem:[#allocation12_spill]] }
 0xb05   : > { %s13448_s16 = sld [smem:[#allocation9_spill]] }
 0xb06   : > { %s13449_s17 = sld [smem:[#allocation11_spill]] }
 0xb08   : > { %s30_s18 = sadd.s32 1, %s13445_s18  }
 0xb09   : > { %p27_p1 = scmp.ge.s32.totalorder %s30_s18, 4   ;;  %s13451_s30 = smov %s13446_s15 }
 0xb0a   : > { %s13452_s15 = smov %s13447_s2 }
 0xb0b   :  { %29 = sbr.rel (!%p27_p1) target bundleno = 14 (0xe), region = 169 }
 0xb10   :  { %6153 = vsyncpa [#allocation3], 1 }
 0xb11   :  { %6155 = vsyncpa [#allocation3 + $0x1], 1 }
 0xb12   :  { %6156 = vsyncpa [#allocation5], 1 }
 0xb13   :  { %6158 = vsyncpa [#allocation5 + $0x1], 1 }

</bundles_post_ra>
